<compile_context>
chip_gen: v6e
topology: v6e:2x2x1
jax: 0.10.0
libtpu: 0.0.40
codegen_flags: <defaults>
</compile_context>

<pallas_src>
import math
import numpy as np

import jax
import jax.numpy as jnp
from jax.experimental import pallas as pl
from jax.experimental.pallas import tpu as pltpu

LANE = 128


def _round_up(x, m):
    return ((x + m - 1) // m) * m


def _vmem_capacity_bytes():
    # Generation-aware VMEM capacity (v5e/v6e: 128 MiB, v7x: 64 MiB per TC).
    try:
        return int(pltpu.get_tpu_info().vmem_capacity_bytes)
    except Exception:
        return 64 << 20  # conservative (v7x-sized) fallback


# ----------------------------------------------------------------------------
# Parameter initialization (mirrors NeuMF.__init__; "module" layout)
# ----------------------------------------------------------------------------
def init_neumf_params(key, nb_users, nb_items, mf_dim, mlp_layer_sizes):
    assert mlp_layer_sizes[0] % 2 == 0, "mlp_layer_sizes[0] % 2 != 0"
    keys = iter(jax.random.split(key, 64))

    def normal(shape):
        return 0.01 * jax.random.normal(next(keys), shape, dtype=jnp.float32)

    def uniform(shape, limit):
        return jax.random.uniform(
            next(keys), shape, minval=-limit, maxval=limit, dtype=jnp.float32
        )

    params = {}
    params["mf_user_embed"] = normal((nb_users, mf_dim))
    params["mf_item_embed"] = normal((nb_items, mf_dim))
    params["mlp_user_embed"] = normal((nb_users, mlp_layer_sizes[0] // 2))
    params["mlp_item_embed"] = normal((nb_items, mlp_layer_sizes[0] // 2))

    # MLP Linear layers: glorot-uniform weights, PyTorch-default uniform biases.
    mlp = []
    for i in range(1, len(mlp_layer_sizes)):
        fan_in, fan_out = mlp_layer_sizes[i - 1], mlp_layer_sizes[i]
        limit = math.sqrt(6.0 / (fan_in + fan_out))
        w = uniform((fan_in, fan_out), limit)            # stored as [in, out]
        b = uniform((1, fan_out), 1.0 / math.sqrt(fan_in))
        mlp.append((w, b))
    params["mlp"] = mlp

    # Final Linear: lecun-uniform weights, input = [mf_dim + last_mlp].
    fan_in = mlp_layer_sizes[-1] + mf_dim
    limit = math.sqrt(3.0 / fan_in)
    wf = uniform((fan_in, 1), limit)                     # [in, 1]
    params["wf_mf"] = wf[:mf_dim, :]
    params["wf_mlp"] = wf[mf_dim:, :]
    params["bf"] = uniform((1, 1), 1.0 / math.sqrt(fan_in))
    return params


# ----------------------------------------------------------------------------
# Kernel-layout params: split first/final layers, TRUE (unpadded) widths,
# optionally narrow matmul operands to bf16 (biases / final row stay f32).
# ----------------------------------------------------------------------------
def prepare_kernel_params(params, mf_dim, mlp_layer_sizes,
                          compute_dtype=jnp.bfloat16):
    half = mlp_layer_sizes[0] // 2
    kp = {
        "mf_user_embed": params["mf_user_embed"].astype(compute_dtype),
        "mf_item_embed": params["mf_item_embed"].astype(compute_dtype),
        "mlp_user_embed": params["mlp_user_embed"].astype(compute_dtype),
        "mlp_item_embed": params["mlp_item_embed"].astype(compute_dtype),
    }

    # First MLP layer split (user half / item half) so the concat never happens.
    w0, b0 = params["mlp"][0]
    kp["w0u"] = w0[:half].astype(compute_dtype)          # (half, L1)
    kp["w0i"] = w0[half:].astype(compute_dtype)          # (half, L1)
    kp["b0"] = b0.astype(jnp.float32)                    # (1, L1)

    kp["mlp_rest"] = [(w.astype(compute_dtype), b.astype(jnp.float32))
                      for (w, b) in params["mlp"][1:]]

    # Final-layer weights stored as (1, K) rows: VPU multiply + lane reduction
    # instead of an N=1 MXU matmul.  Kept f32 (tiny).
    kp["wf_mf"] = params["wf_mf"].T.astype(jnp.float32)    # (1, mf_dim)
    kp["wf_mlp"] = params["wf_mlp"].T.astype(jnp.float32)  # (1, last_hidden)
    kp["bf"] = params["bf"].astype(jnp.float32)
    return kp


# ----------------------------------------------------------------------------
# Kernel + wrapper builder (built once per config, returns a jitted forward)
# ----------------------------------------------------------------------------
def build_neumf_forward(mf_dim, mlp_layer_sizes, *, sigmoid=False,
                        block_b=1024, compute_dtype=jnp.bfloat16):
    assert mlp_layer_sizes[0] % 2 == 0
    assert block_b % LANE == 0
    n_mlp = len(mlp_layer_sizes) - 1
    half = mlp_layer_sizes[0] // 2
    hid = list(mlp_layer_sizes[1:])
    fuse_final_reduce = (mf_dim == hid[-1])   # one XLU reduce instead of two
    vmem_cap = _vmem_capacity_bytes()

    def kernel(xmf_ref, xmlpu_ref, xmlpi_ref, *rest):
        # rest = [w0u, w0i, b0, (w, b) * (n_mlp - 1), wf_mf, wf_mlp, bf, out]
        bb = xmf_ref.shape[0]
        w0u, w0i, b0 = rest[0][...], rest[1][...], rest[2][...]
        # First MLP layer on the split halves (== Linear on concat(xmlpu, xmlpi)).
        h = (jnp.dot(xmlpu_ref[...], w0u, preferred_element_type=jnp.float32)
             + jnp.dot(xmlpi_ref[...], w0i, preferred_element_type=jnp.float32)
             + b0)
        h = jnp.maximum(h, 0.0)
        idx = 3
        for _ in range(n_mlp - 1):
            w, b = rest[idx][...], rest[idx + 1][...]
            idx += 2
            h = jnp.maximum(
                jnp.dot(h.astype(compute_dtype), w,
                        preferred_element_type=jnp.float32) + b, 0.0)
        wf_mf = rest[idx][...]
        wf_mlp = rest[idx + 1][...]
        bf_ref = rest[idx + 2]
        out_ref = rest[idx + 3]

        # MF path was already multiplied in the XLA gather fusion.
        xmf = xmf_ref[...].astype(jnp.float32)

        # Final Linear on concat([xmf, h]) in split-weight form: VPU multiply +
        # cross-lane (XLU) reduction (fused into one reduce when widths match).
        if fuse_final_reduce:
            logit = jnp.sum(xmf * wf_mf + h * wf_mlp, axis=-1)
        else:
            logit = jnp.sum(xmf * wf_mf, axis=-1) + jnp.sum(h * wf_mlp, axis=-1)
        logit = logit.reshape(1, bb) + bf_ref[...]        # (1, bb), lane-dense
        if sigmoid:
            logit = jax.nn.sigmoid(logit)
        out_ref[...] = logit.astype(out_ref.dtype)

    def _tile_rows(B):
        if B > block_b:
            return block_b
        if B > 2 * LANE:
            # v7x has 2 TensorCores sharded over the "parallel" grid axis:
            # prefer >= 2 lane-dense tiles when the batch is big enough.
            return _round_up((B + 1) // 2, LANE)
        return _round_up(max(B, 1), 8)        # tiny batch: one small tile

    def fwd(kparams, user, item):
        B = user.shape[0]
        bb = _tile_rows(B)
        B_pad = _round_up(B, bb)
        grid = (B_pad // bb,)

        # Embedding gathers stay in XLA for now (see TODO at top of file), but
        # the MF product + dtype cast are fused into the gather so only three
        # unpadded streams reach the kernel.
        xmf = (jnp.take(kparams["mf_user_embed"], user, axis=0)
               * jnp.take(kparams["mf_item_embed"], item, axis=0)
               ).astype(compute_dtype)
        xmlpu = jnp.take(kparams["mlp_user_embed"], user, axis=0)
        xmlpi = jnp.take(kparams["mlp_item_embed"], item, axis=0)
        if B_pad != B:
            pad = ((0, B_pad - B), (0, 0))
            xmf, xmlpu, xmlpi = (jnp.pad(a, pad) for a in (xmf, xmlpu, xmlpi))

        def act_spec(width):
            # True (unpadded) width: block last dim == full array dim is legal.
            return pl.BlockSpec((bb, width), lambda i: (i, 0))

        in_specs = [act_spec(mf_dim), act_spec(half), act_spec(half)]
        flat = [xmf, xmlpu, xmlpi]

        consts = [kparams["w0u"], kparams["w0i"], kparams["b0"]]
        for w, b in kparams["mlp_rest"]:
            consts += [w, b]
        consts += [kparams["wf_mf"], kparams["wf_mlp"], kparams["bf"]]
        for c in consts:   # grid-invariant full-array blocks (stay resident)
            in_specs.append(pl.BlockSpec(c.shape, lambda i: (0, 0)))
            flat.append(c)

        out_specs = pl.BlockSpec((1, bb), lambda i: (0, i))
        out_shape = jax.ShapeDtypeStruct((1, B_pad), jnp.float32)

        # VMEM budget: double-buffered activation tiles + (double-buffered)
        # resident weights + output tile + intermediates, clamped to this
        # generation's physical capacity minus headroom.
        act_item = np.dtype(compute_dtype).itemsize
        act_tile = bb * (mf_dim + 2 * half) * act_item
        wgt_bytes = sum(int(np.prod(c.shape)) * np.dtype(c.dtype).itemsize
                        for c in consts)
        out_tile = bb * 4
        scratch = 4 * bb * max(hid + [mf_dim]) * 4
        needed = 2 * (act_tile + wgt_bytes + out_tile) + scratch + (8 << 20)
        cap = max(32 << 20, vmem_cap - (16 << 20))
        vmem_limit = int(min(max(needed, 16 << 20), cap))

        out = pl.pallas_call(
            kernel,
            grid=grid,
            in_specs=in_specs,
            out_specs=out_specs,
            out_shape=out_shape,
            compiler_params=pltpu.CompilerParams(
                dimension_semantics=("parallel",),
                vmem_limit_bytes=vmem_limit,
            ),
        )(*flat)
        return out[0, :B].reshape(B, 1)

    return jax.jit(fwd)


# ----------------------------------------------------------------------------
# Pure-JAX reference (uses the unsplit "module" params)
# ----------------------------------------------------------------------------
def neumf_reference(params, user, item, sigmoid=False):
    xmfu = jnp.take(params["mf_user_embed"], user, axis=0)
    xmfi = jnp.take(params["mf_item_embed"], item, axis=0)
    xmf = xmfu * xmfi
    xmlpu = jnp.take(params["mlp_user_embed"], user, axis=0)
    xmlpi = jnp.take(params["mlp_item_embed"], item, axis=0)
    h = jnp.concatenate((xmlpu, xmlpi), axis=1)
    for w, b in params["mlp"]:
        h = jnp.maximum(h @ w + b, 0.0)
    x = jnp.concatenate((xmf, h), axis=1)
    wf = jnp.concatenate((params["wf_mf"], params["wf_mlp"]), axis=0)
    out = x @ wf + params["bf"]
    if sigmoid:
        out = jax.nn.sigmoid(out)
    return out


if __name__ == "__main__":
    # Small, forward-consistent sizes.
    nb_users, nb_items = 64, 96
    mf_dim = 16
    mlp_layer_sizes = [32, 32, 16]   # mlp_layer_sizes[0] must be even
    batch = 1500                     # -> 2 grid steps at block_b=1024 (+ padding)
    block_b = 1024

    key = jax.random.PRNGKey(0)
    k_params, k_user, k_item = jax.random.split(key, 3)
    params = init_neumf_params(k_params, nb_users, nb_items, mf_dim, mlp_layer_sizes)

    user = jax.random.randint(k_user, (batch,), 0, nb_users, dtype=jnp.int32)
    item = jax.random.randint(k_item, (batch,), 0, nb_items, dtype=jnp.int32)

    ref = neumf_reference(params, user, item, sigmoid=False)

    # f32 operand path.  Tolerance accounts for the TPU's default f32 matmul
    # precision (bf16 MXU passes) possibly differing between XLA and Mosaic.
    fwd_f32 = build_neumf_forward(mf_dim, mlp_layer_sizes, sigmoid=False,
                                  block_b=block_b, compute_dtype=jnp.float32)
    kp_f32 = prepare_kernel_params(params, mf_dim, mlp_layer_sizes, jnp.float32)
    out_f32 = jax.block_until_ready(fwd_f32(kp_f32, user, item))
    np.testing.assert_allclose(np.asarray(out_f32), np.asarray(ref),
                               rtol=2e-3, atol=5e-3)
    assert out_f32.shape == (batch, 1) and out_f32.dtype == jnp.float32

    # Default path: bf16 operands / f32 accumulation (mem-bound win on all
    # generations) — looser tolerance vs the f32 reference.
    fwd_bf16 = build_neumf_forward(mf_dim, mlp_layer_sizes, sigmoid=False,
                                   block_b=block_b)
    kp_bf16 = prepare_kernel_params(params, mf_dim, mlp_layer_sizes)
    out_bf16 = jax.block_until_ready(fwd_bf16(kp_bf16, user, item))
    np.testing.assert_allclose(np.asarray(out_bf16), np.asarray(ref),
                               rtol=5e-2, atol=5e-2)
    assert out_bf16.shape == (batch, 1)

    print("KERNEL_OK")
</pallas_src>

<mosaic_0001>
module attributes {stable_mosaic.version = 11 : i64} {
  func.func @kernel(%arg0: i32, %arg1: memref<1024x16xf32, #tpu.memory_space<vmem>>, %arg2: memref<1024x16xf32, #tpu.memory_space<vmem>>, %arg3: memref<1024x16xf32, #tpu.memory_space<vmem>>, %arg4: memref<16x32xf32, #tpu.memory_space<vmem>>, %arg5: memref<16x32xf32, #tpu.memory_space<vmem>>, %arg6: memref<1x32xf32, #tpu.memory_space<vmem>>, %arg7: memref<32x16xf32, #tpu.memory_space<vmem>>, %arg8: memref<1x16xf32, #tpu.memory_space<vmem>>, %arg9: memref<1x16xf32, #tpu.memory_space<vmem>>, %arg10: memref<1x16xf32, #tpu.memory_space<vmem>>, %arg11: memref<1x1xf32, #tpu.memory_space<vmem>>, %arg12: memref<1x1024xf32, #tpu.memory_space<vmem>>) attributes {dimension_semantics = [#tpu.dimension_semantics<parallel>], iteration_bounds = array<i64: 2>, scalar_prefetch = 0 : i64, scratch_operands = 0 : i64, tpu.core_type = #tpu.core_type<tc>, window_params = [{transform_indices = @transform_0, window_bounds = array<i64: 1024, 16>}, {transform_indices = @transform_1, window_bounds = array<i64: 1024, 16>}, {transform_indices = @transform_2, window_bounds = array<i64: 1024, 16>}, {pipeline_mode = #tpu.pipeline_mode<synchronous>, transform_indices = @transform_3, window_bounds = array<i64: 16, 32>}, {pipeline_mode = #tpu.pipeline_mode<synchronous>, transform_indices = @transform_4, window_bounds = array<i64: 16, 32>}, {pipeline_mode = #tpu.pipeline_mode<synchronous>, transform_indices = @transform_5, window_bounds = array<i64: 1, 32>}, {pipeline_mode = #tpu.pipeline_mode<synchronous>, transform_indices = @transform_6, window_bounds = array<i64: 32, 16>}, {pipeline_mode = #tpu.pipeline_mode<synchronous>, transform_indices = @transform_7, window_bounds = array<i64: 1, 16>}, {pipeline_mode = #tpu.pipeline_mode<synchronous>, transform_indices = @transform_8, window_bounds = array<i64: 1, 16>}, {pipeline_mode = #tpu.pipeline_mode<synchronous>, transform_indices = @transform_9, window_bounds = array<i64: 1, 16>}, {pipeline_mode = #tpu.pipeline_mode<synchronous>, transform_indices = @transform_10, window_bounds = array<i64: 1, 1>}, {transform_indices = @transform_11, window_bounds = array<i64: 1, 1024>}]} {
    %c0 = arith.constant 0 : index
    %c0_0 = arith.constant 0 : index
    %0 = vector.load %arg4[%c0, %c0_0] : memref<16x32xf32, #tpu.memory_space<vmem>>, vector<16x32xf32>
    %c0_1 = arith.constant 0 : index
    %c0_2 = arith.constant 0 : index
    %1 = vector.load %arg5[%c0_1, %c0_2] : memref<16x32xf32, #tpu.memory_space<vmem>>, vector<16x32xf32>
    %c0_3 = arith.constant 0 : index
    %c0_4 = arith.constant 0 : index
    %2 = vector.load %arg6[%c0_3, %c0_4] : memref<1x32xf32, #tpu.memory_space<vmem>>, vector<1x32xf32>
    %c0_5 = arith.constant 0 : index
    %c0_6 = arith.constant 0 : index
    %3 = vector.load %arg2[%c0_5, %c0_6] : memref<1024x16xf32, #tpu.memory_space<vmem>>, vector<1024x16xf32>
    %cst = arith.constant dense<0.000000e+00> : vector<1024x32xf32>
    %4 = tpu.matmul %3, %0, %cst {dimension_numbers = #tpu.dot_dimension_numbers<[1], [0], [0], [1], [0, 0, 1, 1], [], []>} : vector<1024x16xf32>, vector<16x32xf32>, vector<1024x32xf32> -> vector<1024x32xf32>
    %c0_7 = arith.constant 0 : index
    %c0_8 = arith.constant 0 : index
    %5 = vector.load %arg3[%c0_7, %c0_8] : memref<1024x16xf32, #tpu.memory_space<vmem>>, vector<1024x16xf32>
    %cst_9 = arith.constant dense<0.000000e+00> : vector<1024x32xf32>
    %6 = tpu.matmul %5, %1, %cst_9 {dimension_numbers = #tpu.dot_dimension_numbers<[1], [0], [0], [1], [0, 0, 1, 1], [], []>} : vector<1024x16xf32>, vector<16x32xf32>, vector<1024x32xf32> -> vector<1024x32xf32>
    %7 = arith.addf %4, %6 : vector<1024x32xf32>
    %8 = vector.broadcast %2 : vector<1x32xf32> to vector<1024x32xf32>
    %9 = arith.addf %7, %8 : vector<1024x32xf32>
    %cst_10 = arith.constant 0.000000e+00 : f32
    %10 = vector.broadcast %cst_10 : f32 to vector<1024x32xf32>
    %11 = arith.maximumf %9, %10 : vector<1024x32xf32>
    %c0_11 = arith.constant 0 : index
    %c0_12 = arith.constant 0 : index
    %12 = vector.load %arg7[%c0_11, %c0_12] : memref<32x16xf32, #tpu.memory_space<vmem>>, vector<32x16xf32>
    %c0_13 = arith.constant 0 : index
    %c0_14 = arith.constant 0 : index
    %13 = vector.load %arg8[%c0_13, %c0_14] : memref<1x16xf32, #tpu.memory_space<vmem>>, vector<1x16xf32>
    %cst_15 = arith.constant dense<0.000000e+00> : vector<1024x16xf32>
    %14 = tpu.matmul %11, %12, %cst_15 {dimension_numbers = #tpu.dot_dimension_numbers<[1], [0], [0], [1], [0, 0, 1, 1], [], []>} : vector<1024x32xf32>, vector<32x16xf32>, vector<1024x16xf32> -> vector<1024x16xf32>
    %15 = vector.broadcast %13 : vector<1x16xf32> to vector<1024x16xf32>
    %16 = arith.addf %14, %15 : vector<1024x16xf32>
    %cst_16 = arith.constant 0.000000e+00 : f32
    %17 = vector.broadcast %cst_16 : f32 to vector<1024x16xf32>
    %18 = arith.maximumf %16, %17 : vector<1024x16xf32>
    %c0_17 = arith.constant 0 : index
    %c0_18 = arith.constant 0 : index
    %19 = vector.load %arg9[%c0_17, %c0_18] : memref<1x16xf32, #tpu.memory_space<vmem>>, vector<1x16xf32>
    %c0_19 = arith.constant 0 : index
    %c0_20 = arith.constant 0 : index
    %20 = vector.load %arg10[%c0_19, %c0_20] : memref<1x16xf32, #tpu.memory_space<vmem>>, vector<1x16xf32>
    %c0_21 = arith.constant 0 : index
    %c0_22 = arith.constant 0 : index
    %21 = vector.load %arg1[%c0_21, %c0_22] : memref<1024x16xf32, #tpu.memory_space<vmem>>, vector<1024x16xf32>
    %22 = vector.broadcast %19 : vector<1x16xf32> to vector<1024x16xf32>
    %23 = arith.mulf %21, %22 : vector<1024x16xf32>
    %24 = vector.broadcast %20 : vector<1x16xf32> to vector<1024x16xf32>
    %25 = arith.mulf %18, %24 : vector<1024x16xf32>
    %26 = arith.addf %23, %25 : vector<1024x16xf32>
    %cst_23 = arith.constant dense<0.000000e+00> : vector<1024xf32>
    %27 = vector.multi_reduction <add>, %26, %cst_23 [1] : vector<1024x16xf32> to vector<1024xf32>
    %28 = vector.shape_cast %27 : vector<1024xf32> to vector<1x1024xf32>
    %c0_24 = arith.constant 0 : index
    %c0_25 = arith.constant 0 : index
    %29 = vector.load %arg11[%c0_24, %c0_25] : memref<1x1xf32, #tpu.memory_space<vmem>>, vector<1x1xf32>
    %30 = vector.broadcast %29 : vector<1x1xf32> to vector<1x1024xf32>
    %31 = arith.addf %28, %30 : vector<1x1024xf32>
    %c0_26 = arith.constant 0 : index
    %c0_27 = arith.constant 0 : index
    %32 = vector.load %arg12[%c0_26, %c0_27] : memref<1x1024xf32, #tpu.memory_space<vmem>>, vector<1x1024xf32>
    tpu.vector_store %arg12[%c0_26, %c0_27], %31 {strides = array<i32>} : memref<1x1024xf32, #tpu.memory_space<vmem>>, vector<1x1024xf32>,
    return
  }
  func.func @transform_0(%arg0: i32) -> (i32, i32) {
    %c0_i32 = arith.constant 0 : i32
    %c0_i32_0 = arith.constant 0 : i32
    return %arg0, %c0_i32 : i32, i32
  }
  func.func @transform_1(%arg0: i32) -> (i32, i32) {
    %c0_i32 = arith.constant 0 : i32
    %c0_i32_0 = arith.constant 0 : i32
    return %arg0, %c0_i32 : i32, i32
  }
  func.func @transform_2(%arg0: i32) -> (i32, i32) {
    %c0_i32 = arith.constant 0 : i32
    %c0_i32_0 = arith.constant 0 : i32
    return %arg0, %c0_i32 : i32, i32
  }
  func.func @transform_3(%arg0: i32) -> (i32, i32) {
    %c0_i32 = arith.constant 0 : i32
    %c0_i32_0 = arith.constant 0 : i32
    %c0_i32_1 = arith.constant 0 : i32
    return %c0_i32, %c0_i32_0 : i32, i32
  }
  func.func @transform_4(%arg0: i32) -> (i32, i32) {
    %c0_i32 = arith.constant 0 : i32
    %c0_i32_0 = arith.constant 0 : i32
    %c0_i32_1 = arith.constant 0 : i32
    return %c0_i32, %c0_i32_0 : i32, i32
  }
  func.func @transform_5(%arg0: i32) -> (i32, i32) {
    %c0_i32 = arith.constant 0 : i32
    %c0_i32_0 = arith.constant 0 : i32
    %c0_i32_1 = arith.constant 0 : i32
    return %c0_i32, %c0_i32_0 : i32, i32
  }
  func.func @transform_6(%arg0: i32) -> (i32, i32) {
    %c0_i32 = arith.constant 0 : i32
    %c0_i32_0 = arith.constant 0 : i32
    %c0_i32_1 = arith.constant 0 : i32
    return %c0_i32, %c0_i32_0 : i32, i32
  }
  func.func @transform_7(%arg0: i32) -> (i32, i32) {
    %c0_i32 = arith.constant 0 : i32
    %c0_i32_0 = arith.constant 0 : i32
    %c0_i32_1 = arith.constant 0 : i32
    return %c0_i32, %c0_i32_0 : i32, i32
  }
  func.func @transform_8(%arg0: i32) -> (i32, i32) {
    %c0_i32 = arith.constant 0 : i32
    %c0_i32_0 = arith.constant 0 : i32
    %c0_i32_1 = arith.constant 0 : i32
    return %c0_i32, %c0_i32_0 : i32, i32
  }
  func.func @transform_9(%arg0: i32) -> (i32, i32) {
    %c0_i32 = arith.constant 0 : i32
    %c0_i32_0 = arith.constant 0 : i32
    %c0_i32_1 = arith.constant 0 : i32
    return %c0_i32, %c0_i32_0 : i32, i32
  }
  func.func @transform_10(%arg0: i32) -> (i32, i32) {
    %c0_i32 = arith.constant 0 : i32
    %c0_i32_0 = arith.constant 0 : i32
    %c0_i32_1 = arith.constant 0 : i32
    return %c0_i32, %c0_i32_0 : i32, i32
  }
  func.func @transform_11(%arg0: i32) -> (i32, i32) {
    %c0_i32 = arith.constant 0 : i32
    %c0_i32_0 = arith.constant 0 : i32
    return %c0_i32, %arg0 : i32, i32
  }
}

</mosaic_0001>

<bundles_post_ra>
// kernel: fwd.1
= control target key start
LH: loop header
LB: loop body
LE: loop exit
PB: predicated region body
PF: predicated region fallthrough
CT: control target
= control target key end

     0   :  { %s18571_s19 = smov 0   ;;  %s24842_s0 = inlined_call_operand.vmem [shape: f32[2048,16], index: 0, kind: input, shape index: {}]   ;;  %s24843_s1 = inlined_call_operand.vmem [shape: f32[2048,16], index: 1, kind: input, shape index: {}]   ;;  %s24844_s2 = inlined_call_operand.vmem [shape: f32[2048,16], index: 2, kind: input, shape index: {}]   ;;  %s24845_s3 = inlined_call_operand.vmem [shape: f32[16,32], index: 3, kind: input, shape index: {}]   ;;  %s24846_s4 = inlined_call_operand.vmem [shape: f32[16,32], index: 4, kind: input, shape index: {}]   ;;  %s24847_s5 = inlined_call_operand.vmem [shape: f32[1,32], index: 5, kind: input, shape index: {}]   ;;  %s24848_s6 = inlined_call_operand.vmem [shape: f32[32,16], index: 6, kind: input, shape index: {}]   ;;  %s24849_s7 = inlined_call_operand.vmem [shape: f32[1,16], index: 7, kind: input, shape index: {}]   ;;  %s24850_s8 = inlined_call_operand.vmem [shape: f32[1,16], index: 8, kind: input, shape index: {}]   ;;  %s24851_s9 = inlined_call_operand.vmem [shape: f32[1,16], index: 9, kind: input, shape index: {}]   ;;  %s24852_s10 = inlined_call_operand.<no memory space> [shape: f32[1,1], index: 10, kind: input, shape index: {}]   ;;  %s24853_s11 = inlined_call_operand.vmem [shape: f32[1,2048], index: 11, kind: output, shape index: {}]  }
   0x1   :  { %v16_v0 = vstv %s24852_s10 }
   0x2   :  { %17 = vst [vmem:[#allocation2] sm:$0x1] %v16_v0 }
   0x3 LB: > { %s17082_s20 = sadd.s32 4294967295, %s18504_s19   ;;  %p17086_p0 = scmp.ge.s32.totalorder %s18504_s19, 1  ;;  %s18504_s19 = sphi %s18571_s19, %s23_s19  }
   0x4   : > { %p362_p1 = scmp.lt.s32.totalorder %s18504_s19, 3 }
   0x6   : > { %p363_p2 = pnand %p17086_p0, %p362_p1 }
   0x8   : > { %366 = sbr.rel (%p363_p2) target bundleno = 2359 (0x937), region = 64 }
   0xd   : > { %v437_v1 = vld [vmem:[%s24846_s4 + $0x8] sm:$0xff]  ;;  %v436_v2 = vld [vmem:[%s24846_s4] sm:$0xff]  ;;  %s17087_s24 = sshll.u32 %s17082_s20, 7  ;;  %vm695_vm0 = vcmask 130048   ;;  %vm3147_vm1 = vcmask 261120   ;;  %vm16304_vm2 = vcmask 130112  }
   0xe   : > { %18468 = vmatprep.subr.mxu1 %v437_v1  ;;  %p412_p3 = scmp.lt.s32.totalorder %s17087_s24, 255  ;;  %17876 = vmatprep.subr.mxu0 %v437_v1  ;;  %v435_v3 = vld [vmem:[%s24845_s3 + $0x8] sm:$0xff]  ;;  %v434_v7 = vld [vmem:[%s24845_s3] sm:$0xff]  ;;  %vm16311_vm3 = vcmask 195712   ;;  %vm16318_vm4 = vcmask 261312   ;;  %vm16325_vm5 = vcmask 326912  }
   0xf   : > { %18470 = vmatpush3.msra.mxu1 %v437_v1  ;;  %17877 = vmatpush3.msra.mxu0 %v437_v1  ;;  %vm16332_vm6 = vcmask 392512   ;;  %vm16339_vm7 = vcmask 458112   ;;  %vm16346_vm8 = vcmask 523712   ;;  %vm16353_vm9 = vcmask 589312  }
  0x10   : > { %18469 = vmatprep.subr.mxu1 %v436_v2  ;;  %s25509_s24 = smov (!%p412_p3, %s17087_s24), 255  ;;  %17878 = vmatprep.subr.mxu0 %v436_v2  ;;  %vm16360_vm10 = vcmask 654912   ;;  %vm16367_vm11 = vcmask 720512   ;;  %vm16374_vm12 = vcmask 786112   ;;  %vm16381_vm13 = vcmask 851712  }
  0x11   : > { %18471 = vmatpush3.msra.mxu1 %v436_v2  ;;  %17879 = vmatpush3.msra.mxu0 %v436_v2  ;;  %s18590_s27 = sshll.u32 %s25509_s24, 3  ;;  %vm16388_vm14 = vcmask 917312   ;;  %vm16395_vm15 = vcmask 982912  }
  0x12   : > { %18072 = vmatprep.subr.mxu1 %v435_v3  ;;  %s18596_s30 = scalar_lea.vmem %s24844_s2, %s18590_s27  ;;  %s18838_s22 = scalar_lea.vmem %s24843_s1, %s18590_s27 }
  0x13   : > { %v631_v4 = vld [vmem:[%s18596_s30 + $0x200] sm:$0xff]  ;;  %v632_v5 = vld [vmem:[%s18596_s30 + $0x208] sm:$0xff]  ;;  %v633_v6 = vld [vmem:[%s18596_s30 + $0x210] sm:$0xff]  ;;  %s19652_s14 = scalar_lea.vmem %s24842_s0, %s18590_s27 }
  0x14   : > { %17976 = vmatprep.mubr.msk.f32.mxu1 %vm695_vm0, %v631_v4  ;;  %v634_v8 = vld [vmem:[%s18596_s30 + $0x218] sm:$0xff]  ;;  %v635_v9 = vld [vmem:[%s18596_s30 + $0x220] sm:$0xff]  ;;  %v636_v10 = vld [vmem:[%s18596_s30 + $0x228] sm:$0xff] }
  0x15   : > { %17977 = vmatmul.mubr.msk.f32.vlgmr.msra.gmra.mxu1 %vm695_vm0, %v632_v5  ;;  %v637_v11 = vld [vmem:[%s18596_s30 + $0x230] sm:$0xff]  ;;  %v638_v12 = vld [vmem:[%s18596_s30 + $0x238] sm:$0xff]  ;;  %v639_v13 = vld [vmem:[%s18596_s30 + $0x240] sm:$0xff] }
  0x16   : > { %18073 = vmatpush3.msra.mxu1 %v435_v3  ;;  %17979 = vmatprep.mubr.msk.f32.mxu1 %vm695_vm0, %v633_v6  ;;  %v640_v14 = vld [vmem:[%s18596_s30 + $0x248] sm:$0xff]  ;;  %v641_v15 = vld [vmem:[%s18596_s30 + $0x250] sm:$0xff]  ;;  %v642_v16 = vld [vmem:[%s18596_s30 + $0x258] sm:$0xff] }
  0x17   : > { %18074 = vmatprep.subr.mxu1 %v434_v7  ;;  %v643_v17 = vld [vmem:[%s18596_s30 + $0x260] sm:$0xff]  ;;  %v568_v19 = vld [vmem:[%s18596_s30 + $0x8] sm:$0xff]  ;;  %v569_v20 = vld [vmem:[%s18596_s30 + $0x10] sm:$0xff] }
  0x18   : > { %18075 = vmatpush3.msra.mxu1 %v434_v7  ;;  %v567_v18 = vld [vmem:[%s18596_s30] sm:$0xff]  ;;  %v644_v21 = vld [vmem:[%s18596_s30 + $0x268] sm:$0xff]  ;;  %v645_v22 = vld [vmem:[%s18596_s30 + $0x270] sm:$0xff] }
  0x19   : > { %17980 = vmatmul.mubr.msk.f32.gmra.mxu1 %vm695_vm0, %v634_v8  ;;  %17880 = vmatprep.mubr.msk.f32.mxu0 %vm695_vm0, %v567_v18  ;;  %v570_v23 = vld [vmem:[%s18596_s30 + $0x18] sm:$0xff]  ;;  %v571_v24 = vld [vmem:[%s18596_s30 + $0x20] sm:$0xff]  ;;  %v572_v27 = vld [vmem:[%s18596_s30 + $0x28] sm:$0xff] }
  0x1a   : > { %17982 = vmatprep.mubr.msk.f32.mxu1 %vm695_vm0, %v635_v9  ;;  %17881 = vmatmul.mubr.msk.f32.vlgmr.msra.gmra.mxu0 %vm695_vm0, %v568_v19  ;;  %v646_v25 = vld [vmem:[%s18596_s30 + $0x278] sm:$0xff]  ;;  %v647_v26 = vld [vmem:[%s18596_s30 + $0x280] sm:$0xff]  ;;  %v573_v28 = vld [vmem:[%s18596_s30 + $0x30] sm:$0xff] }
  0x1b   : > { %17883 = vmatprep.mubr.msk.f32.mxu0 %vm695_vm0, %v569_v20  ;;  %v648_v29 = vld [vmem:[%s18596_s30 + $0x288] sm:$0xff]  ;;  %v649_v30 = vld [vmem:[%s18596_s30 + $0x290] sm:$0xff]  ;;  %v574_v31 = vld [vmem:[%s18596_s30 + $0x38] sm:$0xff] }
  0x1c   : > { %v575_v32 = vld [vmem:[%s18596_s30 + $0x40] sm:$0xff]  ;;  %v650_v33 = vld [vmem:[%s18596_s30 + $0x298] sm:$0xff]  ;;  %v576_v35 = vld [vmem:[%s18596_s30 + $0x48] sm:$0xff] }
  0x1d   : > { %17983 = vmatmul.mubr.msk.f32.gmra.mxu1 %vm695_vm0, %v636_v10  ;;  %v651_v34 = vld [vmem:[%s18596_s30 + $0x2a0] sm:$0xff]  ;;  %v577_v36 = vld [vmem:[%s18596_s30 + $0x50] sm:$0xff]  ;;  %v652_v37 = vld [vmem:[%s18596_s30 + $0x2a8] sm:$0xff] }
  0x1e   : > { %17985 = vmatprep.mubr.msk.f32.mxu1 %vm695_vm0, %v637_v11  ;;  %17884 = vmatmul.mubr.msk.f32.gmra.mxu0 %vm695_vm0, %v570_v23  ;;  %v653_v38 = vld [vmem:[%s18596_s30 + $0x2b0] sm:$0xff]  ;;  %v578_v39 = vld [vmem:[%s18596_s30 + $0x58] sm:$0xff]  ;;  %v579_v40 = vld [vmem:[%s18596_s30 + $0x60] sm:$0xff] }
  0x1f   : > { %17886 = vmatprep.mubr.msk.f32.mxu0 %vm695_vm0, %v571_v24  ;;  %v654_v41 = vld [vmem:[%s18596_s30 + $0x2b8] sm:$0xff]  ;;  %v655_v42 = vld [vmem:[%s18596_s30 + $0x2c0] sm:$0xff]  ;;  %v580_v43 = vld [vmem:[%s18596_s30 + $0x68] sm:$0xff] }
  0x20   : > { %v581_v44 = vld [vmem:[%s18596_s30 + $0x70] sm:$0xff]  ;;  %v656_v45 = vld [vmem:[%s18596_s30 + $0x2c8] sm:$0xff]  ;;  %v582_v47 = vld [vmem:[%s18596_s30 + $0x78] sm:$0xff] }
  0x21   : > { %17986 = vmatmul.mubr.msk.f32.gmra.mxu1 %vm695_vm0, %v638_v12  ;;  %v657_v46 = vld [vmem:[%s18596_s30 + $0x2d0] sm:$0xff]  ;;  %v583_v48 = vld [vmem:[%s18596_s30 + $0x80] sm:$0xff]  ;;  %v658_v49 = vld [vmem:[%s18596_s30 + $0x2d8] sm:$0xff] }
  0x22   : > { %17988 = vmatprep.mubr.msk.f32.mxu1 %vm695_vm0, %v639_v13  ;;  %17887 = vmatmul.mubr.msk.f32.gmra.mxu0 %vm695_vm0, %v572_v27  ;;  %v659_v50 = vld [vmem:[%s18596_s30 + $0x2e0] sm:$0xff]  ;;  %v584_v51 = vld [vmem:[%s18596_s30 + $0x88] sm:$0xff]  ;;  %v585_v52 = vld [vmem:[%s18596_s30 + $0x90] sm:$0xff] }
  0x23   : > { %17889 = vmatprep.mubr.msk.f32.mxu0 %vm695_vm0, %v573_v28  ;;  %v660_v53 = vld [vmem:[%s18596_s30 + $0x2e8] sm:$0xff]  ;;  %v661_v54 = vld [vmem:[%s18596_s30 + $0x2f0] sm:$0xff]  ;;  %v586_v55 = vld [vmem:[%s18596_s30 + $0x98] sm:$0xff] }
  0x24   : > { %v587_v56 = vld [vmem:[%s18596_s30 + $0xa0] sm:$0xff]  ;;  %v662_v57 = vld [vmem:[%s18596_s30 + $0x2f8] sm:$0xff]  ;;  %v588_v59 = vld [vmem:[%s18596_s30 + $0xa8] sm:$0xff] }
  0x25   : > { %17989 = vmatmul.mubr.msk.f32.gmra.mxu1 %vm695_vm0, %v640_v14  ;;  %v663_v58 = vld [vmem:[%s18596_s30 + $0x300] sm:$0xff]  ;;  %v589_v60 = vld [vmem:[%s18596_s30 + $0xb0] sm:$0xff]  ;;  %v664_v61 = vld [vmem:[%s18596_s30 + $0x308] sm:$0xff] }
  0x26   : > { %17991 = vmatprep.mubr.msk.f32.mxu1 %vm695_vm0, %v641_v15  ;;  %17890 = vmatmul.mubr.msk.f32.gmra.mxu0 %vm695_vm0, %v574_v31  ;;  %v665_v62 = vld [vmem:[%s18596_s30 + $0x310] sm:$0xff]  ;;  %v590_v63 = vld [vmem:[%s18596_s30 + $0xb8] sm:$0xff]  ;;  %v591_v0 = vld [vmem:[%s18596_s30 + $0xc0] sm:$0xff] }
  0x27   : > { %17892 = vmatprep.mubr.msk.f32.mxu0 %vm695_vm0, %v575_v32  ;;  %v666_v1 = vld [vmem:[%s18596_s30 + $0x318] sm:$0xff]  ;;  %v667_v2 = vld [vmem:[%s18596_s30 + $0x320] sm:$0xff]  ;;  %v592_v3 = vld [vmem:[%s18596_s30 + $0xc8] sm:$0xff] }
  0x28   : > { %v593_v4 = vld [vmem:[%s18596_s30 + $0xd0] sm:$0xff]  ;;  %v668_v5 = vld [vmem:[%s18596_s30 + $0x328] sm:$0xff]  ;;  %v594_v7 = vld [vmem:[%s18596_s30 + $0xd8] sm:$0xff] }
  0x29   : > { %17992 = vmatmul.mubr.msk.f32.gmra.mxu1 %vm695_vm0, %v642_v16  ;;  %v669_v6 = vld [vmem:[%s18596_s30 + $0x330] sm:$0xff]  ;;  %v595_v8 = vld [vmem:[%s18596_s30 + $0xe0] sm:$0xff]  ;;  %v3139_v9 = vld [vmem:[%s24848_s6 + $0x18] sm:$0xff] }
  0x2a   : > { %17994 = vmatprep.mubr.msk.f32.mxu1 %vm695_vm0, %v643_v17  ;;  %17893 = vmatmul.mubr.msk.f32.gmra.mxu0 %vm695_vm0, %v576_v35  ;;  %v670_v10 = vld [vmem:[%s18596_s30 + $0x338] sm:$0xff]  ;;  %v671_v11 = vld [vmem:[%s18596_s30 + $0x340] sm:$0xff]  ;;  %v596_v12 = vld [vmem:[%s18596_s30 + $0xe8] sm:$0xff] }
  0x2b   : > { %17895 = vmatprep.mubr.msk.f32.mxu0 %vm695_vm0, %v577_v36  ;;  %18268 = vmatprep.subr.mxu0 %v3139_v9  ;;  %v597_v13 = vld [vmem:[%s18596_s30 + $0xf0] sm:$0xff]  ;;  %v672_v14 = vld [vmem:[%s18596_s30 + $0x348] sm:$0xff]  ;;  %v598_v16 = vld [vmem:[%s18596_s30 + $0xf8] sm:$0xff] }
  0x2c   : > { %18269 = vmatpush3.msra.mxu0 %v3139_v9  ;;  %v673_v15 = vld [vmem:[%s18596_s30 + $0x350] sm:$0xff]  ;;  %v599_v17 = vld [vmem:[%s18596_s30 + $0x100] sm:$0xff]  ;;  %v674_v18 = vld [vmem:[%s18596_s30 + $0x358] sm:$0xff] }
  0x2d   : > { %17995 = vmatmul.mubr.msk.f32.gmra.mxu1 %vm695_vm0, %v644_v21  ;;  %v675_v19 = vld [vmem:[%s18596_s30 + $0x360] sm:$0xff]  ;;  %v600_v20 = vld [vmem:[%s18596_s30 + $0x108] sm:$0xff]  ;;  %v601_v21 = vld [vmem:[%s18596_s30 + $0x110] sm:$0xff] }
  0x2e   : > { %17997 = vmatprep.mubr.msk.f32.mxu1 %vm695_vm0, %v645_v22  ;;  %17896 = vmatmul.mubr.msk.f32.gmra.mxu0 %vm695_vm0, %v578_v39  ;;  %v676_v22 = vld [vmem:[%s18596_s30 + $0x368] sm:$0xff]  ;;  %v677_v23 = vld [vmem:[%s18596_s30 + $0x370] sm:$0xff]  ;;  %v602_v24 = vld [vmem:[%s18596_s30 + $0x118] sm:$0xff] }
  0x2f   : > { %17898 = vmatprep.mubr.msk.f32.mxu0 %vm695_vm0, %v579_v40  ;;  %v679_v27 = vld [vmem:[%s18596_s30 + $0x380] sm:$0xff]  ;;  %v604_v28 = vld [vmem:[%s18596_s30 + $0x128] sm:$0xff]  ;;  %v681_v31 = vld [vmem:[%s18596_s30 + $0x390] sm:$0xff] }
  0x30   : > { %v606_v32 = vld [vmem:[%s18596_s30 + $0x138] sm:$0xff]  ;;  %v683_v35 = vld [vmem:[%s18596_s30 + $0x3a0] sm:$0xff]  ;;  %v608_v36 = vld [vmem:[%s18596_s30 + $0x148] sm:$0xff] }
  0x31   : > { %17998 = vmatmul.mubr.msk.f32.gmra.mxu1 %vm695_vm0, %v646_v25  ;;  %v603_v25 = vld [vmem:[%s18596_s30 + $0x120] sm:$0xff]  ;;  %v685_v39 = vld [vmem:[%s18596_s30 + $0x3b0] sm:$0xff]  ;;  %v610_v40 = vld [vmem:[%s18596_s30 + $0x158] sm:$0xff] }
  0x32   : > { %18000 = vmatprep.mubr.msk.f32.mxu1 %vm695_vm0, %v647_v26  ;;  %17899 = vmatmul.mubr.msk.f32.gmra.mxu0 %vm695_vm0, %v580_v43  ;;  %v678_v26 = vld [vmem:[%s18596_s30 + $0x378] sm:$0xff] }
  0x33   : > { %17901 = vmatprep.mubr.msk.f32.mxu0 %vm695_vm0, %v581_v44  ;;  %v686_v43 = vld [vmem:[%s18596_s30 + $0x3b8] sm:$0xff]  ;;  %v687_v44 = vld [vmem:[%s18596_s30 + $0x3c0] sm:$0xff] }
  0x34   : > { %v626_v9 = vld [vmem:[%s18596_s30 + $0x1d8] sm:$0xff] }
  0x35   : > { %18001 = vmatmul.mubr.msk.f32.gmra.mxu1 %vm695_vm0, %v648_v29  ;;  %v605_v29 = vld [vmem:[%s18596_s30 + $0x130] sm:$0xff] }
  0x36   : > { %18003 = vmatprep.mubr.msk.f32.mxu1 %vm695_vm0, %v649_v30  ;;  %17902 = vmatmul.mubr.msk.f32.gmra.mxu0 %vm695_vm0, %v582_v47  ;;  %v680_v30 = vld [vmem:[%s18596_s30 + $0x388] sm:$0xff] }
  0x37   : > { %17904 = vmatprep.mubr.msk.f32.mxu0 %vm695_vm0, %v583_v48  ;;  %v688_v47 = vld [vmem:[%s18596_s30 + $0x3c8] sm:$0xff]  ;;  %v689_v48 = vld [vmem:[%s18596_s30 + $0x3d0] sm:$0xff] }
  0x39   : > { %18004 = vmatmul.mubr.msk.f32.gmra.mxu1 %vm695_vm0, %v650_v33  ;;  %v607_v33 = vld [vmem:[%s18596_s30 + $0x140] sm:$0xff] }
  0x3a   : > { %18006 = vmatprep.mubr.msk.f32.mxu1 %vm695_vm0, %v651_v34  ;;  %17905 = vmatmul.mubr.msk.f32.gmra.mxu0 %vm695_vm0, %v584_v51  ;;  %v682_v34 = vld [vmem:[%s18596_s30 + $0x398] sm:$0xff] }
  0x3b   : > { %17907 = vmatprep.mubr.msk.f32.mxu0 %vm695_vm0, %v585_v52  ;;  %v690_v51 = vld [vmem:[%s18596_s30 + $0x3d8] sm:$0xff]  ;;  %v691_v52 = vld [vmem:[%s18596_s30 + $0x3e0] sm:$0xff] }
  0x3d   : > { %18007 = vmatmul.mubr.msk.f32.gmra.mxu1 %vm695_vm0, %v652_v37  ;;  %v609_v37 = vld [vmem:[%s18596_s30 + $0x150] sm:$0xff] }
  0x3e   : > { %18009 = vmatprep.mubr.msk.f32.mxu1 %vm695_vm0, %v653_v38  ;;  %17908 = vmatmul.mubr.msk.f32.gmra.mxu0 %vm695_vm0, %v586_v55  ;;  %v684_v38 = vld [vmem:[%s18596_s30 + $0x3a8] sm:$0xff] }
  0x3f   : > { %17910 = vmatprep.mubr.msk.f32.mxu0 %vm695_vm0, %v587_v56  ;;  %v692_v55 = vld [vmem:[%s18596_s30 + $0x3e8] sm:$0xff]  ;;  %v693_v56 = vld [vmem:[%s18596_s30 + $0x3f0] sm:$0xff] }
  0x41   : > { %18010 = vmatmul.mubr.msk.f32.gmra.mxu1 %vm695_vm0, %v654_v41  ;;  %v611_v41 = vld [vmem:[%s18596_s30 + $0x160] sm:$0xff] }
  0x42   : > { %18012 = vmatprep.mubr.msk.f32.mxu1 %vm695_vm0, %v655_v42  ;;  %17911 = vmatmul.mubr.msk.f32.gmra.mxu0 %vm695_vm0, %v588_v59  ;;  %v3138_v42 = vld [vmem:[%s24848_s6 + $0x10] sm:$0xff]  ;;  %v694_v59 = vld [vmem:[%s18596_s30 + $0x3f8] sm:$0xff] }
  0x43   : > { %17913 = vmatprep.mubr.msk.f32.mxu0 %vm695_vm0, %v589_v60  ;;  %18270 = vmatprep.subr.mxu0 %v3138_v42  ;;  %v439_v60 = vld [vmem:[%s18838_s22] sm:$0xff] }
  0x44   : > { %18271 = vmatpush3.msra.mxu0 %v3138_v42  ;;  %v472_v42 = vld [vmem:[%s18838_s22 + $0x108] sm:$0xff] }
  0x45   : > { %18013 = vmatmul.mubr.msk.f32.gmra.mxu1 %vm695_vm0, %v656_v45  ;;  %v612_v45 = vld [vmem:[%s18596_s30 + $0x168] sm:$0xff] }
  0x46   : > { %18015 = vmatprep.mubr.msk.f32.mxu1 %vm695_vm0, %v657_v46  ;;  %17914 = vmatmul.mubr.msk.f32.gmra.mxu0 %vm695_vm0, %v590_v63  ;;  %v613_v46 = vld [vmem:[%s18596_s30 + $0x170] sm:$0xff]  ;;  %v440_v63 = vld [vmem:[%s18838_s22 + $0x8] sm:$0xff] }
  0x47   : > { %17916 = vmatprep.mubr.msk.f32.mxu0 %vm695_vm0, %v591_v0  ;;  %v441_v0 = vld [vmem:[%s18838_s22 + $0x10] sm:$0xff] }
  0x49   : > { %18016 = vmatmul.mubr.msk.f32.gmra.mxu1 %vm695_vm0, %v658_v49  ;;  %v614_v49 = vld [vmem:[%s18596_s30 + $0x178] sm:$0xff] }
  0x4a   : > { %18018 = vmatprep.mubr.msk.f32.mxu1 %vm695_vm0, %v659_v50  ;;  %17917 = vmatmul.mubr.msk.f32.gmra.mxu0 %vm695_vm0, %v592_v3  ;;  %v615_v50 = vld [vmem:[%s18596_s30 + $0x180] sm:$0xff]  ;;  %v442_v3 = vld [vmem:[%s18838_s22 + $0x18] sm:$0xff] }
  0x4b   : > { %17919 = vmatprep.mubr.msk.f32.mxu0 %vm695_vm0, %v593_v4  ;;  %v443_v4 = vld [vmem:[%s18838_s22 + $0x20] sm:$0xff] }
  0x4d   : > { %18019 = vmatmul.mubr.msk.f32.gmra.mxu1 %vm695_vm0, %v660_v53  ;;  %v616_v53 = vld [vmem:[%s18596_s30 + $0x188] sm:$0xff] }
  0x4e   : > { %18021 = vmatprep.mubr.msk.f32.mxu1 %vm695_vm0, %v661_v54  ;;  %17920 = vmatmul.mubr.msk.f32.gmra.mxu0 %vm695_vm0, %v594_v7  ;;  %v617_v54 = vld [vmem:[%s18596_s30 + $0x190] sm:$0xff]  ;;  %v444_v7 = vld [vmem:[%s18838_s22 + $0x28] sm:$0xff] }
  0x4f   : > { %17922 = vmatprep.mubr.msk.f32.mxu0 %vm695_vm0, %v595_v8  ;;  %v445_v8 = vld [vmem:[%s18838_s22 + $0x30] sm:$0xff] }
  0x51   : > { %18022 = vmatmul.mubr.msk.f32.gmra.mxu1 %vm695_vm0, %v662_v57  ;;  %v618_v57 = vld [vmem:[%s18596_s30 + $0x198] sm:$0xff] }
  0x52   : > { %18024 = vmatprep.mubr.msk.f32.mxu1 %vm695_vm0, %v663_v58  ;;  %17923 = vmatmul.mubr.msk.f32.gmra.mxu0 %vm695_vm0, %v596_v12  ;;  %v619_v58 = vld [vmem:[%s18596_s30 + $0x1a0] sm:$0xff]  ;;  %v446_v12 = vld [vmem:[%s18838_s22 + $0x38] sm:$0xff] }
  0x53   : > { %17925 = vmatprep.mubr.msk.f32.mxu0 %vm695_vm0, %v597_v13  ;;  %v447_v13 = vld [vmem:[%s18838_s22 + $0x40] sm:$0xff] }
  0x55   : > { %18025 = vmatmul.mubr.msk.f32.gmra.mxu1 %vm695_vm0, %v664_v61  ;;  %v620_v61 = vld [vmem:[%s18596_s30 + $0x1a8] sm:$0xff] }
  0x56   : > { %18027 = vmatprep.mubr.msk.f32.mxu1 %vm695_vm0, %v665_v62  ;;  %17926 = vmatmul.mubr.msk.f32.gmra.mxu0 %vm695_vm0, %v598_v16  ;;  %v621_v62 = vld [vmem:[%s18596_s30 + $0x1b0] sm:$0xff]  ;;  %v448_v16 = vld [vmem:[%s18838_s22 + $0x48] sm:$0xff] }
  0x57   : > { %17928 = vmatprep.mubr.msk.f32.mxu0 %vm695_vm0, %v599_v17  ;;  %v449_v17 = vld [vmem:[%s18838_s22 + $0x50] sm:$0xff] }
  0x59   : > { %18028 = vmatmul.mubr.msk.f32.gmra.mxu1 %vm695_vm0, %v666_v1  ;;  %v622_v1 = vld [vmem:[%s18596_s30 + $0x1b8] sm:$0xff] }
  0x5a   : > { %18030 = vmatprep.mubr.msk.f32.mxu1 %vm695_vm0, %v667_v2  ;;  %17929 = vmatmul.mubr.msk.f32.gmra.mxu0 %vm695_vm0, %v600_v20  ;;  %v623_v2 = vld [vmem:[%s18596_s30 + $0x1c0] sm:$0xff] }
  0x5b   : > { %17931 = vmatprep.mubr.msk.f32.mxu0 %vm695_vm0, %v601_v21  ;;  %v451_v20 = vld [vmem:[%s18838_s22 + $0x60] sm:$0xff]  ;;  %v452_v21 = vld [vmem:[%s18838_s22 + $0x68] sm:$0xff] }
  0x5d   : > { %18031 = vmatmul.mubr.msk.f32.gmra.mxu1 %vm695_vm0, %v668_v5  ;;  %v624_v5 = vld [vmem:[%s18596_s30 + $0x1c8] sm:$0xff] }
  0x5e   : > { %18033 = vmatprep.mubr.msk.f32.mxu1 %vm695_vm0, %v669_v6  ;;  %17932 = vmatmul.mubr.msk.f32.gmra.mxu0 %vm695_vm0, %v602_v24  ;;  %v625_v6 = vld [vmem:[%s18596_s30 + $0x1d0] sm:$0xff]  ;;  %v455_v24 = vld [vmem:[%s18838_s22 + $0x80] sm:$0xff] }
  0x5f   : > { %17934 = vmatprep.mubr.msk.f32.mxu0 %vm695_vm0, %v603_v25  ;;  %v456_v25 = vld [vmem:[%s18838_s22 + $0x88] sm:$0xff] }
  0x61   : > { %18034 = vmatmul.mubr.msk.f32.gmra.mxu1 %vm695_vm0, %v670_v10  ;;  %v627_v10 = vld [vmem:[%s18596_s30 + $0x1e0] sm:$0xff] }
  0x62   : > { %18036 = vmatprep.mubr.msk.f32.mxu1 %vm695_vm0, %v671_v11  ;;  %17935 = vmatmul.mubr.msk.f32.gmra.mxu0 %vm695_vm0, %v604_v28  ;;  %v3137_v11 = vld [vmem:[%s24848_s6 + $0x8] sm:$0xff]  ;;  %v459_v28 = vld [vmem:[%s18838_s22 + $0xa0] sm:$0xff] }
  0x63   : > { %17937 = vmatprep.mubr.msk.f32.mxu0 %vm695_vm0, %v605_v29  ;;  %18272 = vmatprep.subr.mxu0 %v3137_v11  ;;  %v460_v29 = vld [vmem:[%s18838_s22 + $0xa8] sm:$0xff] }
  0x64   : > { %18273 = vmatpush3.msra.mxu0 %v3137_v11 }
  0x65   : > { %18037 = vmatmul.mubr.msk.f32.gmra.mxu1 %vm695_vm0, %v672_v14  ;;  %v628_v14 = vld [vmem:[%s18596_s30 + $0x1e8] sm:$0xff] }
  0x66   : > { %18039 = vmatprep.mubr.msk.f32.mxu1 %vm695_vm0, %v673_v15  ;;  %17938 = vmatmul.mubr.msk.f32.gmra.mxu0 %vm695_vm0, %v606_v32  ;;  %v629_v15 = vld [vmem:[%s18596_s30 + $0x1f0] sm:$0xff]  ;;  %v462_v32 = vld [vmem:[%s18838_s22 + $0xb8] sm:$0xff] }
  0x67   : > { %17940 = vmatprep.mubr.msk.f32.mxu0 %vm695_vm0, %v607_v33  ;;  %v463_v33 = vld [vmem:[%s18838_s22 + $0xc0] sm:$0xff] }
  0x69   : > { %18040 = vmatmul.mubr.msk.f32.gmra.mxu1 %vm695_vm0, %v674_v18  ;;  %v630_v18 = vld [vmem:[%s18596_s30 + $0x1f8] sm:$0xff] }
  0x6a   : > { %18042 = vmatprep.mubr.msk.f32.mxu1 %vm695_vm0, %v675_v19  ;;  %17941 = vmatmul.mubr.msk.f32.gmra.mxu0 %vm695_vm0, %v608_v36  ;;  %v450_v19 = vld [vmem:[%s18838_s22 + $0x58] sm:$0xff] }
  0x6b   : > { %17943 = vmatprep.mubr.msk.f32.mxu0 %vm695_vm0, %v609_v37  ;;  %v466_v36 = vld [vmem:[%s18838_s22 + $0xd8] sm:$0xff]  ;;  %v467_v37 = vld [vmem:[%s18838_s22 + $0xe0] sm:$0xff] }
  0x6d   : > { %18043 = vmatmul.mubr.msk.f32.gmra.mxu1 %vm695_vm0, %v676_v22  ;;  %v453_v22 = vld [vmem:[%s18838_s22 + $0x70] sm:$0xff] }
  0x6e   : > { %18045 = vmatprep.mubr.msk.f32.mxu1 %vm695_vm0, %v677_v23  ;;  %17944 = vmatmul.mubr.msk.f32.gmra.mxu0 %vm695_vm0, %v610_v40  ;;  %v454_v23 = vld [vmem:[%s18838_s22 + $0x78] sm:$0xff] }
  0x6f   : > { %17946 = vmatprep.mubr.msk.f32.mxu0 %vm695_vm0, %v611_v41  ;;  %v470_v40 = vld [vmem:[%s18838_s22 + $0xf8] sm:$0xff]  ;;  %v471_v41 = vld [vmem:[%s18838_s22 + $0x100] sm:$0xff] }
  0x71   : > { %18046 = vmatmul.mubr.msk.f32.gmra.mxu1 %vm695_vm0, %v678_v26  ;;  %v457_v26 = vld [vmem:[%s18838_s22 + $0x90] sm:$0xff] }
  0x72   : > { %18048 = vmatprep.mubr.msk.f32.mxu1 %vm695_vm0, %v679_v27  ;;  %17947 = vmatmul.mubr.msk.f32.gmra.mxu0 %vm695_vm0, %v612_v45  ;;  %v458_v27 = vld [vmem:[%s18838_s22 + $0x98] sm:$0xff] }
  0x73   : > { %17949 = vmatprep.mubr.msk.f32.mxu0 %vm695_vm0, %v613_v46  ;;  %v474_v45 = vld [vmem:[%s18838_s22 + $0x118] sm:$0xff] }
  0x75   : > { %18049 = vmatmul.mubr.msk.f32.gmra.mxu1 %vm695_vm0, %v680_v30  ;;  %v461_v30 = vld [vmem:[%s18838_s22 + $0xb0] sm:$0xff] }
  0x76   : > { %18051 = vmatprep.mubr.msk.f32.mxu1 %vm695_vm0, %v681_v31  ;;  %17950 = vmatmul.mubr.msk.f32.gmra.mxu0 %vm695_vm0, %v614_v49  ;;  %v3136_v31 = vld [vmem:[%s24848_s6] sm:$0xff]  ;;  %v476_v49 = vld [vmem:[%s18838_s22 + $0x128] sm:$0xff] }
  0x77   : > { %17952 = vmatprep.mubr.msk.f32.mxu0 %vm695_vm0, %v615_v50  ;;  %18274 = vmatprep.subr.mxu0 %v3136_v31 }
  0x78   : > { %18275 = vmatpush3.msra.mxu0 %v3136_v31  ;;  %v494_v31 = vld [vmem:[%s18838_s22 + $0x1b8] sm:$0xff] }
  0x79   : > { %18052 = vmatmul.mubr.msk.f32.gmra.mxu1 %vm695_vm0, %v682_v34  ;;  %v464_v34 = vld [vmem:[%s18838_s22 + $0xc8] sm:$0xff] }
  0x7a   : > { %18054 = vmatprep.mubr.msk.f32.mxu1 %vm695_vm0, %v683_v35  ;;  %17953 = vmatmul.mubr.msk.f32.gmra.mxu0 %vm695_vm0, %v616_v53  ;;  %v465_v35 = vld [vmem:[%s18838_s22 + $0xd0] sm:$0xff]  ;;  %v478_v53 = vld [vmem:[%s18838_s22 + $0x138] sm:$0xff] }
  0x7b   : > { %17955 = vmatprep.mubr.msk.f32.mxu0 %vm695_vm0, %v617_v54 }
  0x7d   : > { %18055 = vmatmul.mubr.msk.f32.gmra.mxu1 %vm695_vm0, %v684_v38  ;;  %v468_v38 = vld [vmem:[%s18838_s22 + $0xe8] sm:$0xff] }
  0x7e   : > { %18057 = vmatprep.mubr.msk.f32.mxu1 %vm695_vm0, %v685_v39  ;;  %17956 = vmatmul.mubr.msk.f32.gmra.mxu0 %vm695_vm0, %v618_v57  ;;  %v469_v39 = vld [vmem:[%s18838_s22 + $0xf0] sm:$0xff]  ;;  %v480_v57 = vld [vmem:[%s18838_s22 + $0x148] sm:$0xff] }
  0x7f   : > { %17958 = vmatprep.mubr.msk.f32.mxu0 %vm695_vm0, %v619_v58 }
  0x81   : > { %18058 = vmatmul.mubr.msk.f32.gmra.mxu1 %vm695_vm0, %v686_v43  ;;  %v473_v43 = vld [vmem:[%s18838_s22 + $0x110] sm:$0xff] }
  0x82   : > { %18060 = vmatprep.mubr.msk.f32.mxu1 %vm695_vm0, %v687_v44  ;;  %17959 = vmatmul.mubr.msk.f32.gmra.mxu0 %vm695_vm0, %v620_v61  ;;  %v482_v61 = vld [vmem:[%s18838_s22 + $0x158] sm:$0xff] }
  0x83   : > { %17961 = vmatprep.mubr.msk.f32.mxu0 %vm695_vm0, %v621_v62 }
  0x85   : > { %18061 = vmatmul.mubr.msk.f32.gmra.mxu1 %vm695_vm0, %v688_v47  ;;  %v475_v47 = vld [vmem:[%s18838_s22 + $0x120] sm:$0xff] }
  0x86   : > { %18063 = vmatprep.mubr.msk.f32.mxu1 %vm695_vm0, %v689_v48  ;;  %17962 = vmatmul.mubr.msk.f32.gmra.mxu0 %vm695_vm0, %v622_v1  ;;  %v484_v1 = vld [vmem:[%s18838_s22 + $0x168] sm:$0xff] }
  0x87   : > { %17964 = vmatprep.mubr.msk.f32.mxu0 %vm695_vm0, %v623_v2 }
  0x89   : > { %18064 = vmatmul.mubr.msk.f32.gmra.mxu1 %vm695_vm0, %v690_v51  ;;  %v477_v51 = vld [vmem:[%s18838_s22 + $0x130] sm:$0xff] }
  0x8a   : > { %18066 = vmatprep.mubr.msk.f32.mxu1 %vm695_vm0, %v691_v52  ;;  %17965 = vmatmul.mubr.msk.f32.gmra.mxu0 %vm695_vm0, %v624_v5 }
  0x8b   : > { %17967 = vmatprep.mubr.msk.f32.mxu0 %vm695_vm0, %v625_v6 }
  0x8d   : > { %18067 = vmatmul.mubr.msk.f32.gmra.mxu1 %vm695_vm0, %v692_v55  ;;  %v479_v55 = vld [vmem:[%s18838_s22 + $0x140] sm:$0xff] }
  0x8e   : > { %18069 = vmatprep.mubr.msk.f32.mxu1 %vm695_vm0, %v693_v56  ;;  %17968 = vmatmul.mubr.msk.f32.gmra.mxu0 %vm695_vm0, %v626_v9 }
  0x8f   : > { %17970 = vmatprep.mubr.msk.f32.mxu0 %vm695_vm0, %v627_v10  ;;  %v487_v10 = vld [vmem:[%s18838_s22 + $0x180] sm:$0xff] }
  0x91   : > { %18070 = vmatmul.mubr.msk.f32.gmra.mxu1 %vm695_vm0, %v694_v59  ;;  %v481_v59 = vld [vmem:[%s18838_s22 + $0x150] sm:$0xff] }
  0x92   : > { %18076 = vmatprep.mubr.msk.f32.mxu1 %vm695_vm0, %v439_v60  ;;  %17971 = vmatmul.mubr.msk.f32.gmra.mxu0 %vm695_vm0, %v628_v14 }
  0x93   : > { %17973 = vmatprep.mubr.msk.f32.mxu0 %vm695_vm0, %v629_v15 }
  0x95   : > { %18077 = vmatmul.mubr.msk.f32.vlgmr.msra.gmra.mxu1 %vm695_vm0, %v440_v63  ;;  %v483_v63 = vld [vmem:[%s18838_s22 + $0x160] sm:$0xff] }
  0x96   : > { %18079 = vmatprep.mubr.msk.f32.mxu1 %vm695_vm0, %v441_v0  ;;  %17974 = vmatmul.mubr.msk.f32.gmra.mxu0 %vm695_vm0, %v630_v18 }
  0x99   : > { %18080 = vmatmul.mubr.msk.f32.gmra.mxu1 %vm695_vm0, %v442_v3 }
  0x9a   : > { %18082 = vmatprep.mubr.msk.f32.mxu1 %vm695_vm0, %v443_v4  ;;  %v485_v4 = vld [vmem:[%s18838_s22 + $0x170] sm:$0xff] }
  0x9d   : > { %18083 = vmatmul.mubr.msk.f32.gmra.mxu1 %vm695_vm0, %v444_v7  ;;  %v486_v7 = vld [vmem:[%s18838_s22 + $0x178] sm:$0xff] }
  0x9e   : > { %18085 = vmatprep.mubr.msk.f32.mxu1 %vm695_vm0, %v445_v8 }
  0xa1   : > { %18086 = vmatmul.mubr.msk.f32.gmra.mxu1 %vm695_vm0, %v446_v12 }
  0xa2   : > { %18088 = vmatprep.mubr.msk.f32.mxu1 %vm695_vm0, %v447_v13  ;;  %v488_v13 = vld [vmem:[%s18838_s22 + $0x188] sm:$0xff] }
  0xa5   : > { %18089 = vmatmul.mubr.msk.f32.gmra.mxu1 %vm695_vm0, %v448_v16  ;;  %v489_v16 = vld [vmem:[%s18838_s22 + $0x190] sm:$0xff] }
  0xa6   : > { %18091 = vmatprep.mubr.msk.f32.mxu1 %vm695_vm0, %v449_v17 }
  0xa9   : > { %18092 = vmatmul.mubr.msk.f32.gmra.mxu1 %vm695_vm0, %v450_v19  ;;  %v490_v19 = vld [vmem:[%s18838_s22 + $0x198] sm:$0xff] }
  0xaa   : > { %18094 = vmatprep.mubr.msk.f32.mxu1 %vm695_vm0, %v451_v20 }
  0xad   : > { %18095 = vmatmul.mubr.msk.f32.gmra.mxu1 %vm695_vm0, %v452_v21 }
  0xae   : > { %18097 = vmatprep.mubr.msk.f32.mxu1 %vm695_vm0, %v453_v22  ;;  %v491_v22 = vld [vmem:[%s18838_s22 + $0x1a0] sm:$0xff] }
  0xb1   : > { %18098 = vmatmul.mubr.msk.f32.gmra.mxu1 %vm695_vm0, %v454_v23 }
  0xb2   : > { %18100 = vmatprep.mubr.msk.f32.mxu1 %vm695_vm0, %v455_v24 }
  0xb5   : > { %18101 = vmatmul.mubr.msk.f32.gmra.mxu1 %vm695_vm0, %v456_v25  ;;  %v492_v25 = vld [vmem:[%s18838_s22 + $0x1a8] sm:$0xff] }
  0xb6   : > { %18103 = vmatprep.mubr.msk.f32.mxu1 %vm695_vm0, %v457_v26 }
  0xb9   : > { %18104 = vmatmul.mubr.msk.f32.gmra.mxu1 %vm695_vm0, %v458_v27 }
  0xba   : > { %18106 = vmatprep.mubr.msk.f32.mxu1 %vm695_vm0, %v459_v28  ;;  %v493_v28 = vld [vmem:[%s18838_s22 + $0x1b0] sm:$0xff] }
  0xbd   : > { %18107 = vmatmul.mubr.msk.f32.gmra.mxu1 %vm695_vm0, %v460_v29 }
  0xbe   : > { %18109 = vmatprep.mubr.msk.f32.mxu1 %vm695_vm0, %v461_v30 }
  0xc1   : > { %18110 = vmatmul.mubr.msk.f32.gmra.mxu1 %vm695_vm0, %v462_v32 }
  0xc2   : > { %18112 = vmatprep.mubr.msk.f32.mxu1 %vm695_vm0, %v463_v33 }
  0xc5   : > { %18113 = vmatmul.mubr.msk.f32.gmra.mxu1 %vm695_vm0, %v464_v34  ;;  %v495_v34 = vld [vmem:[%s18838_s22 + $0x1c0] sm:$0xff] }
  0xc6   : > { %18115 = vmatprep.mubr.msk.f32.mxu1 %vm695_vm0, %v465_v35 }
  0xc9   : > { %18116 = vmatmul.mubr.msk.f32.gmra.mxu1 %vm695_vm0, %v466_v36 }
  0xca   : > { %18118 = vmatprep.mubr.msk.f32.mxu1 %vm695_vm0, %v467_v37  ;;  %v496_v37 = vld [vmem:[%s18838_s22 + $0x1c8] sm:$0xff] }
  0xcd   : > { %18119 = vmatmul.mubr.msk.f32.gmra.mxu1 %vm695_vm0, %v468_v38 }
  0xce   : > { %18121 = vmatprep.mubr.msk.f32.mxu1 %vm695_vm0, %v469_v39  ;;  %v497_v39 = vld [vmem:[%s18838_s22 + $0x1d0] sm:$0xff] }
  0xd1   : > { %18122 = vmatmul.mubr.msk.f32.gmra.mxu1 %vm695_vm0, %v470_v40 }
  0xd2   : > { %18124 = vmatprep.mubr.msk.f32.mxu1 %vm695_vm0, %v471_v41 }
  0xd5   : > { %v18943_v44 = vpop.f32.mrf.mxu1  ;;  %18125 = vmatmul.mubr.msk.f32.gmra.mxu1 %vm695_vm0, %v472_v42  ;;  %v498_v42 = vld [vmem:[%s18838_s22 + $0x1d8] sm:$0xff] }
  0xd6   : > { %18127 = vmatprep.mubr.msk.f32.mxu1 %vm695_vm0, %v473_v43 }
  0xd7   : > { %v18948_v46 = vpop.f32.mrf.mxu1 }
  0xd9   : > { %v18951_v48 = vpop.f32.mrf.mxu1  ;;  %18128 = vmatmul.mubr.msk.f32.gmra.mxu1 %vm695_vm0, %v474_v45  ;;  %v499_v45 = vld [vmem:[%s18838_s22 + $0x1e0] sm:$0xff] }
  0xda   : > { %18130 = vmatprep.mubr.msk.f32.mxu1 %vm695_vm0, %v475_v47  ;;  %v18988_v2 = vpop.f32.mrf.mxu0 }
  0xdb   : > { %v18956_v50 = vpop.f32.mrf.mxu1 }
  0xdc   : > { %v18993_v5 = vpop.f32.mrf.mxu0 }
  0xdd   : > { %v18959_v52 = vpop.f32.mrf.mxu1  ;;  %18131 = vmatmul.mubr.msk.f32.gmra.mxu1 %vm695_vm0, %v476_v49 }
  0xde   : > { %18133 = vmatprep.mubr.msk.f32.mxu1 %vm695_vm0, %v477_v51  ;;  %v19000_v8 = vpop.f32.mrf.mxu0  ;;  %v500_v51 = vld [vmem:[%s18838_s22 + $0x1e8] sm:$0xff] }
  0xdf   : > { %v18964_v54 = vpop.f32.mrf.mxu1 }
  0xe0   : > { %v19005_v11 = vpop.f32.mrf.mxu0 }
  0xe1   : > { %v18967_v56 = vpop.f32.mrf.mxu1  ;;  %18134 = vmatmul.mubr.msk.f32.gmra.mxu1 %vm695_vm0, %v478_v53 }
  0xe2   : > { %18136 = vmatprep.mubr.msk.f32.mxu1 %vm695_vm0, %v479_v55  ;;  %v19012_v14 = vpop.f32.mrf.mxu0  ;;  %v501_v55 = vld [vmem:[%s18838_s22 + $0x1f0] sm:$0xff] }
  0xe3   : > { %v18972_v58 = vpop.f32.mrf.mxu1 }
  0xe4   : > { %v19017_v17 = vpop.f32.mrf.mxu0 }
  0xe5   : > { %v18975_v60 = vpop.f32.mrf.mxu1  ;;  %18137 = vmatmul.mubr.msk.f32.gmra.mxu1 %vm695_vm0, %v480_v57 }
  0xe6   : > { %18139 = vmatprep.mubr.msk.f32.mxu1 %vm695_vm0, %v481_v59  ;;  %v19024_v20 = vpop.f32.mrf.mxu0 }
  0xe7   : > { %v18980_v62 = vpop.f32.mrf.mxu1 }
  0xe8   : > { %v19029_v23 = vpop.f32.mrf.mxu0 }
  0xe9   : > { %v18983_v0 = vpop.f32.mrf.mxu1  ;;  %18140 = vmatmul.mubr.msk.f32.gmra.mxu1 %vm695_vm0, %v482_v61  ;;  %v502_v61 = vld [vmem:[%s18838_s22 + $0x1f8] sm:$0xff] }
  0xea   : > { %18142 = vmatprep.mubr.msk.f32.mxu1 %vm695_vm0, %v483_v63  ;;  %v19036_v26 = vpop.f32.mrf.mxu0 }
  0xeb   : > { %v18990_v3 = vpop.f32.mrf.mxu1 }
  0xec   : > { %v19041_v29 = vpop.f32.mrf.mxu0 }
  0xed   : > { %v18995_v6 = vpop.f32.mrf.mxu1  ;;  %18143 = vmatmul.mubr.msk.f32.gmra.mxu1 %vm695_vm0, %v484_v1  ;;  %v503_v1 = vld [vmem:[%s18838_s22 + $0x200] sm:$0xff] }
  0xee   : > { %18145 = vmatprep.mubr.msk.f32.mxu1 %vm695_vm0, %v485_v4  ;;  %v19048_v32 = vpop.f32.mrf.mxu0 }
  0xef   : > { %v19002_v9 = vpop.f32.mrf.mxu1 }
  0xf0   : > { %v19056_v36 = vpop.f32.mrf.mxu0 }
  0xf1   : > { %v19007_v12 = vpop.f32.mrf.mxu1  ;;  %18146 = vmatmul.mubr.msk.f32.gmra.mxu1 %vm695_vm0, %v486_v7 }
  0xf2   : > { %18148 = vmatprep.mubr.msk.f32.mxu1 %vm695_vm0, %v487_v10  ;;  %v19066_v41 = vpop.f32.mrf.mxu0  ;;  %v504_v10 = vld [vmem:[%s18838_s22 + $0x208] sm:$0xff] }
  0xf3   : > { %v19014_v15 = vpop.f32.mrf.mxu1 }
  0xf4   : > { %v19076_v49 = vpop.f32.mrf.mxu0 }
  0xf5   : > { %v19019_v18 = vpop.f32.mrf.mxu1  ;;  %18149 = vmatmul.mubr.msk.f32.gmra.mxu1 %vm695_vm0, %v488_v13 }
  0xf6   : > { %18151 = vmatprep.mubr.msk.f32.mxu1 %vm695_vm0, %v489_v16  ;;  %v19086_v59 = vpop.f32.mrf.mxu0  ;;  %v505_v16 = vld [vmem:[%s18838_s22 + $0x210] sm:$0xff] }
  0xf7   : > { %v19026_v21 = vpop.f32.mrf.mxu1 }
  0xf8   : > { %24952 = vst [vmem:[#allocation3_spill] sm:$0xff] %v19026_v21  ;;  %v19096_v7 = vpop.f32.mrf.mxu0 }
  0xf9   : > { %v19031_v24 = vpop.f32.mrf.mxu1  ;;  %18152 = vmatmul.mubr.msk.f32.gmra.mxu1 %vm695_vm0, %v490_v19 }
  0xfa   : > { %24953 = vst [vmem:[#allocation4_spill] sm:$0xff] %v19031_v24  ;;  %18154 = vmatprep.mubr.msk.f32.mxu1 %vm695_vm0, %v491_v22  ;;  %v19106_v22 = vpop.f32.mrf.mxu0 }
  0xfb   : > { %v19038_v27 = vpop.f32.mrf.mxu1 }
  0xfc   : > { %24954 = vst [vmem:[#allocation5_spill] sm:$0xff] %v19038_v27 }
  0xfd   : > { %v19043_v30 = vpop.f32.mrf.mxu1  ;;  %18155 = vmatmul.mubr.msk.f32.gmra.mxu1 %vm695_vm0, %v492_v25  ;;  %v506_v25 = vld [vmem:[%s18838_s22 + $0x218] sm:$0xff] }
  0xfe   : > { %24955 = vst [vmem:[#allocation6_spill] sm:$0xff] %v19043_v30  ;;  %18157 = vmatprep.mubr.msk.f32.mxu1 %vm695_vm0, %v493_v28 }
  0xff   : > { %v19050_v33 = vpop.f32.mrf.mxu1 }
 0x100   : > { %24956 = vst [vmem:[#allocation7_spill] sm:$0xff] %v19050_v33 }
 0x101   : > { %v19053_v35 = vpop.f32.mrf.mxu1  ;;  %18158 = vmatmul.mubr.msk.f32.gmra.mxu1 %vm695_vm0, %v494_v31  ;;  %v507_v31 = vld [vmem:[%s18838_s22 + $0x220] sm:$0xff] }
 0x102   : > { %24957 = vst [vmem:[#allocation8_spill] sm:$0xff] %v19053_v35  ;;  %18160 = vmatprep.mubr.msk.f32.mxu1 %vm695_vm0, %v495_v34 }
 0x103   : > { %v19060_v38 = vpop.f32.mrf.mxu1 }
 0x104   : > { %24958 = vst [vmem:[#allocation9_spill] sm:$0xff] %v19060_v38 }
 0x105   : > { %v19063_v40 = vpop.f32.mrf.mxu1  ;;  %18161 = vmatmul.mubr.msk.f32.gmra.mxu1 %vm695_vm0, %v496_v37  ;;  %v19116_v37 = vpop.f32.mrf.mxu0 }
 0x106   : > { %24959 = vst [vmem:[#allocation10_spill] sm:$0xff] %v19063_v40  ;;  %18163 = vmatprep.mubr.msk.f32.mxu1 %vm695_vm0, %v497_v39  ;;  %v508_v39 = vld [vmem:[%s18838_s22 + $0x228] sm:$0xff]  ;;  %v537_v40 = vld [vmem:[%s18838_s22 + $0x310] sm:$0xff] }
 0x107   : > { %v19070_v43 = vpop.f32.mrf.mxu1 }
 0x108   : > { %24960 = vst [vmem:[#allocation11_spill] sm:$0xff] %v19070_v43  ;;  %v535_v43 = vld [vmem:[%s18838_s22 + $0x300] sm:$0xff] }
 0x109   : > { %v19073_v47 = vpop.f32.mrf.mxu1  ;;  %18164 = vmatmul.mubr.msk.f32.gmra.mxu1 %vm695_vm0, %v498_v42 }
 0x10a   : > { %24961 = vst [vmem:[#allocation12_spill] sm:$0xff] %v19073_v47  ;;  %18166 = vmatprep.mubr.msk.f32.mxu1 %vm695_vm0, %v499_v45  ;;  %v509_v45 = vld [vmem:[%s18838_s22 + $0x230] sm:$0xff] }
 0x10b   : > { %v19080_v53 = vpop.f32.mrf.mxu1  ;;  %v533_v47 = vld [vmem:[%s18838_s22 + $0x2f0] sm:$0xff] }
 0x10c   : > { %24962 = vst [vmem:[#allocation13_spill] sm:$0xff] %v19080_v53  ;;  %v531_v53 = vld [vmem:[%s18838_s22 + $0x2e0] sm:$0xff] }
 0x10d   : > { %v19083_v57 = vpop.f32.mrf.mxu1  ;;  %18167 = vmatmul.mubr.msk.f32.gmra.mxu1 %vm695_vm0, %v500_v51 }
 0x10e   : > { %24963 = vst [vmem:[#allocation14_spill] sm:$0xff] %v19083_v57  ;;  %18169 = vmatprep.mubr.msk.f32.mxu1 %vm695_vm0, %v501_v55  ;;  %v19126_v55 = vpop.f32.mrf.mxu0  ;;  %v529_v57 = vld [vmem:[%s18838_s22 + $0x2d0] sm:$0xff] }
 0x10f   : > { %v19090_v63 = vpop.f32.mrf.mxu1 }
 0x110   : > { %24964 = vst [vmem:[#allocation15_spill] sm:$0xff] %v19090_v63  ;;  %v527_v63 = vld [vmem:[%s18838_s22 + $0x2c0] sm:$0xff] }
 0x111   : > { %v19093_v4 = vpop.f32.mrf.mxu1  ;;  %18170 = vmatmul.mubr.msk.f32.gmra.mxu1 %vm695_vm0, %v502_v61  ;;  %v510_v61 = vld [vmem:[%s18838_s22 + $0x238] sm:$0xff] }
 0x112   : > { %24965 = vst [vmem:[#allocation16_spill] sm:$0xff] %v19093_v4  ;;  %18172 = vmatprep.mubr.msk.f32.mxu1 %vm695_vm0, %v503_v1  ;;  %v525_v4 = vld [vmem:[%s18838_s22 + $0x2b0] sm:$0xff] }
 0x113   : > { %v19100_v13 = vpop.f32.mrf.mxu1 }
 0x114   : > { %24966 = vst [vmem:[#allocation17_spill] sm:$0xff] %v19100_v13  ;;  %v523_v13 = vld [vmem:[%s18838_s22 + $0x2a0] sm:$0xff] }
 0x115   : > { %v19103_v19 = vpop.f32.mrf.mxu1  ;;  %18173 = vmatmul.mubr.msk.f32.gmra.mxu1 %vm695_vm0, %v504_v10  ;;  %v511_v10 = vld [vmem:[%s18838_s22 + $0x240] sm:$0xff] }
 0x116   : > { %24967 = vst [vmem:[#allocation18_spill] sm:$0xff] %v19103_v19  ;;  %18175 = vmatprep.mubr.msk.f32.mxu1 %vm695_vm0, %v505_v16  ;;  %v521_v19 = vld [vmem:[%s18838_s22 + $0x290] sm:$0xff] }
 0x117   : > { %v19110_v28 = vpop.f32.mrf.mxu1 }
 0x118   : > { %24968 = vst [vmem:[#allocation19_spill] sm:$0xff] %v19110_v28  ;;  %v519_v28 = vld [vmem:[%s18838_s22 + $0x280] sm:$0xff] }
 0x119   : > { %v19113_v34 = vpop.f32.mrf.mxu1  ;;  %18176 = vmatmul.mubr.msk.f32.gmra.mxu1 %vm695_vm0, %v506_v25  ;;  %v19136_v25 = vpop.f32.mrf.mxu0 }
 0x11a   : > { %24969 = vst [vmem:[#allocation20_spill] sm:$0xff] %v19113_v34  ;;  %18178 = vmatprep.mubr.msk.f32.mxu1 %vm695_vm0, %v507_v31  ;;  %v512_v31 = vld [vmem:[%s18838_s22 + $0x248] sm:$0xff]  ;;  %v517_v34 = vld [vmem:[%s18838_s22 + $0x270] sm:$0xff] }
 0x11b   : > { %v19120_v42 = vpop.f32.mrf.mxu1 }
 0x11c   : > { %24970 = vst [vmem:[#allocation21_spill] sm:$0xff] %v19120_v42  ;;  %v515_v42 = vld [vmem:[%s18838_s22 + $0x260] sm:$0xff] }
 0x11d   : > { %v19123_v51 = vpop.f32.mrf.mxu1  ;;  %18179 = vmatmul.mubr.msk.f32.gmra.mxu1 %vm695_vm0, %v508_v39 }
 0x11e   : > { %24971 = vst [vmem:[#allocation22_spill] sm:$0xff] %v19123_v51  ;;  %18181 = vmatprep.mubr.msk.f32.mxu1 %vm695_vm0, %v509_v45  ;;  %v513_v51 = vld [vmem:[%s18838_s22 + $0x250] sm:$0xff] }
 0x11f   : > { %v19130_v1 = vpop.f32.mrf.mxu1 }
 0x120   : > { %24972 = vst [vmem:[#allocation23_spill] sm:$0xff] %v19130_v1  ;;  %v19146_v1 = vpop.f32.mrf.mxu0 }
 0x121   : > { %v19133_v16 = vpop.f32.mrf.mxu1  ;;  %18182 = vmatmul.mubr.msk.f32.gmra.mxu1 %vm695_vm0, %v510_v61  ;;  %v514_v61 = vld [vmem:[%s18838_s22 + $0x258] sm:$0xff] }
 0x122   : > { %24973 = vst [vmem:[#allocation24_spill] sm:$0xff] %v19133_v16  ;;  %18184 = vmatprep.mubr.msk.f32.mxu1 %vm695_vm0, %v511_v10 }
 0x123   : > { %v19140_v39 = vpop.f32.mrf.mxu1 }
 0x124   : > { %24974 = vst [vmem:[#allocation25_spill] sm:$0xff] %v19140_v39  ;;  %v19156_v39 = vpop.f32.mrf.mxu0 }
 0x125   : > { %v19143_v45 = vpop.f32.mrf.mxu1  ;;  %18185 = vmatmul.mubr.msk.f32.gmra.mxu1 %vm695_vm0, %v512_v31  ;;  %v516_v31 = vld [vmem:[%s18838_s22 + $0x268] sm:$0xff] }
 0x126   : > { %24975 = vst [vmem:[#allocation26_spill] sm:$0xff] %v19143_v45  ;;  %18187 = vmatprep.mubr.msk.f32.mxu1 %vm695_vm0, %v513_v51 }
 0x127   : > { %v19150_v16 = vpop.f32.mrf.mxu1 }
 0x128   : > { %24976 = vst [vmem:[#allocation27_spill] sm:$0xff] %v19150_v16  ;;  %v19166_v16 = vpop.f32.mrf.mxu0 }
 0x129   : > { %v19153_v10 = vpop.f32.mrf.mxu1  ;;  %18188 = vmatmul.mubr.msk.f32.gmra.mxu1 %vm695_vm0, %v514_v61  ;;  %v518_v61 = vld [vmem:[%s18838_s22 + $0x278] sm:$0xff] }
 0x12a   : > { %24977 = vst [vmem:[#allocation28_spill] sm:$0xff] %v19153_v10  ;;  %18190 = vmatprep.mubr.msk.f32.mxu1 %vm695_vm0, %v515_v42 }
 0x12b   : > { %v19160_v45 = vpop.f32.mrf.mxu1 }
 0x12c   : > { %24978 = vst [vmem:[#allocation29_spill] sm:$0xff] %v19160_v45  ;;  %v19176_v45 = vpop.f32.mrf.mxu0 }
 0x12d   : > { %v19163_v51 = vpop.f32.mrf.mxu1  ;;  %18191 = vmatmul.mubr.msk.f32.gmra.mxu1 %vm695_vm0, %v516_v31  ;;  %v520_v31 = vld [vmem:[%s18838_s22 + $0x288] sm:$0xff] }
 0x12e   : > { %24979 = vst [vmem:[#allocation30_spill] sm:$0xff] %v19163_v51  ;;  %18193 = vmatprep.mubr.msk.f32.mxu1 %vm695_vm0, %v517_v34 }
 0x12f   : > { %v19170_v10 = vpop.f32.mrf.mxu1 }
 0x130   : > { %24980 = vst [vmem:[#allocation31_spill] sm:$0xff] %v19170_v10  ;;  %v19186_v10 = vpop.f32.mrf.mxu0 }
 0x131   : > { %v19173_v42 = vpop.f32.mrf.mxu1  ;;  %18194 = vmatmul.mubr.msk.f32.gmra.mxu1 %vm695_vm0, %v518_v61  ;;  %v522_v61 = vld [vmem:[%s18838_s22 + $0x298] sm:$0xff] }
 0x132   : > { %24981 = vst [vmem:[#allocation32_spill] sm:$0xff] %v19173_v42  ;;  %18196 = vmatprep.mubr.msk.f32.mxu1 %vm695_vm0, %v519_v28 }
 0x133   : > { %v19180_v51 = vpop.f32.mrf.mxu1 }
 0x134   : > { %24982 = vst [vmem:[#allocation33_spill] sm:$0xff] %v19180_v51  ;;  %v19196_v51 = vpop.f32.mrf.mxu0 }
 0x135   : > { %v19183_v34 = vpop.f32.mrf.mxu1  ;;  %18197 = vmatmul.mubr.msk.f32.gmra.mxu1 %vm695_vm0, %v520_v31  ;;  %v524_v31 = vld [vmem:[%s18838_s22 + $0x2a8] sm:$0xff] }
 0x136   : > { %24983 = vst [vmem:[#allocation34_spill] sm:$0xff] %v19183_v34  ;;  %18199 = vmatprep.mubr.msk.f32.mxu1 %vm695_vm0, %v521_v19 }
 0x137   : > { %v19190_v42 = vpop.f32.mrf.mxu1 }
 0x138   : > { %24984 = vst [vmem:[#allocation35_spill] sm:$0xff] %v19190_v42  ;;  %v19206_v42 = vpop.f32.mrf.mxu0 }
 0x139   : > { %v19193_v28 = vpop.f32.mrf.mxu1  ;;  %18200 = vmatmul.mubr.msk.f32.gmra.mxu1 %vm695_vm0, %v522_v61  ;;  %v526_v61 = vld [vmem:[%s18838_s22 + $0x2b8] sm:$0xff] }
 0x13a   : > { %24985 = vst [vmem:[#allocation36_spill] sm:$0xff] %v19193_v28  ;;  %18202 = vmatprep.mubr.msk.f32.mxu1 %vm695_vm0, %v523_v13 }
 0x13b   : > { %v19200_v34 = vpop.f32.mrf.mxu1 }
 0x13c   : > { %24986 = vst [vmem:[#allocation37_spill] sm:$0xff] %v19200_v34  ;;  %v19216_v34 = vpop.f32.mrf.mxu0 }
 0x13d   : > { %v19203_v19 = vpop.f32.mrf.mxu1  ;;  %18203 = vmatmul.mubr.msk.f32.gmra.mxu1 %vm695_vm0, %v524_v31  ;;  %v528_v31 = vld [vmem:[%s18838_s22 + $0x2c8] sm:$0xff] }
 0x13e   : > { %24987 = vst [vmem:[#allocation38_spill] sm:$0xff] %v19203_v19  ;;  %18205 = vmatprep.mubr.msk.f32.mxu1 %vm695_vm0, %v525_v4 }
 0x13f   : > { %v19210_v28 = vpop.f32.mrf.mxu1 }
 0x140   : > { %24988 = vst [vmem:[#allocation39_spill] sm:$0xff] %v19210_v28  ;;  %v19226_v28 = vpop.f32.mrf.mxu0 }
 0x141   : > { %v19213_v13 = vpop.f32.mrf.mxu1  ;;  %18206 = vmatmul.mubr.msk.f32.gmra.mxu1 %vm695_vm0, %v526_v61  ;;  %v530_v61 = vld [vmem:[%s18838_s22 + $0x2d8] sm:$0xff] }
 0x142   : > { %24989 = vst [vmem:[#allocation40_spill] sm:$0xff] %v19213_v13  ;;  %18208 = vmatprep.mubr.msk.f32.mxu1 %vm695_vm0, %v527_v63 }
 0x143   : > { %v19220_v19 = vpop.f32.mrf.mxu1 }
 0x144   : > { %24990 = vst [vmem:[#allocation41_spill] sm:$0xff] %v19220_v19  ;;  %v19236_v19 = vpop.f32.mrf.mxu0 }
 0x145   : > { %v19223_v4 = vpop.f32.mrf.mxu1  ;;  %18209 = vmatmul.mubr.msk.f32.gmra.mxu1 %vm695_vm0, %v528_v31  ;;  %v532_v31 = vld [vmem:[%s18838_s22 + $0x2e8] sm:$0xff] }
 0x146   : > { %24991 = vst [vmem:[#allocation42_spill] sm:$0xff] %v19223_v4  ;;  %18211 = vmatprep.mubr.msk.f32.mxu1 %vm695_vm0, %v529_v57 }
 0x147   : > { %v19230_v13 = vpop.f32.mrf.mxu1 }
 0x148   : > { %24992 = vst [vmem:[#allocation43_spill] sm:$0xff] %v19230_v13  ;;  %v19246_v13 = vpop.f32.mrf.mxu0 }
 0x149   : > { %v19233_v63 = vpop.f32.mrf.mxu1  ;;  %18212 = vmatmul.mubr.msk.f32.gmra.mxu1 %vm695_vm0, %v530_v61 }
 0x14a   : > { %24993 = vst [vmem:[#allocation44_spill] sm:$0xff] %v19233_v63  ;;  %18214 = vmatprep.mubr.msk.f32.mxu1 %vm695_vm0, %v531_v53  ;;  %v534_v63 = vld [vmem:[%s18838_s22 + $0x2f8] sm:$0xff] }
 0x14b   : > { %v19240_v4 = vpop.f32.mrf.mxu1 }
 0x14c   : > { %24994 = vst [vmem:[#allocation45_spill] sm:$0xff] %v19240_v4  ;;  %v19256_v4 = vpop.f32.mrf.mxu0 }
 0x14d   : > { %v19243_v57 = vpop.f32.mrf.mxu1  ;;  %18215 = vmatmul.mubr.msk.f32.gmra.mxu1 %vm695_vm0, %v532_v31 }
 0x14e   : > { %24995 = vst [vmem:[#allocation46_spill] sm:$0xff] %v19243_v57  ;;  %18217 = vmatprep.mubr.msk.f32.mxu1 %vm695_vm0, %v533_v47  ;;  %v536_v57 = vld [vmem:[%s18838_s22 + $0x308] sm:$0xff]  ;;  %v19264_v47 = vpop.f32.mrf.mxu0 }
 0x14f   : > { %v19250_v61 = vpop.f32.mrf.mxu1 }
 0x150   : > { %24996 = vst [vmem:[#allocation47_spill] sm:$0xff] %v19250_v61  ;;  %v19278_v30 = vpop.f32.mrf.mxu0 }
 0x151   : > { %v19253_v53 = vpop.f32.mrf.mxu1  ;;  %18218 = vmatmul.mubr.msk.f32.gmra.mxu1 %vm695_vm0, %v534_v63 }
 0x152   : > { %24997 = vst [vmem:[#allocation48_spill] sm:$0xff] %v19253_v53  ;;  %18220 = vmatprep.mubr.msk.f32.mxu1 %vm695_vm0, %v535_v43  ;;  %v19269_v53 = vld [vmem:[%s24847_s5] ss:$0 sm:$0xff]  ;;  %v538_v43 = vld [vmem:[%s18838_s22 + $0x318] sm:$0xff] }
 0x153   : > { %v19260_v31 = vpop.f32.mrf.mxu1 }
 0x154   : > { %24998 = vst [vmem:[#allocation49_spill] sm:$0xff] %v19260_v31  ;;  %v539_v31 = vld [vmem:[%s18838_s22 + $0x320] sm:$0xff] }
 0x155   : > { %v18078_v38 = vpop.f32.mrf.mxu1  ;;  %18221 = vmatmul.mubr.msk.f32.gmra.mxu1 %vm695_vm0, %v536_v57 }
 0x156   : > { %v2241_v63 = vadd.f32 %v18078_v38, %v18988_v2  ;;  %18223 = vmatprep.mubr.msk.f32.mxu1 %vm695_vm0, %v537_v40  ;;  %v540_v2 = vld [vmem:[%s18838_s22 + $0x328] sm:$0xff]  ;;  %v541_v40 = vld [vmem:[%s18838_s22 + $0x330] sm:$0xff] }
 0x157   : > { %v2235_v61 = vpop.f32.mrf.mxu1 }
 0x158   : > { %v2236_v35 = vadd.f32 %v2235_v61, %v18993_v5  ;;  %v2881_v57 = vadd.f32 %v19269_v53, %v2241_v63 }
 0x159   : > { %v18081_v33 = vpop.f32.mrf.mxu1  ;;  %18224 = vmatmul.mubr.msk.f32.gmra.mxu1 %vm695_vm0, %v538_v43 }
 0x15a   : > { %v2880_v27 = vadd.f32 %v19269_v53, %v2236_v35  ;;  %v2251_v24 = vadd.f32 %v18081_v33, %v19000_v8  ;;  %18226 = vmatprep.mubr.msk.f32.mxu1 %vm695_vm0, %v539_v31  ;;  %v3009_v63 = vmax.f32 %v2881_v57, 0.0  ;;  %v19288_v35 = vpop.f32.mrf.mxu0 }
 0x15b   : > { %v2245_v38 = vpop.f32.mrf.mxu1 }
 0x15c   : > { %v3008_v5 = vmax.f32 %v2880_v27, 0.0  ;;  %v2246_v61 = vadd.f32 %v2245_v38, %v19005_v11  ;;  %v2883_v43 = vadd.f32 %v19269_v53, %v2251_v24  ;;  %v542_v27 = vld [vmem:[%s18838_s22 + $0x338] sm:$0xff]  ;;  %v543_v11 = vld [vmem:[%s18838_s22 + $0x340] sm:$0xff] }
 0x15d   : > { %v18084_v21 = vpop.f32.mrf.mxu1  ;;  %18227 = vmatmul.mubr.msk.f32.gmra.mxu1 %vm695_vm0, %v540_v2 }
 0x15e   : > { %v2882_v8 = vadd.f32 %v19269_v53, %v2246_v61  ;;  %v2261_v33 = vadd.f32 %v18084_v21, %v19012_v14  ;;  %18276 = vmatprep.mubr.msk.f32.mxu0 %vm3147_vm1, %v3008_v5  ;;  %18229 = vmatprep.mubr.msk.f32.mxu1 %vm695_vm0, %v541_v40  ;;  %v3011_v38 = vmax.f32 %v2883_v43, 0.0  ;;  %v19300_v14 = vpop.f32.mrf.mxu0  ;;  %v544_v5 = vld [vmem:[%s18838_s22 + $0x348] sm:$0xff] }
 0x15f   : > { %v2255_v31 = vpop.f32.mrf.mxu1  ;;  %18277 = vmatmul.mubr.msk.f32.vlgmr.msra.gmra.mxu0 %vm3147_vm1, %v3009_v63 }
 0x160   : > { %v3010_v24 = vmax.f32 %v2882_v8, 0.0  ;;  %v2885_v57 = vadd.f32 %v19269_v53, %v2261_v33  ;;  %v2256_v2 = vadd.f32 %v2255_v31, %v19017_v17  ;;  %v545_v17 = vld [vmem:[%s18838_s22 + $0x350] sm:$0xff] }
 0x161   : > { %v18087_v61 = vpop.f32.mrf.mxu1  ;;  %18230 = vmatmul.mubr.msk.f32.gmra.mxu1 %vm695_vm0, %v542_v27 }
 0x162   : > { %v2884_v21 = vadd.f32 %v19269_v53, %v2256_v2  ;;  %v2271_v40 = vadd.f32 %v18087_v61, %v19024_v20  ;;  %18279 = vmatprep.mubr.msk.f32.mxu0 %vm3147_vm1, %v3010_v24  ;;  %18232 = vmatprep.mubr.msk.f32.mxu1 %vm695_vm0, %v543_v11  ;;  %v3013_v63 = vmax.f32 %v2885_v57, 0.0  ;;  %v19312_v20 = vpop.f32.mrf.mxu0  ;;  %v546_v57 = vld [vmem:[%s18838_s22 + $0x358] sm:$0xff] }
 0x163   : > { %v2265_v8 = vpop.f32.mrf.mxu1  ;;  %18280 = vmatmul.mubr.msk.f32.gmra.mxu0 %vm3147_vm1, %v3011_v38 }
 0x164   : > { %v3012_v43 = vmax.f32 %v2884_v21, 0.0  ;;  %v2887_v33 = vadd.f32 %v19269_v53, %v2271_v40  ;;  %v2266_v27 = vadd.f32 %v2265_v8, %v19029_v23  ;;  %v547_v23 = vld [vmem:[%s18838_s22 + $0x360] sm:$0xff] }
 0x165   : > { %v18090_v31 = vpop.f32.mrf.mxu1  ;;  %18233 = vmatmul.mubr.msk.f32.gmra.mxu1 %vm695_vm0, %v544_v5 }
 0x166   : > { %v2886_v11 = vadd.f32 %v19269_v53, %v2266_v27  ;;  %v2281_v24 = vadd.f32 %v18090_v31, %v19036_v26  ;;  %18282 = vmatprep.mubr.msk.f32.mxu0 %vm3147_vm1, %v3012_v43  ;;  %18235 = vmatprep.mubr.msk.f32.mxu1 %vm695_vm0, %v545_v17  ;;  %v3015_v2 = vmax.f32 %v2887_v33, 0.0  ;;  %v19324_v26 = vpop.f32.mrf.mxu0 }
 0x167   : > { %v2275_v38 = vpop.f32.mrf.mxu1  ;;  %18283 = vmatmul.mubr.msk.f32.gmra.mxu0 %vm3147_vm1, %v3013_v63  ;;  %v548_v63 = vld [vmem:[%s18838_s22 + $0x368] sm:$0xff] }
 0x168   : > { %v3014_v61 = vmax.f32 %v2886_v11, 0.0  ;;  %v2889_v21 = vadd.f32 %v19269_v53, %v2281_v24  ;;  %v2276_v40 = vadd.f32 %v2275_v38, %v19041_v29  ;;  %v549_v29 = vld [vmem:[%s18838_s22 + $0x370] sm:$0xff] }
 0x169   : > { %v18093_v5 = vpop.f32.mrf.mxu1  ;;  %18236 = vmatmul.mubr.msk.f32.gmra.mxu1 %vm695_vm0, %v546_v57 }
 0x16a   : > { %v2888_v8 = vadd.f32 %v19269_v53, %v2276_v40  ;;  %v2291_v17 = vadd.f32 %v18093_v5, %v19048_v32  ;;  %18285 = vmatprep.mubr.msk.f32.mxu0 %vm3147_vm1, %v3014_v61  ;;  %18238 = vmatprep.mubr.msk.f32.mxu1 %vm695_vm0, %v547_v23  ;;  %v3017_v43 = vmax.f32 %v2889_v21, 0.0  ;;  %v19336_v32 = vpop.f32.mrf.mxu0 }
 0x16b   : > { %v2285_v33 = vpop.f32.mrf.mxu1  ;;  %18286 = vmatmul.mubr.msk.f32.gmra.mxu0 %vm3147_vm1, %v3015_v2  ;;  %v550_v2 = vld [vmem:[%s18838_s22 + $0x378] sm:$0xff] }
 0x16c   : > { %v3016_v27 = vmax.f32 %v2888_v8, 0.0  ;;  %v2891_v31 = vadd.f32 %v19269_v53, %v2291_v17  ;;  %v2286_v11 = vadd.f32 %v2285_v33, %v19056_v36  ;;  %v551_v36 = vld [vmem:[%s18838_s22 + $0x380] sm:$0xff] }
 0x16d   : > { %v18096_v24 = vpop.f32.mrf.mxu1  ;;  %18239 = vmatmul.mubr.msk.f32.gmra.mxu1 %vm695_vm0, %v548_v63 }
 0x16e   : > { %v2890_v57 = vadd.f32 %v19269_v53, %v2286_v11  ;;  %v2301_v38 = vadd.f32 %v18096_v24, %v19066_v41  ;;  %18288 = vmatprep.mubr.msk.f32.mxu0 %vm3147_vm1, %v3016_v27  ;;  %18241 = vmatprep.mubr.msk.f32.mxu1 %vm695_vm0, %v549_v29  ;;  %v3019_v23 = vmax.f32 %v2891_v31, 0.0  ;;  %v19348_v41 = vpop.f32.mrf.mxu0 }
 0x16f   : > { %v2295_v61 = vpop.f32.mrf.mxu1  ;;  %18289 = vmatmul.mubr.msk.f32.gmra.mxu0 %vm3147_vm1, %v3017_v43  ;;  %v552_v43 = vld [vmem:[%s18838_s22 + $0x388] sm:$0xff] }
 0x170   : > { %v3018_v21 = vmax.f32 %v2890_v57, 0.0  ;;  %v2893_v40 = vadd.f32 %v19269_v53, %v2301_v38  ;;  %v2296_v5 = vadd.f32 %v2295_v61, %v19076_v49  ;;  %v553_v49 = vld [vmem:[%s18838_s22 + $0x390] sm:$0xff] }
 0x171   : > { %v18099_v8 = vpop.f32.mrf.mxu1  ;;  %18242 = vmatmul.mubr.msk.f32.gmra.mxu1 %vm695_vm0, %v550_v2  ;;  %v554_v2 = vld [vmem:[%s18838_s22 + $0x398] sm:$0xff] }
 0x172   : > { %v2892_v17 = vadd.f32 %v19269_v53, %v2296_v5  ;;  %v2311_v63 = vadd.f32 %v18099_v8, %v19086_v59  ;;  %18291 = vmatprep.mubr.msk.f32.mxu0 %vm3147_vm1, %v3018_v21  ;;  %18244 = vmatprep.mubr.msk.f32.mxu1 %vm695_vm0, %v551_v36  ;;  %v3021_v33 = vmax.f32 %v2893_v40, 0.0  ;;  %v19360_v59 = vpop.f32.mrf.mxu0 }
 0x173   : > { %v2305_v29 = vpop.f32.mrf.mxu1  ;;  %18292 = vmatmul.mubr.msk.f32.gmra.mxu0 %vm3147_vm1, %v3019_v23 }
 0x174   : > { %v3020_v27 = vmax.f32 %v2892_v17, 0.0  ;;  %v2895_v31 = vadd.f32 %v19269_v53, %v2311_v63  ;;  %v2306_v11 = vadd.f32 %v2305_v29, %v19096_v7  ;;  %v555_v7 = vld [vmem:[%s18838_s22 + $0x3a0] sm:$0xff]  ;;  %v556_v63 = vld [vmem:[%s18838_s22 + $0x3a8] sm:$0xff] }
 0x175   : > { %v18102_v24 = vpop.f32.mrf.mxu1  ;;  %18245 = vmatmul.mubr.msk.f32.gmra.mxu1 %vm695_vm0, %v552_v43 }
 0x176   : > { %v2894_v57 = vadd.f32 %v19269_v53, %v2306_v11  ;;  %v2321_v38 = vadd.f32 %v18102_v24, %v19106_v22  ;;  %18294 = vmatprep.mubr.msk.f32.mxu0 %vm3147_vm1, %v3020_v27  ;;  %18247 = vmatprep.mubr.msk.f32.mxu1 %vm695_vm0, %v553_v49  ;;  %v3023_v23 = vmax.f32 %v2895_v31, 0.0  ;;  %v19372_v22 = vpop.f32.mrf.mxu0 }
 0x177   : > { %v2315_v61 = vpop.f32.mrf.mxu1  ;;  %18295 = vmatmul.mubr.msk.f32.gmra.mxu0 %vm3147_vm1, %v3021_v33 }
 0x178   : > { %v3022_v36 = vmax.f32 %v2894_v57, 0.0  ;;  %v2897_v21 = vadd.f32 %v19269_v53, %v2321_v38  ;;  %v2316_v40 = vadd.f32 %v2315_v61, %v19116_v37  ;;  %v557_v37 = vld [vmem:[%s18838_s22 + $0x3b0] sm:$0xff]  ;;  %v558_v57 = vld [vmem:[%s18838_s22 + $0x3b8] sm:$0xff] }
 0x179   : > { %v18105_v5 = vpop.f32.mrf.mxu1  ;;  %18248 = vmatmul.mubr.msk.f32.gmra.mxu1 %vm695_vm0, %v554_v2 }
 0x17a   : > { %v2896_v8 = vadd.f32 %v19269_v53, %v2316_v40  ;;  %v2331_v17 = vadd.f32 %v18105_v5, %v19126_v55  ;;  %18297 = vmatprep.mubr.msk.f32.mxu0 %vm3147_vm1, %v3022_v36  ;;  %18250 = vmatprep.mubr.msk.f32.mxu1 %vm695_vm0, %v555_v7  ;;  %v3025_v43 = vmax.f32 %v2897_v21, 0.0  ;;  %v19384_v55 = vpop.f32.mrf.mxu0  ;;  %v560_v5 = vld [vmem:[%s18838_s22 + $0x3c8] sm:$0xff] }
 0x17b   : > { %v2325_v33 = vpop.f32.mrf.mxu1  ;;  %18298 = vmatmul.mubr.msk.f32.gmra.mxu0 %vm3147_vm1, %v3023_v23 }
 0x17c   : > { %v3024_v29 = vmax.f32 %v2896_v8, 0.0  ;;  %v2899_v49 = vadd.f32 %v19269_v53, %v2331_v17  ;;  %v2326_v27 = vadd.f32 %v2325_v33, %v19136_v25  ;;  %v559_v25 = vld [vmem:[%s18838_s22 + $0x3c0] sm:$0xff] }
 0x17d   : > { %v18108_v31 = vpop.f32.mrf.mxu1  ;;  %18251 = vmatmul.mubr.msk.f32.gmra.mxu1 %vm695_vm0, %v556_v63 }
 0x17e   : > { %v2898_v11 = vadd.f32 %v19269_v53, %v2326_v27  ;;  %v2341_v24 = vadd.f32 %v18108_v31, %v19146_v1  ;;  %18300 = vmatprep.mubr.msk.f32.mxu0 %vm3147_vm1, %v3024_v29  ;;  %18253 = vmatprep.mubr.msk.f32.mxu1 %vm695_vm0, %v557_v37  ;;  %v3027_v38 = vmax.f32 %v2899_v49, 0.0  ;;  %v19396_v1 = vpop.f32.mrf.mxu0  ;;  %v562_v27 = vld [vmem:[%s18838_s22 + $0x3d8] sm:$0xff] }
 0x17f   : > { %v2335_v2 = vpop.f32.mrf.mxu1  ;;  %18301 = vmatmul.mubr.msk.f32.gmra.mxu0 %vm3147_vm1, %v3025_v43 }
 0x180   : > { %v3026_v23 = vmax.f32 %v2898_v11, 0.0  ;;  %v2901_v61 = vadd.f32 %v19269_v53, %v2341_v24  ;;  %v2336_v7 = vadd.f32 %v2335_v2, %v19156_v39  ;;  %v561_v39 = vld [vmem:[%s18838_s22 + $0x3d0] sm:$0xff] }
 0x181   : > { %v18111_v36 = vpop.f32.mrf.mxu1  ;;  %18254 = vmatmul.mubr.msk.f32.gmra.mxu1 %vm695_vm0, %v558_v57 }
 0x182   : > { %v2900_v21 = vadd.f32 %v19269_v53, %v2336_v7  ;;  %v2351_v40 = vadd.f32 %v18111_v36, %v19166_v16  ;;  %18303 = vmatprep.mubr.msk.f32.mxu0 %vm3147_vm1, %v3026_v23  ;;  %18256 = vmatprep.mubr.msk.f32.mxu1 %vm695_vm0, %v559_v25  ;;  %v3029_v8 = vmax.f32 %v2901_v61, 0.0  ;;  %v19408_v16 = vpop.f32.mrf.mxu0  ;;  %v18506_v25 = vmov 0   ;;  %v5275_v23 = vld [vmem:[#allocation2] sm:$0x1]  ;;  %v564_v36 = vld [vmem:[%s18838_s22 + $0x3e8] sm:$0xff] }
 0x183   : > { %v2345_v17 = vpop.f32.mrf.mxu1  ;;  %18304 = vmatmul.mubr.msk.f32.gmra.mxu0 %vm3147_vm1, %v3027_v38  ;;  %18482 = vset.pattern.permute.xlu0 %v18506_v25 }
 0x184   : > { %v3028_v63 = vmax.f32 %v2900_v21, 0.0  ;;  %v2903_v43 = vadd.f32 %v19269_v53, %v2351_v40  ;;  %v2346_v33 = vadd.f32 %v2345_v17, %v19176_v45  ;;  %v563_v45 = vld [vmem:[%s18838_s22 + $0x3e0] sm:$0xff]  ;;  %v565_v40 = vld [vmem:[%s18838_s22 + $0x3f0] sm:$0xff]  ;;  %5278 = vperm.xlu0 %18482, %v5275_v23   ;;  %18483 = vset.pattern.permute.xlu1 %v18506_v25 }
 0x185   : > { %v18114_v37 = vpop.f32.mrf.mxu1  ;;  %18257 = vmatmul.mubr.msk.f32.gmra.mxu1 %vm695_vm0, %v560_v5 }
 0x186   : > { %v2902_v29 = vadd.f32 %v19269_v53, %v2346_v33  ;;  %v2361_v49 = vadd.f32 %v18114_v37, %v19186_v10  ;;  %18306 = vmatprep.mubr.msk.f32.mxu0 %vm3147_vm1, %v3028_v63  ;;  %18259 = vmatprep.mubr.msk.f32.mxu1 %vm695_vm0, %v561_v39  ;;  %v3031_v31 = vmax.f32 %v2903_v43, 0.0  ;;  %v19420_v10 = vpop.f32.mrf.mxu0  ;;  %v566_v33 = vld [vmem:[%s18838_s22 + $0x3f8] sm:$0xff] }
 0x187   : > { %v2355_v11 = vpop.f32.mrf.mxu1  ;;  %18307 = vmatmul.mubr.msk.f32.gmra.mxu0 %vm3147_vm1, %v3029_v8 }
 0x188   : > { %v3030_v24 = vmax.f32 %v2902_v29, 0.0  ;;  %v2905_v57 = vadd.f32 %v19269_v53, %v2361_v49  ;;  %v2356_v38 = vadd.f32 %v2355_v11, %v19196_v51 }
 0x189   : > { %v18117_v2 = vpop.f32.mrf.mxu1  ;;  %18260 = vmatmul.mubr.msk.f32.gmra.mxu1 %vm695_vm0, %v562_v27 }
 0x18a   : > { %v2904_v61 = vadd.f32 %v19269_v53, %v2356_v38  ;;  %v2371_v7 = vadd.f32 %v18117_v2, %v19206_v42  ;;  %18309 = vmatprep.mubr.msk.f32.mxu0 %vm3147_vm1, %v3030_v24  ;;  %18262 = vmatprep.mubr.msk.f32.mxu1 %vm695_vm0, %v563_v45  ;;  %v3033_v21 = vmax.f32 %v2905_v57, 0.0  ;;  %v19432_v42 = vpop.f32.mrf.mxu0 }
 0x18b   : > { %v2365_v51 = vpop.f32.mrf.mxu1  ;;  %18310 = vmatmul.mubr.msk.f32.gmra.mxu0 %vm3147_vm1, %v3031_v31 }
 0x18c   : > { %v3032_v5 = vmax.f32 %v2904_v61, 0.0  ;;  %v2907_v8 = vadd.f32 %v19269_v53, %v2371_v7  ;;  %v2366_v17 = vadd.f32 %v2365_v51, %v19216_v34  ;;  %v19443_v11 = vpop.f32.mrf.mxu0 }
 0x18d   : > { %v18120_v39 = vpop.f32.mrf.mxu1  ;;  %18263 = vmatmul.mubr.msk.f32.gmra.mxu1 %vm695_vm0, %v564_v36 }
 0x18e   : > { %v2906_v63 = vadd.f32 %v19269_v53, %v2366_v17  ;;  %v2381_v43 = vadd.f32 %v18120_v39, %v19226_v28  ;;  %18312 = vmatprep.mubr.msk.f32.mxu0 %vm3147_vm1, %v3032_v5  ;;  %18265 = vmatprep.mubr.msk.f32.mxu1 %vm695_vm0, %v565_v40  ;;  %v3035_v37 = vmax.f32 %v2907_v8, 0.0  ;;  %v19451_v23 = vpop.f32.mrf.mxu0 }
 0x18f   : > { %v2375_v29 = vpop.f32.mrf.mxu1  ;;  %18313 = vmatmul.mubr.msk.f32.gmra.mxu0 %vm3147_vm1, %v3033_v21 }
 0x190   : > { %v3034_v34 = vmax.f32 %v2906_v63, 0.0  ;;  %v2909_v49 = vadd.f32 %v19269_v53, %v2381_v43  ;;  %v2376_v27 = vadd.f32 %v2375_v29, %v19236_v19 }
 0x191   : > { %v18123_v31 = vpop.f32.mrf.mxu1  ;;  %18266 = vmatmul.mubr.msk.f32.gmra.mxu1 %vm695_vm0, %v566_v33 }
 0x192   : > { %v2908_v28 = vadd.f32 %v19269_v53, %v2376_v27  ;;  %v2391_v45 = vadd.f32 %v18123_v31, %v19246_v13  ;;  %18315 = vmatprep.mubr.msk.f32.mxu0 %vm3147_vm1, %v3034_v34  ;;  %v3037_v24 = vmax.f32 %v2909_v49, 0.0 }
 0x193   : > { %v2385_v57 = vpop.f32.mrf.mxu1  ;;  %18316 = vmatmul.mubr.msk.f32.gmra.mxu0 %vm3147_vm1, %v3035_v37 }
 0x194   : > { %v3036_v38 = vmax.f32 %v2908_v28, 0.0  ;;  %v2911_v2 = vadd.f32 %v19269_v53, %v2391_v45  ;;  %v2386_v19 = vadd.f32 %v2385_v57, %v19256_v4  ;;  %v19459_v4 = vpop.f32.mrf.mxu0 }
 0x195   : > { %v18126_v25 = vpop.f32.mrf.mxu1 }
 0x196   : > { %v2910_v61 = vadd.f32 %v19269_v53, %v2386_v19  ;;  %v2401_v7 = vadd.f32 %v18126_v25, %v19264_v47  ;;  %18318 = vmatprep.mubr.msk.f32.mxu0 %vm3147_vm1, %v3036_v38  ;;  %v3039_v13 = vmax.f32 %v2911_v2, 0.0 }
 0x197   : > { %v2395_v36 = vpop.f32.mrf.mxu1  ;;  %18319 = vmatmul.mubr.msk.f32.gmra.mxu0 %vm3147_vm1, %v3037_v24 }
 0x198   : > { %v3038_v21 = vmax.f32 %v2910_v61, 0.0  ;;  %v2913_v51 = vadd.f32 %v19269_v53, %v2401_v7  ;;  %v2396_v40 = vadd.f32 %v2395_v36, %v19278_v30  ;;  %v19467_v30 = vpop.f32.mrf.mxu0 }
 0x199   : > { %v18129_v5 = vpop.f32.mrf.mxu1 }
 0x19a   : > { %v2912_v8 = vadd.f32 %v19269_v53, %v2396_v40  ;;  %v2411_v17 = vadd.f32 %v18129_v5, %v19288_v35  ;;  %18321 = vmatprep.mubr.msk.f32.mxu0 %vm3147_vm1, %v3038_v21  ;;  %v3041_v47 = vmax.f32 %v2913_v51, 0.0 }
 0x19b   : > { %v2405_v39 = vpop.f32.mrf.mxu1  ;;  %18322 = vmatmul.mubr.msk.f32.gmra.mxu0 %vm3147_vm1, %v3039_v13 }
 0x19c   : > { %v3040_v63 = vmax.f32 %v2912_v8, 0.0  ;;  %v2915_v43 = vadd.f32 %v19269_v53, %v2411_v17  ;;  %v2406_v33 = vadd.f32 %v2405_v39, %v19300_v14  ;;  %v19475_v14 = vpop.f32.mrf.mxu0 }
 0x19d   : > { %v18132_v37 = vpop.f32.mrf.mxu1 }
 0x19e   : > { %v2914_v29 = vadd.f32 %v19269_v53, %v2406_v33  ;;  %v2421_v34 = vadd.f32 %v18132_v37, %v19312_v20  ;;  %18324 = vmatprep.mubr.msk.f32.mxu0 %vm3147_vm1, %v3040_v63  ;;  %v3043_v35 = vmax.f32 %v2915_v43, 0.0 }
 0x19f   : > { %v2415_v49 = vpop.f32.mrf.mxu1  ;;  %18325 = vmatmul.mubr.msk.f32.gmra.mxu0 %vm3147_vm1, %v3041_v47 }
 0x1a0   : > { %v3042_v27 = vmax.f32 %v2914_v29, 0.0  ;;  %v2917_v31 = vadd.f32 %v19269_v53, %v2421_v34  ;;  %v2416_v28 = vadd.f32 %v2415_v49, %v19324_v26  ;;  %v19483_v26 = vpop.f32.mrf.mxu0 }
 0x1a1   : > { %v18135_v45 = vpop.f32.mrf.mxu1 }
 0x1a2   : > { %v2916_v24 = vadd.f32 %v19269_v53, %v2416_v28  ;;  %v2431_v57 = vadd.f32 %v18135_v45, %v19336_v32  ;;  %18327 = vmatprep.mubr.msk.f32.mxu0 %vm3147_vm1, %v3042_v27  ;;  %v3045_v20 = vmax.f32 %v2917_v31, 0.0 }
 0x1a3   : > { %v2425_v38 = vpop.f32.mrf.mxu1  ;;  %18328 = vmatmul.mubr.msk.f32.gmra.mxu0 %vm3147_vm1, %v3043_v35 }
 0x1a4   : > { %v3044_v2 = vmax.f32 %v2916_v24, 0.0  ;;  %v2919_v19 = vadd.f32 %v19269_v53, %v2431_v57  ;;  %v2426_v25 = vadd.f32 %v2425_v38, %v19348_v41  ;;  %v19491_v41 = vpop.f32.mrf.mxu0 }
 0x1a5   : > { %v18138_v61 = vpop.f32.mrf.mxu1 }
 0x1a6   : > { %v2918_v7 = vadd.f32 %v19269_v53, %v2426_v25  ;;  %v2441_v13 = vadd.f32 %v18138_v61, %v19360_v59  ;;  %18330 = vmatprep.mubr.msk.f32.mxu0 %vm3147_vm1, %v3044_v2  ;;  %v3047_v32 = vmax.f32 %v2919_v19, 0.0 }
 0x1a7   : > { %v2435_v36 = vpop.f32.mrf.mxu1  ;;  %18331 = vmatmul.mubr.msk.f32.gmra.mxu0 %vm3147_vm1, %v3045_v20 }
 0x1a8   : > { %v3046_v21 = vmax.f32 %v2918_v7, 0.0  ;;  %v2921_v51 = vadd.f32 %v19269_v53, %v2441_v13  ;;  %v2436_v40 = vadd.f32 %v2435_v36, %v19372_v22  ;;  %v17963_v22 = vpop.f32.mrf.mxu0 }
 0x1a9   : > { %v18141_v5 = vpop.f32.mrf.mxu1 }
 0x1aa   : > { %v2920_v8 = vadd.f32 %v19269_v53, %v2436_v40  ;;  %v2451_v17 = vadd.f32 %v18141_v5, %v19384_v55  ;;  %18333 = vmatprep.mubr.msk.f32.mxu0 %vm3147_vm1, %v3046_v21  ;;  %v3049_v59 = vmax.f32 %v2921_v51, 0.0  ;;  %v1416_v28 = vpop.f32.mrf.mxu0 }
 0x1ab   : > { %v2445_v47 = vpop.f32.mrf.mxu1  ;;  %18334 = vmatmul.mubr.msk.f32.gmra.mxu0 %vm3147_vm1, %v3047_v32 }
 0x1ac   : > { %v3048_v39 = vmax.f32 %v2920_v8, 0.0  ;;  %v2923_v63 = vadd.f32 %v19269_v53, %v2451_v17  ;;  %v2446_v43 = vadd.f32 %v2445_v47, %v19396_v1  ;;  %v17966_v19 = vpop.f32.mrf.mxu0 }
 0x1ad   : > { %v18144_v33 = vpop.f32.mrf.mxu1 }
 0x1ae   : > { %v2922_v37 = vadd.f32 %v19269_v53, %v2446_v43  ;;  %v2461_v29 = vadd.f32 %v18144_v33, %v19408_v16  ;;  %18336 = vmatprep.mubr.msk.f32.mxu0 %vm3147_vm1, %v3048_v39  ;;  %v3051_v55 = vmax.f32 %v2923_v63, 0.0  ;;  %v1426_v21 = vpop.f32.mrf.mxu0 }
 0x1af   : > { %v2455_v34 = vpop.f32.mrf.mxu1  ;;  %18337 = vmatmul.mubr.msk.f32.gmra.mxu0 %vm3147_vm1, %v3049_v59 }
 0x1b0   : > { %v3050_v35 = vmax.f32 %v2922_v37, 0.0  ;;  %v2925_v49 = vadd.f32 %v19269_v53, %v2461_v29  ;;  %v2456_v27 = vadd.f32 %v2455_v34, %v19420_v10  ;;  %v17969_v47 = vpop.f32.mrf.mxu0 }
 0x1b1   : > { %v18147_v31 = vpop.f32.mrf.mxu1 }
 0x1b2   : > { %v2924_v1 = vadd.f32 %v19269_v53, %v2456_v27  ;;  %v2471_v45 = vadd.f32 %v18147_v31, %v19432_v42  ;;  %18339 = vmatprep.mubr.msk.f32.mxu0 %vm3147_vm1, %v3050_v35  ;;  %v3053_v16 = vmax.f32 %v2925_v49, 0.0 }
 0x1b3   : > { %v2465_v24 = vpop.f32.mrf.mxu1  ;;  %18340 = vmatmul.mubr.msk.f32.gmra.mxu0 %vm3147_vm1, %v3051_v55  ;;  %v1436_v55 = vpop.f32.mrf.mxu0 }
 0x1b4   : > { %v3052_v57 = vmax.f32 %v2924_v1, 0.0  ;;  %v2927_v20 = vadd.f32 %v19269_v53, %v2471_v45  ;;  %v2466_v38 = vadd.f32 %v2465_v24, %v19443_v11 }
 0x1b5   : > { %v18150_v2 = vpop.f32.mrf.mxu1  ;;  %v17972_v45 = vpop.f32.mrf.mxu0 }
 0x1b6   : > { %v2926_v10 = vadd.f32 %v19269_v53, %v2466_v38  ;;  %v2481_v25 = vadd.f32 %v18150_v2, %v19451_v23  ;;  %18342 = vmatprep.mubr.msk.f32.mxu0 %vm3147_vm1, %v3052_v57  ;;  %v3055_v42 = vmax.f32 %v2927_v20, 0.0 }
 0x1b7   : > { %v2475_v61 = vpop.f32.mrf.mxu1  ;;  %18343 = vmatmul.mubr.msk.f32.gmra.mxu0 %vm3147_vm1, %v3053_v16 }
 0x1b8   : > { %v3054_v7 = vmax.f32 %v2926_v10, 0.0  ;;  %v2929_v13 = vadd.f32 %v19269_v53, %v2481_v25  ;;  %v2476_v32 = vadd.f32 %v2475_v61, %v19459_v4  ;;  %v1446_v10 = vpop.f32.mrf.mxu0 }
 0x1b9   : > { %v18153_v36 = vpop.f32.mrf.mxu1 }
 0x1ba   : > { %v2928_v11 = vadd.f32 %v19269_v53, %v2476_v32  ;;  %v2491_v51 = vadd.f32 %v18153_v36, %v19467_v30  ;;  %18345 = vmatprep.mubr.msk.f32.mxu0 %vm3147_vm1, %v3054_v7  ;;  %v3057_v23 = vmax.f32 %v2929_v13, 0.0  ;;  %v17975_v36 = vpop.f32.mrf.mxu0 }
 0x1bb   : > { %v2485_v40 = vpop.f32.mrf.mxu1  ;;  %18346 = vmatmul.mubr.msk.f32.gmra.mxu0 %vm3147_vm1, %v3055_v42 }
 0x1bc   : > { %v3056_v5 = vmax.f32 %v2928_v11, 0.0  ;;  %v2931_v8 = vadd.f32 %v19269_v53, %v2491_v51  ;;  %v2486_v17 = vadd.f32 %v2485_v40, %v19475_v14 }
 0x1bd   : > { %v18156_v59 = vpop.f32.mrf.mxu1 }
 0x1be   : > { %v2930_v4 = vadd.f32 %v19269_v53, %v2486_v17  ;;  %v2501_v39 = vadd.f32 %v18156_v59, %v19483_v26  ;;  %18348 = vmatprep.mubr.msk.f32.mxu0 %vm3147_vm1, %v3056_v5  ;;  %v3059_v30 = vmax.f32 %v2931_v8, 0.0  ;;  %v1456_v59 = vpop.f32.mrf.mxu0 }
 0x1bf   : > { %v2495_v63 = vpop.f32.mrf.mxu1  ;;  %18349 = vmatmul.mubr.msk.f32.gmra.mxu0 %vm3147_vm1, %v3057_v23 }
 0x1c0   : > { %v3058_v43 = vmax.f32 %v2930_v4, 0.0  ;;  %v2933_v33 = vadd.f32 %v19269_v53, %v2501_v39  ;;  %v2496_v37 = vadd.f32 %v2495_v63, %v19491_v41 }
 0x1c1   : > { %v18159_v29 = vpop.f32.mrf.mxu1 }
 0x1c2   : > { %v2932_v14 = vadd.f32 %v19269_v53, %v2496_v37  ;;  %v2511_v34 = vadd.f32 %v18159_v29, %v17963_v22  ;;  %18351 = vmatprep.mubr.msk.f32.mxu0 %vm3147_vm1, %v3058_v43  ;;  %v3061_v35 = vmax.f32 %v2933_v33, 0.0 }
 0x1c3   : > { %v2505_v26 = vpop.f32.mrf.mxu1  ;;  %18352 = vmatmul.mubr.msk.f32.gmra.mxu0 %vm3147_vm1, %v3059_v30 }
 0x1c4   : > { %v3060_v49 = vmax.f32 %v2932_v14, 0.0  ;;  %v2935_v27 = vadd.f32 %v19269_v53, %v2511_v34  ;;  %v2506_v31 = vadd.f32 %v2505_v26, %v1416_v28 }
 0x1c5   : > { %v18162_v1 = vpop.f32.mrf.mxu1 }
 0x1c6   : > { %v2934_v16 = vadd.f32 %v19269_v53, %v2506_v31  ;;  %v2521_v41 = vadd.f32 %v18162_v1, %v17966_v19  ;;  %18354 = vmatprep.mubr.msk.f32.mxu0 %vm3147_vm1, %v3060_v49  ;;  %v3063_v24 = vmax.f32 %v2935_v27, 0.0 }
 0x1c7   : > { %v2515_v57 = vpop.f32.mrf.mxu1  ;;  %18355 = vmatmul.mubr.msk.f32.gmra.mxu0 %vm3147_vm1, %v3061_v35 }
 0x1c8   : > { %v3062_v22 = vmax.f32 %v2934_v16, 0.0  ;;  %v2937_v20 = vadd.f32 %v19269_v53, %v2521_v41  ;;  %v2516_v38 = vadd.f32 %v2515_v57, %v1426_v21 }
 0x1c9   : > { %v18165_v2 = vpop.f32.mrf.mxu1 }
 0x1ca   : > { %v2936_v25 = vadd.f32 %v19269_v53, %v2516_v38  ;;  %v2531_v28 = vadd.f32 %v18165_v2, %v17969_v47  ;;  %18357 = vmatprep.mubr.msk.f32.mxu0 %vm3147_vm1, %v3062_v22  ;;  %v3065_v42 = vmax.f32 %v2937_v20, 0.0 }
 0x1cb   : > { %v2525_v61 = vpop.f32.mrf.mxu1  ;;  %18358 = vmatmul.mubr.msk.f32.gmra.mxu0 %vm3147_vm1, %v3063_v24 }
 0x1cc   : > { %v3064_v19 = vmax.f32 %v2936_v25, 0.0  ;;  %v2939_v7 = vadd.f32 %v19269_v53, %v2531_v28  ;;  %v2526_v13 = vadd.f32 %v2525_v61, %v1436_v55 }
 0x1cd   : > { %v18168_v32 = vpop.f32.mrf.mxu1 }
 0x1ce   : > { %v2938_v11 = vadd.f32 %v19269_v53, %v2526_v13  ;;  %v2541_v21 = vadd.f32 %v18168_v32, %v17972_v45  ;;  %18360 = vmatprep.mubr.msk.f32.mxu0 %vm3147_vm1, %v3064_v19  ;;  %v3067_v51 = vmax.f32 %v2939_v7, 0.0 }
 0x1cf   : > { %v2535_v23 = vpop.f32.mrf.mxu1  ;;  %18361 = vmatmul.mubr.msk.f32.gmra.mxu0 %vm3147_vm1, %v3065_v42 }
 0x1d0   : > { %v3066_v40 = vmax.f32 %v2938_v11, 0.0  ;;  %v2941_v5 = vadd.f32 %v19269_v53, %v2541_v21  ;;  %v2536_v8 = vadd.f32 %v2535_v23, %v1446_v10 }
 0x1d1   : > { %v18171_v17 = vpop.f32.mrf.mxu1 }
 0x1d2   : > { %v2940_v47 = vadd.f32 %v19269_v53, %v2536_v8  ;;  %v2551_v4 = vadd.f32 %v18171_v17, %v17975_v36  ;;  %18363 = vmatprep.mubr.msk.f32.mxu0 %vm3147_vm1, %v3066_v40  ;;  %v3069_v39 = vmax.f32 %v2941_v5, 0.0 }
 0x1d3   : > { %v2545_v30 = vpop.f32.mrf.mxu1  ;;  %18364 = vmatmul.mubr.msk.f32.gmra.mxu0 %vm3147_vm1, %v3067_v51 }
 0x1d4   : > { %v3068_v63 = vmax.f32 %v2940_v47, 0.0  ;;  %v2943_v43 = vadd.f32 %v19269_v53, %v2551_v4  ;;  %v2546_v33 = vadd.f32 %v2545_v30, %v1456_v59 }
 0x1d5   : > { %v18174_v37 = vpop.f32.mrf.mxu1 }
 0x1d6   : > { %v2942_v29 = vadd.f32 %v19269_v53, %v2546_v33  ;;  %v2561_v55 = vadd.f32 %v18174_v37, %v18943_v44  ;;  %18366 = vmatprep.mubr.msk.f32.mxu0 %vm3147_vm1, %v3068_v63  ;;  %v3071_v14 = vmax.f32 %v2943_v43, 0.0 }
 0x1d7   : > { %v2555_v34 = vpop.f32.mrf.mxu1  ;;  %18367 = vmatmul.mubr.msk.f32.gmra.mxu0 %vm3147_vm1, %v3069_v39 }
 0x1d8   : > { %v3070_v35 = vmax.f32 %v2942_v29, 0.0  ;;  %v2556_v26 = vadd.f32 %v2555_v34, %v18948_v46  ;;  %v2945_v49 = vadd.f32 %v19269_v53, %v2561_v55 }
 0x1d9   : > { %v18177_v27 = vpop.f32.mrf.mxu1 }
 0x1da   : > { %v2944_v31 = vadd.f32 %v19269_v53, %v2556_v26  ;;  %v2571_v1 = vadd.f32 %v18177_v27, %v18951_v48  ;;  %18369 = vmatprep.mubr.msk.f32.mxu0 %vm3147_vm1, %v3070_v35  ;;  %v3073_v41 = vmax.f32 %v2945_v49, 0.0  ;;  %v24999_v27 = vld [vmem:[#allocation3_spill] sm:$0xff] }
 0x1db   : > { %v2565_v45 = vpop.f32.mrf.mxu1  ;;  %18370 = vmatmul.mubr.msk.f32.gmra.mxu0 %vm3147_vm1, %v3071_v14 }
 0x1dc   : > { %v3072_v44 = vmax.f32 %v2944_v31, 0.0  ;;  %v2566_v16 = vadd.f32 %v2565_v45, %v18956_v50  ;;  %v2947_v24 = vadd.f32 %v19269_v53, %v2571_v1 }
 0x1dd   : > { %v18180_v57 = vpop.f32.mrf.mxu1 }
 0x1de   : > { %v2946_v46 = vadd.f32 %v19269_v53, %v2566_v16  ;;  %v2581_v22 = vadd.f32 %v18180_v57, %v18959_v52  ;;  %18372 = vmatprep.mubr.msk.f32.mxu0 %vm3147_vm1, %v3072_v44  ;;  %v3075_v2 = vmax.f32 %v2947_v24, 0.0  ;;  %v25000_v16 = vld [vmem:[#allocation4_spill] sm:$0xff]  ;;  %v25001_v57 = vld [vmem:[#allocation5_spill] sm:$0xff] }
 0x1df   : > { %v2575_v20 = vpop.f32.mrf.mxu1  ;;  %18373 = vmatmul.mubr.msk.f32.gmra.mxu0 %vm3147_vm1, %v3073_v41 }
 0x1e0   : > { %v3074_v48 = vmax.f32 %v2946_v46, 0.0  ;;  %v2576_v38 = vadd.f32 %v2575_v20, %v18964_v54  ;;  %v2949_v10 = vadd.f32 %v19269_v53, %v2581_v22 }
 0x1e1   : > { %v18183_v50 = vpop.f32.mrf.mxu1 }
 0x1e2   : > { %v2948_v25 = vadd.f32 %v19269_v53, %v2576_v38  ;;  %v2591_v28 = vadd.f32 %v18183_v50, %v18967_v56  ;;  %18375 = vmatprep.mubr.msk.f32.mxu0 %vm3147_vm1, %v3074_v48  ;;  %v3077_v19 = vmax.f32 %v2949_v10, 0.0 }
 0x1e3   : > { %v2585_v42 = vpop.f32.mrf.mxu1  ;;  %18376 = vmatmul.mubr.msk.f32.gmra.mxu0 %vm3147_vm1, %v3075_v2  ;;  %v25002_v2 = vld [vmem:[#allocation6_spill] sm:$0xff] }
 0x1e4   : > { %v3076_v52 = vmax.f32 %v2948_v25, 0.0  ;;  %v2586_v61 = vadd.f32 %v2585_v42, %v18972_v58  ;;  %v2951_v7 = vadd.f32 %v19269_v53, %v2591_v28  ;;  %v25003_v28 = vld [vmem:[#allocation7_spill] sm:$0xff] }
 0x1e5   : > { %v18186_v54 = vpop.f32.mrf.mxu1 }
 0x1e6   : > { %v2950_v13 = vadd.f32 %v19269_v53, %v2586_v61  ;;  %v2601_v32 = vadd.f32 %v18186_v54, %v18975_v60  ;;  %18378 = vmatprep.mubr.msk.f32.mxu0 %vm3147_vm1, %v3076_v52  ;;  %v3079_v21 = vmax.f32 %v2951_v7, 0.0  ;;  %v19617_v61 = vld [vmem:[%s24847_s5] ss:$0 sm:$0xff]  ;;  %v25004_v54 = vld [vmem:[#allocation8_spill] sm:$0xff] }
 0x1e7   : > { %v2595_v36 = vpop.f32.mrf.mxu1  ;;  %18379 = vmatmul.mubr.msk.f32.gmra.mxu0 %vm3147_vm1, %v3077_v19 }
 0x1e8   : > { %v3078_v56 = vmax.f32 %v2950_v13, 0.0  ;;  %v2596_v11 = vadd.f32 %v2595_v36, %v18980_v62  ;;  %v2953_v51 = vadd.f32 %v19269_v53, %v2601_v32 }
 0x1e9   : > { %v18189_v58 = vpop.f32.mrf.mxu1 }
 0x1ea   : > { %v2952_v23 = vadd.f32 %v19269_v53, %v2596_v11  ;;  %v2611_v40 = vadd.f32 %v18189_v58, %v18983_v0  ;;  %18381 = vmatprep.mubr.msk.f32.mxu0 %vm3147_vm1, %v3078_v56  ;;  %v3081_v17 = vmax.f32 %v2953_v51, 0.0  ;;  %v25005_v56 = vld [vmem:[#allocation9_spill] sm:$0xff] }
 0x1eb   : > { %v2605_v5 = vpop.f32.mrf.mxu1  ;;  %18382 = vmatmul.mubr.msk.f32.gmra.mxu0 %vm3147_vm1, %v3079_v21 }
 0x1ec   : > { %v3080_v60 = vmax.f32 %v2952_v23, 0.0  ;;  %v2606_v8 = vadd.f32 %v2605_v5, %v18990_v3  ;;  %v2955_v59 = vadd.f32 %v19269_v53, %v2611_v40  ;;  %v25006_v40 = vld [vmem:[#allocation10_spill] sm:$0xff] }
 0x1ed   : > { %v18192_v62 = vpop.f32.mrf.mxu1 }
 0x1ee   : > { %v2954_v47 = vadd.f32 %v19269_v53, %v2606_v8  ;;  %v2621_v4 = vadd.f32 %v18192_v62, %v18995_v6  ;;  %18384 = vmatprep.mubr.msk.f32.mxu0 %vm3147_vm1, %v3080_v60  ;;  %v3083_v63 = vmax.f32 %v2955_v59, 0.0 }
 0x1ef   : > { %v2615_v39 = vpop.f32.mrf.mxu1  ;;  %18385 = vmatmul.mubr.msk.f32.gmra.mxu0 %vm3147_vm1, %v3081_v17  ;;  %v25007_v17 = vld [vmem:[#allocation11_spill] sm:$0xff] }
 0x1f0   : > { %v3082_v0 = vmax.f32 %v2954_v47, 0.0  ;;  %v2616_v30 = vadd.f32 %v2615_v39, %v19002_v9  ;;  %v2957_v43 = vadd.f32 %v19269_v53, %v2621_v4 }
 0x1f1   : > { %v18195_v3 = vpop.f32.mrf.mxu1 }
 0x1f2   : > { %v2956_v33 = vadd.f32 %v19269_v53, %v2616_v30  ;;  %v2631_v37 = vadd.f32 %v18195_v3, %v19007_v12  ;;  %18387 = vmatprep.mubr.msk.f32.mxu0 %vm3147_vm1, %v3082_v0  ;;  %v3085_v14 = vmax.f32 %v2957_v43, 0.0  ;;  %v25008_v0 = vld [vmem:[#allocation12_spill] sm:$0xff]  ;;  %v25009_v3 = vld [vmem:[#allocation13_spill] sm:$0xff] }
 0x1f3   : > { %v2625_v29 = vpop.f32.mrf.mxu1  ;;  %18388 = vmatmul.mubr.msk.f32.gmra.mxu0 %vm3147_vm1, %v3083_v63 }
 0x1f4   : > { %v3084_v6 = vmax.f32 %v2956_v33, 0.0  ;;  %v2626_v55 = vadd.f32 %v2625_v29, %v19014_v15  ;;  %v2959_v34 = vadd.f32 %v19269_v53, %v2631_v37 }
 0x1f5   : > { %v18198_v9 = vpop.f32.mrf.mxu1 }
 0x1f6   : > { %v2958_v35 = vadd.f32 %v19269_v53, %v2626_v55  ;;  %v2641_v26 = vadd.f32 %v18198_v9, %v19019_v18  ;;  %18390 = vmatprep.mubr.msk.f32.mxu0 %vm3147_vm1, %v3084_v6  ;;  %v3087_v1 = vmax.f32 %v2959_v34, 0.0 }
 0x1f7   : > { %v2635_v49 = vpop.f32.mrf.mxu1  ;;  %18391 = vmatmul.mubr.msk.f32.gmra.mxu0 %vm3147_vm1, %v3085_v14  ;;  %v25010_v14 = vld [vmem:[#allocation14_spill] sm:$0xff] }
 0x1f8   : > { %v3086_v12 = vmax.f32 %v2958_v35, 0.0  ;;  %v2636_v31 = vadd.f32 %v2635_v49, %v24999_v27  ;;  %v2961_v45 = vadd.f32 %v19269_v53, %v2641_v26  ;;  %v25011_v26 = vld [vmem:[#allocation15_spill] sm:$0xff] }
 0x1f9   : > { %v18201_v15 = vpop.f32.mrf.mxu1 }
 0x1fa   : > { %v2960_v44 = vadd.f32 %v19269_v53, %v2636_v31  ;;  %v2651_v41 = vadd.f32 %v18201_v15, %v25000_v16  ;;  %18393 = vmatprep.mubr.msk.f32.mxu0 %vm3147_vm1, %v3086_v12  ;;  %v3089_v22 = vmax.f32 %v2961_v45, 0.0  ;;  %v25012_v45 = vld [vmem:[#allocation16_spill] sm:$0xff] }
 0x1fb   : > { %v2645_v24 = vpop.f32.mrf.mxu1  ;;  %18394 = vmatmul.mubr.msk.f32.gmra.mxu0 %vm3147_vm1, %v3087_v1 }
 0x1fc   : > { %v3088_v18 = vmax.f32 %v2960_v44, 0.0  ;;  %v2646_v46 = vadd.f32 %v2645_v24, %v25001_v57  ;;  %v2963_v20 = vadd.f32 %v19269_v53, %v2651_v41  ;;  %v25013_v41 = vld [vmem:[#allocation17_spill] sm:$0xff] }
 0x1fd   : > { %v18204_v48 = vpop.f32.mrf.mxu1 }
 0x1fe   : > { %v2962_v38 = vadd.f32 %v19269_v53, %v2646_v46  ;;  %v2661_v10 = vadd.f32 %v18204_v48, %v25002_v2  ;;  %18396 = vmatprep.mubr.msk.f32.mxu0 %vm3147_vm1, %v3088_v18  ;;  %v3091_v52 = vmax.f32 %v2963_v20, 0.0  ;;  %v25014_v20 = vld [vmem:[#allocation18_spill] sm:$0xff] }
 0x1ff   : > { %v2655_v50 = vpop.f32.mrf.mxu1  ;;  %18397 = vmatmul.mubr.msk.f32.gmra.mxu0 %vm3147_vm1, %v3089_v22  ;;  %v19663_v2 = vld [vmem:[%s24850_s8] ss:$0 sm:$0xff] }
 0x200   : > { %v3090_v25 = vmax.f32 %v2962_v38, 0.0  ;;  %v2656_v42 = vadd.f32 %v2655_v50, %v25003_v28  ;;  %v2965_v19 = vadd.f32 %v19617_v61, %v2661_v10  ;;  %v4368_v10 = vld [vmem:[%s19652_s14 + $0x8] sm:$0xff]  ;;  %v4367_v50 = vld [vmem:[%s19652_s14] sm:$0xff] }
 0x201   : > { %v18207_v7 = vpop.f32.mrf.mxu1  ;;  %v25015_v28 = vld [vmem:[#allocation19_spill] sm:$0xff] }
 0x202   : > { %v2964_v53 = vadd.f32 %v19617_v61, %v2656_v42  ;;  %v2671_v13 = vadd.f32 %v18207_v7, %v25004_v54  ;;  %18399 = vmatprep.mubr.msk.f32.mxu0 %vm3147_vm1, %v3090_v25  ;;  %v3093_v21 = vmax.f32 %v2965_v19, 0.0  ;;  %v4369_v19 = vld [vmem:[%s19652_s14 + $0x10] sm:$0xff]  ;;  %v4372_v7 = vld [vmem:[%s19652_s14 + $0x28] sm:$0xff] }
 0x203   : > { %v2665_v32 = vpop.f32.mrf.mxu1  ;;  %18400 = vmatmul.mubr.msk.f32.gmra.mxu0 %vm3147_vm1, %v3091_v52  ;;  %v4370_v52 = vld [vmem:[%s19652_s14 + $0x18] sm:$0xff] }
 0x204   : > { %v3092_v36 = vmax.f32 %v2964_v53, 0.0  ;;  %v2666_v11 = vadd.f32 %v2665_v32, %v25005_v56  ;;  %v2967_v51 = vadd.f32 %v19617_v61, %v2671_v13  ;;  %v4371_v32 = vld [vmem:[%s19652_s14 + $0x20] sm:$0xff] }
 0x205   : > { %v18210_v58 = vpop.f32.mrf.mxu1 }
 0x206   : > { %v2966_v23 = vadd.f32 %v19617_v61, %v2666_v11  ;;  %v2681_v5 = vadd.f32 %v18210_v58, %v25006_v40  ;;  %18402 = vmatprep.mubr.msk.f32.mxu0 %vm3147_vm1, %v3092_v36  ;;  %v3095_v62 = vmax.f32 %v2967_v51, 0.0  ;;  %v4374_v36 = vld [vmem:[%s19652_s14 + $0x38] sm:$0xff]  ;;  %v25016_v11 = vld [vmem:[#allocation20_spill] sm:$0xff]  ;;  %v19678_v51 = vmul.f32 %v19663_v2, %v4368_v10  ;;  %v4387_v10 = vld [vmem:[%s19652_s14 + $0xa0] sm:$0xff] }
 0x207   : > { %v2675_v60 = vpop.f32.mrf.mxu1  ;;  %18403 = vmatmul.mubr.msk.f32.gmra.mxu0 %vm3147_vm1, %v3093_v21  ;;  %v4373_v58 = vld [vmem:[%s19652_s14 + $0x30] sm:$0xff] }
 0x208   : > { %v3094_v8 = vmax.f32 %v2966_v23, 0.0  ;;  %v2676_v59 = vadd.f32 %v2675_v60, %v25007_v17  ;;  %v2969_v47 = vadd.f32 %v19617_v61, %v2681_v5  ;;  %v4376_v23 = vld [vmem:[%s19652_s14 + $0x48] sm:$0xff]  ;;  %v19684_v5 = vmul.f32 %v19663_v2, %v4370_v52 }
 0x209   : > { %v18213_v4 = vpop.f32.mrf.mxu1  ;;  %v19687_v60 = vmul.f32 %v19663_v2, %v4367_v50  ;;  %v19693_v17 = vmul.f32 %v19663_v2, %v4372_v7  ;;  %v4388_v50 = vld [vmem:[%s19652_s14 + $0xa8] sm:$0xff] }
 0x20a   : > { %v2968_v39 = vadd.f32 %v19617_v61, %v2676_v59  ;;  %v2691_v30 = vadd.f32 %v18213_v4, %v25008_v0  ;;  %18405 = vmatprep.mubr.msk.f32.mxu0 %vm3147_vm1, %v3094_v8  ;;  %v3097_v37 = vmax.f32 %v2969_v47, 0.0  ;;  %v19690_v8 = vmul.f32 %v19663_v2, %v4369_v19  ;;  %v4375_v59 = vld [vmem:[%s19652_s14 + $0x40] sm:$0xff]  ;;  %v4378_v47 = vld [vmem:[%s19652_s14 + $0x58] sm:$0xff] }
 0x20b   : > { %v2685_v63 = vpop.f32.mrf.mxu1  ;;  %18406 = vmatmul.mubr.msk.f32.gmra.mxu0 %vm3147_vm1, %v3095_v62  ;;  %v4377_v62 = vld [vmem:[%s19652_s14 + $0x50] sm:$0xff] }
 0x20c   : > { %v3096_v43 = vmax.f32 %v2968_v39, 0.0  ;;  %v2686_v33 = vadd.f32 %v2685_v63, %v25009_v3  ;;  %v2971_v29 = vadd.f32 %v19617_v61, %v2691_v30  ;;  %v25017_v39 = vld [vmem:[#allocation21_spill] sm:$0xff]  ;;  %v19700_v30 = vmul.f32 %v19663_v2, %v4371_v32  ;;  %v4380_v3 = vld [vmem:[%s19652_s14 + $0x68] sm:$0xff] }
 0x20d   : > { %v18216_v6 = vpop.f32.mrf.mxu1  ;;  %v19703_v63 = vmul.f32 %v19663_v2, %v4374_v36  ;;  %v25020_v32 = vld [vmem:[#allocation24_spill] sm:$0xff] }
 0x20e   : > { %v2970_v55 = vadd.f32 %v19617_v61, %v2686_v33  ;;  %v2701_v34 = vadd.f32 %v18216_v6, %v25010_v14  ;;  %18408 = vmatprep.mubr.msk.f32.mxu0 %vm3147_vm1, %v3096_v43  ;;  %v3099_v12 = vmax.f32 %v2971_v29, 0.0  ;;  %v4379_v43 = vld [vmem:[%s19652_s14 + $0x60] sm:$0xff]  ;;  %v4382_v33 = vld [vmem:[%s19652_s14 + $0x78] sm:$0xff]  ;;  %v19715_v14 = vmul.f32 %v19663_v2, %v4373_v58 }
 0x20f   : > { %v2695_v9 = vpop.f32.mrf.mxu1  ;;  %18409 = vmatmul.mubr.msk.f32.gmra.mxu0 %vm3147_vm1, %v3097_v37 }
 0x210   : > { %v3098_v35 = vmax.f32 %v2970_v55, 0.0  ;;  %v2696_v49 = vadd.f32 %v2695_v9, %v25011_v26  ;;  %v2973_v27 = vadd.f32 %v19617_v61, %v2701_v34  ;;  %v19712_v55 = vld [vmem:[%s24849_s7] ss:$0 sm:$0xff]  ;;  %v19718_v34 = vmul.f32 %v19663_v2, %v4376_v23  ;;  %v4381_v9 = vld [vmem:[%s19652_s14 + $0x70] sm:$0xff] }
 0x211   : > { %v18219_v31 = vpop.f32.mrf.mxu1  ;;  %v25018_v26 = vld [vmem:[#allocation22_spill] sm:$0xff] }
 0x212   : > { %v2972_v1 = vadd.f32 %v19617_v61, %v2696_v49  ;;  %v2711_v15 = vadd.f32 %v18219_v31, %v25012_v45  ;;  %18411 = vmatprep.mubr.msk.f32.mxu0 %vm3147_vm1, %v3098_v35  ;;  %v3101_v18 = vmax.f32 %v2973_v27, 0.0  ;;  %v19728_v27 = vmul.f32 %v19663_v2, %v4378_v47  ;;  %v4383_v31 = vld [vmem:[%s19652_s14 + $0x80] sm:$0xff]  ;;  %v4389_v47 = vld [vmem:[%s19652_s14 + $0xb0] sm:$0xff] }
 0x213   : > { %v2705_v44 = vpop.f32.mrf.mxu1  ;;  %18412 = vmatmul.mubr.msk.f32.gmra.mxu0 %vm3147_vm1, %v3099_v12  ;;  %v19725_v12 = vmul.f32 %v19663_v2, %v4375_v59  ;;  %v19761_v7 = vmul.f32 %v19663_v2, %v4383_v31  ;;  %v19779_v59 = vmul.f32 %v19663_v2, %v4387_v10 }
 0x214   : > { %v3100_v16 = vmax.f32 %v2972_v1, 0.0  ;;  %v2706_v24 = vadd.f32 %v2705_v44, %v25013_v41  ;;  %v2975_v57 = vadd.f32 %v19617_v61, %v2711_v15  ;;  %v4384_v1 = vld [vmem:[%s19652_s14 + $0x88] sm:$0xff]  ;;  %v19734_v44 = vmul.f32 %v19663_v2, %v4377_v62 }
 0x215   : > { %v18222_v46 = vpop.f32.mrf.mxu1  ;;  %v19740_v41 = vmul.f32 %v19663_v2, %v4380_v3  ;;  %v19782_v62 = vmul.f32 %v19663_v2, %v4388_v50 }
 0x216   : > { %v2974_v22 = vadd.f32 %v19617_v61, %v2706_v24  ;;  %v2721_v48 = vadd.f32 %v18222_v46, %v25014_v20  ;;  %18414 = vmatprep.mubr.msk.f32.mxu0 %vm3147_vm1, %v3100_v16  ;;  %v3103_v53 = vmax.f32 %v2975_v57, 0.0  ;;  %v19737_v16 = vmul.f32 %v19663_v2, %v4379_v43  ;;  %v25019_v46 = vld [vmem:[#allocation23_spill] sm:$0xff]  ;;  %v25021_v43 = vld [vmem:[#allocation25_spill] sm:$0xff] }
 0x217   : > { %v2715_v38 = vpop.f32.mrf.mxu1  ;;  %18415 = vmatmul.mubr.msk.f32.gmra.mxu0 %vm3147_vm1, %v3101_v18  ;;  %v19743_v24 = vmul.f32 %v19663_v2, %v4382_v33  ;;  %v4386_v18 = vld [vmem:[%s19652_s14 + $0x98] sm:$0xff] }
 0x218   : > { %v3102_v25 = vmax.f32 %v2974_v22, 0.0  ;;  %v2716_v42 = vadd.f32 %v2715_v38, %v25015_v28  ;;  %v2977_v54 = vadd.f32 %v19617_v61, %v2721_v48  ;;  %v19749_v48 = vmul.f32 %v19663_v2, %v4381_v9  ;;  %v4385_v38 = vld [vmem:[%s19652_s14 + $0x90] sm:$0xff] }
 0x219   : > { %v18225_v13 = vpop.f32.mrf.mxu1 }
 0x21a   : > { %v2976_v56 = vadd.f32 %v19617_v61, %v2716_v42  ;;  %v2731_v21 = vadd.f32 %v18225_v13, %v25016_v11  ;;  %18417 = vmatprep.mubr.msk.f32.mxu0 %vm3147_vm1, %v3102_v25  ;;  %v3105_v37 = vmax.f32 %v2977_v54, 0.0  ;;  %v19758_v42 = vld [vmem:[%s24851_s9] ss:$0 sm:$0xff]  ;;  %v4390_v11 = vld [vmem:[%s19652_s14 + $0xb8] sm:$0xff] }
 0x21b   : > { %v2725_v40 = vpop.f32.mrf.mxu1  ;;  %18418 = vmatmul.mubr.msk.f32.gmra.mxu0 %vm3147_vm1, %v3103_v53  ;;  %v19764_v53 = vmul.f32 %v19663_v2, %v4384_v1 }
 0x21c   : > { %v3104_v4 = vmax.f32 %v2976_v56, 0.0  ;;  %v2726_v0 = vadd.f32 %v2725_v40, %v25017_v39  ;;  %v2979_v29 = vadd.f32 %v19617_v61, %v2731_v21  ;;  %v19770_v56 = vmul.f32 %v19663_v2, %v4386_v18 }
 0x21d   : > { %v18228_v6 = vpop.f32.mrf.mxu1  ;;  %v19776_v40 = vmul.f32 %v19663_v2, %v4385_v38 }
 0x21e   : > { %v2978_v35 = vadd.f32 %v19617_v61, %v2726_v0  ;;  %v2741_v49 = vadd.f32 %v18228_v6, %v25018_v26  ;;  %18420 = vmatprep.mubr.msk.f32.mxu0 %vm3147_vm1, %v3104_v4  ;;  %v3107_v25 = vmax.f32 %v2979_v29, 0.0 }
 0x21f   : > { %v2735_v45 = vpop.f32.mrf.mxu1  ;;  %v18278_v15 = vpop.f32.mrf.mxu0  ;;  %18421 = vmatmul.mubr.msk.f32.gmra.mxu0 %vm3147_vm1, %v3105_v37 }
 0x220   : > { %v3106_v57 = vmax.f32 %v2978_v35, 0.0  ;;  %v2736_v22 = vadd.f32 %v2735_v45, %v25019_v46  ;;  %v3604_v20 = vadd.f32 %v18278_v15, %v19712_v55  ;;  %v2981_v28 = vadd.f32 %v19617_v61, %v2741_v49  ;;  %v25022_v49 = vld [vmem:[#allocation26_spill] sm:$0xff] }
 0x221   : > { %v18231_v52 = vpop.f32.mrf.mxu1  ;;  %v3598_v19 = vpop.f32.mrf.mxu0  ;;  %v19790_v35 = vmul.f32 %v19663_v2, %v4390_v11  ;;  %v19797_v45 = vmul.f32 %v19663_v2, %v4389_v47 }
 0x222   : > { %v2980_v54 = vadd.f32 %v19617_v61, %v2736_v22  ;;  %v4238_v13 = vmax.f32 %v3604_v20, 0.0  ;;  %v2751_v36 = vadd.f32 %v18231_v52, %v25020_v32  ;;  %18423 = vmatprep.mubr.msk.f32.mxu0 %vm3147_vm1, %v3106_v57  ;;  %v3599_v21 = vadd.f32 %v19712_v55, %v3598_v19 }
 0x223   : > { %v2745_v58 = vpop.f32.mrf.mxu1  ;;  %v18281_v23 = vpop.f32.mrf.mxu0  ;;  %18424 = vmatmul.mubr.msk.f32.gmra.mxu0 %vm3147_vm1, %v3107_v25  ;;  %v3109_v33 = vmax.f32 %v2981_v28, 0.0  ;;  %v25023_v25 = vld [vmem:[#allocation27_spill] sm:$0xff] }
 0x224   : > { %v3108_v4 = vmax.f32 %v2980_v54, 0.0  ;;  %v4636_v39 = vmul.f32 %v19758_v42, %v4238_v13  ;;  %v2983_v0 = vadd.f32 %v19617_v61, %v2751_v36  ;;  %v2746_v3 = vadd.f32 %v2745_v58, %v25021_v43 }
 0x225   : > { %v4237_v37 = vmax.f32 %v3599_v21, 0.0  ;;  %v3614_v29 = vadd.f32 %v18281_v23, %v19712_v55  ;;  %v18234_v6 = vpop.f32.mrf.mxu1  ;;  %v3608_v9 = vpop.f32.mrf.mxu0  ;;  %v25024_v21 = vld [vmem:[#allocation28_spill] sm:$0xff] }
 0x226   : > { %v2982_v26 = vadd.f32 %v19617_v61, %v2746_v3  ;;  %v2761_v31 = vadd.f32 %v18234_v6, %v25022_v49  ;;  %v3609_v1 = vadd.f32 %v19712_v55, %v3608_v9  ;;  %18426 = vmatprep.mubr.msk.f32.mxu0 %vm3147_vm1, %v3108_v4  ;;  %v3111_v15 = vmax.f32 %v2983_v0, 0.0  ;;  %v25025_v3 = vld [vmem:[#allocation29_spill] sm:$0xff]  ;;  %v4392_v6 = vld [vmem:[%s19652_s14 + $0xc8] sm:$0xff] }
 0x227   : > { %v4635_v18 = vmul.f32 %v19758_v42, %v4237_v37  ;;  %v4240_v57 = vmax.f32 %v3614_v29, 0.0  ;;  %v2755_v46 = vpop.f32.mrf.mxu1  ;;  %v18284_v22 = vpop.f32.mrf.mxu0  ;;  %18427 = vmatmul.mubr.msk.f32.gmra.mxu0 %vm3147_vm1, %v3109_v33  ;;  %v4764_v20 = vadd.f32 %v4636_v39, %v19678_v51 }
 0x228   : > { %v3110_v38 = vmax.f32 %v2982_v26, 0.0  ;;  %v2985_v10 = vadd.f32 %v19617_v61, %v2761_v31  ;;  %v4239_v50 = vmax.f32 %v3609_v1, 0.0  ;;  %v2756_v28 = vadd.f32 %v2755_v46, %v25023_v25  ;;  %v25026_v46 = vld [vmem:[#allocation30_spill] sm:$0xff] }
 0x229   : > { %v4638_v52 = vmul.f32 %v19758_v42, %v4240_v57  ;;  %v3624_v19 = vadd.f32 %v18284_v22, %v19712_v55  ;;  %v18237_v54 = vpop.f32.mrf.mxu1  ;;  %v3618_v13 = vpop.f32.mrf.mxu0  ;;  %v4894_v32 = vsel %vm695_vm0, %v4764_v20, 0.0  ;;  %v4763_v36 = vadd.f32 %v4635_v18, %v19687_v60 }
 0x22a   : > { %v4637_v11 = vmul.f32 %v19758_v42, %v4239_v50  ;;  %v2984_v51 = vadd.f32 %v19617_v61, %v2756_v28  ;;  %v2771_v58 = vadd.f32 %v18237_v54, %v25024_v21  ;;  %4895 = vadd.xlane.f32.xlu0 %v4894_v32  ;;  %18429 = vmatprep.mubr.msk.f32.mxu0 %vm3147_vm1, %v3110_v38  ;;  %v3113_v23 = vmax.f32 %v2985_v10, 0.0 }
 0x22b   : > { %v4242_v47 = vmax.f32 %v3624_v19, 0.0  ;;  %v3619_v4 = vadd.f32 %v19712_v55, %v3618_v13  ;;  %v2765_v39 = vpop.f32.mrf.mxu1  ;;  %v18287_v0 = vpop.f32.mrf.mxu0  ;;  %18430 = vmatmul.mubr.msk.f32.gmra.mxu0 %vm3147_vm1, %v3111_v15  ;;  %v4766_v60 = vadd.f32 %v4638_v52, %v19684_v5  ;;  %v4891_v29 = vsel %vm695_vm0, %v4763_v36, 0.0  ;;  %v25027_v19 = vld [vmem:[#allocation31_spill] sm:$0xff] }
 0x22c   : > { %v3112_v43 = vmax.f32 %v2984_v51, 0.0  ;;  %v2766_v33 = vadd.f32 %v2765_v39, %v25025_v3  ;;  %v3634_v37 = vadd.f32 %v18287_v0, %v19712_v55  ;;  %v4765_v18 = vadd.f32 %v4637_v11, %v19690_v8  ;;  %v25028_v39 = vld [vmem:[#allocation32_spill] sm:$0xff] }
 0x22d   : > { %v4640_v9 = vmul.f32 %v19758_v42, %v4242_v47  ;;  %v4241_v26 = vmax.f32 %v3619_v4, 0.0  ;;  %v18240_v49 = vpop.f32.mrf.mxu1  ;;  %v3628_v31 = vpop.f32.mrf.mxu0  ;;  %v4900_v1 = vsel %vm695_vm0, %v4766_v60, 0.0  ;;  %v2987_v15 = vadd.f32 %v19617_v61, %v2771_v58 }
 0x22e   : > { %v2986_v5 = vadd.f32 %v19617_v61, %v2766_v33  ;;  %v4244_v57 = vmax.f32 %v3634_v37, 0.0  ;;  %v2781_v22 = vadd.f32 %v18240_v49, %v25026_v46  ;;  %4901 = vadd.xlane.f32.xlu1 %v4900_v1  ;;  %4892 = vadd.xlane.f32.xlu0 %v4891_v29  ;;  %v3629_v38 = vadd.f32 %v19712_v55, %v3628_v31 }
 0x22f   : > { %v4639_v20 = vmul.f32 %v19758_v42, %v4241_v26  ;;  %18432 = vmatprep.mubr.msk.f32.mxu0 %vm3147_vm1, %v3112_v43  ;;  %v2775_v10 = vpop.f32.mrf.mxu1  ;;  %v18290_v50 = vpop.f32.mrf.mxu0  ;;  %v4897_v25 = vsel %vm695_vm0, %v4765_v18, 0.0  ;;  %v19830_v8 = vmul.f32 %v19663_v2, %v4392_v6  ;;  %v4768_v13 = vadd.f32 %v4640_v9, %v19693_v17  ;;  %v25029_v6 = vld [vmem:[#allocation33_spill] sm:$0xff] }
 0x230   : > { %v3114_v28 = vmax.f32 %v2986_v5, 0.0  ;;  %v4642_v52 = vmul.f32 %v19758_v42, %v4244_v57  ;;  %v2776_v54 = vadd.f32 %v2775_v10, %v25027_v19  ;;  %18433 = vmatmul.mubr.msk.f32.gmra.mxu0 %vm3147_vm1, %v3113_v23  ;;  %v2989_v32 = vadd.f32 %v19617_v61, %v2781_v22  ;;  %v25030_v22 = vld [vmem:[#allocation34_spill] sm:$0xff]  ;;  %v25031_v19 = vld [vmem:[#allocation35_spill] sm:$0xff] }
 0x231   : > { %v4243_v36 = vmax.f32 %v3629_v38, 0.0  ;;  %v3644_v11 = vadd.f32 %v18290_v50, %v19712_v55  ;;  %v18243_v51 = vpop.f32.mrf.mxu1  ;;  %v3638_v21 = vpop.f32.mrf.mxu0  ;;  %v4767_v58 = vadd.f32 %v4639_v20, %v19700_v30  ;;  %v3115_v47 = vmax.f32 %v2987_v15, 0.0 }
 0x232   : > { %v2988_v4 = vadd.f32 %v19617_v61, %v2776_v54  ;;  %v2791_v0 = vadd.f32 %v18243_v51, %v25028_v39  ;;  %v3639_v60 = vadd.f32 %v19712_v55, %v3638_v21  ;;  %4898 = vadd.xlane.f32.xlu1 %v4897_v25  ;;  %18435 = vmatprep.mubr.msk.f32.mxu0 %vm3147_vm1, %v3114_v28  ;;  %v4906_v26 = vsel %vm695_vm0, %v4768_v13, 0.0 }
 0x233   : > { %v4641_v17 = vmul.f32 %v19758_v42, %v4243_v36  ;;  %v4246_v23 = vmax.f32 %v3644_v11, 0.0  ;;  %v2785_v43 = vpop.f32.mrf.mxu1  ;;  %v18293_v3 = vpop.f32.mrf.mxu0  ;;  %v4903_v33 = vsel %vm695_vm0, %v4767_v58, 0.0  ;;  %v4770_v37 = vadd.f32 %v4642_v52, %v19703_v63 }
 0x234   : > { %v3116_v30 = vmax.f32 %v2988_v4, 0.0  ;;  %v4245_v29 = vmax.f32 %v3639_v60, 0.0  ;;  %v2786_v9 = vadd.f32 %v2785_v43, %v25029_v6  ;;  %18436 = vmatmul.mubr.msk.f32.gmra.mxu0 %vm3147_vm1, %v3115_v47  ;;  %4904 = vadd.xlane.f32.xlu0 %v4903_v33  ;;  %v2991_v31 = vadd.f32 %v19617_v61, %v2791_v0  ;;  %v25032_v60 = vld [vmem:[#allocation36_spill] sm:$0xff] }
 0x235   : > { %v4644_v49 = vmul.f32 %v19758_v42, %v4246_v23  ;;  %v3654_v1 = vadd.f32 %v18293_v3, %v19712_v55  ;;  %v18246_v18 = vpop.f32.mrf.mxu1  ;;  %v3648_v15 = vpop.f32.mrf.mxu0  ;;  %v4769_v5 = vadd.f32 %v4641_v17, %v19715_v14  ;;  %v3117_v63 = vmax.f32 %v2989_v32, 0.0 }
 0x236   : > { %v4643_v57 = vmul.f32 %v19758_v42, %v4245_v29  ;;  %v2990_v46 = vadd.f32 %v19617_v61, %v2786_v9  ;;  %v2801_v20 = vadd.f32 %v18246_v18, %v25030_v22  ;;  %4907 = vadd.xlane.f32.xlu1 %v4906_v26  ;;  %18438 = vmatprep.mubr.msk.f32.mxu0 %vm3147_vm1, %v3116_v30  ;;  %v4912_v52 = vsel %vm695_vm0, %v4770_v37, 0.0  ;;  %v25033_v29 = vld [vmem:[#allocation37_spill] sm:$0xff] }
 0x237   : > { %v4248_v38 = vmax.f32 %v3654_v1, 0.0  ;;  %v3649_v10 = vadd.f32 %v19712_v55, %v3648_v15  ;;  %v2795_v50 = vpop.f32.mrf.mxu1  ;;  %v18296_v25 = vpop.f32.mrf.mxu0  ;;  %v4909_v28 = vsel %vm695_vm0, %v4769_v5, 0.0  ;;  %v4772_v32 = vadd.f32 %v4644_v49, %v19718_v34 }
 0x238   : > { %v3118_v14 = vmax.f32 %v2990_v46, 0.0  ;;  %v2796_v54 = vadd.f32 %v2795_v50, %v25031_v19  ;;  %v3664_v13 = vadd.f32 %v18296_v25, %v19712_v55  ;;  %18439 = vmatmul.mubr.msk.f32.gmra.mxu0 %vm3147_vm1, %v3117_v63  ;;  %4910 = vadd.xlane.f32.xlu0 %v4909_v28  ;;  %v3119_v36 = vmax.f32 %v2991_v31, 0.0  ;;  %v25034_v63 = vld [vmem:[#allocation38_spill] sm:$0xff] }
 0x239   : > { %v4646_v11 = vmul.f32 %v19758_v42, %v4248_v38  ;;  %v4247_v51 = vmax.f32 %v3649_v10, 0.0  ;;  %v18249_v21 = vpop.f32.mrf.mxu1  ;;  %v3658_v58 = vpop.f32.mrf.mxu0  ;;  %v4771_v47 = vadd.f32 %v4643_v57, %v19725_v12  ;;  %v2993_v4 = vadd.f32 %v19617_v61, %v2801_v20 }
 0x23a   : > { %v2992_v39 = vadd.f32 %v19617_v61, %v2796_v54  ;;  %v4250_v0 = vmax.f32 %v3664_v13, 0.0  ;;  %v2811_v17 = vadd.f32 %v18249_v21, %v25032_v60  ;;  %4913 = vadd.xlane.f32.xlu1 %v4912_v52  ;;  %18441 = vmatprep.mubr.msk.f32.mxu0 %vm3147_vm1, %v3118_v14  ;;  %v3659_v23 = vadd.f32 %v19712_v55, %v3658_v58  ;;  %v25035_v52 = vld [vmem:[#allocation39_spill] sm:$0xff] }
 0x23b   : > { %v4645_v34 = vmul.f32 %v19758_v42, %v4247_v51  ;;  %v2805_v43 = vpop.f32.mrf.mxu1  ;;  %v18299_v3 = vpop.f32.mrf.mxu0  ;;  %v4915_v33 = vsel %vm695_vm0, %v4771_v47, 0.0  ;;  %v4774_v12 = vadd.f32 %v4646_v11, %v19728_v27  ;;  %v4918_v9 = vsel %vm695_vm0, %v4772_v32, 0.0 }
 0x23c   : > { %v3120_v37 = vmax.f32 %v2992_v39, 0.0  ;;  %v4648_v30 = vmul.f32 %v19758_v42, %v4250_v0  ;;  %v2806_v6 = vadd.f32 %v2805_v43, %v25033_v29  ;;  %18442 = vmatmul.mubr.msk.f32.gmra.mxu0 %vm3147_vm1, %v3119_v36  ;;  %4916 = vadd.xlane.f32.xlu0 %v4915_v33  ;;  %v2995_v26 = vadd.f32 %v19617_v61, %v2811_v17  ;;  %v25037_v43 = vld [vmem:[#allocation41_spill] sm:$0xff] }
 0x23d   : > { %v4249_v49 = vmax.f32 %v3659_v23, 0.0  ;;  %v3674_v31 = vadd.f32 %v18299_v3, %v19712_v55  ;;  %v18252_v1 = vpop.f32.mrf.mxu1  ;;  %v3668_v18 = vpop.f32.mrf.mxu0  ;;  %v4773_v15 = vadd.f32 %v4645_v34, %v19734_v44  ;;  %v3121_v27 = vmax.f32 %v2993_v4, 0.0  ;;  %v25036_v4 = vld [vmem:[#allocation40_spill] sm:$0xff] }
 0x23e   : > { %v2994_v5 = vadd.f32 %v19617_v61, %v2806_v6  ;;  %v2821_v57 = vadd.f32 %v18252_v1, %v25034_v63  ;;  %v3669_v46 = vadd.f32 %v19712_v55, %v3668_v18  ;;  %4919 = vadd.xlane.f32.xlu1 %v4918_v9  ;;  %18444 = vmatprep.mubr.msk.f32.mxu0 %vm3147_vm1, %v3120_v37  ;;  %v4924_v25 = vsel %vm695_vm0, %v4774_v12, 0.0  ;;  %v25038_v1 = vld [vmem:[#allocation42_spill] sm:$0xff] }
 0x23f   : > { %v4647_v22 = vmul.f32 %v19758_v42, %v4249_v49  ;;  %v4252_v20 = vmax.f32 %v3674_v31, 0.0  ;;  %v2815_v38 = vpop.f32.mrf.mxu1  ;;  %v18302_v10 = vpop.f32.mrf.mxu0  ;;  %v4921_v50 = vsel %vm695_vm0, %v4773_v15, 0.0  ;;  %v4776_v19 = vadd.f32 %v4648_v30, %v19740_v41 }
 0x240   : > { %v3122_v44 = vmax.f32 %v2994_v5, 0.0  ;;  %v4251_v28 = vmax.f32 %v3669_v46, 0.0  ;;  %v2816_v14 = vadd.f32 %v2815_v38, %v25035_v52  ;;  %18445 = vmatmul.mubr.msk.f32.gmra.mxu0 %vm3147_vm1, %v3121_v27  ;;  %4922 = vadd.xlane.f32.xlu0 %v4921_v50  ;;  %v2997_v13 = vadd.f32 %v19617_v61, %v2821_v57 }
 0x241   : > { %v4650_v54 = vmul.f32 %v19758_v42, %v4252_v20  ;;  %v3684_v32 = vadd.f32 %v18302_v10, %v19712_v55  ;;  %v18255_v36 = vpop.f32.mrf.mxu1  ;;  %v3678_v11 = vpop.f32.mrf.mxu0  ;;  %v4775_v51 = vadd.f32 %v4647_v22, %v19737_v16  ;;  %v3123_v21 = vmax.f32 %v2995_v26, 0.0  ;;  %v25039_v20 = vld [vmem:[#allocation43_spill] sm:$0xff] }
 0x242   : > { %v4649_v58 = vmul.f32 %v19758_v42, %v4251_v28  ;;  %v2996_v47 = vadd.f32 %v19617_v61, %v2816_v14  ;;  %v2831_v39 = vadd.f32 %v18255_v36, %v25036_v4  ;;  %4925 = vadd.xlane.f32.xlu1 %v4924_v25  ;;  %18447 = vmatprep.mubr.msk.f32.mxu0 %vm3147_vm1, %v3122_v44  ;;  %v4930_v12 = vsel %vm695_vm0, %v4776_v19, 0.0 }
 0x243   : > { %v4254_v41 = vmax.f32 %v3684_v32, 0.0  ;;  %v3679_v0 = vadd.f32 %v19712_v55, %v3678_v11  ;;  %v2825_v60 = vpop.f32.mrf.mxu1  ;;  %v18305_v17 = vpop.f32.mrf.mxu0  ;;  %v4927_v34 = vsel %vm695_vm0, %v4775_v51, 0.0  ;;  %v4778_v23 = vadd.f32 %v4650_v54, %v19743_v24 }
 0x244   : > { %v3124_v16 = vmax.f32 %v2996_v47, 0.0  ;;  %v2826_v3 = vadd.f32 %v2825_v60, %v25037_v43  ;;  %v3694_v33 = vadd.f32 %v18305_v17, %v19712_v55  ;;  %18448 = vmatmul.mubr.msk.f32.gmra.mxu0 %vm3147_vm1, %v3123_v21  ;;  %4928 = vadd.xlane.f32.xlu0 %v4927_v34  ;;  %v3125_v37 = vmax.f32 %v2997_v13, 0.0  ;;  %v25040_v13 = vld [vmem:[#allocation44_spill] sm:$0xff] }
 0x245   : > { %v4652_v30 = vmul.f32 %v19758_v42, %v4254_v41  ;;  %v4253_v29 = vmax.f32 %v3679_v0, 0.0  ;;  %v18258_v6 = vpop.f32.mrf.mxu1  ;;  %v3688_v9 = vpop.f32.mrf.mxu0  ;;  %v4777_v26 = vadd.f32 %v4649_v58, %v19749_v48  ;;  %v2999_v24 = vadd.f32 %v19617_v61, %v2831_v39  ;;  %v25041_v39 = vld [vmem:[#allocation45_spill] sm:$0xff] }
 0x246   : > { %v2998_v49 = vadd.f32 %v19617_v61, %v2826_v3  ;;  %v4256_v31 = vmax.f32 %v3694_v33, 0.0  ;;  %v2841_v18 = vadd.f32 %v18258_v6, %v25038_v1  ;;  %4931 = vadd.xlane.f32.xlu1 %v4930_v12  ;;  %18450 = vmatprep.mubr.msk.f32.mxu0 %vm3147_vm1, %v3124_v16  ;;  %v3689_v27 = vadd.f32 %v19712_v55, %v3688_v9  ;;  %v25042_v12 = vld [vmem:[#allocation46_spill] sm:$0xff] }
 0x247   : > { %v4651_v15 = vmul.f32 %v19758_v42, %v4253_v29  ;;  %v2835_v5 = vpop.f32.mrf.mxu1  ;;  %v18308_v63 = vpop.f32.mrf.mxu0  ;;  %v4933_v57 = vsel %vm695_vm0, %v4777_v26, 0.0  ;;  %v4936_v48 = vsel %vm695_vm0, %v4778_v23, 0.0  ;;  %v4780_v10 = vadd.f32 %v4652_v30, %v19764_v53 }
 0x248   : > { %v3126_v46 = vmax.f32 %v2998_v49, 0.0  ;;  %v4654_v22 = vmul.f32 %v19758_v42, %v4256_v31  ;;  %v2836_v38 = vadd.f32 %v2835_v5, %v25039_v20  ;;  %18451 = vmatmul.mubr.msk.f32.gmra.mxu0 %vm3147_vm1, %v3125_v37  ;;  %4934 = vadd.xlane.f32.xlu0 %v4933_v57  ;;  %v3001_v50 = vadd.f32 %v19617_v61, %v2841_v18  ;;  %v25043_v49 = vld [vmem:[#allocation47_spill] sm:$0xff] }
 0x249   : > { %v4255_v25 = vmax.f32 %v3689_v27, 0.0  ;;  %v3704_v44 = vadd.f32 %v18308_v63, %v19712_v55  ;;  %v18261_v28 = vpop.f32.mrf.mxu1  ;;  %v3698_v52 = vpop.f32.mrf.mxu0  ;;  %v4779_v14 = vadd.f32 %v4651_v15, %v19761_v7  ;;  %v3127_v19 = vmax.f32 %v2999_v24, 0.0  ;;  %v4391_v15 = vld [vmem:[%s19652_s14 + $0xc0] sm:$0xff] }
 0x24a   : > { %v3000_v54 = vadd.f32 %v19617_v61, %v2836_v38  ;;  %v2851_v32 = vadd.f32 %v18261_v28, %v25040_v13  ;;  %v3699_v36 = vadd.f32 %v19712_v55, %v3698_v52  ;;  %4937 = vadd.xlane.f32.xlu1 %v4936_v48  ;;  %18453 = vmatprep.mubr.msk.f32.mxu0 %vm3147_vm1, %v3126_v46  ;;  %v4942_v0 = vsel %vm695_vm0, %v4780_v10, 0.0  ;;  %v25044_v10 = vld [vmem:[#allocation48_spill] sm:$0xff] }
 0x24b   : > { %v4653_v53 = vmul.f32 %v19758_v42, %v4255_v25  ;;  %v4258_v11 = vmax.f32 %v3704_v44, 0.0  ;;  %v2845_v51 = vpop.f32.mrf.mxu1  ;;  %v18311_v21 = vpop.f32.mrf.mxu0  ;;  %v4939_v58 = vsel %vm695_vm0, %v4779_v14, 0.0  ;;  %v4782_v47 = vadd.f32 %v4654_v22, %v19770_v56 }
 0x24c   : > { %v3128_v7 = vmax.f32 %v3000_v54, 0.0  ;;  %v4257_v4 = vmax.f32 %v3699_v36, 0.0  ;;  %v2846_v41 = vadd.f32 %v2845_v51, %v25041_v39  ;;  %18454 = vmatmul.mubr.msk.f32.gmra.mxu0 %vm3147_vm1, %v3127_v19  ;;  %4940 = vadd.xlane.f32.xlu0 %v4939_v58  ;;  %v3003_v17 = vadd.f32 %v19617_v61, %v2851_v32  ;;  %v25045_v19 = vld [vmem:[#allocation49_spill] sm:$0xff] }
 0x24d   : > { %v4656_v60 = vmul.f32 %v19758_v42, %v4258_v11  ;;  %v3714_v34 = vadd.f32 %v18311_v21, %v19712_v55  ;;  %v18264_v23 = vpop.f32.mrf.mxu1  ;;  %v3708_v16 = vpop.f32.mrf.mxu0  ;;  %v4781_v43 = vadd.f32 %v4653_v53, %v19776_v40  ;;  %v3129_v56 = vmax.f32 %v3001_v50, 0.0  ;;  %v4394_v36 = vld [vmem:[%s19652_s14 + $0xd8] sm:$0xff] }
 0x24e   : > { %v4655_v3 = vmul.f32 %v19758_v42, %v4257_v4  ;;  %v3002_v33 = vadd.f32 %v19617_v61, %v2846_v41  ;;  %v2861_v37 = vadd.f32 %v18264_v23, %v25042_v12  ;;  %4943 = vadd.xlane.f32.xlu1 %v4942_v0  ;;  %18456 = vmatprep.mubr.msk.f32.mxu0 %vm3147_vm1, %v3128_v7  ;;  %v4948_v40 = vsel %vm695_vm0, %v4782_v47, 0.0  ;;  %v4393_v47 = vld [vmem:[%s19652_s14 + $0xd0] sm:$0xff] }
 0x24f   : > { %v4260_v30 = vmax.f32 %v3714_v34, 0.0  ;;  %v3709_v29 = vadd.f32 %v19712_v55, %v3708_v16  ;;  %v2855_v6 = vpop.f32.mrf.mxu1  ;;  %v18314_v9 = vpop.f32.mrf.mxu0  ;;  %v4945_v26 = vsel %vm695_vm0, %v4781_v43, 0.0  ;;  %v4784_v18 = vadd.f32 %v4656_v60, %v19782_v62 }
 0x250   : > { %v3130_v24 = vmax.f32 %v3002_v33, 0.0  ;;  %v2856_v31 = vadd.f32 %v2855_v6, %v25043_v49  ;;  %v3724_v1 = vadd.f32 %v18314_v9, %v19712_v55  ;;  %18457 = vmatmul.mubr.msk.f32.gmra.mxu0 %vm3147_vm1, %v3129_v56  ;;  %4946 = vadd.xlane.f32.xlu0 %v4945_v26  ;;  %v3131_v27 = vmax.f32 %v3003_v17, 0.0  ;;  %v4396_v26 = vld [vmem:[%s19652_s14 + $0xe8] sm:$0xff] }
 0x251   : > { %v4658_v5 = vmul.f32 %v19758_v42, %v4260_v30  ;;  %v4259_v63 = vmax.f32 %v3709_v29, 0.0  ;;  %v18267_v57 = vpop.f32.mrf.mxu1  ;;  %v3718_v48 = vpop.f32.mrf.mxu0  ;;  %v4783_v46 = vadd.f32 %v4655_v3, %v19779_v59  ;;  %v3005_v22 = vadd.f32 %v19617_v61, %v2861_v37  ;;  %v4395_v37 = vld [vmem:[%s19652_s14 + $0xe0] sm:$0xff] }
 0x252   : > { %v3004_v20 = vadd.f32 %v19617_v61, %v2856_v31  ;;  %v4262_v38 = vmax.f32 %v3724_v1, 0.0  ;;  %v2871_v50 = vadd.f32 %v18267_v57, %v25044_v10  ;;  %4949 = vadd.xlane.f32.xlu1 %v4948_v40  ;;  %18459 = vmatprep.mubr.msk.f32.mxu0 %vm3147_vm1, %v3130_v24  ;;  %v3719_v25 = vadd.f32 %v19712_v55, %v3718_v48  ;;  %v4397_v57 = vld [vmem:[%s19652_s14 + $0xf0] sm:$0xff] }
 0x253   : > { %v4657_v62 = vmul.f32 %v19758_v42, %v4259_v63  ;;  %v2865_v44 = vpop.f32.mrf.mxu1  ;;  %v18317_v28 = vpop.f32.mrf.mxu0  ;;  %v4951_v59 = vsel %vm695_vm0, %v4783_v46, 0.0  ;;  %v4525_v52 = vmul.f32 %v19663_v2, %v4391_v15  ;;  %v4954_v13 = vsel %vm695_vm0, %v4784_v18, 0.0 }
 0x254   : > { %v3132_v14 = vmax.f32 %v3004_v20, 0.0  ;;  %v2866_v54 = vadd.f32 %v2865_v44, %v25045_v19  ;;  %18460 = vmatmul.mubr.msk.f32.gmra.mxu0 %vm3147_vm1, %v3131_v27  ;;  %4952 = vadd.xlane.f32.xlu0 %v4951_v59  ;;  %v4786_v32 = vadd.f32 %v4658_v5, %v19790_v35  ;;  %v4660_v53 = vmul.f32 %v19758_v42, %v4262_v38  ;;  %v4398_v38 = vld [vmem:[%s19652_s14 + $0xf8] sm:$0xff] }
 0x255   : > { %v4261_v11 = vmax.f32 %v3719_v25, 0.0  ;;  %v3734_v51 = vadd.f32 %v18317_v28, %v19712_v55  ;;  %v3728_v21 = vpop.f32.mrf.mxu0  ;;  %v4785_v58 = vadd.f32 %v4657_v62, %v19797_v45  ;;  %v3133_v7 = vmax.f32 %v3005_v22, 0.0 }
 0x256   : > { %v3007_v4 = vadd.f32 %v19617_v61, %v2871_v50  ;;  %v3006_v39 = vadd.f32 %v19617_v61, %v2866_v54  ;;  %v3729_v41 = vadd.f32 %v19712_v55, %v3728_v21  ;;  %4955 = vadd.xlane.f32.xlu1 %v4954_v13  ;;  %18462 = vmatprep.mubr.msk.f32.mxu0 %vm3147_vm1, %v3132_v14  ;;  %v4960_v3 = vsel %vm695_vm0, %v4786_v32, 0.0  ;;  %v4399_v54 = vld [vmem:[%s19652_s14 + $0x100] sm:$0xff] }
 0x257   : > { %v4659_v35 = vmul.f32 %v19758_v42, %v4261_v11  ;;  %v4264_v0 = vmax.f32 %v3734_v51, 0.0  ;;  %v18320_v60 = vpop.f32.mrf.mxu0  ;;  %v4957_v17 = vsel %vm695_vm0, %v4785_v58, 0.0  ;;  %v4528_v45 = vmul.f32 %v19663_v2, %v4394_v36  ;;  %v4400_v11 = vld [vmem:[%s19652_s14 + $0x108] sm:$0xff] }
 0x258   : > { %v3134_v34 = vmax.f32 %v3006_v39, 0.0  ;;  %v4263_v23 = vmax.f32 %v3729_v41, 0.0  ;;  %v3744_v16 = vadd.f32 %v18320_v60, %v19712_v55  ;;  %18463 = vmatmul.mubr.msk.f32.gmra.mxu0 %vm3147_vm1, %v3133_v7  ;;  %4958 = vadd.xlane.f32.xlu0 %v4957_v17  ;;  %v4527_v61 = vmul.f32 %v19663_v2, %v4393_v47  ;;  %v4401_v60 = vld [vmem:[%s19652_s14 + $0x110] sm:$0xff] }
 0x259   : > { %v4662_v43 = vmul.f32 %v19758_v42, %v4264_v0  ;;  %v3738_v56 = vpop.f32.mrf.mxu0  ;;  %v4787_v33 = vadd.f32 %v4659_v35, %v4525_v52  ;;  %v4788_v12 = vadd.f32 %v4660_v53, %v19830_v8  ;;  %v3135_v30 = vmax.f32 %v3007_v4, 0.0 }
 0x25a   : > { %v4661_v29 = vmul.f32 %v19758_v42, %v4263_v23  ;;  %v4266_v6 = vmax.f32 %v3744_v16, 0.0  ;;  %v3739_v9 = vadd.f32 %v19712_v55, %v3738_v56  ;;  %4961 = vadd.xlane.f32.xlu1 %v4960_v3  ;;  %18465 = vmatprep.mubr.msk.f32.mxu0 %vm3147_vm1, %v3134_v34  ;;  %v4529_v1 = vmul.f32 %v19663_v2, %v4395_v37  ;;  %v4402_v16 = vld [vmem:[%s19652_s14 + $0x118] sm:$0xff] }
 0x25b   : > { %v18323_v40 = vpop.f32.mrf.mxu0  ;;  %v4963_v24 = vsel %vm695_vm0, %v4787_v33, 0.0  ;;  %v4966_v27 = vsel %vm695_vm0, %v4788_v12, 0.0  ;;  %v4790_v5 = vadd.f32 %v4662_v43, %v4528_v45  ;;  %v4530_v63 = vmul.f32 %v19663_v2, %v4396_v26 }
 0x25c   : > { %v4265_v49 = vmax.f32 %v3739_v9, 0.0  ;;  %v3754_v31 = vadd.f32 %v18323_v40, %v19712_v55  ;;  %18466 = vmatmul.mubr.msk.f32.gmra.mxu0 %vm3147_vm1, %v3135_v30  ;;  %4964 = vadd.xlane.f32.xlu0 %v4963_v24  ;;  %v4789_v8 = vadd.f32 %v4661_v29, %v4527_v61  ;;  %v4664_v18 = vmul.f32 %v19758_v42, %v4266_v6  ;;  %v4403_v9 = vld [vmem:[%s19652_s14 + $0x120] sm:$0xff] }
 0x25d   : > { %v3748_v15 = vpop.f32.mrf.mxu0  ;;  %v4531_v44 = vmul.f32 %v19663_v2, %v4397_v57  ;;  %v4972_v52 = vsel %vm695_vm0, %v4790_v5, 0.0  ;;  %v4532_v19 = vmul.f32 %v19663_v2, %v4398_v38  ;;  %v4533_v7 = vmul.f32 %v19663_v2, %v4399_v54 }
 0x25e   : > { %v4663_v48 = vmul.f32 %v19758_v42, %v4265_v49  ;;  %v4268_v46 = vmax.f32 %v3754_v31, 0.0  ;;  %v3749_v22 = vadd.f32 %v19712_v55, %v3748_v15  ;;  %4967 = vadd.xlane.f32.xlu1 %v4966_v27  ;;  %v4969_v20 = vsel %vm695_vm0, %v4789_v8, 0.0  ;;  %v4404_v31 = vld [vmem:[%s19652_s14 + $0x128] sm:$0xff] }
 0x25f   : > { %v18326_v10 = vpop.f32.mrf.mxu0  ;;  %v4792_v14 = vadd.f32 %v4664_v18, %v4530_v63  ;;  %v4534_v0 = vmul.f32 %v19663_v2, %v4400_v11  ;;  %v4535_v33 = vmul.f32 %v19663_v2, %v4401_v60  ;;  %v4536_v6 = vmul.f32 %v19663_v2, %v4402_v16 }
 0x260   : > { %v4267_v50 = vmax.f32 %v3749_v22, 0.0  ;;  %v3764_v62 = vadd.f32 %v18326_v10, %v19712_v55  ;;  %4970 = vadd.xlane.f32.xlu0 %v4969_v20  ;;  %v4791_v25 = vadd.f32 %v4663_v48, %v4529_v1  ;;  %v4666_v28 = vmul.f32 %v19758_v42, %v4268_v46  ;;  %v4405_v22 = vld [vmem:[%s19652_s14 + $0x130] sm:$0xff] }
 0x261   : > { %v3758_v59 = vpop.f32.mrf.mxu0  ;;  %v4978_v41 = vsel %vm695_vm0, %v4792_v14, 0.0  ;;  %v4537_v27 = vmul.f32 %v19663_v2, %v4403_v9  ;;  %v4538_v46 = vmul.f32 %v19663_v2, %v4404_v31 }
 0x262   : > { %v4665_v13 = vmul.f32 %v19758_v42, %v4267_v50  ;;  %v4270_v32 = vmax.f32 %v3764_v62, 0.0  ;;  %v3759_v36 = vadd.f32 %v19712_v55, %v3758_v59  ;;  %4973 = vadd.xlane.f32.xlu1 %v4972_v52  ;;  %v4975_v53 = vsel %vm695_vm0, %v4791_v25, 0.0  ;;  %v4406_v62 = vld [vmem:[%s19652_s14 + $0x138] sm:$0xff] }
 0x263   : > { %v18329_v51 = vpop.f32.mrf.mxu0  ;;  %v4794_v35 = vadd.f32 %v4666_v28, %v4532_v19  ;;  %v4539_v52 = vmul.f32 %v19663_v2, %v4405_v22 }
 0x264   : > { %v4269_v21 = vmax.f32 %v3759_v36, 0.0  ;;  %v3774_v58 = vadd.f32 %v18329_v51, %v19712_v55  ;;  %4976 = vadd.xlane.f32.xlu0 %v4975_v53  ;;  %v4793_v47 = vadd.f32 %v4665_v13, %v4531_v44  ;;  %v4668_v4 = vmul.f32 %v19758_v42, %v4270_v32  ;;  %v20045_v32 = vld [vmem:[%s24850_s8] ss:$0 sm:$0xff] }
 0x265   : > { %v3768_v39 = vpop.f32.mrf.mxu0  ;;  %v4984_v30 = vsel %vm695_vm0, %v4794_v35, 0.0  ;;  %v4540_v36 = vmul.f32 %v20045_v32, %v4406_v62  ;;  %v4407_v53 = vld [vmem:[%s19652_s14 + $0x140] sm:$0xff] }
 0x266   : > { %v4667_v17 = vmul.f32 %v19758_v42, %v4269_v21  ;;  %v4272_v45 = vmax.f32 %v3774_v58, 0.0  ;;  %v3769_v34 = vadd.f32 %v19712_v55, %v3768_v39  ;;  %4979 = vadd.xlane.f32.xlu1 %v4978_v41  ;;  %v4981_v23 = vsel %vm695_vm0, %v4793_v47, 0.0  ;;  %v4408_v58 = vld [vmem:[%s19652_s14 + $0x148] sm:$0xff] }
 0x267   : > { %v18332_v61 = vpop.f32.mrf.mxu0  ;;  %v4796_v29 = vadd.f32 %v4668_v4, %v4534_v0  ;;  %v4541_v41 = vmul.f32 %v20045_v32, %v4407_v53 }
 0x268   : > { %v4271_v43 = vmax.f32 %v3769_v34, 0.0  ;;  %v3784_v56 = vadd.f32 %v18332_v61, %v19712_v55  ;;  %4982 = vadd.xlane.f32.xlu0 %v4981_v23  ;;  %v4795_v3 = vadd.f32 %v4667_v17, %v4533_v7  ;;  %v4670_v12 = vmul.f32 %v19758_v42, %v4272_v45  ;;  %v4409_v34 = vld [vmem:[%s19652_s14 + $0x150] sm:$0xff] }
 0x269   : > { %v3778_v37 = vpop.f32.mrf.mxu0  ;;  %v4990_v57 = vsel %vm695_vm0, %v4796_v29, 0.0  ;;  %v4542_v45 = vmul.f32 %v20045_v32, %v4408_v58 }
 0x26a   : > { %v4669_v26 = vmul.f32 %v19758_v42, %v4271_v43  ;;  %v4274_v40 = vmax.f32 %v3784_v56, 0.0  ;;  %v3779_v24 = vadd.f32 %v19712_v55, %v3778_v37  ;;  %4985 = vadd.xlane.f32.xlu1 %v4984_v30  ;;  %v4987_v49 = vsel %vm695_vm0, %v4795_v3, 0.0  ;;  %v4410_v56 = vld [vmem:[%s19652_s14 + $0x158] sm:$0xff] }
 0x26b   : > { %v18335_v8 = vpop.f32.mrf.mxu0  ;;  %v4798_v48 = vadd.f32 %v4670_v12, %v4536_v6  ;;  %v4543_v30 = vmul.f32 %v20045_v32, %v4409_v34 }
 0x26c   : > { %v4273_v1 = vmax.f32 %v3779_v24, 0.0  ;;  %v3794_v18 = vadd.f32 %v18335_v8, %v19712_v55  ;;  %4988 = vadd.xlane.f32.xlu0 %v4987_v49  ;;  %v4797_v15 = vadd.f32 %v4669_v26, %v4535_v33  ;;  %v4672_v5 = vmul.f32 %v19758_v42, %v4274_v40  ;;  %v4411_v24 = vld [vmem:[%s19652_s14 + $0x160] sm:$0xff] }
 0x26d   : > { %v3788_v63 = vpop.f32.mrf.mxu0  ;;  %v4996_v54 = vsel %vm695_vm0, %v4798_v48, 0.0  ;;  %v4544_v40 = vmul.f32 %v20045_v32, %v4410_v56 }
 0x26e   : > { %v4671_v20 = vmul.f32 %v19758_v42, %v4273_v1  ;;  %v4276_v38 = vmax.f32 %v3794_v18, 0.0  ;;  %v3789_v10 = vadd.f32 %v19712_v55, %v3788_v63  ;;  %4991 = vadd.xlane.f32.xlu1 %v4990_v57  ;;  %v4993_v50 = vsel %vm695_vm0, %v4797_v15, 0.0  ;;  %v4412_v18 = vld [vmem:[%s19652_s14 + $0x168] sm:$0xff] }
 0x26f   : > { %v18338_v25 = vpop.f32.mrf.mxu0  ;;  %v4800_v13 = vadd.f32 %v4672_v5, %v4538_v46  ;;  %v4545_v57 = vmul.f32 %v20045_v32, %v4411_v24 }
 0x270   : > { %v4275_v44 = vmax.f32 %v3789_v10, 0.0  ;;  %v3804_v28 = vadd.f32 %v18338_v25, %v19712_v55  ;;  %4994 = vadd.xlane.f32.xlu0 %v4993_v50  ;;  %v4799_v59 = vadd.f32 %v4671_v20, %v4537_v27  ;;  %v4674_v14 = vmul.f32 %v19758_v42, %v4276_v38  ;;  %v4413_v10 = vld [vmem:[%s19652_s14 + $0x170] sm:$0xff] }
 0x271   : > { %v3798_v19 = vpop.f32.mrf.mxu0  ;;  %v5002_v60 = vsel %vm695_vm0, %v4800_v13, 0.0  ;;  %v4546_v38 = vmul.f32 %v20045_v32, %v4412_v18 }
 0x272   : > { %v4673_v11 = vmul.f32 %v19758_v42, %v4275_v44  ;;  %v4278_v51 = vmax.f32 %v3804_v28, 0.0  ;;  %v3799_v2 = vadd.f32 %v19712_v55, %v3798_v19  ;;  %4997 = vadd.xlane.f32.xlu1 %v4996_v54  ;;  %v4999_v21 = vsel %vm695_vm0, %v4799_v59, 0.0  ;;  %v4414_v28 = vld [vmem:[%s19652_s14 + $0x178] sm:$0xff] }
 0x273   : > { %v18341_v47 = vpop.f32.mrf.mxu0  ;;  %v4802_v17 = vadd.f32 %v4674_v14, %v4540_v36  ;;  %v4547_v54 = vmul.f32 %v20045_v32, %v4413_v10 }
 0x274   : > { %v4277_v7 = vmax.f32 %v3799_v2, 0.0  ;;  %v3814_v4 = vadd.f32 %v18341_v47, %v19712_v55  ;;  %5000 = vadd.xlane.f32.xlu0 %v4999_v21  ;;  %v4801_v39 = vadd.f32 %v4673_v11, %v4539_v52  ;;  %v4676_v35 = vmul.f32 %v19758_v42, %v4278_v51  ;;  %v4415_v2 = vld [vmem:[%s19652_s14 + $0x180] sm:$0xff] }
 0x275   : > { %v3808_v0 = vpop.f32.mrf.mxu0  ;;  %v5008_v9 = vsel %vm695_vm0, %v4802_v17, 0.0  ;;  %v4548_v51 = vmul.f32 %v20045_v32, %v4414_v28 }
 0x276   : > { %v4675_v23 = vmul.f32 %v19758_v42, %v4277_v7  ;;  %v4280_v16 = vmax.f32 %v3814_v4, 0.0  ;;  %v3809_v61 = vadd.f32 %v19712_v55, %v3808_v0  ;;  %5003 = vadd.xlane.f32.xlu1 %v5002_v60  ;;  %v5005_v43 = vsel %vm695_vm0, %v4801_v39, 0.0  ;;  %v4416_v4 = vld [vmem:[%s19652_s14 + $0x188] sm:$0xff] }
 0x277   : > { %v18344_v3 = vpop.f32.mrf.mxu0  ;;  %v4804_v26 = vadd.f32 %v4676_v35, %v4542_v45  ;;  %v4549_v60 = vmul.f32 %v20045_v32, %v4415_v2 }
 0x278   : > { %v4279_v33 = vmax.f32 %v3809_v61, 0.0  ;;  %v3824_v12 = vadd.f32 %v18344_v3, %v19712_v55  ;;  %5006 = vadd.xlane.f32.xlu0 %v5005_v43  ;;  %v4803_v37 = vadd.f32 %v4675_v23, %v4541_v41  ;;  %v4678_v29 = vmul.f32 %v19758_v42, %v4280_v16  ;;  %v20073_v55 = vld [vmem:[%s24849_s7] ss:$0 sm:$0xff]  ;;  %v4417_v61 = vld [vmem:[%s19652_s14 + $0x190] sm:$0xff] }
 0x279   : > { %v3818_v6 = vpop.f32.mrf.mxu0  ;;  %v5014_v22 = vsel %vm695_vm0, %v4804_v26, 0.0  ;;  %v4550_v16 = vmul.f32 %v20045_v32, %v4416_v4 }
 0x27a   : > { %v4677_v49 = vmul.f32 %v19758_v42, %v4279_v33  ;;  %v4282_v31 = vmax.f32 %v3824_v12, 0.0  ;;  %v3819_v8 = vadd.f32 %v20073_v55, %v3818_v6  ;;  %5009 = vadd.xlane.f32.xlu1 %v5008_v9  ;;  %v5011_v1 = vsel %vm695_vm0, %v4803_v37, 0.0  ;;  %v4418_v12 = vld [vmem:[%s19652_s14 + $0x198] sm:$0xff] }
 0x27b   : > { %v18347_v15 = vpop.f32.mrf.mxu0  ;;  %v4806_v20 = vadd.f32 %v4678_v29, %v4544_v40  ;;  %v4551_v9 = vmul.f32 %v20045_v32, %v4417_v61 }
 0x27c   : > { %v4281_v27 = vmax.f32 %v3819_v8, 0.0  ;;  %v3834_v5 = vadd.f32 %v20073_v55, %v18347_v15  ;;  %5012 = vadd.xlane.f32.xlu0 %v5011_v1  ;;  %v4805_v63 = vadd.f32 %v4677_v49, %v4543_v30  ;;  %v4680_v48 = vmul.f32 %v19758_v42, %v4282_v31  ;;  %v4419_v8 = vld [vmem:[%s19652_s14 + $0x1a0] sm:$0xff] }
 0x27d   : > { %v3828_v46 = vpop.f32.mrf.mxu0  ;;  %v5020_v53 = vsel %vm695_vm0, %v4806_v20, 0.0  ;;  %v4552_v31 = vmul.f32 %v20045_v32, %v4418_v12 }
 0x27e   : > { %v4679_v50 = vmul.f32 %v19758_v42, %v4281_v27  ;;  %v4284_v62 = vmax.f32 %v3834_v5, 0.0  ;;  %v3829_v25 = vadd.f32 %v20073_v55, %v3828_v46  ;;  %5015 = vadd.xlane.f32.xlu1 %v5014_v22  ;;  %v5017_v44 = vsel %vm695_vm0, %v4805_v63, 0.0  ;;  %v20093_v42 = vld [vmem:[%s24851_s9] ss:$0 sm:$0xff]  ;;  %v4420_v5 = vld [vmem:[%s19652_s14 + $0x1a8] sm:$0xff] }
 0x27f   : > { %v18350_v59 = vpop.f32.mrf.mxu0  ;;  %v4808_v11 = vadd.f32 %v4680_v48, %v4546_v38  ;;  %v4553_v22 = vmul.f32 %v20045_v32, %v4419_v8 }
 0x280   : > { %v4283_v52 = vmax.f32 %v3829_v25, 0.0  ;;  %v3844_v14 = vadd.f32 %v20073_v55, %v18350_v59  ;;  %5018 = vadd.xlane.f32.xlu0 %v5017_v44  ;;  %v4807_v19 = vadd.f32 %v4679_v50, %v4545_v57  ;;  %v4682_v13 = vmul.f32 %v20093_v42, %v4284_v62  ;;  %v4421_v25 = vld [vmem:[%s19652_s14 + $0x1b0] sm:$0xff] }
 0x281   : > { %v3838_v36 = vpop.f32.mrf.mxu0  ;;  %v5026_v34 = vsel %vm695_vm0, %v4808_v11, 0.0  ;;  %v4554_v62 = vmul.f32 %v20045_v32, %v4420_v5 }
 0x282   : > { %v4681_v21 = vmul.f32 %v20093_v42, %v4283_v52  ;;  %v4286_v58 = vmax.f32 %v3844_v14, 0.0  ;;  %v3839_v47 = vadd.f32 %v20073_v55, %v3838_v36  ;;  %5021 = vadd.xlane.f32.xlu1 %v5020_v53  ;;  %v5023_v7 = vsel %vm695_vm0, %v4807_v19, 0.0  ;;  %v4422_v14 = vld [vmem:[%s19652_s14 + $0x1b8] sm:$0xff] }
 0x283   : > { %v18353_v39 = vpop.f32.mrf.mxu0  ;;  %v4810_v23 = vadd.f32 %v4682_v13, %v4548_v51  ;;  %v4555_v53 = vmul.f32 %v20045_v32, %v4421_v25 }
 0x284   : > { %v4285_v41 = vmax.f32 %v3839_v47, 0.0  ;;  %v3854_v35 = vadd.f32 %v20073_v55, %v18353_v39  ;;  %5024 = vadd.xlane.f32.xlu0 %v5023_v7  ;;  %v4809_v0 = vadd.f32 %v4681_v21, %v4547_v54  ;;  %v4684_v17 = vmul.f32 %v20093_v42, %v4286_v58  ;;  %v4423_v47 = vld [vmem:[%s19652_s14 + $0x1c0] sm:$0xff] }
 0x285   : > { %v3848_v45 = vpop.f32.mrf.mxu0  ;;  %v5032_v24 = vsel %vm695_vm0, %v4810_v23, 0.0  ;;  %v4556_v58 = vmul.f32 %v20045_v32, %v4422_v14 }
 0x286   : > { %v4683_v43 = vmul.f32 %v20093_v42, %v4285_v41  ;;  %v4288_v56 = vmax.f32 %v3854_v35, 0.0  ;;  %v3849_v3 = vadd.f32 %v20073_v55, %v3848_v45  ;;  %5027 = vadd.xlane.f32.xlu1 %v5026_v34  ;;  %v5029_v33 = vsel %vm695_vm0, %v4809_v0, 0.0  ;;  %v4424_v35 = vld [vmem:[%s19652_s14 + $0x1c8] sm:$0xff] }
 0x287   : > { %v18356_v37 = vpop.f32.mrf.mxu0  ;;  %v4812_v49 = vadd.f32 %v4684_v17, %v4550_v16  ;;  %v4557_v34 = vmul.f32 %v20045_v32, %v4423_v47 }
 0x288   : > { %v4287_v30 = vmax.f32 %v3849_v3, 0.0  ;;  %v3864_v29 = vadd.f32 %v20073_v55, %v18356_v37  ;;  %5030 = vadd.xlane.f32.xlu0 %v5029_v33  ;;  %v4811_v6 = vadd.f32 %v4683_v43, %v4549_v60  ;;  %v4686_v26 = vmul.f32 %v20093_v42, %v4288_v56  ;;  %v4425_v3 = vld [vmem:[%s19652_s14 + $0x1d0] sm:$0xff] }
 0x289   : > { %v3858_v40 = vpop.f32.mrf.mxu0  ;;  %v5038_v10 = vsel %vm695_vm0, %v4812_v49, 0.0  ;;  %v4558_v56 = vmul.f32 %v20045_v32, %v4424_v35 }
 0x28a   : > { %v4685_v1 = vmul.f32 %v20093_v42, %v4287_v30  ;;  %v4290_v18 = vmax.f32 %v3864_v29, 0.0  ;;  %v3859_v15 = vadd.f32 %v20073_v55, %v3858_v40  ;;  %5033 = vadd.xlane.f32.xlu1 %v5032_v24  ;;  %v5035_v27 = vsel %vm695_vm0, %v4811_v6, 0.0  ;;  %v4426_v29 = vld [vmem:[%s19652_s14 + $0x1d8] sm:$0xff] }
 0x28b   : > { %v18359_v63 = vpop.f32.mrf.mxu0  ;;  %v4814_v50 = vadd.f32 %v4686_v26, %v4552_v31  ;;  %v4559_v24 = vmul.f32 %v20045_v32, %v4425_v3 }
 0x28c   : > { %v4289_v57 = vmax.f32 %v3859_v15, 0.0  ;;  %v3874_v48 = vadd.f32 %v20073_v55, %v18359_v63  ;;  %5036 = vadd.xlane.f32.xlu0 %v5035_v27  ;;  %v4813_v46 = vadd.f32 %v4685_v1, %v4551_v9  ;;  %v4688_v20 = vmul.f32 %v20093_v42, %v4290_v18  ;;  %v4427_v15 = vld [vmem:[%s19652_s14 + $0x1e0] sm:$0xff] }
 0x28d   : > { %v3868_v38 = vpop.f32.mrf.mxu0  ;;  %v5044_v2 = vsel %vm695_vm0, %v4814_v50, 0.0  ;;  %v4560_v18 = vmul.f32 %v20045_v32, %v4426_v29 }
 0x28e   : > { %v4687_v44 = vmul.f32 %v20093_v42, %v4289_v57  ;;  %v4292_v28 = vmax.f32 %v3874_v48, 0.0  ;;  %v3869_v59 = vadd.f32 %v20073_v55, %v3868_v38  ;;  %5039 = vadd.xlane.f32.xlu1 %v5038_v10  ;;  %v5041_v52 = vsel %vm695_vm0, %v4813_v46, 0.0  ;;  %v4428_v48 = vld [vmem:[%s19652_s14 + $0x1e8] sm:$0xff] }
 0x28f   : > { %v18362_v19 = vpop.f32.mrf.mxu0  ;;  %v4816_v21 = vadd.f32 %v4688_v20, %v4554_v62  ;;  %v4561_v10 = vmul.f32 %v20045_v32, %v4427_v15 }
 0x290   : > { %v4291_v54 = vmax.f32 %v3869_v59, 0.0  ;;  %v3884_v13 = vadd.f32 %v20073_v55, %v18362_v19  ;;  %5042 = vadd.xlane.f32.xlu0 %v5041_v52  ;;  %v4815_v36 = vadd.f32 %v4687_v44, %v4553_v22  ;;  %v4690_v11 = vmul.f32 %v20093_v42, %v4292_v28  ;;  %v4429_v59 = vld [vmem:[%s19652_s14 + $0x1f0] sm:$0xff] }
 0x291   : > { %v3878_v51 = vpop.f32.mrf.mxu0  ;;  %v5050_v61 = vsel %vm695_vm0, %v4816_v21, 0.0  ;;  %v4562_v28 = vmul.f32 %v20045_v32, %v4428_v48 }
 0x292   : > { %v4689_v7 = vmul.f32 %v20093_v42, %v4291_v54  ;;  %v4294_v4 = vmax.f32 %v3884_v13, 0.0  ;;  %v3879_v39 = vadd.f32 %v20073_v55, %v3878_v51  ;;  %5045 = vadd.xlane.f32.xlu1 %v5044_v2  ;;  %v5047_v41 = vsel %vm695_vm0, %v4815_v36, 0.0  ;;  %v4430_v13 = vld [vmem:[%s19652_s14 + $0x1f8] sm:$0xff] }
 0x293   : > { %v18365_v0 = vpop.f32.mrf.mxu0  ;;  %v4818_v43 = vadd.f32 %v4690_v11, %v4556_v58  ;;  %v4563_v2 = vmul.f32 %v20045_v32, %v4429_v59 }
 0x294   : > { %v4293_v60 = vmax.f32 %v3879_v39, 0.0  ;;  %v3894_v17 = vadd.f32 %v20073_v55, %v18365_v0  ;;  %5048 = vadd.xlane.f32.xlu0 %v5047_v41  ;;  %v4817_v45 = vadd.f32 %v4689_v7, %v4555_v53  ;;  %v4692_v23 = vmul.f32 %v20093_v42, %v4294_v4  ;;  %v4431_v39 = vld [vmem:[%s19652_s14 + $0x200] sm:$0xff] }
 0x295   : > { %v3888_v16 = vpop.f32.mrf.mxu0  ;;  %v5056_v8 = vsel %vm695_vm0, %v4818_v43, 0.0  ;;  %v4564_v4 = vmul.f32 %v20045_v32, %v4430_v13  ;;  %v4437_v13 = vld [vmem:[%s19652_s14 + $0x230] sm:$0xff] }
 0x296   : > { %v4691_v33 = vmul.f32 %v20093_v42, %v4293_v60  ;;  %v4296_v12 = vmax.f32 %v3894_v17, 0.0  ;;  %v3889_v37 = vadd.f32 %v20073_v55, %v3888_v16  ;;  %5051 = vadd.xlane.f32.xlu1 %v5050_v61  ;;  %v5053_v30 = vsel %vm695_vm0, %v4817_v45, 0.0  ;;  %v4432_v17 = vld [vmem:[%s19652_s14 + $0x208] sm:$0xff] }
 0x297   : > { %v18368_v6 = vpop.f32.mrf.mxu0  ;;  %v4820_v1 = vadd.f32 %v4692_v23, %v4558_v56  ;;  %v4565_v61 = vmul.f32 %v20045_v32, %v4431_v39 }
 0x298   : > { %v4295_v9 = vmax.f32 %v3889_v37, 0.0  ;;  %v3904_v26 = vadd.f32 %v20073_v55, %v18368_v6  ;;  %5054 = vadd.xlane.f32.xlu0 %v5053_v30  ;;  %v4819_v40 = vadd.f32 %v4691_v33, %v4557_v34  ;;  %v4694_v49 = vmul.f32 %v20093_v42, %v4296_v12  ;;  %v4433_v37 = vld [vmem:[%s19652_s14 + $0x210] sm:$0xff] }
 0x299   : > { %v3898_v31 = vpop.f32.mrf.mxu0  ;;  %v5062_v25 = vsel %vm695_vm0, %v4820_v1, 0.0  ;;  %v4566_v12 = vmul.f32 %v20045_v32, %v4432_v17  ;;  %v4567_v1 = vmul.f32 %v20045_v32, %v4433_v37 }
 0x29a   : > { %v4693_v27 = vmul.f32 %v20093_v42, %v4295_v9  ;;  %v4298_v5 = vmax.f32 %v3904_v26, 0.0  ;;  %v3899_v63 = vadd.f32 %v20073_v55, %v3898_v31  ;;  %5057 = vadd.xlane.f32.xlu1 %v5056_v8  ;;  %v5059_v57 = vsel %vm695_vm0, %v4819_v40, 0.0  ;;  %v4434_v26 = vld [vmem:[%s19652_s14 + $0x218] sm:$0xff] }
 0x29b   : > { %v18371_v46 = vpop.f32.mrf.mxu0  ;;  %v4822_v44 = vadd.f32 %v4694_v49, %v4560_v18  ;;  %v24854_v40 = vlaneseq }
 0x29c   : > { %v4297_v22 = vmax.f32 %v3899_v63, 0.0  ;;  %v3914_v20 = vadd.f32 %v20073_v55, %v18371_v46  ;;  %5060 = vadd.xlane.f32.xlu0 %v5059_v57  ;;  %v4821_v38 = vadd.f32 %v4693_v27, %v4559_v24  ;;  %v4696_v50 = vmul.f32 %v20093_v42, %v4298_v5  ;;  %v4435_v57 = vld [vmem:[%s19652_s14 + $0x220] sm:$0xff] }
 0x29d   : > { %v3908_v62 = vpop.f32.mrf.mxu0  ;;  %v5068_v47 = vsel %vm695_vm0, %v4822_v44, 0.0  ;;  %v4568_v63 = vmul.f32 %v20045_v32, %v4434_v26 }
 0x29e   : > { %v4695_v52 = vmul.f32 %v20093_v42, %v4297_v22  ;;  %v4300_v14 = vmax.f32 %v3914_v20, 0.0  ;;  %v3909_v19 = vadd.f32 %v20073_v55, %v3908_v62  ;;  %5063 = vadd.xlane.f32.xlu1 %v5062_v25  ;;  %v5065_v54 = vsel %vm695_vm0, %v4821_v38, 0.0  ;;  %v4436_v38 = vld [vmem:[%s19652_s14 + $0x228] sm:$0xff] }
 0x29f   : > { %v18374_v36 = vpop.f32.mrf.mxu0  ;;  %v4824_v7 = vadd.f32 %v4696_v50, %v4562_v28  ;;  %v4569_v28 = vmul.f32 %v20045_v32, %v4435_v57 }
 0x2a0   : > { %v4299_v53 = vmax.f32 %v3909_v19, 0.0  ;;  %v3924_v11 = vadd.f32 %v20073_v55, %v18374_v36  ;;  %5066 = vadd.xlane.f32.xlu0 %v5065_v54  ;;  %v4823_v51 = vadd.f32 %v4695_v52, %v4561_v10  ;;  %v4698_v21 = vmul.f32 %v20093_v42, %v4300_v14 }
 0x2a1   : > { %v3918_v58 = vpop.f32.mrf.mxu0  ;;  %v5074_v3 = vsel %vm695_vm0, %v4824_v7, 0.0  ;;  %v20204_v10 = vshrl.u32 %v24854_v40, 7  ;;  %v4570_v54 = vmul.f32 %v20045_v32, %v4436_v38 }
 0x2a2   : > { %v4697_v41 = vmul.f32 %v20093_v42, %v4299_v53  ;;  %v4302_v35 = vmax.f32 %v3924_v11, 0.0  ;;  %v3919_v0 = vadd.f32 %v20073_v55, %v3918_v58  ;;  %5069 = vadd.xlane.f32.xlu1 %v5068_v47  ;;  %v5071_v60 = vsel %vm695_vm0, %v4823_v51, 0.0  ;;  %v5279_v47 = vpop.permute.xlu0 %5278 }
 0x2a3   : > { %v18377_v45 = vpop.f32.mrf.mxu0  ;;  %v4826_v33 = vadd.f32 %v4698_v21, %v4564_v4  ;;  %v20217_v21 = vsub.s32 0, %v20204_v10 }
 0x2a4   : > { %v4301_v34 = vmax.f32 %v3919_v0, 0.0  ;;  %v3934_v23 = vadd.f32 %v20073_v55, %v18377_v45  ;;  %5072 = vadd.xlane.f32.xlu0 %v5071_v60  ;;  %v4825_v16 = vadd.f32 %v4697_v41, %v4563_v2  ;;  %v4700_v43 = vmul.f32 %v20093_v42, %v4302_v35  ;;  %v4438_v2 = vld [vmem:[%s19652_s14 + $0x238] sm:$0xff]  ;;  %v4439_v35 = vld [vmem:[%s19652_s14 + $0x240] sm:$0xff]  ;;  %v4440_v0 = vld [vmem:[%s19652_s14 + $0x248] sm:$0xff] }
 0x2a5   : > { %v3928_v56 = vpop.f32.mrf.mxu0  ;;  %v5080_v27 = vsel %vm695_vm0, %v4826_v33, 0.0  ;;  %25046 = vst [vmem:[#allocation3_spill] sm:$0xff] %v20217_v21  ;;  %v4571_v41 = vmul.f32 %v20045_v32, %v4437_v13 }
 0x2a6   : > { %v4699_v30 = vmul.f32 %v20093_v42, %v4301_v34  ;;  %v4304_v29 = vmax.f32 %v3934_v23, 0.0  ;;  %v3929_v6 = vadd.f32 %v20073_v55, %v3928_v56  ;;  %5075 = vadd.xlane.f32.xlu1 %v5074_v3  ;;  %v5077_v9 = vsel %vm695_vm0, %v4825_v16, 0.0  ;;  %v4441_v16 = vld [vmem:[%s19652_s14 + $0x250] sm:$0xff] }
 0x2a7   : > { %v18380_v24 = vpop.f32.mrf.mxu0  ;;  %v4828_v5 = vadd.f32 %v4700_v43, %v4566_v12  ;;  %v4572_v23 = vmul.f32 %v20045_v32, %v4438_v2  ;;  %v20232_v12 = vrot.slane %v5279_v47, %v20217_v21 }
 0x2a8   : > { %v4303_v49 = vmax.f32 %v3929_v6, 0.0  ;;  %v3944_v31 = vadd.f32 %v20073_v55, %v18380_v24  ;;  %5078 = vadd.xlane.f32.xlu0 %v5077_v9  ;;  %v4827_v8 = vadd.f32 %v4699_v30, %v4565_v61  ;;  %v4702_v18 = vmul.f32 %v20093_v42, %v4304_v29  ;;  %v4442_v61 = vld [vmem:[%s19652_s14 + $0x258] sm:$0xff]  ;;  %v4443_v6 = vld [vmem:[%s19652_s14 + $0x260] sm:$0xff] }
 0x2a9   : > { %v3938_v15 = vpop.f32.mrf.mxu0  ;;  %v5086_v14 = vsel %vm695_vm0, %v4828_v5, 0.0  ;;  %25047 = vst [vmem:[#allocation4_spill] sm:$0xff] %v20232_v12  ;;  %v4573_v30 = vmul.f32 %v20045_v32, %v4439_v35  ;;  %v4574_v29 = vmul.f32 %v20045_v32, %v4440_v0  ;;  %v4575_v24 = vmul.f32 %v20045_v32, %v4441_v16 }
 0x2aa   : > { %v4701_v48 = vmul.f32 %v20093_v42, %v4303_v49  ;;  %v4306_v46 = vmax.f32 %v3944_v31, 0.0  ;;  %v3939_v22 = vadd.f32 %v20073_v55, %v3938_v15  ;;  %5081 = vadd.xlane.f32.xlu1 %v5080_v27  ;;  %v5083_v20 = vsel %vm695_vm0, %v4827_v8, 0.0  ;;  %v4444_v31 = vld [vmem:[%s19652_s14 + $0x268] sm:$0xff]  ;;  %v4445_v8 = vld [vmem:[%s19652_s14 + $0x270] sm:$0xff] }
 0x2ab   : > { %v18383_v50 = vpop.f32.mrf.mxu0  ;;  %v4830_v19 = vadd.f32 %v4702_v18, %v4568_v63  ;;  %v4576_v49 = vmul.f32 %v20045_v32, %v4442_v61  ;;  %v4578_v38 = vmul.f32 %v20045_v32, %v4444_v31  ;;  %v20274_v0 = vsub.s32 5, %v20204_v10 }
 0x2ac   : > { %v4305_v62 = vmax.f32 %v3939_v22, 0.0  ;;  %v3954_v25 = vadd.f32 %v20073_v55, %v18383_v50  ;;  %5084 = vadd.xlane.f32.xlu0 %v5083_v20  ;;  %v4829_v44 = vadd.f32 %v4701_v48, %v4567_v1  ;;  %v4704_v59 = vmul.f32 %v20093_v42, %v4306_v46 }
 0x2ad   : > { %v3948_v52 = vpop.f32.mrf.mxu0  ;;  %v5092_v45 = vsel %vm695_vm0, %v4830_v19, 0.0  ;;  %v4577_v46 = vmul.f32 %v20045_v32, %v4443_v6  ;;  %v20250_v50 = vmul.f32 %v20045_v32, %v4445_v8  ;;  %25052 = vst [vmem:[#allocation9_spill] sm:$0xff] %v20274_v0  ;;  %v20282_v16 = vsub.s32 7, %v20204_v10 }
 0x2ae   : > { %v4703_v36 = vmul.f32 %v20093_v42, %v4305_v62  ;;  %v4308_v53 = vmax.f32 %v3954_v25, 0.0  ;;  %v3949_v11 = vadd.f32 %v20073_v55, %v3948_v52  ;;  %5087 = vadd.xlane.f32.xlu1 %v5086_v14  ;;  %v5089_v51 = vsel %vm695_vm0, %v4829_v44, 0.0 }
 0x2af   : > { %v18386_v58 = vpop.f32.mrf.mxu0  ;;  %v4832_v34 = vadd.f32 %v4704_v59, %v4570_v54  ;;  %v20257_v59 = vsub.s32 2, %v20204_v10 }
 0x2b0   : > { %v4307_v7 = vmax.f32 %v3949_v11, 0.0  ;;  %v3964_v4 = vadd.f32 %v20073_v55, %v18386_v58  ;;  %5090 = vadd.xlane.f32.xlu0 %v5089_v51  ;;  %v4831_v39 = vadd.f32 %v4703_v36, %v4569_v28  ;;  %v4706_v60 = vmul.f32 %v20093_v42, %v4308_v53 }
 0x2b1   : > { %v3958_v17 = vpop.f32.mrf.mxu0  ;;  %v5098_v15 = vsel %vm695_vm0, %v4832_v34, 0.0  ;;  %v20254_v28 = vsub.s32 1, %v20204_v10  ;;  %25049 = vst [vmem:[#allocation6_spill] sm:$0xff] %v20257_v59  ;;  %v20264_v11 = vsub.s32 3, %v20204_v10  ;;  %v18507_v51 = vmov 1966171168  }
 0x2b2   : > { %v4705_v43 = vmul.f32 %v20093_v42, %v4307_v7  ;;  %v4310_v56 = vmax.f32 %v3964_v4, 0.0  ;;  %v3959_v3 = vadd.f32 %v20073_v55, %v3958_v17  ;;  %5093 = vadd.xlane.f32.xlu1 %v5092_v45  ;;  %v5095_v33 = vsel %vm695_vm0, %v4831_v39, 0.0 }
 0x2b3   : > { %v18389_v37 = vpop.f32.mrf.mxu0  ;;  %v4834_v5 = vadd.f32 %v4706_v60, %v4572_v23  ;;  %v4896_v22 = vpop.xlane.xlu0 %4895  ;;  %25048 = vst [vmem:[#allocation5_spill] sm:$0xff] %v20254_v28  ;;  %25050 = vst [vmem:[#allocation7_spill] sm:$0xff] %v20264_v11  ;;  %v9642_v2 = vunpack.c.l.s4 %v18507_v51  ;;  %v20269_v4 = vsub.s32 4, %v20204_v10  ;;  %v20277_v60 = vsub.s32 6, %v20204_v10 }
 0x2b4   : > { %v4309_v9 = vmax.f32 %v3959_v3, 0.0  ;;  %v3974_v26 = vadd.f32 %v20073_v55, %v18389_v37  ;;  %5096 = vadd.xlane.f32.xlu0 %v5095_v33  ;;  %v4708_v1 = vmul.f32 %v20093_v42, %v4310_v56  ;;  %v4833_v27 = vadd.f32 %v4705_v43, %v4571_v41 }
 0x2b5   : > { %v3968_v18 = vpop.f32.mrf.mxu0  ;;  %v5104_v14 = vsel %vm695_vm0, %v4834_v5, 0.0  ;;  %v5286_v13 = vadd.f32 %v20232_v12, %v4896_v22  ;;  %25051 = vst [vmem:[#allocation8_spill] sm:$0xff] %v20269_v4  ;;  %25053 = vst [vmem:[#allocation10_spill] sm:$0xff] %v20277_v60  ;;  %v9643_v33 = vunpack.c.0.s8 %v9642_v2 }
 0x2b6   : > { %v4707_v63 = vmul.f32 %v20093_v42, %v4309_v9  ;;  %v4312_v57 = vmax.f32 %v3974_v26, 0.0  ;;  %v3969_v48 = vadd.f32 %v20073_v55, %v3968_v18  ;;  %5099 = vadd.xlane.f32.xlu1 %v5098_v15  ;;  %v5101_v20 = vsel %vm695_vm0, %v4833_v27, 0.0  ;;  %v4447_v27 = vld [vmem:[%s19652_s14 + $0x280] sm:$0xff] }
 0x2b7   : > { %v18392_v44 = vpop.f32.mrf.mxu0  ;;  %v4836_v54 = vadd.f32 %v4708_v1, %v4574_v29  ;;  %v4893_v17 = vpop.xlane.xlu0 %4892  ;;  %v5576_v56 = vrot.slane %v5286_v13, %v20217_v21  ;;  %v5580_v3 = vrot.slane %v5286_v13, %v20254_v28  ;;  %v5584_v29 = vrot.slane %v5286_v13, %v20257_v59 }
 0x2b8   : > { %v4710_v62 = vmul.f32 %v20093_v42, %v4312_v57  ;;  %v4311_v25 = vmax.f32 %v3969_v48, 0.0  ;;  %5102 = vadd.xlane.f32.xlu0 %v5101_v20  ;;  %v3984_v52 = vadd.f32 %v20073_v55, %v18392_v44  ;;  %v4835_v19 = vadd.f32 %v4707_v63, %v4573_v30 }
 0x2b9   : > { %v3978_v53 = vpop.f32.mrf.mxu0  ;;  %v5110_v23 = vsel %vm695_vm0, %v4836_v54, 0.0  ;;  %v5588_v6 = vrot.slane %v5286_v13, %v20264_v11  ;;  %v5600_v31 = vrot.slane %v5286_v13, %v20277_v60  ;;  %v5604_v5 = vrot.slane %v5286_v13, %v20282_v16 }
 0x2ba   : > { %v4709_v36 = vmul.f32 %v20093_v42, %v4311_v25  ;;  %5105 = vadd.xlane.f32.xlu1 %v5104_v14  ;;  %v4314_v58 = vmax.f32 %v3984_v52, 0.0  ;;  %v3979_v47 = vadd.f32 %v20073_v55, %v3978_v53  ;;  %v5107_v7 = vsel %vm695_vm0, %v4835_v19, 0.0  ;;  %v4449_v25 = vld [vmem:[%s19652_s14 + $0x290] sm:$0xff] }
 0x2bb   : > { %v20271_v39 = vpop.f32.mrf.mxu0  ;;  %v4838_v35 = vadd.f32 %v4710_v62, %v4576_v49  ;;  %v5596_v49 = vrot.slane %v5286_v13, %v20274_v0  ;;  %v20302_v57 = vsub.s32 %v9643_v33, %v20204_v10  ;;  %v9686_v48 = vcombine.low %v5576_v56, %v5580_v3  ;;  %v4451_v56 = vld [vmem:[%s19652_s14 + $0x2a0] sm:$0xff] }
 0x2bc   : > { %5108 = vadd.xlane.f32.xlu0 %v5107_v7  ;;  %v4837_v41 = vadd.f32 %v4709_v36, %v4575_v24  ;;  %v4712_v45 = vmul.f32 %v20093_v42, %v4314_v58  ;;  %v4313_v34 = vmax.f32 %v3979_v47, 0.0  ;;  %v5592_v24 = vrot.slane %v5286_v13, %v20269_v4 }
 0x2bd   : > { %v3988_v61 = vpop.f32.mrf.mxu0  ;;  %v5116_v26 = vsel %vm695_vm0, %v4838_v35, 0.0  ;;  %v20297_v8 = vpop.xlane.xlu0 %4904  ;;  %v9687_v44 = vcombine.low %v5584_v29, %v5588_v6  ;;  %v4581_v52 = vmul.f32 %v20045_v32, %v4447_v27  ;;  %v9689_v36 = vcombine.low %v5600_v31, %v5604_v5 }
 0x2be   : > { %5111 = vadd.xlane.f32.xlu1 %v5110_v23  ;;  %v5113_v43 = vsel %vm695_vm0, %v4837_v41, 0.0  ;;  %v4711_v37 = vmul.f32 %v20093_v42, %v4313_v34  ;;  %v3989_v30 = vadd.f32 %v20073_v55, %v3988_v61  ;;  %v4840_v15 = vadd.f32 %v4712_v45, %v4578_v38 }
 0x2bf   : > { %v20291_v9 = vpop.f32.mrf.mxu0  ;;  %v9688_v14 = vcombine.low %v5592_v24, %v5596_v49  ;;  %v4583_v51 = vmul.f32 %v20045_v32, %v4449_v25  ;;  %v9696_v2 = vrot.slane %v9686_v48, %v20302_v57  ;;  %v9703_v35 = vrot.slane %v9687_v44, %v20302_v57 }
 0x2c0   : > { %5114 = vadd.xlane.f32.xlu0 %v5113_v43  ;;  %v4315_v1 = vmax.f32 %v3989_v30, 0.0  ;;  %v4839_v18 = vadd.f32 %v4711_v37, %v4577_v46  ;;  %v5285_v46 = vadd.f32 %v20232_v12, %v4893_v17  ;;  %v5122_v54 = vsel %vm695_vm0, %v4840_v15, 0.0 }
 0x2c1   : > { %v3998_v63 = vpop.f32.mrf.mxu0  ;;  %v20316_v58 = vpop.xlane.xlu0 %4910  ;;  %v9710_v3 = vrot.slane %v9688_v14, %v20302_v57  ;;  %v9717_v33 = vrot.slane %v9689_v36, %v20302_v57  ;;  %v4585_v31 = vmul.f32 %v20045_v32, %v4451_v56  ;;  %v9718_v48 = vcombine.low %v9696_v2, %v9703_v35 }
 0x2c2   : > { %5117 = vadd.xlane.f32.xlu1 %v5116_v26  ;;  %v4713_v22 = vmul.f32 %v20093_v42, %v4315_v1  ;;  %v3999_v20 = vadd.f32 %v20073_v55, %v3998_v63  ;;  %v5119_v62 = vsel %vm695_vm0, %v4839_v18, 0.0  ;;  %v5548_v45 = vrot.slane %v5285_v46, %v20254_v28 }
 0x2c3   : > { %v20309_v38 = vpop.f32.mrf.mxu0  ;;  %v5552_v34 = vrot.slane %v5285_v46, %v20257_v59  ;;  %v5556_v23 = vrot.slane %v5285_v46, %v20264_v11  ;;  %v5560_v30 = vrot.slane %v5285_v46, %v20269_v4  ;;  %v5564_v29 = vrot.slane %v5285_v46, %v20274_v0 }
 0x2c4   : > { %5120 = vadd.xlane.f32.xlu0 %v5119_v62  ;;  %v4317_v19 = vmax.f32 %v3999_v20, 0.0  ;;  %v4841_v13 = vadd.f32 %v4713_v22, %v20250_v50  ;;  %v5544_v50 = vrot.slane %v5285_v46, %v20217_v21  ;;  %v5568_v6 = vrot.slane %v5285_v46, %v20277_v60 }
 0x2c5   : > { %v4008_v53 = vpop.f32.mrf.mxu0  ;;  %v5572_v1 = vrot.slane %v5285_v46, %v20282_v16  ;;  %v9638_v15 = vcombine.low %v5552_v34, %v5556_v23  ;;  %v4917_v27 = vpop.xlane.xlu0 %4916  ;;  %v9719_v22 = vcombine.low %v9710_v3, %v9717_v33  ;;  %v9639_v20 = vcombine.low %v5560_v30, %v5564_v29 }
 0x2c6   : > { %5123 = vadd.xlane.f32.xlu1 %v5122_v54  ;;  %v4715_v47 = vmul.f32 %v20093_v42, %v4317_v19  ;;  %v4009_v7 = vadd.f32 %v20073_v55, %v4008_v53  ;;  %v5125_v41 = vsel %vm695_vm0, %v4841_v13, 0.0  ;;  %v9637_v18 = vcombine.low %v5544_v50, %v5548_v45 }
 0x2c7   : > { %v20322_v17 = vpop.f32.mrf.mxu0  ;;  %v9640_v62 = vcombine.low %v5568_v6, %v5572_v1  ;;  %v5293_v14 = vadd.f32 %v20232_v12, %v4917_v27  ;;  %v9654_v46 = vrot.slane %v9638_v15, %v20302_v57  ;;  %v9661_v19 = vrot.slane %v9639_v20, %v20302_v57  ;;  %v4446_v20 = vld [vmem:[%s19652_s14 + $0x278] sm:$0xff] }
 0x2c8   : > { %5126 = vadd.xlane.f32.xlu0 %v5125_v41  ;;  %v4319_v61 = vmax.f32 %v4009_v7, 0.0  ;;  %v4843_v43 = vadd.f32 %v4715_v47, %v4581_v52  ;;  %v9647_v25 = vrot.slane %v9637_v18, %v20302_v57  ;;  %v9726_v36 = vrot.slane %v9718_v48, %v20302_v57 }
 0x2c9   : > { %v4018_v37 = vpop.f32.mrf.mxu0  ;;  %v9668_v54 = vrot.slane %v9640_v62, %v20302_v57  ;;  %v9733_v53 = vrot.slane %v9719_v22, %v20302_v57  ;;  %v5800_v7 = vrot.slane %v5293_v14, %v20217_v21  ;;  %v5804_v41 = vrot.slane %v5293_v14, %v20254_v28  ;;  %v4902_v62 = vpop.xlane.xlu1 %4901 }
 0x2ca   : > { %v4717_v26 = vmul.f32 %v20093_v42, %v4319_v61  ;;  %v4019_v24 = vadd.f32 %v20073_v55, %v4018_v37  ;;  %v5131_v49 = vsel %vm695_vm0, %v4843_v43, 0.0  ;;  %v5808_v34 = vrot.slane %v5293_v14, %v20257_v59 }
 0x2cb   : > { %v9670_v2 = vcombine.low %v9661_v19, %v9668_v54  ;;  %v9734_v35 = vcombine.low %v9726_v36, %v9733_v53  ;;  %v5812_v23 = vrot.slane %v5293_v14, %v20264_v11  ;;  %v5816_v61 = vrot.slane %v5293_v14, %v20269_v4  ;;  %v20367_v22 = vpop.f32.mrf.mxu0 }
 0x2cc   : > { %5132 = vadd.xlane.f32.xlu0 %v5131_v49  ;;  %v4321_v5 = vmax.f32 %v4019_v24, 0.0  ;;  %v4845_v63 = vadd.f32 %v4717_v26, %v4583_v51  ;;  %v9669_v51 = vcombine.low %v9647_v25, %v9654_v46  ;;  %v5820_v43 = vrot.slane %v5293_v14, %v20274_v0 }
 0x2cd   : > { %v9684_v45 = vrot.slane %v9670_v2, %v20302_v57  ;;  %v5824_v56 = vrot.slane %v5293_v14, %v20277_v60  ;;  %v5828_v3 = vrot.slane %v5293_v14, %v20282_v16  ;;  %v10029_v33 = vcombine.low %v5800_v7, %v5804_v41  ;;  %v4028_v14 = vpop.f32.mrf.mxu0  ;;  %v4899_v46 = vpop.xlane.xlu1 %4898 }
 0x2ce   : > { %v4719_v44 = vmul.f32 %v20093_v42, %v4321_v5  ;;  %v5137_v52 = vsel %vm695_vm0, %v4845_v63, 0.0  ;;  %v9677_v50 = vrot.slane %v9669_v51, %v20302_v57  ;;  %v10030_v30 = vcombine.low %v5808_v34, %v5812_v23 }
 0x2cf   : > { %v10031_v29 = vcombine.low %v5816_v61, %v5820_v43  ;;  %v10032_v6 = vcombine.low %v5824_v56, %v5828_v3  ;;  %v10039_v26 = vrot.slane %v10029_v33, %v20302_v57  ;;  %v3994_v63 = vadd.f32 %v20073_v55, %v20271_v39 }
 0x2d0   : > { %5138 = vadd.xlane.f32.xlu0 %v5137_v52  ;;  %v4847_v13 = vadd.f32 %v4719_v44, %v4585_v31  ;;  %v9685_v37 = vcombine.low %v9677_v50, %v9684_v45  ;;  %v10046_v24 = vrot.slane %v10030_v30, %v20302_v57  ;;  %v4580_v44 = vmul.f32 %v20045_v32, %v4446_v20 }
 0x2d1   : > { %v10053_v49 = vrot.slane %v10031_v29, %v20302_v57  ;;  %v10060_v31 = vrot.slane %v10032_v6, %v20302_v57  ;;  %v4316_v48 = vmax.f32 %v3994_v63, 0.0  ;;  %v5288_v52 = vadd.f32 %v20232_v12, %v4902_v62 }
 0x2d2   : > { %v5143_v47 = vsel %vm695_vm0, %v4847_v13, 0.0  ;;  %v10061_v1 = vcombine.low %v10039_v26, %v10046_v24  ;;  %v4029_v19 = vadd.f32 %v20073_v55, %v4028_v14  ;;  %v5287_v7 = vadd.f32 %v20232_v12, %v4899_v46  ;;  %v20397_v26 = vld [vmem:[%s24850_s8] ss:$0 sm:$0xff] }
 0x2d3   : > { %v10062_v18 = vcombine.low %v10053_v49, %v10060_v31  ;;  %v4714_v25 = vmul.f32 %v20093_v42, %v4316_v48  ;;  %v5640_v39 = vrot.slane %v5288_v52, %v20217_v21  ;;  %v5644_v13 = vrot.slane %v5288_v52, %v20254_v28  ;;  %v4923_v49 = vpop.xlane.xlu0 %4922 }
 0x2d4   : > { %5144 = vadd.xlane.f32.xlu0 %v5143_v47  ;;  %v10069_v15 = vrot.slane %v10061_v1, %v20302_v57  ;;  %v5648_v36 = vrot.slane %v5288_v52, %v20257_v59  ;;  %v5652_v53 = vrot.slane %v5288_v52, %v20264_v11  ;;  %v5656_v51 = vrot.slane %v5288_v52, %v20269_v4 }
 0x2d5   : > { %v10076_v27 = vrot.slane %v10062_v18, %v20302_v57  ;;  %v4842_v54 = vadd.f32 %v4714_v25, %v4580_v44  ;;  %v5660_v32 = vrot.slane %v5288_v52, %v20274_v0  ;;  %v5664_v2 = vrot.slane %v5288_v52, %v20277_v60 }
 0x2d6   : > { %v5668_v47 = vrot.slane %v5288_v52, %v20282_v16  ;;  %v4323_v55 = vmax.f32 %v4029_v19, 0.0  ;;  %v9784_v50 = vcombine.low %v5640_v39, %v5644_v13  ;;  %v9785_v45 = vcombine.low %v5648_v36, %v5652_v53 }
 0x2d7   : > { %15913 = vperm.xlu1 %18483, %v9734_v35   ;;  %v10077_v5 = vcombine.low %v10069_v15, %v10076_v27  ;;  %v5128_v41 = vsel %vm695_vm0, %v4842_v54, 0.0  ;;  %v4453_v35 = vld [vmem:[%s19652_s14 + $0x2b0] sm:$0xff]  ;;  %v9786_v34 = vcombine.low %v5656_v51, %v5660_v32  ;;  %v5608_v61 = vrot.slane %v5287_v7, %v20217_v21 }
 0x2d8   : > { %v9787_v23 = vcombine.low %v5664_v2, %v5668_v47  ;;  %v5612_v43 = vrot.slane %v5287_v7, %v20254_v28  ;;  %v5616_v56 = vrot.slane %v5287_v7, %v20257_v59  ;;  %v5620_v3 = vrot.slane %v5287_v7, %v20264_v11 }
 0x2d9   : > { %v5624_v33 = vrot.slane %v5287_v7, %v20269_v4  ;;  %v5632_v30 = vrot.slane %v5287_v7, %v20277_v60  ;;  %v5636_v29 = vrot.slane %v5287_v7, %v20282_v16  ;;  %v4721_v6 = vmul.f32 %v20093_v42, %v4323_v55 }
 0x2da   : > { %v4587_v24 = vmul.f32 %v20397_v26, %v4453_v35  ;;  %v9794_v31 = vrot.slane %v9784_v50, %v20302_v57  ;;  %v9801_v1 = vrot.slane %v9785_v45, %v20302_v57  ;;  %v9808_v18 = vrot.slane %v9786_v34, %v20302_v57 }
 0x2db   : > { %15910 = vperm.xlu1 %18483, %v9685_v37   ;;  %v5628_v37 = vrot.slane %v5287_v7, %v20274_v0  ;;  %v9815_v15 = vrot.slane %v9787_v23, %v20302_v57  ;;  %v9735_v27 = vcombine.low %v5608_v61, %v5612_v43  ;;  %v9738_v63 = vcombine.low %v5632_v30, %v5636_v29 }
 0x2dc   : > { %v4849_v48 = vadd.f32 %v4721_v6, %v4587_v24  ;;  %v5295_v20 = vadd.f32 %v20232_v12, %v4923_v49  ;;  %v9816_v62 = vcombine.low %v9794_v31, %v9801_v1  ;;  %v20428_v1 = vpop.f32.mrf.mxu0 }
 0x2dd   : > { %v9737_v42 = vcombine.low %v5624_v33, %v5628_v37  ;;  %v9817_v25 = vcombine.low %v9808_v18, %v9815_v15  ;;  %v9745_v44 = vrot.slane %v9735_v27, %v20302_v57  ;;  %v9766_v46 = vrot.slane %v9738_v63, %v20302_v57  ;;  %v20433_v18 = vld [vmem:[%s24849_s7] ss:$0 sm:$0xff] }
 0x2de   : > { %v5149_v19 = vsel %vm695_vm0, %v4849_v48, 0.0  ;;  %v5864_v54 = vrot.slane %v5295_v20, %v20217_v21  ;;  %v5868_v39 = vrot.slane %v5295_v20, %v20254_v28  ;;  %v5872_v13 = vrot.slane %v5295_v20, %v20257_v59  ;;  %v4038_v27 = vpop.f32.mrf.mxu0  ;;  %v4448_v48 = vld [vmem:[%s19652_s14 + $0x288] sm:$0xff] }
 0x2df   : > { %v9759_v14 = vrot.slane %v9737_v42, %v20302_v57  ;;  %v5876_v36 = vrot.slane %v5295_v20, %v20264_v11  ;;  %v5880_v53 = vrot.slane %v5295_v20, %v20269_v4  ;;  %v5884_v51 = vrot.slane %v5295_v20, %v20274_v0 }
 0x2e0   : > { %v5888_v32 = vrot.slane %v5295_v20, %v20277_v60  ;;  %v5892_v2 = vrot.slane %v5295_v20, %v20282_v16  ;;  %v9824_v47 = vrot.slane %v9816_v62, %v20302_v57  ;;  %v9831_v7 = vrot.slane %v9817_v25, %v20302_v57  ;;  %v20443_v62 = vld [vmem:[%s24851_s9] ss:$0 sm:$0xff] }
 0x2e1   : > { %v10127_v35 = vcombine.low %v5864_v54, %v5868_v39  ;;  %v10128_v50 = vcombine.low %v5872_v13, %v5876_v36  ;;  %v10129_v45 = vcombine.low %v5880_v53, %v5884_v51  ;;  %v4004_v15 = vadd.f32 %v20433_v18, %v20291_v9 }
 0x2e2   : > { %v10130_v34 = vcombine.low %v5888_v32, %v5892_v2  ;;  %v9832_v23 = vcombine.low %v9824_v47, %v9831_v7  ;;  %v4039_v63 = vadd.f32 %v20433_v18, %v4038_v27  ;;  %v5289_v47 = vadd.f32 %v20232_v12, %v20297_v8 }
 0x2e3   : > { %v10151_v33 = vrot.slane %v10129_v45, %v20302_v57  ;;  %v4318_v42 = vmax.f32 %v4004_v15, 0.0 }
 0x2e4   : > { %v10158_v37 = vrot.slane %v10130_v34, %v20302_v57  ;;  %v4929_v34 = vpop.xlane.xlu0 %4928  ;;  %v5692_v8 = vrot.slane %v5289_v47, %v20274_v0 }
 0x2e5   : > { %v4716_v25 = vmul.f32 %v20443_v62, %v4318_v42 }
 0x2e6   : > { %v10160_v6 = vcombine.low %v10151_v33, %v10158_v37  ;;  %v5696_v33 = vrot.slane %v5289_v47, %v20277_v60  ;;  %v5700_v37 = vrot.slane %v5289_v47, %v20282_v16 }
 0x2e8   : > { %v10174_v49 = vrot.slane %v10160_v6, %v20302_v57 }
 0x2ea   : > { %15934 = vperm.xlu0 %18482, %v10077_v5   ;;  %v9736_v5 = vcombine.low %v5616_v56, %v5620_v3  ;;  %v10137_v56 = vrot.slane %v10127_v35, %v20302_v57  ;;  %v10144_v3 = vrot.slane %v10128_v50, %v20302_v57 }
 0x2ec   : > { %v9752_v52 = vrot.slane %v9736_v5, %v20302_v57  ;;  %v10159_v29 = vcombine.low %v10137_v56, %v10144_v3  ;;  %v4908_v5 = vpop.xlane.xlu1 %4907  ;;  %v5684_v56 = vrot.slane %v5289_v47, %v20264_v11  ;;  %v5688_v3 = vrot.slane %v5289_v47, %v20269_v4 }
 0x2ed   : > { %v5290_v20 = vadd.f32 %v20232_v12, %v4908_v5  ;;  %v9836_v5 = vcombine.low %v5696_v33, %v5700_v37 }
 0x2ee   : > { %v9767_v55 = vcombine.low %v9745_v44, %v9752_v52  ;;  %v10167_v24 = vrot.slane %v10159_v29, %v20302_v57  ;;  %v4325_v44 = vmax.f32 %v4039_v63, 0.0  ;;  %v4582_v52 = vmul.f32 %v20397_v26, %v4448_v48 }
 0x2ef   : > { %v5704_v9 = vrot.slane %v5290_v20, %v20217_v21  ;;  %v5716_v54 = vrot.slane %v5290_v20, %v20264_v11  ;;  %v5720_v39 = vrot.slane %v5290_v20, %v20269_v4  ;;  %v5724_v13 = vrot.slane %v5290_v20, %v20274_v0 }
 0x2f0   : > { %v9775_v61 = vrot.slane %v9767_v55, %v20302_v57  ;;  %v10175_v31 = vcombine.low %v10167_v24, %v10174_v49  ;;  %v5728_v36 = vrot.slane %v5290_v20, %v20277_v60  ;;  %v5732_v53 = vrot.slane %v5290_v20, %v20282_v16 }
 0x2f1   : > { %v4723_v51 = vmul.f32 %v20443_v62, %v4325_v44  ;;  %v4844_v32 = vadd.f32 %v4716_v25, %v4582_v52  ;;  %v5297_v49 = vadd.f32 %v20232_v12, %v4929_v34  ;;  %v9835_v27 = vcombine.low %v5688_v3, %v5692_v8 }
 0x2f2   : > { %v9885_v35 = vcombine.low %v5728_v36, %v5732_v53  ;;  %v9864_v36 = vrot.slane %v9836_v5, %v20302_v57  ;;  %v4450_v5 = vld [vmem:[%s19652_s14 + $0x298] sm:$0xff] }
 0x2f3   : > { %v5134_v50 = vsel %vm695_vm0, %v4844_v32, 0.0  ;;  %v5932_v25 = vrot.slane %v5297_v49, %v20254_v28  ;;  %v5936_v44 = vrot.slane %v5297_v49, %v20257_v59  ;;  %v5940_v52 = vrot.slane %v5297_v49, %v20264_v11 }
 0x2f4   : > { %v9913_v24 = vrot.slane %v9885_v35, %v20302_v57 }
 0x2ff   : > { %5129 = vadd.xlane.f32.xlu1 %v5128_v41  ;;  %v9768_v41 = vcombine.low %v9759_v14, %v9766_v46  ;;  %v4455_v14 = vld [vmem:[%s19652_s14 + $0x2c0] sm:$0xff]  ;;  %v5708_v46 = vrot.slane %v5290_v20, %v20254_v28 }
 0x300   : > { %v4589_v2 = vmul.f32 %v20397_v26, %v4455_v14  ;;  %v5944_v14 = vrot.slane %v5297_v49, %v20269_v4 }
 0x301   : > { %v9782_v43 = vrot.slane %v9768_v41, %v20302_v57  ;;  %v9882_v7 = vcombine.low %v5704_v9, %v5708_v46  ;;  %v9884_v41 = vcombine.low %v5720_v39, %v5724_v13  ;;  %v5948_v9 = vrot.slane %v5297_v49, %v20274_v0 }
 0x302   : > { %v4851_v45 = vadd.f32 %v4723_v51, %v4589_v2  ;;  %v5952_v46 = vrot.slane %v5297_v49, %v20277_v60  ;;  %v9857_v13 = vrot.slane %v9835_v27, %v20302_v57  ;;  %v10226_v51 = vcombine.low %v5936_v44, %v5940_v52 }
 0x303   : > { %v9783_v30 = vcombine.low %v9775_v61, %v9782_v43  ;;  %v5676_v61 = vrot.slane %v5289_v47, %v20254_v28  ;;  %v5680_v43 = vrot.slane %v5289_v47, %v20257_v59  ;;  %v9906_v6 = vrot.slane %v9884_v41, %v20302_v57 }
 0x304   : > { %v5155_v42 = vsel %vm695_vm0, %v4851_v45, 0.0  ;;  %v10227_v32 = vcombine.low %v5944_v14, %v5948_v9  ;;  %v9866_v41 = vcombine.low %v9857_v13, %v9864_v36 }
 0x305   : > { %v9834_v15 = vcombine.low %v5680_v43, %v5684_v56  ;;  %v9915_v48 = vcombine.low %v9906_v6, %v9913_v24  ;;  %v4014_v24 = vadd.f32 %v20433_v18, %v20309_v38 }
 0x306   : > { %v10249_v45 = vrot.slane %v10227_v32, %v20302_v57  ;;  %v9880_v43 = vrot.slane %v9866_v41, %v20302_v57 }
 0x307   : > { %v9850_v39 = vrot.slane %v9834_v15, %v20302_v57  ;;  %v4320_v15 = vmax.f32 %v4014_v24, 0.0 }
 0x309   : > { %5150 = vadd.xlane.f32.xlu0 %v5149_v19  ;;  %v5712_v19 = vrot.slane %v5290_v20, %v20257_v59  ;;  %v5928_v20 = vrot.slane %v5297_v49, %v20217_v21 }
 0x30b   : > { %v9883_v55 = vcombine.low %v5712_v19, %v5716_v54  ;;  %v5956_v19 = vrot.slane %v5297_v49, %v20282_v16  ;;  %v10225_v53 = vcombine.low %v5928_v20, %v5932_v25  ;;  %v4584_v25 = vmul.f32 %v20397_v26, %v4450_v5 }
 0x30d   : > { %v9899_v29 = vrot.slane %v9883_v55, %v20302_v57  ;;  %v10228_v2 = vcombine.low %v5952_v46, %v5956_v19  ;;  %v10235_v35 = vrot.slane %v10225_v53, %v20302_v57  ;;  %v5291_v53 = vadd.f32 %v20232_v12, %v20316_v58 }
 0x30f   : > { %v10256_v34 = vrot.slane %v10228_v2, %v20302_v57  ;;  %v5752_v58 = vrot.slane %v5291_v53, %v20269_v4 }
 0x310   : > { %15919 = vperm.xlu1 %18483, %v9832_v23   ;;  %v5672_v23 = vrot.slane %v5289_v47, %v20217_v21 }
 0x311   : > { %v10258_v3 = vcombine.low %v10249_v45, %v10256_v34  ;;  %v5740_v45 = vrot.slane %v5291_v53, %v20254_v28  ;;  %v5744_v34 = vrot.slane %v5291_v53, %v20257_v59 }
 0x313   : > { %v10272_v37 = vrot.slane %v10258_v3, %v20302_v57 }
 0x314   : > { %15916 = vperm.xlu1 %18483, %v9783_v30   ;;  %v9892_v30 = vrot.slane %v9882_v7, %v20302_v57  ;;  %v9929_v7 = vrot.slane %v9915_v48, %v20302_v57  ;;  %v4718_v48 = vmul.f32 %v20443_v62, %v4320_v15 }
 0x316   : > { %v9914_v63 = vcombine.low %v9892_v30, %v9899_v29  ;;  %v20497_v29 = vpop.f32.mrf.mxu0  ;;  %v4846_v13 = vadd.f32 %v4718_v48, %v4584_v25 }
 0x318   : > { %v9922_v47 = vrot.slane %v9914_v63, %v20302_v57  ;;  %v4048_v6 = vpop.f32.mrf.mxu0  ;;  %v5140_v41 = vsel %vm695_vm0, %v4846_v13, 0.0 }
 0x319   : > { %v4049_v49 = vadd.f32 %v20433_v18, %v4048_v6 }
 0x31b   : > { %v4327_v27 = vmax.f32 %v4049_v49, 0.0 }
 0x31d   : > { %v4725_v20 = vmul.f32 %v20443_v62, %v4327_v27 }
 0x31f   : > { %15940 = vperm.xlu0 %18482, %v10175_v31   ;;  %v9833_v31 = vcombine.low %v5672_v23, %v5676_v61  ;;  %v9930_v23 = vcombine.low %v9922_v47, %v9929_v7 }
 0x321   : > { %v9843_v54 = vrot.slane %v9833_v31, %v20302_v57  ;;  %v4914_v31 = vpop.xlane.xlu1 %4913 }
 0x322   : > { %v5292_v63 = vadd.f32 %v20232_v12, %v4914_v31 }
 0x323   : > { %v9865_v55 = vcombine.low %v9843_v54, %v9850_v39 }
 0x324   : > { %v5768_v52 = vrot.slane %v5292_v63, %v20217_v21  ;;  %v5772_v38 = vrot.slane %v5292_v63, %v20254_v28  ;;  %v5776_v14 = vrot.slane %v5292_v63, %v20257_v59  ;;  %v5780_v9 = vrot.slane %v5292_v63, %v20264_v11 }
 0x325   : > { %v9873_v61 = vrot.slane %v9865_v55, %v20302_v57  ;;  %v5784_v46 = vrot.slane %v5292_v63, %v20269_v4  ;;  %v5788_v19 = vrot.slane %v5292_v63, %v20274_v0  ;;  %v5792_v54 = vrot.slane %v5292_v63, %v20277_v60 }
 0x326   : > { %v5796_v39 = vrot.slane %v5292_v63, %v20282_v16  ;;  %v9980_v32 = vcombine.low %v5768_v52, %v5772_v38  ;;  %v9981_v2 = vcombine.low %v5776_v14, %v5780_v9 }
 0x327   : > { %v9881_v8 = vcombine.low %v9873_v61, %v9880_v43  ;;  %v9982_v47 = vcombine.low %v5784_v46, %v5788_v19  ;;  %v5756_v61 = vrot.slane %v5291_v53, %v20274_v0  ;;  %v5760_v43 = vrot.slane %v5291_v53, %v20277_v60 }
 0x328   : > { %v9983_v7 = vcombine.low %v5792_v54, %v5796_v39  ;;  %v9990_v3 = vrot.slane %v9980_v32, %v20302_v57 }
 0x329   : > { %v9933_v48 = vcombine.low %v5752_v58, %v5756_v61 }
 0x32b   : > { %v9955_v54 = vrot.slane %v9933_v48, %v20302_v57 }
 0x338   : > { %5135 = vadd.xlane.f32.xlu1 %v5134_v50  ;;  %v10242_v50 = vrot.slane %v10226_v51, %v20302_v57  ;;  %v4935_v51 = vpop.xlane.xlu0 %4934 }
 0x339   : > { %v5299_v55 = vadd.f32 %v20232_v12, %v4935_v51 }
 0x33a   : > { %v10257_v56 = vcombine.low %v10235_v35, %v10242_v50  ;;  %v5736_v50 = vrot.slane %v5291_v53, %v20217_v21 }
 0x33b   : > { %v5996_v6 = vrot.slane %v5299_v55, %v20254_v28  ;;  %v6000_v24 = vrot.slane %v5299_v55, %v20257_v59  ;;  %v6004_v49 = vrot.slane %v5299_v55, %v20264_v11  ;;  %v6008_v31 = vrot.slane %v5299_v55, %v20269_v4 }
 0x33c   : > { %v10265_v33 = vrot.slane %v10257_v56, %v20302_v57  ;;  %v5764_v56 = vrot.slane %v5291_v53, %v20282_v16  ;;  %v6012_v15 = vrot.slane %v5299_v55, %v20274_v0  ;;  %v6016_v27 = vrot.slane %v5299_v55, %v20277_v60 }
 0x33d   : > { %v6020_v5 = vrot.slane %v5299_v55, %v20282_v16  ;;  %v10324_v38 = vcombine.low %v6000_v24, %v6004_v49  ;;  %v4920_v24 = vpop.xlane.xlu1 %4919 }
 0x33e   : > { %5156 = vadd.xlane.f32.xlu0 %v5155_v42  ;;  %v10273_v30 = vcombine.low %v10265_v33, %v10272_v37  ;;  %v4457_v42 = vld [vmem:[%s19652_s14 + $0x2d0] sm:$0xff]  ;;  %v10004_v33 = vrot.slane %v9982_v47, %v20302_v57  ;;  %v10011_v37 = vrot.slane %v9983_v7, %v20302_v57  ;;  %v10325_v14 = vcombine.low %v6008_v31, %v6012_v15 }
 0x33f   : > { %v4591_v44 = vmul.f32 %v20397_v26, %v4457_v42  ;;  %v9931_v42 = vcombine.low %v5736_v50, %v5740_v45  ;;  %v10326_v9 = vcombine.low %v6016_v27, %v6020_v5  ;;  %v5294_v5 = vadd.f32 %v20232_v12, %v4920_v24 }
 0x341   : > { %v4853_v36 = vadd.f32 %v4725_v20, %v4591_v44  ;;  %v9934_v20 = vcombine.low %v5760_v43, %v5764_v56  ;;  %v10013_v44 = vcombine.low %v10004_v33, %v10011_v37  ;;  %v9941_v46 = vrot.slane %v9931_v42, %v20302_v57  ;;  %v20556_v43 = vpop.f32.mrf.mxu0  ;;  %v4941_v42 = vpop.xlane.xlu0 %4940 }
 0x342   : > { %v10354_v51 = vrot.slane %v10326_v9, %v20302_v57  ;;  %v5301_v48 = vadd.f32 %v20232_v12, %v4941_v42  ;;  %v5856_v9 = vrot.slane %v5294_v5, %v20277_v60 }
 0x343   : > { %v5161_v35 = vsel %vm695_vm0, %v4853_v36, 0.0  ;;  %v9962_v39 = vrot.slane %v9934_v20, %v20302_v57  ;;  %v10340_v36 = vrot.slane %v10324_v38, %v20302_v57  ;;  %v4058_v56 = vpop.f32.mrf.mxu0  ;;  %v5832_v20 = vrot.slane %v5294_v5, %v20217_v21 }
 0x344   : > { %v5848_v38 = vrot.slane %v5294_v5, %v20269_v4 }
 0x345   : > { %v9964_v7 = vcombine.low %v9955_v54, %v9962_v39  ;;  %v6056_v39 = vrot.slane %v5301_v48, %v20217_v21 }
 0x347   : > { %v9978_v45 = vrot.slane %v9964_v7, %v20302_v57 }
 0x349   : > { %15925 = vperm.xlu1 %18483, %v9930_v23   ;;  %v5748_v23 = vrot.slane %v5291_v53, %v20264_v11  ;;  %v10347_v53 = vrot.slane %v10325_v14, %v20302_v57  ;;  %v5852_v14 = vrot.slane %v5294_v5, %v20274_v0 }
 0x34b   : > { %v9932_v63 = vcombine.low %v5744_v34, %v5748_v23 }
 0x34d   : > { %15922 = vperm.xlu1 %18483, %v9881_v8   ;;  %v9997_v8 = vrot.slane %v9981_v2, %v20302_v57  ;;  %v9948_v19 = vrot.slane %v9932_v63, %v20302_v57  ;;  %v10027_v2 = vrot.slane %v10013_v44, %v20302_v57  ;;  %v5840_v44 = vrot.slane %v5294_v5, %v20257_v59 }
 0x34f   : > { %v10012_v25 = vcombine.low %v9990_v3, %v9997_v8  ;;  %v9963_v47 = vcombine.low %v9941_v46, %v9948_v19  ;;  %v4024_v3 = vadd.f32 %v20433_v18, %v20322_v17  ;;  %v4059_v8 = vadd.f32 %v20433_v18, %v4058_v56 }
 0x350   : > { %v5860_v46 = vrot.slane %v5294_v5, %v20282_v16 }
 0x351   : > { %v10020_v32 = vrot.slane %v10012_v25, %v20302_v57  ;;  %v9971_v50 = vrot.slane %v9963_v47, %v20302_v57  ;;  %v4322_v33 = vmax.f32 %v4024_v3, 0.0  ;;  %v4329_v37 = vmax.f32 %v4059_v8, 0.0 }
 0x352   : > { %v5836_v25 = vrot.slane %v5294_v5, %v20254_v28  ;;  %v6084_v47 = vrot.slane %v5301_v48, %v20282_v16 }
 0x353   : > { %v9979_v58 = vcombine.low %v9971_v50, %v9978_v45  ;;  %v4720_v49 = vmul.f32 %v20443_v62, %v4322_v33  ;;  %v4727_v31 = vmul.f32 %v20443_v62, %v4329_v37 }
 0x354   : > { %15946 = vperm.xlu0 %18482, %v10273_v30   ;;  %v5992_v30 = vrot.slane %v5299_v55, %v20217_v21  ;;  %v10078_v7 = vcombine.low %v5832_v20, %v5836_v25  ;;  %v4034_v25 = vadd.f32 %v20433_v18, %v20367_v22 }
 0x356   : > { %v10323_v52 = vcombine.low %v5992_v30, %v5996_v6  ;;  %v4459_v30 = vld [vmem:[%s19652_s14 + $0x2e0] sm:$0xff]  ;;  %v4452_v6 = vld [vmem:[%s19652_s14 + $0x2a8] sm:$0xff] }
 0x357   : > { %v4593_v15 = vmul.f32 %v20397_v26, %v4459_v30  ;;  %v4586_v27 = vmul.f32 %v20397_v26, %v4452_v6 }
 0x358   : > { %v10333_v13 = vrot.slane %v10323_v52, %v20302_v57  ;;  %v5844_v52 = vrot.slane %v5294_v5, %v20264_v11 }
 0x359   : > { %v4855_v63 = vadd.f32 %v4727_v31, %v4593_v15  ;;  %v4848_v17 = vadd.f32 %v4720_v49, %v4586_v27 }
 0x35a   : > { %v10355_v55 = vcombine.low %v10333_v13, %v10340_v36  ;;  %v6060_v13 = vrot.slane %v5301_v48, %v20254_v28  ;;  %v6064_v36 = vrot.slane %v5301_v48, %v20257_v59 }
 0x35b   : > { %v5167_v19 = vsel %vm695_vm0, %v4855_v63, 0.0  ;;  %v5146_v54 = vsel %vm695_vm0, %v4848_v17, 0.0 }
 0x35c   : > { %v10363_v34 = vrot.slane %v10355_v55, %v20302_v57  ;;  %v10079_v55 = vcombine.low %v5840_v44, %v5844_v52  ;;  %v10421_v50 = vcombine.low %v6056_v39, %v6060_v13  ;;  %v4324_v52 = vmax.f32 %v4034_v25, 0.0 }
 0x35e   : > { %v10431_v8 = vrot.slane %v10421_v50, %v20302_v57 }
 0x371   : > { %5141 = vadd.xlane.f32.xlu1 %v5140_v41  ;;  %v10356_v41 = vcombine.low %v10347_v53, %v10354_v51  ;;  %v6068_v53 = vrot.slane %v5301_v48, %v20264_v11  ;;  %v6072_v51 = vrot.slane %v5301_v48, %v20269_v4 }
 0x373   : > { %5162 = vadd.xlane.f32.xlu0 %v5161_v35  ;;  %v10028_v35 = vcombine.low %v10020_v32, %v10027_v2  ;;  %v10370_v23 = vrot.slane %v10356_v41, %v20302_v57  ;;  %v6076_v32 = vrot.slane %v5301_v48, %v20274_v0  ;;  %v6080_v2 = vrot.slane %v5301_v48, %v20277_v60  ;;  %v20599_v48 = vpop.f32.mrf.mxu0 }
 0x374   : > { %v10080_v41 = vcombine.low %v5848_v38, %v5852_v14  ;;  %v10422_v45 = vcombine.low %v6064_v36, %v6068_v53  ;;  %v4461_v14 = vld [vmem:[%s19652_s14 + $0x2f0] sm:$0xff]  ;;  %v4947_v53 = vpop.xlane.xlu0 %4946 }
 0x375   : > { %v10371_v61 = vcombine.low %v10363_v34, %v10370_v23  ;;  %v10423_v34 = vcombine.low %v6072_v51, %v6076_v32  ;;  %v10424_v23 = vcombine.low %v6080_v2, %v6084_v47  ;;  %v4068_v20 = vpop.f32.mrf.mxu0  ;;  %v4595_v39 = vmul.f32 %v20397_v26, %v4461_v14 }
 0x376   : > { %v10102_v56 = vrot.slane %v10080_v41, %v20302_v57  ;;  %v10438_v33 = vrot.slane %v10422_v45, %v20302_v57  ;;  %v4069_v44 = vadd.f32 %v20433_v18, %v4068_v20  ;;  %v5303_v32 = vadd.f32 %v20232_v12, %v4947_v53 }
 0x377   : > { %v10445_v37 = vrot.slane %v10423_v34, %v20302_v57  ;;  %v10452_v30 = vrot.slane %v10424_v23, %v20302_v57 }
 0x378   : > { %v10453_v49 = vcombine.low %v10431_v8, %v10438_v33  ;;  %v4331_v38 = vmax.f32 %v4069_v44, 0.0  ;;  %v6136_v8 = vrot.slane %v5303_v32, %v20269_v4  ;;  %v6140_v33 = vrot.slane %v5303_v32, %v20274_v0 }
 0x379   : > { %v10454_v31 = vcombine.low %v10445_v37, %v10452_v30  ;;  %v6144_v37 = vrot.slane %v5303_v32, %v20277_v60  ;;  %v6148_v30 = vrot.slane %v5303_v32, %v20282_v16 }
 0x37a   : > { %v10461_v5 = vrot.slane %v10453_v49, %v20302_v57 }
 0x37b   : > { %v10468_v42 = vrot.slane %v10454_v31, %v20302_v57 }
 0x37d   : > { %v10469_v17 = vcombine.low %v10461_v5, %v10468_v42  ;;  %v10521_v5 = vcombine.low %v6136_v8, %v6140_v33  ;;  %v10522_v42 = vcombine.low %v6144_v37, %v6148_v30 }
 0x37f   : > { %v10550_v14 = vrot.slane %v10522_v42, %v20302_v57 }
 0x382   : > { %15931 = vperm.xlu1 %18483, %v10028_v35   ;;  %v10081_v35 = vcombine.low %v5856_v9, %v5860_v46  ;;  %v4454_v9 = vld [vmem:[%s19652_s14 + $0x2b8] sm:$0xff]  ;;  %v4926_v46 = vpop.xlane.xlu1 %4925 }
 0x383   : > { %v4588_v13 = vmul.f32 %v20397_v26, %v4454_v9  ;;  %v5296_v36 = vadd.f32 %v20232_v12, %v4926_v46 }
 0x384   : > { %v10109_v3 = vrot.slane %v10081_v35, %v20302_v57 }
 0x385   : > { %v5896_v2 = vrot.slane %v5296_v36, %v20217_v21  ;;  %v5900_v47 = vrot.slane %v5296_v36, %v20254_v28  ;;  %v5912_v41 = vrot.slane %v5296_v36, %v20269_v4  ;;  %v5916_v35 = vrot.slane %v5296_v36, %v20274_v0 }
 0x386   : > { %15928 = vperm.xlu1 %18483, %v9979_v58   ;;  %v10088_v58 = vrot.slane %v10078_v7, %v20302_v57  ;;  %v10111_v24 = vcombine.low %v10102_v56, %v10109_v3  ;;  %v5904_v7 = vrot.slane %v5296_v36, %v20257_v59  ;;  %v5920_v50 = vrot.slane %v5296_v36, %v20277_v60 }
 0x387   : > { %v5924_v45 = vrot.slane %v5296_v36, %v20282_v16  ;;  %v6128_v56 = vrot.slane %v5303_v32, %v20257_v59  ;;  %v6132_v3 = vrot.slane %v5303_v32, %v20264_v11  ;;  %v10178_v49 = vcombine.low %v5912_v41, %v5916_v35  ;;  %v4463_v35 = vld [vmem:[%s19652_s14 + $0x300] sm:$0xff] }
 0x388   : > { %v10125_v27 = vrot.slane %v10111_v24, %v20302_v57 }
 0x389   : > { %15952 = vperm.xlu0 %18482, %v10371_v61   ;;  %v10095_v61 = vrot.slane %v10079_v55, %v20302_v57  ;;  %v5908_v55 = vrot.slane %v5296_v36, %v20264_v11  ;;  %v10179_v31 = vcombine.low %v5920_v50, %v5924_v45  ;;  %v10200_v20 = vrot.slane %v10178_v49, %v20302_v57  ;;  %v4456_v50 = vld [vmem:[%s19652_s14 + $0x2c8] sm:$0xff]  ;;  %v4932_v45 = vpop.xlane.xlu1 %4931 }
 0x38b   : > { %v10110_v6 = vcombine.low %v10088_v58, %v10095_v61  ;;  %v6120_v58 = vrot.slane %v5303_v32, %v20217_v21  ;;  %v6124_v61 = vrot.slane %v5303_v32, %v20254_v28  ;;  %v10177_v24 = vcombine.low %v5904_v7, %v5908_v55  ;;  %v20642_v32 = vpop.f32.mrf.mxu0 }
 0x38c   : > { %v10207_v25 = vrot.slane %v10179_v31, %v20302_v57 }
 0x38d   : > { %v10118_v15 = vrot.slane %v10110_v6, %v20302_v57  ;;  %v10176_v6 = vcombine.low %v5896_v2, %v5900_v47  ;;  %v4078_v2 = vpop.f32.mrf.mxu0  ;;  %v4044_v47 = vadd.f32 %v20433_v18, %v20428_v1 }
 0x38e   : > { %v10209_v46 = vcombine.low %v10200_v20, %v10207_v25  ;;  %v4079_v7 = vadd.f32 %v20433_v18, %v4078_v2 }
 0x38f   : > { %v10126_v63 = vcombine.low %v10118_v15, %v10125_v27  ;;  %v10519_v15 = vcombine.low %v6120_v58, %v6124_v61  ;;  %v10520_v27 = vcombine.low %v6128_v56, %v6132_v3  ;;  %v4326_v55 = vmax.f32 %v4044_v47, 0.0  ;;  %v4953_v3 = vpop.xlane.xlu0 %4952 }
 0x390   : > { %v4333_v41 = vmax.f32 %v4079_v7, 0.0  ;;  %v4597_v58 = vmul.f32 %v20397_v26, %v4463_v35  ;;  %v4590_v61 = vmul.f32 %v20397_v26, %v4456_v50  ;;  %v5298_v56 = vadd.f32 %v20232_v12, %v4932_v45 }
 0x391   : > { %v10529_v44 = vrot.slane %v10519_v15, %v20302_v57  ;;  %v5305_v33 = vadd.f32 %v20232_v12, %v4953_v3 }
 0x392   : > { %v5960_v37 = vrot.slane %v5298_v56, %v20217_v21  ;;  %v5964_v30 = vrot.slane %v5298_v56, %v20254_v28  ;;  %v5976_v49 = vrot.slane %v5298_v56, %v20269_v4  ;;  %v5980_v31 = vrot.slane %v5298_v56, %v20274_v0 }
 0x393   : > { %v5984_v15 = vrot.slane %v5298_v56, %v20277_v60  ;;  %v6192_v20 = vrot.slane %v5305_v33, %v20257_v59  ;;  %v6196_v25 = vrot.slane %v5305_v33, %v20264_v11 }
 0x3a8   : > { %5168 = vadd.xlane.f32.xlu0 %v5167_v19  ;;  %v4722_v19 = vmul.f32 %v20443_v62, %v4324_v52  ;;  %v10536_v52 = vrot.slane %v10520_v27, %v20302_v57  ;;  %v5988_v27 = vrot.slane %v5298_v56, %v20282_v16 }
 0x3aa   : > { %5147 = vadd.xlane.f32.xlu1 %v5146_v54  ;;  %v4729_v54 = vmul.f32 %v20443_v62, %v4331_v38  ;;  %v4850_v22 = vadd.f32 %v4722_v19, %v4588_v13  ;;  %v10543_v38 = vrot.slane %v10521_v5, %v20302_v57  ;;  %v10551_v19 = vcombine.low %v10529_v44, %v10536_v52 }
 0x3ab   : > { %v10223_v13 = vrot.slane %v10209_v46, %v20302_v57  ;;  %v6200_v44 = vrot.slane %v5305_v33, %v20269_v4  ;;  %v6204_v52 = vrot.slane %v5305_v33, %v20274_v0 }
 0x3ac   : > { %v4857_v51 = vadd.f32 %v4729_v54, %v4595_v39  ;;  %v5152_v23 = vsel %vm695_vm0, %v4850_v22, 0.0  ;;  %v10552_v54 = vcombine.low %v10543_v38, %v10550_v14  ;;  %v10559_v36 = vrot.slane %v10551_v19, %v20302_v57 }
 0x3ad   : > { %v6208_v38 = vrot.slane %v5305_v33, %v20277_v60  ;;  %v6212_v14 = vrot.slane %v5305_v33, %v20282_v16  ;;  %v10276_v19 = vcombine.low %v5976_v49, %v5980_v31  ;;  %v4465_v31 = vld [vmem:[%s19652_s14 + $0x310] sm:$0xff] }
 0x3ae   : > { %v5173_v34 = vsel %vm695_vm0, %v4857_v51, 0.0  ;;  %v10566_v53 = vrot.slane %v10552_v54, %v20302_v57  ;;  %v10277_v54 = vcombine.low %v5984_v15, %v5988_v27  ;;  %v4458_v15 = vld [vmem:[%s19652_s14 + $0x2d8] sm:$0xff]  ;;  %v4938_v27 = vpop.xlane.xlu1 %4937 }
 0x3af   : > { %v10298_v2 = vrot.slane %v10276_v19, %v20302_v57 }
 0x3b0   : > { %v10567_v22 = vcombine.low %v10559_v36, %v10566_v53  ;;  %v10619_v36 = vcombine.low %v6200_v44, %v6204_v52  ;;  %v10620_v53 = vcombine.low %v6208_v38, %v6212_v14  ;;  %v10305_v47 = vrot.slane %v10277_v54, %v20302_v57 }
 0x3b2   : > { %v10648_v35 = vrot.slane %v10620_v53, %v20302_v57  ;;  %v10307_v45 = vcombine.low %v10298_v2, %v10305_v47 }
 0x3bb   : > { %15937 = vperm.xlu1 %18483, %v10126_v63   ;;  %v10186_v63 = vrot.slane %v10176_v6, %v20302_v57  ;;  %v5968_v6 = vrot.slane %v5298_v56, %v20257_v59 }
 0x3be   : > { %15958 = vperm.xlu0 %18482, %v10469_v17   ;;  %v10193_v17 = vrot.slane %v10177_v24, %v20302_v57  ;;  %v5972_v24 = vrot.slane %v5298_v56, %v20264_v11 }
 0x3c0   : > { %v10208_v9 = vcombine.low %v10186_v63, %v10193_v17  ;;  %v6184_v63 = vrot.slane %v5305_v33, %v20217_v21  ;;  %v6188_v17 = vrot.slane %v5305_v33, %v20254_v28  ;;  %v10275_v46 = vcombine.low %v5968_v6, %v5972_v24  ;;  %v20685_v33 = vpop.f32.mrf.mxu0 }
 0x3c2   : > { %v10216_v39 = vrot.slane %v10208_v9, %v20302_v57  ;;  %v10274_v9 = vcombine.low %v5960_v37, %v5964_v30  ;;  %v4088_v37 = vpop.f32.mrf.mxu0  ;;  %v4054_v30 = vadd.f32 %v20433_v18, %v20497_v29 }
 0x3c3   : > { %v4089_v6 = vadd.f32 %v20433_v18, %v4088_v37 }
 0x3c4   : > { %v10224_v51 = vcombine.low %v10216_v39, %v10223_v13  ;;  %v10617_v39 = vcombine.low %v6184_v63, %v6188_v17  ;;  %v10618_v13 = vcombine.low %v6192_v20, %v6196_v25  ;;  %v4328_v24 = vmax.f32 %v4054_v30, 0.0  ;;  %v4959_v25 = vpop.xlane.xlu0 %4958 }
 0x3c5   : > { %v4335_v49 = vmax.f32 %v4089_v6, 0.0  ;;  %v4599_v63 = vmul.f32 %v20397_v26, %v4465_v31  ;;  %v4592_v17 = vmul.f32 %v20397_v26, %v4458_v15  ;;  %v5300_v20 = vadd.f32 %v20232_v12, %v4938_v27 }
 0x3c6   : > { %v10627_v7 = vrot.slane %v10617_v39, %v20302_v57  ;;  %v5307_v52 = vadd.f32 %v20232_v12, %v4959_v25 }
 0x3c7   : > { %v6024_v38 = vrot.slane %v5300_v20, %v20217_v21  ;;  %v6028_v14 = vrot.slane %v5300_v20, %v20254_v28  ;;  %v6040_v19 = vrot.slane %v5300_v20, %v20269_v4  ;;  %v6044_v54 = vrot.slane %v5300_v20, %v20274_v0 }
 0x3c8   : > { %v6048_v39 = vrot.slane %v5300_v20, %v20277_v60  ;;  %v6256_v2 = vrot.slane %v5307_v52, %v20257_v59  ;;  %v6260_v47 = vrot.slane %v5307_v52, %v20264_v11 }
 0x3dd   : > { %5174 = vadd.xlane.f32.xlu0 %v5173_v34  ;;  %v4724_v34 = vmul.f32 %v20443_v62, %v4326_v55  ;;  %v10634_v55 = vrot.slane %v10618_v13, %v20302_v57  ;;  %v6052_v13 = vrot.slane %v5300_v20, %v20282_v16 }
 0x3df   : > { %5153 = vadd.xlane.f32.xlu1 %v5152_v23  ;;  %v4731_v23 = vmul.f32 %v20443_v62, %v4333_v41  ;;  %v4852_v1 = vadd.f32 %v4724_v34, %v4590_v61  ;;  %v10641_v41 = vrot.slane %v10619_v36, %v20302_v57  ;;  %v10649_v34 = vcombine.low %v10627_v7, %v10634_v55 }
 0x3e0   : > { %v10321_v61 = vrot.slane %v10307_v45, %v20302_v57  ;;  %v6264_v7 = vrot.slane %v5307_v52, %v20269_v4  ;;  %v6268_v55 = vrot.slane %v5307_v52, %v20274_v0 }
 0x3e1   : > { %v4859_v8 = vadd.f32 %v4731_v23, %v4597_v58  ;;  %v5158_v42 = vsel %vm695_vm0, %v4852_v1, 0.0  ;;  %v10650_v23 = vcombine.low %v10641_v41, %v10648_v35  ;;  %v10657_v56 = vrot.slane %v10649_v34, %v20302_v57 }
 0x3e2   : > { %v6272_v41 = vrot.slane %v5307_v52, %v20277_v60  ;;  %v6276_v35 = vrot.slane %v5307_v52, %v20282_v16  ;;  %v10374_v34 = vcombine.low %v6040_v19, %v6044_v54 }
 0x3e3   : > { %v5179_v5 = vsel %vm695_vm0, %v4859_v8, 0.0  ;;  %v10664_v3 = vrot.slane %v10650_v23, %v20302_v57  ;;  %v10375_v23 = vcombine.low %v6048_v39, %v6052_v13  ;;  %v4467_v39 = vld [vmem:[%s19652_s14 + $0x320] sm:$0xff]  ;;  %v4460_v13 = vld [vmem:[%s19652_s14 + $0x2e8] sm:$0xff] }
 0x3e4   : > { %v10396_v37 = vrot.slane %v10374_v34, %v20302_v57 }
 0x3e5   : > { %v10665_v1 = vcombine.low %v10657_v56, %v10664_v3  ;;  %v10717_v56 = vcombine.low %v6264_v7, %v6268_v55  ;;  %v10718_v3 = vcombine.low %v6272_v41, %v6276_v35  ;;  %v10403_v30 = vrot.slane %v10375_v23, %v20302_v57 }
 0x3e7   : > { %v10746_v31 = vrot.slane %v10718_v3, %v20302_v57  ;;  %v10405_v27 = vcombine.low %v10396_v37, %v10403_v30 }
 0x3f0   : > { %15943 = vperm.xlu1 %18483, %v10224_v51   ;;  %v10284_v51 = vrot.slane %v10274_v9, %v20302_v57  ;;  %v6032_v9 = vrot.slane %v5300_v20, %v20257_v59 }
 0x3f3   : > { %15964 = vperm.xlu0 %18482, %v10567_v22   ;;  %v10291_v22 = vrot.slane %v10275_v46, %v20302_v57  ;;  %v6036_v46 = vrot.slane %v5300_v20, %v20264_v11 }
 0x3f5   : > { %v10306_v50 = vcombine.low %v10284_v51, %v10291_v22  ;;  %v6248_v51 = vrot.slane %v5307_v52, %v20217_v21  ;;  %v6252_v22 = vrot.slane %v5307_v52, %v20254_v28  ;;  %v10373_v45 = vcombine.low %v6032_v9, %v6036_v46 }
 0x3f6   : > { %v4064_v9 = vadd.f32 %v20433_v18, %v20556_v43 }
 0x3f7   : > { %v10314_v58 = vrot.slane %v10306_v50, %v20302_v57  ;;  %v10372_v50 = vcombine.low %v6024_v38, %v6028_v14  ;;  %v20728_v38 = vpop.f32.mrf.mxu0 }
 0x3f8   : > { %v4330_v19 = vmax.f32 %v4064_v9, 0.0 }
 0x3f9   : > { %v10322_v8 = vcombine.low %v10314_v58, %v10321_v61  ;;  %v10715_v58 = vcombine.low %v6248_v51, %v6252_v22  ;;  %v10716_v61 = vcombine.low %v6256_v2, %v6260_v47  ;;  %v4098_v14 = vpop.f32.mrf.mxu0  ;;  %v4601_v51 = vmul.f32 %v20397_v26, %v4467_v39  ;;  %v4965_v47 = vpop.xlane.xlu0 %4964 }
 0x3fa   : > { %v4099_v46 = vadd.f32 %v20433_v18, %v4098_v14  ;;  %v4594_v22 = vmul.f32 %v20397_v26, %v4460_v13  ;;  %v5309_v43 = vadd.f32 %v20232_v12, %v4965_v47 }
 0x3fb   : > { %v10725_v6 = vrot.slane %v10715_v58, %v20302_v57 }
 0x3fc   : > { %v4337_v54 = vmax.f32 %v4099_v46, 0.0  ;;  %v6312_v3 = vrot.slane %v5309_v43, %v20217_v21  ;;  %v6324_v37 = vrot.slane %v5309_v43, %v20264_v11  ;;  %v6328_v30 = vrot.slane %v5309_v43, %v20269_v4 }
 0x412   : > { %5180 = vadd.xlane.f32.xlu0 %v5179_v5  ;;  %v4726_v5 = vmul.f32 %v20443_v62, %v4328_v24  ;;  %v10732_v24 = vrot.slane %v10716_v61, %v20302_v57 }
 0x414   : > { %5159 = vadd.xlane.f32.xlu1 %v5158_v42  ;;  %v4733_v42 = vmul.f32 %v20443_v62, %v4335_v49  ;;  %v4854_v29 = vadd.f32 %v4726_v5, %v4592_v17  ;;  %v10739_v49 = vrot.slane %v10717_v56, %v20302_v57  ;;  %v10747_v5 = vcombine.low %v10725_v6, %v10732_v24 }
 0x415   : > { %v10419_v17 = vrot.slane %v10405_v27, %v20302_v57  ;;  %v6332_v6 = vrot.slane %v5309_v43, %v20274_v0  ;;  %v6336_v24 = vrot.slane %v5309_v43, %v20277_v60 }
 0x416   : > { %v4861_v44 = vadd.f32 %v4733_v42, %v4599_v63  ;;  %v5164_v53 = vsel %vm695_vm0, %v4854_v29, 0.0  ;;  %v10748_v42 = vcombine.low %v10739_v49, %v10746_v31  ;;  %v10755_v20 = vrot.slane %v10747_v5, %v20302_v57  ;;  %v4944_v29 = vpop.xlane.xlu1 %4943 }
 0x417   : > { %v5302_v2 = vadd.f32 %v20232_v12, %v4944_v29  ;;  %v6340_v49 = vrot.slane %v5309_v43, %v20282_v16 }
 0x418   : > { %v5185_v36 = vsel %vm695_vm0, %v4861_v44, 0.0  ;;  %v10762_v25 = vrot.slane %v10748_v42, %v20302_v57 }
 0x419   : > { %v6088_v41 = vrot.slane %v5302_v2, %v20217_v21  ;;  %v6092_v35 = vrot.slane %v5302_v2, %v20254_v28  ;;  %v6104_v34 = vrot.slane %v5302_v2, %v20269_v4  ;;  %v6108_v23 = vrot.slane %v5302_v2, %v20274_v0 }
 0x41a   : > { %v10763_v52 = vcombine.low %v10755_v20, %v10762_v25  ;;  %v6112_v26 = vrot.slane %v5302_v2, %v20277_v60  ;;  %v6116_v58 = vrot.slane %v5302_v2, %v20282_v16  ;;  %v4950_v42 = vpop.xlane.xlu1 %4949  ;;  %v10815_v20 = vcombine.low %v6328_v30, %v6332_v6 }
 0x41b   : > { %v10470_v31 = vcombine.low %v6088_v41, %v6092_v35  ;;  %v10472_v27 = vcombine.low %v6104_v34, %v6108_v23  ;;  %v10816_v25 = vcombine.low %v6336_v24, %v6340_v49  ;;  %v20773_v41 = vpop.f32.mrf.mxu0 }
 0x41c   : > { %v10473_v5 = vcombine.low %v6112_v26, %v6116_v58  ;;  %v4469_v58 = vld [vmem:[%s19652_s14 + $0x330] sm:$0xff] }
 0x41d   : > { %v4108_v35 = vpop.f32.mrf.mxu0 }
 0x41e   : > { %v10501_v14 = vrot.slane %v10473_v5, %v20302_v57 }
 0x425   : > { %15949 = vperm.xlu1 %18483, %v10322_v8   ;;  %v10382_v8 = vrot.slane %v10372_v50, %v20302_v57  ;;  %v6096_v50 = vrot.slane %v5302_v2, %v20257_v59 }
 0x428   : > { %15970 = vperm.xlu0 %18482, %v10665_v1   ;;  %v10389_v1 = vrot.slane %v10373_v45, %v20302_v57  ;;  %v6100_v45 = vrot.slane %v5302_v2, %v20264_v11 }
 0x42a   : > { %v10404_v15 = vcombine.low %v10382_v8, %v10389_v1  ;;  %v6316_v8 = vrot.slane %v5309_v43, %v20254_v28  ;;  %v6320_v1 = vrot.slane %v5309_v43, %v20257_v59 }
 0x42c   : > { %v10412_v63 = vrot.slane %v10404_v15, %v20302_v57  ;;  %v10471_v15 = vcombine.low %v6096_v50, %v6100_v45  ;;  %v4074_v50 = vadd.f32 %v20433_v18, %v20599_v48  ;;  %v20780_v45 = vld [vmem:[%s24849_s7] ss:$0 sm:$0xff] }
 0x42d   : > { %v4109_v34 = vadd.f32 %v20780_v45, %v4108_v35 }
 0x42e   : > { %v10420_v44 = vcombine.low %v10412_v63, %v10419_v17  ;;  %v10813_v63 = vcombine.low %v6312_v3, %v6316_v8  ;;  %v10814_v17 = vcombine.low %v6320_v1, %v6324_v37  ;;  %v10487_v29 = vrot.slane %v10471_v15, %v20302_v57  ;;  %v20790_v8 = vld [vmem:[%s24850_s8] ss:$0 sm:$0xff]  ;;  %v4971_v37 = vpop.xlane.xlu0 %4970 }
 0x42f   : > { %v4332_v23 = vmax.f32 %v4074_v50, 0.0  ;;  %v4339_v26 = vmax.f32 %v4109_v34, 0.0  ;;  %v4603_v18 = vmul.f32 %v20790_v8, %v4469_v58  ;;  %v5304_v1 = vadd.f32 %v20232_v12, %v4950_v42 }
 0x430   : > { %v10823_v9 = vrot.slane %v10813_v63, %v20302_v57  ;;  %v10830_v46 = vrot.slane %v10814_v17, %v20302_v57  ;;  %v5311_v24 = vadd.f32 %v20232_v12, %v4971_v37 }
 0x431   : > { %v4737_v3 = vmul.f32 %v20443_v62, %v4339_v26  ;;  %v6152_v49 = vrot.slane %v5304_v1, %v20217_v21  ;;  %v6164_v15 = vrot.slane %v5304_v1, %v20264_v11  ;;  %v6172_v5 = vrot.slane %v5304_v1, %v20274_v0 }
 0x432   : > { %v6176_v63 = vrot.slane %v5304_v1, %v20277_v60  ;;  %v6180_v42 = vrot.slane %v5304_v1, %v20282_v16 }
 0x433   : > { %v4865_v30 = vadd.f32 %v4737_v3, %v4603_v18 }
 0x435   : > { %v5197_v17 = vsel %vm695_vm0, %v4865_v30, 0.0 }
 0x447   : > { %5186 = vadd.xlane.f32.xlu0 %v5185_v36  ;;  %v4728_v36 = vmul.f32 %v20443_v62, %v4330_v19  ;;  %v10837_v19 = vrot.slane %v10815_v20, %v20302_v57 }
 0x449   : > { %5165 = vadd.xlane.f32.xlu1 %v5164_v53  ;;  %v4735_v53 = vmul.f32 %v20443_v62, %v4337_v54  ;;  %v4856_v55 = vadd.f32 %v4728_v36, %v4594_v22  ;;  %v10844_v54 = vrot.slane %v10816_v25, %v20302_v57  ;;  %v10845_v36 = vcombine.low %v10823_v9, %v10830_v46 }
 0x44a   : > { %v6376_v25 = vrot.slane %v5311_v24, %v20217_v21  ;;  %v6396_v9 = vrot.slane %v5311_v24, %v20274_v0  ;;  %v6400_v46 = vrot.slane %v5311_v24, %v20277_v60 }
 0x44b   : > { %v4863_v7 = vadd.f32 %v4735_v53, %v4601_v51  ;;  %v5170_v56 = vsel %vm695_vm0, %v4856_v55, 0.0  ;;  %v10846_v53 = vcombine.low %v10837_v19, %v10844_v54  ;;  %v10853_v2 = vrot.slane %v10845_v36, %v20302_v57  ;;  %v20771_v55 = vpop.xlane.xlu1 %4955 }
 0x44c   : > { %v6404_v19 = vrot.slane %v5311_v24, %v20282_v16  ;;  %v10571_v36 = vcombine.low %v6176_v63, %v6180_v42  ;;  %v4471_v42 = vld [vmem:[%s19652_s14 + $0x340] sm:$0xff] }
 0x44d   : > { %v5191_v61 = vsel %vm695_vm0, %v4863_v7, 0.0  ;;  %v10860_v47 = vrot.slane %v10846_v53, %v20302_v57 }
 0x44e   : > { %v10599_v50 = vrot.slane %v10571_v36, %v20302_v57 }
 0x44f   : > { %v10861_v43 = vcombine.low %v10853_v2, %v10860_v47  ;;  %v20814_v53 = vpop.xlane.xlu1 %4961  ;;  %v10914_v47 = vcombine.low %v6400_v46, %v6404_v19 }
 0x451   : > { %v10942_v58 = vrot.slane %v10914_v47, %v20302_v57 }
 0x45a   : > { %15955 = vperm.xlu1 %18483, %v10420_v44   ;;  %v10480_v44 = vrot.slane %v10470_v31, %v20302_v57  ;;  %v6160_v31 = vrot.slane %v5304_v1, %v20257_v59 }
 0x45c   : > { %v10502_v39 = vcombine.low %v10480_v44, %v10487_v29  ;;  %v6380_v44 = vrot.slane %v5311_v24, %v20254_v28  ;;  %v6384_v29 = vrot.slane %v5311_v24, %v20257_v59 }
 0x45d   : > { %15976 = vperm.xlu0 %18482, %v10763_v52   ;;  %v10494_v52 = vrot.slane %v10472_v27, %v20302_v57  ;;  %v6168_v27 = vrot.slane %v5304_v1, %v20269_v4 }
 0x45e   : > { %v10510_v51 = vrot.slane %v10502_v39, %v20302_v57  ;;  %v10569_v39 = vcombine.low %v6160_v31, %v6164_v15  ;;  %v4084_v15 = vadd.f32 %v20780_v45, %v20642_v32  ;;  %v5306_v32 = vadd.f32 %v20232_v12, %v20771_v55 }
 0x45f   : > { %v10503_v13 = vcombine.low %v10494_v52, %v10501_v14  ;;  %v6388_v52 = vrot.slane %v5311_v24, %v20264_v11  ;;  %v6392_v14 = vrot.slane %v5311_v24, %v20269_v4  ;;  %v20828_v24 = vpop.xlane.xlu1 %4967 }
 0x460   : > { %v6228_v36 = vrot.slane %v5306_v32, %v20264_v11  ;;  %v6244_v55 = vrot.slane %v5306_v32, %v20282_v16 }
 0x461   : > { %v10517_v22 = vrot.slane %v10503_v13, %v20302_v57  ;;  %v10570_v13 = vcombine.low %v6168_v27, %v6172_v5  ;;  %v10913_v2 = vcombine.low %v6392_v14, %v6396_v9  ;;  %v4334_v5 = vmax.f32 %v4084_v15, 0.0  ;;  %v4977_v14 = vpop.xlane.xlu0 %4976 }
 0x462   : > { %v5313_v19 = vadd.f32 %v20232_v12, %v4977_v14 }
 0x463   : > { %v10518_v7 = vcombine.low %v10510_v51, %v10517_v22  ;;  %v10911_v51 = vcombine.low %v6376_v25, %v6380_v44  ;;  %v10912_v22 = vcombine.low %v6384_v29, %v6388_v52  ;;  %v10592_v35 = vrot.slane %v10570_v13, %v20302_v57 }
 0x464   : > { %v10935_v26 = vrot.slane %v10913_v2, %v20302_v57  ;;  %v4605_v29 = vmul.f32 %v20790_v8, %v4471_v42  ;;  %v6224_v13 = vrot.slane %v5306_v32, %v20257_v59  ;;  %v6240_v2 = vrot.slane %v5306_v32, %v20277_v60 }
 0x465   : > { %v10921_v34 = vrot.slane %v10911_v51, %v20302_v57  ;;  %v6232_v51 = vrot.slane %v5306_v32, %v20269_v4 }
 0x466   : > { %v10944_v18 = vcombine.low %v10935_v26, %v10942_v58  ;;  %v6460_v26 = vrot.slane %v5313_v19, %v20274_v0  ;;  %v6464_v58 = vrot.slane %v5313_v19, %v20277_v60 }
 0x468   : > { %v10958_v30 = vrot.slane %v10944_v18, %v20302_v57 }
 0x47c   : > { %5192 = vadd.xlane.f32.xlu0 %v5191_v61  ;;  %v4462_v61 = vld [vmem:[%s19652_s14 + $0x2f8] sm:$0xff] }
 0x47d   : > { %v4596_v48 = vmul.f32 %v20790_v8, %v4462_v61 }
 0x47e   : > { %5171 = vadd.xlane.f32.xlu1 %v5170_v56  ;;  %v4730_v56 = vmul.f32 %v20443_v62, %v4332_v23  ;;  %v6156_v62 = vrot.slane %v5304_v1, %v20254_v28  ;;  %v10928_v23 = vrot.slane %v10912_v22, %v20302_v57  ;;  %v6236_v22 = vrot.slane %v5306_v32, %v20274_v0 }
 0x480   : > { %v4858_v6 = vadd.f32 %v4730_v56, %v4596_v48  ;;  %v10568_v54 = vcombine.low %v6152_v49, %v6156_v62  ;;  %v10601_v56 = vcombine.low %v10592_v35, %v10599_v50  ;;  %v10943_v3 = vcombine.low %v10921_v34, %v10928_v23  ;;  %v20830_v62 = vpop.f32.mrf.mxu0 }
 0x481   : > { %v6444_v35 = vrot.slane %v5313_v19, %v20254_v28  ;;  %v6448_v50 = vrot.slane %v5313_v19, %v20257_v59  ;;  %v6452_v34 = vrot.slane %v5313_v19, %v20264_v11  ;;  %v6456_v23 = vrot.slane %v5313_v19, %v20269_v4 }
 0x482   : > { %v5176_v20 = vsel %vm695_vm0, %v4858_v6, 0.0  ;;  %v10615_v1 = vrot.slane %v10601_v56, %v20302_v57  ;;  %v10951_v37 = vrot.slane %v10943_v3, %v20302_v57  ;;  %v4118_v31 = vpop.f32.mrf.mxu0  ;;  %v10667_v3 = vcombine.low %v6224_v13, %v6228_v36 }
 0x483   : > { %v4119_v27 = vadd.f32 %v20780_v45, %v4118_v31  ;;  %v10668_v18 = vcombine.low %v6232_v51, %v6236_v22  ;;  %v4094_v22 = vadd.f32 %v20780_v45, %v20685_v33 }
 0x484   : > { %v10959_v49 = vcombine.low %v10951_v37, %v10958_v30  ;;  %v11010_v30 = vcombine.low %v6448_v50, %v6452_v34  ;;  %v10683_v15 = vrot.slane %v10667_v3, %v20302_v57  ;;  %v20883_v36 = vpop.f32.mrf.mxu0 }
 0x485   : > { %v4341_v63 = vmax.f32 %v4119_v27, 0.0  ;;  %v10690_v27 = vrot.slane %v10668_v18, %v20302_v57 }
 0x486   : > { %v11026_v42 = vrot.slane %v11010_v30, %v20302_v57  ;;  %v4128_v51 = vpop.f32.mrf.mxu0 }
 0x48f   : > { %15961 = vperm.xlu1 %18483, %v10518_v7   ;;  %v10578_v7 = vrot.slane %v10568_v54, %v20302_v57  ;;  %v6216_v54 = vrot.slane %v5306_v32, %v20217_v21 }
 0x492   : > { %15982 = vperm.xlu0 %18482, %v10861_v43   ;;  %v10585_v43 = vrot.slane %v10569_v39, %v20302_v57  ;;  %v6220_v39 = vrot.slane %v5306_v32, %v20254_v28 }
 0x494   : > { %v10600_v61 = vcombine.low %v10578_v7, %v10585_v43  ;;  %v6440_v43 = vrot.slane %v5313_v19, %v20217_v21  ;;  %v10666_v56 = vcombine.low %v6216_v54, %v6220_v39 }
 0x496   : > { %v10608_v48 = vrot.slane %v10600_v61, %v20302_v57  ;;  %v6468_v61 = vrot.slane %v5313_v19, %v20282_v16  ;;  %v11009_v37 = vcombine.low %v6440_v43, %v6444_v35  ;;  %v10676_v31 = vrot.slane %v10666_v56, %v20302_v57  ;;  %v4466_v43 = vld [vmem:[%s19652_s14 + $0x318] sm:$0xff] }
 0x498   : > { %v10616_v6 = vcombine.low %v10608_v48, %v10615_v1  ;;  %v10669_v48 = vcombine.low %v6240_v2, %v6244_v55  ;;  %v20867_v1 = vpop.xlane.xlu1 %4973  ;;  %v4129_v2 = vadd.f32 %v20780_v45, %v4128_v51  ;;  %v4336_v55 = vmax.f32 %v4094_v22, 0.0 }
 0x49c   : > { %v20881_v39 = vpop.xlane.xlu1 %4979 }
 0x4b1   : > { %5198 = vadd.xlane.f32.xlu0 %v5197_v17  ;;  %v4464_v17 = vld [vmem:[%s19652_s14 + $0x308] sm:$0xff] }
 0x4b2   : > { %v4598_v52 = vmul.f32 %v20790_v8, %v4464_v17 }
 0x4b3   : > { %5177 = vadd.xlane.f32.xlu1 %v5176_v20  ;;  %v20840_v20 = vld [vmem:[%s24851_s9] ss:$0 sm:$0xff] }
 0x4b4   : > { %v4732_v25 = vmul.f32 %v20840_v20, %v4334_v5  ;;  %v4739_v44 = vmul.f32 %v20840_v20, %v4341_v63  ;;  %v10697_v5 = vrot.slane %v10669_v48, %v20302_v57  ;;  %v11019_v63 = vrot.slane %v11009_v37, %v20302_v57 }
 0x4b5   : > { %v4734_v35 = vmul.f32 %v20840_v20, %v4336_v55 }
 0x4b6   : > { %v4867_v9 = vadd.f32 %v4739_v44, %v4605_v29  ;;  %v4860_v46 = vadd.f32 %v4732_v25, %v4598_v52  ;;  %v10698_v44 = vcombine.low %v10676_v31, %v10683_v15  ;;  %v10699_v29 = vcombine.low %v10690_v27, %v10697_v5 }
 0x4b7   : > { %v11041_v52 = vcombine.low %v11019_v63, %v11026_v42 }
 0x4b8   : > { %v5203_v47 = vsel %vm695_vm0, %v4867_v9, 0.0  ;;  %v5182_v7 = vsel %vm695_vm0, %v4860_v46, 0.0  ;;  %v10706_v14 = vrot.slane %v10698_v44, %v20302_v57  ;;  %v10713_v9 = vrot.slane %v10699_v29, %v20302_v57 }
 0x4b9   : > { %v11049_v46 = vrot.slane %v11041_v52, %v20302_v57 }
 0x4ba   : > { %v10714_v54 = vcombine.low %v10706_v14, %v10713_v9 }
 0x4c4   : > { %15967 = vperm.xlu1 %18483, %v10616_v6   ;;  %v11011_v6 = vcombine.low %v6456_v23, %v6460_v26  ;;  %v4600_v23 = vmul.f32 %v20790_v8, %v4466_v43  ;;  %v5308_v26 = vadd.f32 %v20232_v12, %v20814_v53 }
 0x4c6   : > { %v11033_v17 = vrot.slane %v11011_v6, %v20302_v57  ;;  %v4862_v33 = vadd.f32 %v4734_v35, %v4600_v23  ;;  %v6280_v3 = vrot.slane %v5308_v26, %v20217_v21  ;;  %v6284_v18 = vrot.slane %v5308_v26, %v20254_v28 }
 0x4c7   : > { %15988 = vperm.xlu0 %18482, %v10959_v49   ;;  %v11012_v49 = vcombine.low %v6464_v58, %v6468_v61  ;;  %v4983_v58 = vpop.xlane.xlu0 %4982  ;;  %v6288_v48 = vrot.slane %v5308_v26, %v20257_v59  ;;  %v6292_v37 = vrot.slane %v5308_v26, %v20264_v11  ;;  %v6296_v30 = vrot.slane %v5308_v26, %v20269_v4 }
 0x4c8   : > { %v5315_v56 = vadd.f32 %v20232_v12, %v4983_v58  ;;  %v6300_v6 = vrot.slane %v5308_v26, %v20274_v0  ;;  %v6308_v53 = vrot.slane %v5308_v26, %v20282_v16  ;;  %v5188_v15 = vsel %vm695_vm0, %v4862_v33, 0.0 }
 0x4c9   : > { %v11040_v25 = vrot.slane %v11012_v49, %v20302_v57  ;;  %v6304_v49 = vrot.slane %v5308_v26, %v20277_v60  ;;  %v10764_v52 = vcombine.low %v6280_v3, %v6284_v18 }
 0x4ca   : > { %v6504_v27 = vrot.slane %v5315_v56, %v20217_v21  ;;  %v6508_v5 = vrot.slane %v5315_v56, %v20254_v28  ;;  %v6512_v63 = vrot.slane %v5315_v56, %v20257_v59  ;;  %v6516_v42 = vrot.slane %v5315_v56, %v20264_v11 }
 0x4cb   : > { %v11042_v32 = vcombine.low %v11033_v17, %v11040_v25  ;;  %v6520_v17 = vrot.slane %v5315_v56, %v20269_v4  ;;  %v6524_v25 = vrot.slane %v5315_v56, %v20274_v0  ;;  %v6528_v44 = vrot.slane %v5315_v56, %v20277_v60 }
 0x4cc   : > { %v6532_v29 = vrot.slane %v5315_v56, %v20282_v16  ;;  %v10766_v14 = vcombine.low %v6296_v30, %v6300_v6  ;;  %v10767_v9 = vcombine.low %v6304_v49, %v6308_v53  ;;  %v10774_v22 = vrot.slane %v10764_v52, %v20302_v57  ;;  %v4989_v30 = vpop.xlane.xlu0 %4988  ;;  %v20931_v6 = vpop.f32.mrf.mxu0 }
 0x4cd   : > { %v11056_v19 = vrot.slane %v11042_v32, %v20302_v57  ;;  %v10765_v32 = vcombine.low %v6288_v48, %v6292_v37  ;;  %v4104_v53 = vadd.f32 %v20780_v45, %v20728_v38  ;;  %v5317_v38 = vadd.f32 %v20232_v12, %v4989_v30 }
 0x4ce   : > { %v11110_v51 = vcombine.low %v6528_v44, %v6532_v29  ;;  %v10788_v55 = vrot.slane %v10766_v14, %v20302_v57  ;;  %v4138_v49 = vpop.f32.mrf.mxu0  ;;  %v5310_v29 = vadd.f32 %v20232_v12, %v20828_v24 }
 0x4cf   : > { %v11057_v13 = vcombine.low %v11049_v46, %v11056_v19  ;;  %v20915_v46 = vpop.xlane.xlu1 %4985  ;;  %v11107_v19 = vcombine.low %v6504_v27, %v6508_v5  ;;  %v4475_v5 = vld [vmem:[%s19652_s14 + $0x360] sm:$0xff] }
 0x4d0   : > { %v6344_v14 = vrot.slane %v5310_v29, %v20217_v21  ;;  %v6372_v24 = vrot.slane %v5310_v29, %v20282_v16 }
 0x4d3   : > { %v20929_v48 = vpop.xlane.xlu1 %4991 }
 0x4e6   : > { %5204 = vadd.xlane.f32.xlu0 %v5203_v47  ;;  %v4343_v47 = vmax.f32 %v4129_v2, 0.0  ;;  %v10781_v2 = vrot.slane %v10765_v32, %v20302_v57 }
 0x4e8   : > { %5183 = vadd.xlane.f32.xlu1 %v5182_v7  ;;  %v4473_v7 = vld [vmem:[%s19652_s14 + $0x350] sm:$0xff]  ;;  %v4741_v50 = vmul.f32 %v20840_v20, %v4343_v47  ;;  %v10795_v47 = vrot.slane %v10767_v9, %v20302_v57  ;;  %v6348_v9 = vrot.slane %v5310_v29, %v20254_v28 }
 0x4e9   : > { %v4607_v34 = vmul.f32 %v20790_v8, %v4473_v7  ;;  %v11117_v7 = vrot.slane %v11107_v19, %v20302_v57  ;;  %v6352_v19 = vrot.slane %v5310_v29, %v20257_v59 }
 0x4ea   : > { %v10797_v23 = vcombine.low %v10788_v55, %v10795_v47  ;;  %v6568_v47 = vrot.slane %v5317_v38, %v20217_v21 }
 0x4eb   : > { %v4869_v61 = vadd.f32 %v4741_v50, %v4607_v34  ;;  %v11138_v50 = vrot.slane %v11110_v51, %v20302_v57  ;;  %v10796_v34 = vcombine.low %v10774_v22, %v10781_v2  ;;  %v6364_v51 = vrot.slane %v5310_v29, %v20274_v0 }
 0x4ec   : > { %v10811_v33 = vrot.slane %v10797_v23, %v20302_v57  ;;  %v6368_v22 = vrot.slane %v5310_v29, %v20277_v60  ;;  %v6588_v23 = vrot.slane %v5317_v38, %v20274_v0 }
 0x4ed   : > { %v5209_v31 = vsel %vm695_vm0, %v4869_v61, 0.0  ;;  %v10804_v61 = vrot.slane %v10796_v34, %v20302_v57  ;;  %v6584_v34 = vrot.slane %v5317_v38, %v20269_v4 }
 0x4ef   : > { %v10812_v18 = vcombine.low %v10804_v61, %v10811_v33  ;;  %v10862_v61 = vcombine.low %v6344_v14, %v6348_v9 }
 0x4f9   : > { %15973 = vperm.xlu1 %18483, %v10714_v54   ;;  %v11108_v54 = vcombine.low %v6512_v63, %v6516_v42  ;;  %v4468_v63 = vld [vmem:[%s19652_s14 + $0x328] sm:$0xff] }
 0x4fa   : > { %v4602_v44 = vmul.f32 %v20790_v8, %v4468_v63 }
 0x4fb   : > { %v11124_v43 = vrot.slane %v11108_v54, %v20302_v57  ;;  %v6356_v54 = vrot.slane %v5310_v29, %v20264_v11 }
 0x4fc   : > { %15994 = vperm.xlu0 %18482, %v11057_v13   ;;  %v11109_v13 = vcombine.low %v6520_v17, %v6524_v25  ;;  %v4609_v25 = vmul.f32 %v20790_v8, %v4475_v5 }
 0x4fd   : > { %v11139_v26 = vcombine.low %v11117_v7, %v11124_v43  ;;  %v6572_v7 = vrot.slane %v5317_v38, %v20254_v28  ;;  %v6576_v43 = vrot.slane %v5317_v38, %v20257_v59  ;;  %v10863_v33 = vcombine.low %v6352_v19, %v6356_v54 }
 0x4fe   : > { %v11131_v35 = vrot.slane %v11109_v13, %v20302_v57  ;;  %v6360_v13 = vrot.slane %v5310_v29, %v20269_v4 }
 0x4ff   : > { %v11147_v56 = vrot.slane %v11139_v26, %v20302_v57  ;;  %v6592_v26 = vrot.slane %v5317_v38, %v20277_v60 }
 0x500   : > { %v11140_v58 = vcombine.low %v11131_v35, %v11138_v50  ;;  %v6580_v35 = vrot.slane %v5317_v38, %v20264_v11  ;;  %v4995_v50 = vpop.xlane.xlu0 %4994 }
 0x502   : > { %v11154_v3 = vrot.slane %v11140_v58, %v20302_v57  ;;  %v6596_v58 = vrot.slane %v5317_v38, %v20282_v16  ;;  %v11206_v30 = vcombine.low %v6576_v43, %v6580_v35  ;;  %v4477_v35 = vld [vmem:[%s19652_s14 + $0x370] sm:$0xff] }
 0x504   : > { %v11155_v37 = vcombine.low %v11147_v56, %v11154_v3  ;;  %v10864_v56 = vcombine.low %v6360_v13, %v6364_v51  ;;  %v10865_v3 = vcombine.low %v6368_v22, %v6372_v24  ;;  %v20979_v22 = vpop.xlane.xlu0 %5000  ;;  %v20981_v24 = vpop.f32.mrf.mxu0 }
 0x506   : > { %v10893_v5 = vrot.slane %v10865_v3, %v20302_v57 }
 0x51b   : > { %5210 = vadd.xlane.f32.xlu0 %v5209_v31  ;;  %v4139_v31 = vadd.f32 %v20780_v45, %v4138_v49  ;;  %v11207_v49 = vcombine.low %v6584_v34, %v6588_v23  ;;  %v4470_v34 = vld [vmem:[%s19652_s14 + $0x338] sm:$0xff] }
 0x51d   : > { %5189 = vadd.xlane.f32.xlu1 %v5188_v15  ;;  %v4338_v15 = vmax.f32 %v4104_v53, 0.0  ;;  %v4345_v27 = vmax.f32 %v4139_v31, 0.0  ;;  %v11208_v53 = vcombine.low %v6592_v26, %v6596_v58  ;;  %v10872_v31 = vrot.slane %v10862_v61, %v20302_v57 }
 0x51e   : > { %v4611_v58 = vmul.f32 %v20790_v8, %v4477_v35  ;;  %v4604_v61 = vmul.f32 %v20790_v8, %v4470_v34 }
 0x51f   : > { %v4736_v42 = vmul.f32 %v20840_v20, %v4338_v15  ;;  %v4743_v17 = vmul.f32 %v20840_v20, %v4345_v27  ;;  %v10879_v15 = vrot.slane %v10863_v33, %v20302_v57  ;;  %v10886_v27 = vrot.slane %v10864_v56, %v20302_v57 }
 0x520   : > { %v5312_v33 = vadd.f32 %v20232_v12, %v20867_v1 }
 0x521   : > { %v4871_v52 = vadd.f32 %v4743_v17, %v4609_v25  ;;  %v4864_v32 = vadd.f32 %v4736_v42, %v4602_v44  ;;  %v11222_v42 = vrot.slane %v11206_v30, %v20302_v57  ;;  %v11229_v17 = vrot.slane %v11207_v49, %v20302_v57 }
 0x522   : > { %v11236_v25 = vrot.slane %v11208_v53, %v20302_v57  ;;  %v10894_v44 = vcombine.low %v10872_v31, %v10879_v15  ;;  %v10895_v29 = vcombine.low %v10886_v27, %v10893_v5  ;;  %v6412_v30 = vrot.slane %v5312_v33, %v20254_v28 }
 0x523   : > { %v5215_v2 = vsel %vm695_vm0, %v4871_v52, 0.0  ;;  %v5194_v55 = vsel %vm695_vm0, %v4864_v32, 0.0  ;;  %v6416_v49 = vrot.slane %v5312_v33, %v20257_v59  ;;  %v6420_v53 = vrot.slane %v5312_v33, %v20264_v11 }
 0x524   : > { %v11238_v32 = vcombine.low %v11229_v17, %v11236_v25  ;;  %v10902_v38 = vrot.slane %v10894_v44, %v20302_v57  ;;  %v10909_v14 = vrot.slane %v10895_v29, %v20302_v57  ;;  %v6424_v31 = vrot.slane %v5312_v33, %v20269_v4  ;;  %v21009_v44 = vpop.xlane.xlu0 %5006 }
 0x525   : > { %v6428_v15 = vrot.slane %v5312_v33, %v20274_v0  ;;  %v6432_v27 = vrot.slane %v5312_v33, %v20277_v60  ;;  %v6436_v1 = vrot.slane %v5312_v33, %v20282_v16 }
 0x526   : > { %v11252_v19 = vrot.slane %v11238_v32, %v20302_v57  ;;  %v10910_v54 = vcombine.low %v10902_v38, %v10909_v14 }
 0x52e   : > { %15979 = vperm.xlu1 %18483, %v10812_v18   ;;  %v20963_v18 = vpop.xlane.xlu1 %4997 }
 0x531   : > { %16000 = vperm.xlu0 %18482, %v11155_v37   ;;  %v11205_v37 = vcombine.low %v6568_v47, %v6572_v7 }
 0x532   : > { %v20977_v13 = vpop.xlane.xlu1 %5003 }
 0x533   : > { %v11215_v63 = vrot.slane %v11205_v37, %v20302_v57  ;;  %v6408_v37 = vrot.slane %v5312_v33, %v20217_v21 }
 0x535   : > { %v11237_v52 = vcombine.low %v11215_v63, %v11222_v42  ;;  %v10960_v14 = vcombine.low %v6408_v37, %v6412_v30 }
 0x537   : > { %v11245_v9 = vrot.slane %v11237_v52, %v20302_v57 }
 0x539   : > { %v11253_v51 = vcombine.low %v11245_v9, %v11252_v19  ;;  %v10961_v9 = vcombine.low %v6416_v49, %v6420_v53  ;;  %v10962_v19 = vcombine.low %v6424_v31, %v6428_v15 }
 0x53b   : > { %v10977_v35 = vrot.slane %v10961_v9, %v20302_v57  ;;  %v10984_v34 = vrot.slane %v10962_v19, %v20302_v57 }
 0x550   : > { %5216 = vadd.xlane.f32.xlu0 %v5215_v2  ;;  %v4148_v2 = vpop.f32.mrf.mxu0 }
 0x551   : > { %v4149_v47 = vadd.f32 %v20780_v45, %v4148_v2 }
 0x552   : > { %5195 = vadd.xlane.f32.xlu1 %v5194_v55  ;;  %v4114_v55 = vadd.f32 %v20780_v45, %v20773_v41  ;;  %v5319_v41 = vadd.f32 %v20232_v12, %v4995_v50 }
 0x553   : > { %v4347_v43 = vmax.f32 %v4149_v47, 0.0 }
 0x554   : > { %v4340_v7 = vmax.f32 %v4114_v55, 0.0  ;;  %v6632_v63 = vrot.slane %v5319_v41, %v20217_v21  ;;  %v6636_v42 = vrot.slane %v5319_v41, %v20254_v28  ;;  %v6640_v17 = vrot.slane %v5319_v41, %v20257_v59 }
 0x555   : > { %v4745_v26 = vmul.f32 %v20840_v20, %v4347_v43  ;;  %v6644_v25 = vrot.slane %v5319_v41, %v20264_v11  ;;  %v6648_v29 = vrot.slane %v5319_v41, %v20269_v4  ;;  %v6652_v52 = vrot.slane %v5319_v41, %v20274_v0 }
 0x556   : > { %v4738_v23 = vmul.f32 %v20840_v20, %v4340_v7  ;;  %v6656_v32 = vrot.slane %v5319_v41, %v20277_v60  ;;  %v6660_v38 = vrot.slane %v5319_v41, %v20282_v16  ;;  %v11303_v2 = vcombine.low %v6632_v63, %v6636_v42 }
 0x557   : > { %v4873_v56 = vadd.f32 %v4745_v26, %v4611_v58  ;;  %v11304_v55 = vcombine.low %v6640_v17, %v6644_v25  ;;  %v11305_v47 = vcombine.low %v6648_v29, %v6652_v52  ;;  %v10970_v43 = vrot.slane %v10960_v14, %v20302_v57  ;;  %v4479_v52 = vld [vmem:[%s19652_s14 + $0x380] sm:$0xff] }
 0x558   : > { %v4866_v3 = vadd.f32 %v4738_v23, %v4604_v61  ;;  %v11306_v7 = vcombine.low %v6656_v32, %v6660_v38  ;;  %v11313_v26 = vrot.slane %v11303_v2, %v20302_v57  ;;  %v4124_v42 = vadd.f32 %v20780_v45, %v20830_v62  ;;  %v4472_v32 = vld [vmem:[%s19652_s14 + $0x348] sm:$0xff] }
 0x559   : > { %v5221_v5 = vsel %vm695_vm0, %v4873_v56, 0.0  ;;  %v11320_v58 = vrot.slane %v11304_v55, %v20302_v57  ;;  %v11327_v61 = vrot.slane %v11305_v47, %v20302_v57  ;;  %v10992_v56 = vcombine.low %v10970_v43, %v10977_v35 }
 0x55a   : > { %v5200_v50 = vsel %vm695_vm0, %v4866_v3, 0.0  ;;  %v11334_v33 = vrot.slane %v11306_v7, %v20302_v57  ;;  %v4342_v25 = vmax.f32 %v4124_v42, 0.0  ;;  %v4613_v9 = vmul.f32 %v20790_v8, %v4479_v52 }
 0x55b   : > { %v11335_v41 = vcombine.low %v11313_v26, %v11320_v58  ;;  %v11000_v30 = vrot.slane %v10992_v56, %v20302_v57  ;;  %v4606_v19 = vmul.f32 %v20790_v8, %v4472_v32  ;;  %v5321_v62 = vadd.f32 %v20232_v12, %v20979_v22 }
 0x55c   : > { %v11336_v37 = vcombine.low %v11327_v61, %v11334_v33  ;;  %v4740_v38 = vmul.f32 %v20840_v20, %v4342_v25 }
 0x55d   : > { %v11343_v53 = vrot.slane %v11335_v41, %v20302_v57  ;;  %v6696_v61 = vrot.slane %v5321_v62, %v20217_v21  ;;  %v6700_v33 = vrot.slane %v5321_v62, %v20254_v28  ;;  %v6704_v56 = vrot.slane %v5321_v62, %v20257_v59 }
 0x55e   : > { %v11350_v31 = vrot.slane %v11336_v37, %v20302_v57  ;;  %v4868_v55 = vadd.f32 %v4740_v38, %v4606_v19  ;;  %v6712_v37 = vrot.slane %v5321_v62, %v20269_v4 }
 0x560   : > { %v5206_v22 = vsel %vm695_vm0, %v4868_v55, 0.0 }
 0x563   : > { %15985 = vperm.xlu1 %18483, %v10910_v54   ;;  %v10963_v54 = vcombine.low %v6432_v27, %v6436_v1  ;;  %v11351_v1 = vcombine.low %v11343_v53, %v11350_v31  ;;  %v6724_v53 = vrot.slane %v5321_v62, %v20282_v16 }
 0x565   : > { %v10991_v23 = vrot.slane %v10963_v54, %v20302_v57  ;;  %v5314_v54 = vadd.f32 %v20232_v12, %v20881_v39 }
 0x566   : > { %16006 = vperm.xlu0 %18482, %v11253_v51   ;;  %v21015_v51 = vpop.xlane.xlu1 %5009 }
 0x567   : > { %v10993_v3 = vcombine.low %v10984_v34, %v10991_v23  ;;  %v6472_v47 = vrot.slane %v5314_v54, %v20217_v21  ;;  %v6476_v7 = vrot.slane %v5314_v54, %v20254_v28  ;;  %v6480_v43 = vrot.slane %v5314_v54, %v20257_v59 }
 0x568   : > { %v6484_v35 = vrot.slane %v5314_v54, %v20264_v11  ;;  %v6488_v34 = vrot.slane %v5314_v54, %v20269_v4  ;;  %v6492_v23 = vrot.slane %v5314_v54, %v20274_v0  ;;  %v6496_v26 = vrot.slane %v5314_v54, %v20277_v60 }
 0x569   : > { %v11007_v49 = vrot.slane %v10993_v3, %v20302_v57  ;;  %v6500_v39 = vrot.slane %v5314_v54, %v20282_v16  ;;  %v6708_v3 = vrot.slane %v5321_v62, %v20264_v11  ;;  %v11058_v31 = vcombine.low %v6472_v47, %v6476_v7 }
 0x56a   : > { %v21029_v27 = vpop.xlane.xlu1 %5015 }
 0x56b   : > { %v11008_v15 = vcombine.low %v11000_v30, %v11007_v49  ;;  %v6716_v30 = vrot.slane %v5321_v62, %v20274_v0  ;;  %v6720_v49 = vrot.slane %v5321_v62, %v20277_v60  ;;  %v11402_v25 = vcombine.low %v6704_v56, %v6708_v3 }
 0x56c   : > { %v11068_v32 = vrot.slane %v11058_v31, %v20302_v57  ;;  %v4134_v3 = vadd.f32 %v20780_v45, %v20883_v36  ;;  %v4474_v31 = vld [vmem:[%s19652_s14 + $0x358] sm:$0xff]  ;;  %v5323_v36 = vadd.f32 %v20232_v12, %v21009_v44 }
 0x56d   : > { %v11404_v52 = vcombine.low %v6720_v49, %v6724_v53  ;;  %v11418_v54 = vrot.slane %v11402_v25, %v20302_v57  ;;  %v4481_v53 = vld [vmem:[%s19652_s14 + $0x390] sm:$0xff]  ;;  %v5316_v25 = vadd.f32 %v20232_v12, %v20915_v46 }
 0x56e   : > { %v21068_v42 = vpop.xlane.xlu1 %5021 }
 0x56f   : > { %v11432_v55 = vrot.slane %v11404_v52, %v20302_v57  ;;  %v6564_v46 = vrot.slane %v5316_v25, %v20282_v16 }
 0x585   : > { %5222 = vadd.xlane.f32.xlu0 %v5221_v5  ;;  %v21031_v5 = vpop.xlane.xlu0 %5012 }
 0x587   : > { %5201 = vadd.xlane.f32.xlu1 %v5200_v50  ;;  %v21033_v50 = vpop.f32.mrf.mxu0 }
 0x589   : > { %v4158_v63 = vpop.f32.mrf.mxu0  ;;  %v21062_v41 = vpop.xlane.xlu0 %5018 }
 0x58a   : > { %v4159_v17 = vadd.f32 %v20780_v45, %v4158_v63  ;;  %v11061_v63 = vcombine.low %v6496_v26, %v6500_v39 }
 0x58c   : > { %v4349_v29 = vmax.f32 %v4159_v17, 0.0  ;;  %v11401_v17 = vcombine.low %v6696_v61, %v6700_v33  ;;  %v21086_v33 = vpop.f32.mrf.mxu0 }
 0x58d   : > { %v21084_v61 = vpop.xlane.xlu0 %5024 }
 0x58e   : > { %v4747_v14 = vmul.f32 %v20840_v20, %v4349_v29  ;;  %v11403_v29 = vcombine.low %v6712_v37, %v6716_v30  ;;  %v11411_v19 = vrot.slane %v11401_v17, %v20302_v57  ;;  %v4168_v56 = vpop.f32.mrf.mxu0  ;;  %v4344_v30 = vmax.f32 %v4134_v3, 0.0 }
 0x58f   : > { %v4169_v37 = vadd.f32 %v20780_v45, %v4168_v56  ;;  %v4608_v17 = vmul.f32 %v20790_v8, %v4474_v31 }
 0x590   : > { %v4875_v2 = vadd.f32 %v4747_v14, %v4613_v9  ;;  %v11089_v9 = vrot.slane %v11061_v63, %v20302_v57  ;;  %v11433_v7 = vcombine.low %v11411_v19, %v11418_v54  ;;  %v4615_v63 = vmul.f32 %v20790_v8, %v4481_v53 }
 0x591   : > { %v4351_v49 = vmax.f32 %v4169_v37, 0.0  ;;  %v6552_v19 = vrot.slane %v5316_v25, %v20269_v4  ;;  %v6556_v54 = vrot.slane %v5316_v25, %v20274_v0 }
 0x592   : > { %v5227_v58 = vsel %vm695_vm0, %v4875_v2, 0.0  ;;  %v11425_v2 = vrot.slane %v11403_v29, %v20302_v57 }
 0x593   : > { %v11158_v3 = vcombine.low %v6552_v19, %v6556_v54 }
 0x598   : > { %15991 = vperm.xlu1 %18483, %v11008_v15   ;;  %v11059_v15 = vcombine.low %v6480_v43, %v6484_v35  ;;  %v11434_v43 = vcombine.low %v11425_v2, %v11432_v55  ;;  %v6560_v2 = vrot.slane %v5316_v25, %v20277_v60 }
 0x59a   : > { %v11075_v38 = vrot.slane %v11059_v15, %v20302_v57  ;;  %v11448_v26 = vrot.slane %v11434_v43, %v20302_v57  ;;  %v4742_v15 = vmul.f32 %v20840_v20, %v4344_v30  ;;  %v6772_v43 = vrot.slane %v5323_v36, %v20264_v11 }
 0x59b   : > { %16012 = vperm.xlu0 %18482, %v11351_v1   ;;  %v11060_v1 = vcombine.low %v6488_v34, %v6492_v23  ;;  %v11441_v23 = vrot.slane %v11433_v7, %v20302_v57  ;;  %v6768_v7 = vrot.slane %v5323_v36, %v20257_v59  ;;  %v11159_v37 = vcombine.low %v6560_v2, %v6564_v46 }
 0x59c   : > { %v11090_v62 = vcombine.low %v11068_v32, %v11075_v38  ;;  %v4870_v52 = vadd.f32 %v4742_v15, %v4608_v17  ;;  %v6536_v32 = vrot.slane %v5316_v25, %v20217_v21  ;;  %v6540_v38 = vrot.slane %v5316_v25, %v20254_v28 }
 0x59d   : > { %v11082_v14 = vrot.slane %v11060_v1, %v20302_v57  ;;  %v4749_v1 = vmul.f32 %v20840_v20, %v4351_v49  ;;  %v11500_v53 = vcombine.low %v6768_v7, %v6772_v43  ;;  %v11180_v17 = vrot.slane %v11158_v3, %v20302_v57  ;;  %v21139_v43 = vpop.f32.mrf.mxu0  ;;  %v4476_v3 = vld [vmem:[%s19652_s14 + $0x368] sm:$0xff] }
 0x59e   : > { %v11098_v35 = vrot.slane %v11090_v62, %v20302_v57  ;;  %v5212_v44 = vsel %vm695_vm0, %v4870_v52, 0.0  ;;  %v6760_v62 = vrot.slane %v5323_v36, %v20217_v21 }
 0x59f   : > { %v11091_v47 = vcombine.low %v11082_v14, %v11089_v9  ;;  %v4877_v29 = vadd.f32 %v4749_v1, %v4615_v63  ;;  %v6544_v14 = vrot.slane %v5316_v25, %v20257_v59  ;;  %v6548_v9 = vrot.slane %v5316_v25, %v20264_v11 }
 0x5a0   : > { %v11187_v25 = vrot.slane %v11159_v37, %v20302_v57  ;;  %v11516_v52 = vrot.slane %v11500_v53, %v20302_v57 }
 0x5a1   : > { %v11105_v34 = vrot.slane %v11091_v47, %v20302_v57  ;;  %v5233_v55 = vsel %vm695_vm0, %v4877_v29, 0.0  ;;  %v6764_v47 = vrot.slane %v5323_v36, %v20254_v28  ;;  %v11157_v56 = vcombine.low %v6544_v14, %v6548_v9 }
 0x5a2   : > { %v11189_v14 = vcombine.low %v11180_v17, %v11187_v25 }
 0x5a3   : > { %v11106_v39 = vcombine.low %v11098_v35, %v11105_v34  ;;  %v21115_v35 = vpop.xlane.xlu0 %5030  ;;  %v6776_v34 = vrot.slane %v5323_v36, %v20269_v4  ;;  %v11499_v49 = vcombine.low %v6760_v62, %v6764_v47  ;;  %v11173_v63 = vrot.slane %v11157_v56, %v20302_v57  ;;  %v4483_v56 = vld [vmem:[%s19652_s14 + $0x3a0] sm:$0xff] }
 0x5a4   : > { %v11203_v2 = vrot.slane %v11189_v14, %v20302_v57  ;;  %v4617_v53 = vmul.f32 %v20790_v8, %v4483_v56 }
 0x5a5   : > { %v11509_v29 = vrot.slane %v11499_v49, %v20302_v57 }
 0x5a7   : > { %v11531_v9 = vcombine.low %v11509_v29, %v11516_v52  ;;  %v21137_v7 = vpop.xlane.xlu0 %5036 }
 0x5a9   : > { %v11539_v46 = vrot.slane %v11531_v9, %v20302_v57 }
 0x5ba   : > { %5228 = vadd.xlane.f32.xlu0 %v5227_v58  ;;  %v21082_v58 = vpop.xlane.xlu1 %5027 }
 0x5bc   : > { %5207 = vadd.xlane.f32.xlu1 %v5206_v22  ;;  %v11449_v22 = vcombine.low %v11441_v23, %v11448_v26  ;;  %v6780_v23 = vrot.slane %v5323_v36, %v20274_v0  ;;  %v6784_v26 = vrot.slane %v5323_v36, %v20277_v60 }
 0x5be   : > { %v21121_v30 = vpop.xlane.xlu1 %5033  ;;  %v11501_v31 = vcombine.low %v6776_v34, %v6780_v23  ;;  %v4178_v34 = vpop.f32.mrf.mxu0  ;;  %v4144_v23 = vadd.f32 %v20780_v45, %v20931_v6 }
 0x5c2   : > { %v21135_v62 = vpop.xlane.xlu1 %5039 }
 0x5cd   : > { %15997 = vperm.xlu1 %18483, %v11106_v39   ;;  %v6788_v39 = vrot.slane %v5323_v36, %v20282_v16  ;;  %v11523_v36 = vrot.slane %v11501_v31, %v20302_v57  ;;  %v4610_v31 = vmul.f32 %v20790_v8, %v4476_v3 }
 0x5cf   : > { %v11502_v15 = vcombine.low %v6784_v26, %v6788_v39  ;;  %v4179_v26 = vadd.f32 %v20780_v45, %v4178_v34  ;;  %v4346_v39 = vmax.f32 %v4144_v23, 0.0  ;;  %v5325_v45 = vadd.f32 %v20232_v12, %v21031_v5 }
 0x5d0   : > { %16018 = vperm.xlu0 %18482, %v11449_v22   ;;  %v11156_v22 = vcombine.low %v6536_v32, %v6540_v38 }
 0x5d1   : > { %v11530_v32 = vrot.slane %v11502_v15, %v20302_v57  ;;  %v4744_v37 = vmul.f32 %v20840_v20, %v4346_v39  ;;  %v5318_v15 = vadd.f32 %v20232_v12, %v20929_v48  ;;  %v6828_v14 = vrot.slane %v5325_v45, %v20254_v28  ;;  %v21174_v39 = vpop.xlane.xlu1 %5045 }
 0x5d2   : > { %v11166_v1 = vrot.slane %v11156_v22, %v20302_v57  ;;  %v4353_v22 = vmax.f32 %v4179_v26, 0.0  ;;  %v6832_v9 = vrot.slane %v5325_v45, %v20257_v59 }
 0x5d3   : > { %v11532_v19 = vcombine.low %v11523_v36, %v11530_v32  ;;  %v6600_v6 = vrot.slane %v5318_v15, %v20217_v21  ;;  %v6604_v17 = vrot.slane %v5318_v15, %v20254_v28  ;;  %v6608_v25 = vrot.slane %v5318_v15, %v20257_v59 }
 0x5d4   : > { %v11188_v38 = vcombine.low %v11166_v1, %v11173_v63  ;;  %v4751_v49 = vmul.f32 %v20840_v20, %v4353_v22  ;;  %v4872_v63 = vadd.f32 %v4744_v37, %v4610_v31  ;;  %v6612_v29 = vrot.slane %v5318_v15, %v20264_v11 }
 0x5d5   : > { %v6616_v52 = vrot.slane %v5318_v15, %v20269_v4  ;;  %v6620_v8 = vrot.slane %v5318_v15, %v20274_v0  ;;  %v6624_v36 = vrot.slane %v5318_v15, %v20277_v60  ;;  %v6628_v48 = vrot.slane %v5318_v15, %v20282_v16 }
 0x5d6   : > { %v11196_v54 = vrot.slane %v11188_v38, %v20302_v57  ;;  %v4879_v1 = vadd.f32 %v4751_v49, %v4617_v53  ;;  %v5218_v5 = vsel %vm695_vm0, %v4872_v63, 0.0  ;;  %v6824_v38 = vrot.slane %v5325_v45, %v20217_v21 }
 0x5d7   : > { %v11255_v34 = vcombine.low %v6608_v25, %v6612_v29  ;;  %v11256_v23 = vcombine.low %v6616_v52, %v6620_v8  ;;  %v11257_v26 = vcombine.low %v6624_v36, %v6628_v48 }
 0x5d8   : > { %v5239_v32 = vsel %vm695_vm0, %v4879_v1, 0.0  ;;  %v11597_v22 = vcombine.low %v6824_v38, %v6828_v14  ;;  %v21188_v38 = vpop.xlane.xlu1 %5051 }
 0x5d9   : > { %v11271_v53 = vrot.slane %v11255_v34, %v20302_v57  ;;  %v11278_v31 = vrot.slane %v11256_v23, %v20302_v57  ;;  %v11285_v15 = vrot.slane %v11257_v26, %v20302_v57  ;;  %v4485_v23 = vld [vmem:[%s19652_s14 + $0x3b0] sm:$0xff]  ;;  %v4478_v26 = vld [vmem:[%s19652_s14 + $0x378] sm:$0xff] }
 0x5da   : > { %v11607_v1 = vrot.slane %v11597_v22, %v20302_v57 }
 0x5db   : > { %v11287_v25 = vcombine.low %v11278_v31, %v11285_v15  ;;  %v5327_v15 = vadd.f32 %v20232_v12, %v21062_v41 }
 0x5dd   : > { %v11301_v36 = vrot.slane %v11287_v25, %v20302_v57 }
 0x5ef   : > { %5234 = vadd.xlane.f32.xlu0 %v5233_v55  ;;  %v11546_v55 = vrot.slane %v11532_v19, %v20302_v57  ;;  %v6836_v19 = vrot.slane %v5325_v45, %v20264_v11 }
 0x5f1   : > { %5213 = vadd.xlane.f32.xlu1 %v5212_v44  ;;  %v11204_v44 = vcombine.low %v11196_v54, %v11203_v2  ;;  %v11547_v47 = vcombine.low %v11539_v46, %v11546_v55  ;;  %v21168_v54 = vpop.xlane.xlu0 %5042  ;;  %v6840_v2 = vrot.slane %v5325_v45, %v20269_v4  ;;  %v6844_v46 = vrot.slane %v5325_v45, %v20274_v0 }
 0x5f2   : > { %v6848_v55 = vrot.slane %v5325_v45, %v20277_v60  ;;  %v11598_v56 = vcombine.low %v6832_v9, %v6836_v19  ;;  %v21192_v19 = vpop.f32.mrf.mxu0 }
 0x5f3   : > { %v11599_v3 = vcombine.low %v6840_v2, %v6844_v46  ;;  %v21197_v46 = vld [vmem:[%s24849_s7] ss:$0 sm:$0xff] }
 0x5f4   : > { %v11614_v63 = vrot.slane %v11598_v56, %v20302_v57  ;;  %v4188_v2 = vpop.f32.mrf.mxu0 }
 0x5f5   : > { %v21190_v9 = vpop.xlane.xlu0 %5048 }
 0x5f6   : > { %v11629_v29 = vcombine.low %v11607_v1, %v11614_v63 }
 0x5f8   : > { %v11637_v48 = vrot.slane %v11629_v29, %v20302_v57 }
 0x602   : > { %16003 = vperm.xlu1 %18483, %v11204_v44   ;;  %v6852_v44 = vrot.slane %v5325_v45, %v20282_v16  ;;  %v11621_v45 = vrot.slane %v11599_v3, %v20302_v57  ;;  %v21209_v3 = vld [vmem:[%s24850_s8] ss:$0 sm:$0xff] }
 0x603   : > { %25054 = vst [vmem:[#allocation11_spill] sm:$0xff] %v21209_v3 }
 0x604   : > { %v11600_v37 = vcombine.low %v6848_v55, %v6852_v44  ;;  %v4154_v55 = vadd.f32 %v21197_v46, %v20981_v24  ;;  %v4189_v44 = vadd.f32 %v21197_v46, %v4188_v2  ;;  %v5320_v24 = vadd.f32 %v20232_v12, %v20963_v18 }
 0x605   : > { %16024 = vperm.xlu0 %18482, %v11547_v47   ;;  %v11254_v47 = vcombine.low %v6600_v6, %v6604_v17  ;;  %v6912_v2 = vrot.slane %v5327_v15, %v20277_v60 }
 0x606   : > { %v11628_v6 = vrot.slane %v11600_v37, %v20302_v57  ;;  %v4355_v34 = vmax.f32 %v4189_v44, 0.0  ;;  %v4619_v37 = vmul.f32 %v21209_v3, %v4485_v23  ;;  %v6664_v1 = vrot.slane %v5320_v24, %v20217_v21 }
 0x607   : > { %v11264_v49 = vrot.slane %v11254_v47, %v20302_v57  ;;  %v4348_v47 = vmax.f32 %v4154_v55, 0.0  ;;  %v6672_v63 = vrot.slane %v5320_v24, %v20257_v59  ;;  %v6688_v25 = vrot.slane %v5320_v24, %v20277_v60 }
 0x608   : > { %v11630_v52 = vcombine.low %v11621_v45, %v11628_v6  ;;  %v4753_v56 = vmul.f32 %v20840_v20, %v4355_v34  ;;  %v6676_v45 = vrot.slane %v5320_v24, %v20264_v11  ;;  %v6680_v6 = vrot.slane %v5320_v24, %v20269_v4 }
 0x609   : > { %v11286_v17 = vcombine.low %v11264_v49, %v11271_v53  ;;  %v4746_v22 = vmul.f32 %v20840_v20, %v4348_v47  ;;  %v4612_v49 = vmul.f32 %v21209_v3, %v4478_v26  ;;  %v6668_v20 = vrot.slane %v5320_v24, %v20254_v28  ;;  %v21237_v26 = vpop.xlane.xlu1 %5057 }
 0x60a   : > { %v4881_v53 = vadd.f32 %v4753_v56, %v4619_v37  ;;  %v6692_v18 = vrot.slane %v5320_v24, %v20282_v16  ;;  %v6916_v55 = vrot.slane %v5327_v15, %v20282_v16  ;;  %v11353_v47 = vcombine.low %v6672_v63, %v6676_v45 }
 0x60b   : > { %v11294_v8 = vrot.slane %v11286_v17, %v20302_v57  ;;  %v4874_v31 = vadd.f32 %v4746_v22, %v4612_v49  ;;  %v6684_v17 = vrot.slane %v5320_v24, %v20274_v0  ;;  %v11352_v44 = vcombine.low %v6664_v1, %v6668_v20 }
 0x60c   : > { %v5245_v29 = vsel %vm695_vm0, %v4881_v53, 0.0  ;;  %v11355_v23 = vcombine.low %v6688_v25, %v6692_v18  ;;  %v11698_v49 = vcombine.low %v6912_v2, %v6916_v55  ;;  %v11369_v53 = vrot.slane %v11353_v47, %v20302_v57 }
 0x60d   : > { %v5224_v41 = vsel %vm695_vm0, %v4874_v31, 0.0  ;;  %v11354_v34 = vcombine.low %v6680_v6, %v6684_v17  ;;  %v11362_v24 = vrot.slane %v11352_v44, %v20302_v57 }
 0x60e   : > { %v11726_v45 = vrot.slane %v11698_v49, %v20302_v57  ;;  %v4164_v49 = vadd.f32 %v21197_v46, %v21033_v50 }
 0x60f   : > { %v11376_v31 = vrot.slane %v11354_v34, %v20302_v57  ;;  %v11384_v6 = vcombine.low %v11362_v24, %v11369_v53 }
 0x624   : > { %5240 = vadd.xlane.f32.xlu0 %v5239_v32  ;;  %v11644_v32 = vrot.slane %v11630_v52, %v20302_v57  ;;  %v6888_v52 = vrot.slane %v5327_v15, %v20217_v21 }
 0x626   : > { %5219 = vadd.xlane.f32.xlu1 %v5218_v5  ;;  %v11302_v5 = vcombine.low %v11294_v8, %v11301_v36  ;;  %v11645_v14 = vcombine.low %v11637_v48, %v11644_v32  ;;  %v6892_v8 = vrot.slane %v5327_v15, %v20254_v28  ;;  %v6896_v36 = vrot.slane %v5327_v15, %v20257_v59  ;;  %v21231_v32 = vpop.xlane.xlu0 %5054 }
 0x627   : > { %v6900_v48 = vrot.slane %v5327_v15, %v20264_v11 }
 0x628   : > { %v11695_v22 = vcombine.low %v6888_v52, %v6892_v8  ;;  %v21251_v8 = vpop.xlane.xlu1 %5063 }
 0x629   : > { %v11696_v56 = vcombine.low %v6896_v36, %v6900_v48 }
 0x62a   : > { %v11705_v1 = vrot.slane %v11695_v22, %v20302_v57 }
 0x62b   : > { %v11712_v20 = vrot.slane %v11696_v56, %v20302_v57 }
 0x62c   : > { %v21257_v2 = vpop.xlane.xlu1 %5069 }
 0x62d   : > { %v11727_v25 = vcombine.low %v11705_v1, %v11712_v20  ;;  %v4487_v20 = vld [vmem:[%s19652_s14 + $0x3c0] sm:$0xff] }
 0x62e   : > { %v4621_v50 = vmul.f32 %v21209_v3, %v4487_v20 }
 0x62f   : > { %v11735_v48 = vrot.slane %v11727_v25, %v20302_v57 }
 0x630   : > { %v21261_v47 = vpop.xlane.xlu1 %5075 }
 0x634   : > { %v21267_v56 = vpop.xlane.xlu1 %5081 }
 0x637   : > { %16009 = vperm.xlu1 %18483, %v11302_v5   ;;  %v6904_v5 = vrot.slane %v5327_v15, %v20269_v4 }
 0x638   : > { %v21274_v53 = vpop.xlane.xlu1 %5087 }
 0x639   : > { %25055 = vst [vmem:[#allocation12_spill] sm:$0xff] %v21274_v53 }
 0x63a   : > { %16030 = vperm.xlu0 %18482, %v11645_v14   ;;  %v6908_v14 = vrot.slane %v5327_v15, %v20274_v0  ;;  %v21243_v15 = vpop.xlane.xlu0 %5060 }
 0x63c   : > { %v11697_v37 = vcombine.low %v6904_v5, %v6908_v14 }
 0x63e   : > { %v11719_v63 = vrot.slane %v11697_v37, %v20302_v57  ;;  %v21253_v36 = vpop.xlane.xlu0 %5066 }
 0x640   : > { %v11728_v18 = vcombine.low %v11719_v63, %v11726_v45  ;;  %v4480_v63 = vld [vmem:[%s19652_s14 + $0x388] sm:$0xff]  ;;  %v21283_v45 = vld [vmem:[%s24851_s9] ss:$0 sm:$0xff] }
 0x641   : > { %v4614_v25 = vmul.f32 %v21209_v3, %v4480_v63 }
 0x642   : > { %v11742_v5 = vrot.slane %v11728_v18, %v20302_v57  ;;  %v21259_v55 = vpop.xlane.xlu0 %5072  ;;  %v21289_v18 = vpop.xlane.xlu1 %5093 }
 0x643   : > { %25057 = vst [vmem:[#allocation14_spill] sm:$0xff] %v21289_v18 }
 0x644   : > { %v11743_v44 = vcombine.low %v11735_v48, %v11742_v5 }
 0x646   : > { %v21263_v34 = vpop.xlane.xlu0 %5078 }
 0x64a   : > { %v21269_v37 = vpop.xlane.xlu0 %5084 }
 0x659   : > { %5246 = vadd.xlane.f32.xlu0 %v5245_v29  ;;  %v11383_v29 = vrot.slane %v11355_v23, %v20302_v57  ;;  %v21265_v23 = vpop.f32.mrf.mxu0 }
 0x65b   : > { %5225 = vadd.xlane.f32.xlu1 %v5224_v41  ;;  %v11385_v17 = vcombine.low %v11376_v31, %v11383_v29  ;;  %v11392_v41 = vrot.slane %v11384_v6, %v20302_v57  ;;  %v4198_v22 = vpop.f32.mrf.mxu0  ;;  %v21276_v31 = vpop.xlane.xlu0 %5090  ;;  %v4350_v29 = vmax.f32 %v4164_v49, 0.0 }
 0x65c   : > { %v4199_v24 = vadd.f32 %v21197_v46, %v4198_v22  ;;  %25056 = vst [vmem:[#allocation13_spill] sm:$0xff] %v21276_v31 }
 0x65d   : > { %v11399_v52 = vrot.slane %v11385_v17, %v20302_v57  ;;  %v4748_v6 = vmul.f32 %v21283_v45, %v4350_v29  ;;  %v21301_v29 = vpop.xlane.xlu1 %5099 }
 0x65e   : > { %v4357_v1 = vmax.f32 %v4199_v24, 0.0  ;;  %25059 = vst [vmem:[#allocation16_spill] sm:$0xff] %v21301_v29 }
 0x65f   : > { %v11400_v14 = vcombine.low %v11392_v41, %v11399_v52  ;;  %v21291_v41 = vpop.xlane.xlu0 %5096  ;;  %v5322_v52 = vadd.f32 %v20232_v12, %v20977_v13  ;;  %v4876_v5 = vadd.f32 %v4748_v6, %v4614_v25 }
 0x660   : > { %v4755_v17 = vmul.f32 %v21283_v45, %v4357_v1  ;;  %25058 = vst [vmem:[#allocation15_spill] sm:$0xff] %v21291_v41 }
 0x661   : > { %v6732_v22 = vrot.slane %v5322_v52, %v20254_v28  ;;  %v6736_v49 = vrot.slane %v5322_v52, %v20257_v59  ;;  %v6740_v24 = vrot.slane %v5322_v52, %v20264_v11  ;;  %v6744_v20 = vrot.slane %v5322_v52, %v20269_v4 }
 0x662   : > { %v4883_v48 = vadd.f32 %v4755_v17, %v4621_v50  ;;  %v6748_v13 = vrot.slane %v5322_v52, %v20274_v0  ;;  %v6752_v63 = vrot.slane %v5322_v52, %v20277_v60  ;;  %v5230_v17 = vsel %vm695_vm0, %v4876_v5, 0.0 }
 0x663   : > { %v21303_v1 = vpop.xlane.xlu0 %5102  ;;  %v11451_v18 = vcombine.low %v6736_v49, %v6740_v24 }
 0x664   : > { %25060 = vst [vmem:[#allocation17_spill] sm:$0xff] %v21303_v1  ;;  %v5251_v6 = vsel %vm695_vm0, %v4883_v48, 0.0  ;;  %v11452_v5 = vcombine.low %v6744_v20, %v6748_v13 }
 0x66c   : > { %16015 = vperm.xlu1 %18483, %v11400_v14   ;;  %v5329_v14 = vadd.f32 %v20232_v12, %v21084_v61  ;;  %v6756_v61 = vrot.slane %v5322_v52, %v20282_v16 }
 0x66e   : > { %v6952_v50 = vrot.slane %v5329_v14, %v20217_v21  ;;  %v6956_v25 = vrot.slane %v5329_v14, %v20254_v28  ;;  %v6960_v40 = vrot.slane %v5329_v14, %v20257_v59  ;;  %v6964_v3 = vrot.slane %v5329_v14, %v20264_v11  ;;  %v21319_v28 = vpop.xlane.xlu1 %5105  ;;  %v21321_v59 = vpop.xlane.xlu0 %5108 }
 0x66f   : > { %16036 = vperm.xlu0 %18482, %v11743_v44   ;;  %v6728_v44 = vrot.slane %v5322_v52, %v20217_v21  ;;  %v6968_v1 = vrot.slane %v5329_v14, %v20269_v4  ;;  %v6972_v29 = vrot.slane %v5329_v14, %v20274_v0  ;;  %v6976_v41 = vrot.slane %v5329_v14, %v20277_v60  ;;  %v18461_v21 = vpop.f32.mrf.mxu0 }
 0x670   : > { %v6980_v52 = vrot.slane %v5329_v14, %v20282_v16  ;;  %v11453_v31 = vcombine.low %v6752_v63, %v6756_v61  ;;  %v11793_v11 = vcombine.low %v6952_v50, %v6956_v25  ;;  %v11467_v60 = vrot.slane %v11451_v18, %v20302_v57 }
 0x671   : > { %v11450_v48 = vcombine.low %v6728_v44, %v6732_v22  ;;  %v11795_v53 = vcombine.low %v6968_v1, %v6972_v29  ;;  %v11474_v14 = vrot.slane %v11452_v5, %v20302_v57  ;;  %v4208_v22 = vpop.f32.mrf.mxu0 }
 0x672   : > { %v11796_v4 = vcombine.low %v6976_v41, %v6980_v52  ;;  %v11481_v44 = vrot.slane %v11453_v31, %v20302_v57  ;;  %v11803_v49 = vrot.slane %v11793_v11, %v20302_v57  ;;  %v4184_v52 = vadd.f32 %v21197_v46, %v21139_v43 }
 0x673   : > { %v11460_v0 = vrot.slane %v11450_v48, %v20302_v57  ;;  %v11817_v20 = vrot.slane %v11795_v53, %v20302_v57  ;;  %v18464_v18 = vpop.f32.mrf.mxu0  ;;  %v4194_v48 = vadd.f32 %v21197_v46, %v21192_v19 }
 0x674   : > { %v11824_v13 = vrot.slane %v11796_v4, %v20302_v57  ;;  %v11483_v29 = vcombine.low %v11474_v14, %v11481_v44  ;;  %v4354_v43 = vmax.f32 %v4184_v52, 0.0  ;;  %v4224_v19 = vadd.f32 %v21197_v46, %v18464_v18 }
 0x675   : > { %v11482_v41 = vcombine.low %v11460_v0, %v11467_v60  ;;  %v4218_v11 = vpop.f32.mrf.mxu0  ;;  %v4174_v0 = vadd.f32 %v21197_v46, %v21086_v33  ;;  %v21377_v18 = vadd.f32 %v20232_v12, %v21068_v42  ;;  %v21396_v42 = vadd.f32 %v20232_v12, %v21115_v35 }
 0x676   : > { %v11826_v63 = vcombine.low %v11817_v20, %v11824_v13  ;;  %v11497_v61 = vrot.slane %v11483_v29, %v20302_v57  ;;  %v25061_v20 = vlaneseq  ;;  %v4356_v29 = vmax.f32 %v4194_v48, 0.0 }
 0x677   : > { %v11490_v31 = vrot.slane %v11482_v41, %v20302_v57  ;;  %v18467_v60 = vpop.f32.mrf.mxu0  ;;  %v4209_v41 = vadd.f32 %v21197_v46, %v4208_v22  ;;  %v21414_v35 = vadd.f32 %v20232_v12, %v21135_v62 }
 0x678   : > { %v11840_v53 = vrot.slane %v11826_v63, %v20302_v57  ;;  %v21357_v13 = vand.u32 127, %v25061_v20  ;;  %v21365_v63 = vadd.f32 %v20232_v12, %v21015_v51  ;;  %v21381_v51 = vmul.f32 %v21283_v45, %v4354_v43 }
 0x679   : > { %v11498_v25 = vcombine.low %v11490_v31, %v11497_v61  ;;  %v4228_v33 = vpop.f32.mrf.mxu0  ;;  %25067 = vst [vmem:[#allocation23_spill] sm:$0xff] %v21414_v35  ;;  %v7044_v35 = vrot.slane %v21396_v42, %v20282_v16 }
 0x67a   : > { %v4229_v61 = vadd.f32 %v21197_v46, %v4228_v33  ;;  %v16348_v20 = vadd.s32 4294967232, %v21357_v13 }
 0x68e   : > { %5252 = vadd.xlane.f32.xlu0 %v5251_v6  ;;  %v11794_v6 = vcombine.low %v6960_v40, %v6964_v3  ;;  %v21331_v40 = vpop.xlane.xlu1 %5111  ;;  %v21333_v3 = vpop.xlane.xlu0 %5114 }
 0x690   : > { %5231 = vadd.xlane.f32.xlu1 %v5230_v17  ;;  %v11810_v24 = vrot.slane %v11794_v6, %v20302_v57  ;;  %v4204_v6 = vadd.f32 %v21197_v46, %v21265_v23  ;;  %v4219_v23 = vadd.f32 %v21197_v46, %v4218_v11 }
 0x692   : > { %v11825_v1 = vcombine.low %v11803_v49, %v11810_v24  ;;  %v21337_v17 = vpop.xlane.xlu1 %5117  ;;  %v21339_v50 = vpop.xlane.xlu0 %5120  ;;  %v4352_v49 = vmax.f32 %v4174_v0, 0.0  ;;  %v4214_v24 = vadd.f32 %v21197_v46, %v18461_v21  ;;  %v21369_v21 = vadd.f32 %v20232_v12, %v21029_v27 }
 0x693   : > { %v4358_v31 = vmax.f32 %v4204_v6, 0.0  ;;  %v21385_v27 = vadd.f32 %v20232_v12, %v21082_v58  ;;  %v4361_v52 = vmax.f32 %v4219_v23, 0.0  ;;  %v21403_v58 = vadd.f32 %v20232_v12, %v21121_v30 }
 0x694   : > { %v11833_v4 = vrot.slane %v11825_v1, %v20302_v57  ;;  %v4234_v1 = vadd.f32 %v21197_v46, %v18467_v60  ;;  %v21373_v22 = vmul.f32 %v21283_v45, %v4352_v49  ;;  %v4360_v11 = vmax.f32 %v4214_v24, 0.0 }
 0x695   : > { %25062 = vst [vmem:[#allocation18_spill] sm:$0xff] %v21385_v27  ;;  %v21392_v60 = vmul.f32 %v21283_v45, %v4356_v29  ;;  %25065 = vst [vmem:[#allocation21_spill] sm:$0xff] %v21403_v58  ;;  %v21407_v6 = vadd.f32 %v20232_v12, %v21137_v7  ;;  %v4363_v49 = vmax.f32 %v4229_v61, 0.0  ;;  %v21428_v7 = vadd.f32 %v20232_v12, %v21168_v54 }
 0x696   : > { %v11841_v5 = vcombine.low %v11833_v4, %v11840_v53  ;;  %v21351_v14 = vpop.xlane.xlu1 %5123  ;;  %v21353_v44 = vpop.xlane.xlu0 %5126  ;;  %v16299_v4 = vadd.s32 4294967288, %v21357_v13  ;;  %v4359_v53 = vmax.f32 %v4209_v41, 0.0  ;;  %v4364_v48 = vmax.f32 %v4234_v1, 0.0 }
 0x697   : > { %v21410_v24 = vmul.f32 %v21283_v45, %v4360_v11  ;;  %v21432_v41 = vadd.f32 %v20232_v12, %v21174_v39  ;;  %v21435_v62 = vmul.f32 %v21283_v45, %v4361_v52  ;;  %v21442_v29 = vadd.f32 %v20232_v12, %v21190_v9 }
 0x698   : > { %v21417_v33 = vsub.s32 %v16299_v4, %v20204_v10  ;;  %v21421_v30 = vmul.f32 %v21283_v45, %v4359_v53  ;;  %v21446_v23 = vadd.f32 %v20232_v12, %v21188_v38  ;;  %v21449_v54 = vmul.f32 %v21283_v45, %v4363_v49  ;;  %v25086_v49 = vld [vmem:[#allocation12_spill] sm:$0xff] }
 0x699   : > { %25066 = vst [vmem:[#allocation22_spill] sm:$0xff] %v21410_v24  ;;  %25070 = vst [vmem:[#allocation26_spill] sm:$0xff] %v21432_v41  ;;  %v21453_v39 = vadd.f32 %v20232_v12, %v21231_v32  ;;  %v21457_v1 = vsub.s32 %v21357_v13, %v20204_v10  ;;  %v16313_v9 = vadd.s32 4294967272, %v21357_v13  ;;  %v21466_v38 = vadd.f32 %v20232_v12, %v21237_v26 }
 0x69a   : > { %v21387_v46 = vpop.permute.xlu1 %15913  ;;  %v21389_v0 = vpop.xlane.xlu0 %5132  ;;  %25068 = vst [vmem:[#allocation24_spill] sm:$0xff] %v21417_v33  ;;  %25072 = vst [vmem:[#allocation28_spill] sm:$0xff] %v21446_v23  ;;  %v16306_v32 = vadd.s32 4294967280, %v21357_v13  ;;  %v16362_v11 = vadd.s32 4294967216, %v21357_v13  ;;  %v21475_v4 = vadd.f32 %v20232_v12, %v21243_v15  ;;  %v21479_v53 = vadd.f32 %v20232_v12, %v21251_v8 }
 0x69b   : > { %25063 = vst [vmem:[#allocation19_spill] sm:$0xff] %v21387_v46  ;;  %25073 = vst [vmem:[#allocation29_spill] sm:$0xff] %v21457_v1  ;;  %v21487_v26 = vadd.f32 %v20232_v12, %v21257_v2  ;;  %v21491_v52 = vadd.f32 %v20232_v12, %v21259_v55  ;;  %v21495_v15 = vadd.f32 %v20232_v12, %v21261_v47 }
 0x69c   : > { %25075 = vst [vmem:[#allocation31_spill] sm:$0xff] %v21466_v38  ;;  %25077 = vst [vmem:[#allocation33_spill] sm:$0xff] %v21479_v53  ;;  %v21499_v8 = vadd.f32 %v20232_v12, %v21263_v34  ;;  %v21504_v2 = vadd.f32 %v20232_v12, %v21267_v56  ;;  %v21508_v55 = vadd.f32 %v20232_v12, %v21269_v37  ;;  %v16320_v34 = vadd.s32 4294967264, %v21357_v13  ;;  %v4489_v53 = vld [vmem:[%s19652_s14 + $0x3d0] sm:$0xff]  ;;  %v4482_v38 = vld [vmem:[%s19652_s14 + $0x398] sm:$0xff] }
 0x69d   : > { %25079 = vst [vmem:[#allocation35_spill] sm:$0xff] %v21487_v26  ;;  %25080 = vst [vmem:[#allocation36_spill] sm:$0xff] %v21491_v52  ;;  %v21513_v47 = vsub.s32 %v16313_v9, %v20204_v10  ;;  %v21521_v46 = vsub.s32 %v16306_v32, %v20204_v10  ;;  %v21524_v56 = vsub.s32 %v16362_v11, %v20204_v10  ;;  %v16376_v37 = vadd.s32 4294967200, %v21357_v13  ;;  %v25092_v9 = vld [vmem:[#allocation14_spill] sm:$0xff]  ;;  %v25094_v26 = vld [vmem:[#allocation15_spill] sm:$0xff] }
 0x69e   : > { %v21461_v61 = vpop.xlane.xlu0 %5138  ;;  %25081 = vst [vmem:[#allocation37_spill] sm:$0xff] %v21495_v15  ;;  %25082 = vst [vmem:[#allocation38_spill] sm:$0xff] %v21499_v8  ;;  %v21533_v15 = vadd.f32 %v20232_v12, %v25092_v9  ;;  %v21555_v9 = vadd.f32 %v20232_v12, %v21321_v59  ;;  %v21577_v59 = vadd.f32 %v20232_v12, %v21339_v50 }
 0x69f   : > { %25083 = vst [vmem:[#allocation39_spill] sm:$0xff] %v21504_v2  ;;  %25084 = vst [vmem:[#allocation40_spill] sm:$0xff] %v21508_v55  ;;  %v6820_v1 = vrot.slane %v21365_v63, %v20282_v16  ;;  %v21622_v58 = vadd.f32 %v20232_v12, %v21351_v14 }
 0x6a0   : > { %25085 = vst [vmem:[#allocation41_spill] sm:$0xff] %v21513_v47  ;;  %25088 = vst [vmem:[#allocation43_spill] sm:$0xff] %v21521_v46  ;;  %v25115_v46 = vld [vmem:[#allocation7_spill] sm:$0xff]  ;;  %v25118_v47 = vld [vmem:[#allocation10_spill] sm:$0xff] }
 0x6a1   : > { %16021 = vperm.xlu1 %18483, %v11498_v25   ;;  %v4362_v25 = vmax.f32 %v4224_v19, 0.0  ;;  %v21438_v19 = vmul.f32 %v21283_v45, %v4364_v48  ;;  %25089 = vst [vmem:[#allocation44_spill] sm:$0xff] %v21524_v56  ;;  %25093 = vst [vmem:[#allocation46_spill] sm:$0xff] %v21533_v15  ;;  %v25098_v56 = vld [vmem:[#allocation17_spill] sm:$0xff] }
 0x6a2   : > { %v5145_v11 = vpop.xlane.xlu0 %5144  ;;  %25107 = vst [vmem:[#allocation51_spill] sm:$0xff] %v21577_v59  ;;  %v21626_v59 = vadd.f32 %v20232_v12, %v21353_v44 }
 0x6a3   : > { %v21424_v43 = vmul.f32 %v21283_v45, %v4362_v25  ;;  %25071 = vst [vmem:[#allocation27_spill] sm:$0xff] %v21438_v19  ;;  %v21483_v25 = vadd.f32 %v20232_v12, %v21253_v36  ;;  %v16327_v36 = vadd.s32 4294967256, %v21357_v13  ;;  %v7028_v19 = vrot.slane %v21396_v42, %v25115_v46 }
 0x6a4   : > { %16042 = vperm.xlu0 %18482, %v11841_v5   ;;  %v21399_v5 = vmul.f32 %v21283_v45, %v4358_v31  ;;  %v21459_v31 = vpop.permute.xlu1 %15910  ;;  %v21469_v45 = vsub.s32 %v16348_v20, %v20204_v10  ;;  %v21518_v20 = vadd.f32 %v20232_v12, %v25086_v49  ;;  %v21537_v49 = vadd.f32 %v20232_v12, %v25094_v26 }
 0x6a5   : > { %25069 = vst [vmem:[#allocation25_spill] sm:$0xff] %v21424_v43  ;;  %25074 = vst [vmem:[#allocation30_spill] sm:$0xff] %v21459_v31  ;;  %v25090_v31 = vld [vmem:[#allocation13_spill] sm:$0xff]  ;;  %v21558_v26 = vsub.s32 %v16327_v36, %v20204_v10  ;;  %v21580_v36 = vsub.s32 %v16376_v37, %v20204_v10  ;;  %v6804_v37 = vrot.slane %v21365_v63, %v25115_v46 }
 0x6a6   : > { %25064 = vst [vmem:[#allocation20_spill] sm:$0xff] %v21399_v5  ;;  %25076 = vst [vmem:[#allocation32_spill] sm:$0xff] %v21469_v45  ;;  %v21529_v2 = vadd.f32 %v20232_v12, %v25090_v31  ;;  %v21547_v45 = vadd.f32 %v20232_v12, %v25098_v56  ;;  %v21551_v31 = vadd.f32 %v20232_v12, %v21319_v28 }
 0x6a7   : > { %25078 = vst [vmem:[#allocation34_spill] sm:$0xff] %v21483_v25  ;;  %25087 = vst [vmem:[#allocation42_spill] sm:$0xff] %v21518_v20  ;;  %v25096_v20 = vld [vmem:[#allocation16_spill] sm:$0xff]  ;;  %v21570_v56 = vadd.f32 %v20232_v12, %v21337_v17  ;;  %v21573_v28 = vsub.s32 %v16320_v34, %v20204_v10  ;;  %v25112_v17 = vld [vmem:[#allocation3_spill] sm:$0xff]  ;;  %v21632_v5 = vadd.f32 %v20232_v12, %v21389_v0 }
 0x6a8   : > { %v21510_v48 = vpop.xlane.xlu1 %5129  ;;  %25091 = vst [vmem:[#allocation45_spill] sm:$0xff] %v21529_v2  ;;  %25095 = vst [vmem:[#allocation47_spill] sm:$0xff] %v21537_v49  ;;  %v21541_v32 = vadd.f32 %v20232_v12, %v25096_v20  ;;  %v21562_v20 = vadd.f32 %v20232_v12, %v21331_v40  ;;  %v25109_v40 = vld [vmem:[#allocation11_spill] sm:$0xff]  ;;  %v25113_v34 = vld [vmem:[#allocation5_spill] sm:$0xff]  ;;  %v7016_v33 = vrot.slane %v21396_v42, %v25112_v17 }
 0x6a9   : > { %25099 = vst [vmem:[#allocation49_spill] sm:$0xff] %v21547_v45  ;;  %25100 = vst [vmem:[#allocation12_spill] sm:$0xff] %v21551_v31  ;;  %v4616_v31 = vmul.f32 %v25109_v40, %v4482_v38  ;;  %v25117_v38 = vld [vmem:[#allocation9_spill] sm:$0xff]  ;;  %v7020_v23 = vrot.slane %v21396_v42, %v25113_v34  ;;  %v16390_v45 = vadd.s32 4294967184, %v21357_v13  ;;  %v21641_v0 = vadd.f32 %v20232_v12, %v21461_v61 }
 0x6aa   : > { %25097 = vst [vmem:[#allocation48_spill] sm:$0xff] %v21541_v32  ;;  %25101 = vst [vmem:[#allocation13_spill] sm:$0xff] %v21555_v9  ;;  %v21566_v32 = vadd.f32 %v20232_v12, %v21333_v3  ;;  %v21584_v3 = vpop.permute.xlu0 %15934  ;;  %v7036_v24 = vrot.slane %v21396_v42, %v25117_v38  ;;  %v16334_v9 = vadd.s32 4294967248, %v21357_v13 }
 0x6ab   : > { %25102 = vst [vmem:[#allocation14_spill] sm:$0xff] %v21558_v26  ;;  %25103 = vst [vmem:[#allocation15_spill] sm:$0xff] %v21562_v20  ;;  %v4623_v20 = vmul.f32 %v25109_v40, %v4489_v53  ;;  %v25114_v26 = vld [vmem:[#allocation6_spill] sm:$0xff]  ;;  %v4878_v14 = vadd.f32 %v21373_v22, %v4616_v31  ;;  %v11891_v55 = vcombine.low %v7016_v33, %v7020_v23 }
 0x6ac   : > { %25104 = vst [vmem:[#allocation16_spill] sm:$0xff] %v21566_v32  ;;  %25105 = vst [vmem:[#allocation17_spill] sm:$0xff] %v21570_v56  ;;  %v21586_v15 = vpop.permute.xlu1 %15919  ;;  %v6792_v56 = vrot.slane %v21365_v63, %v25112_v17  ;;  %v6800_v50 = vrot.slane %v21365_v63, %v25114_v26  ;;  %v7024_v41 = vrot.slane %v21396_v42, %v25114_v26  ;;  %v16341_v32 = vadd.s32 4294967240, %v21357_v13 }
 0x6ad   : > { %25106 = vst [vmem:[#allocation50_spill] sm:$0xff] %v21573_v28  ;;  %25108 = vst [vmem:[#allocation52_spill] sm:$0xff] %v21580_v36  ;;  %v6796_v28 = vrot.slane %v21365_v63, %v25113_v34  ;;  %v25116_v36 = vld [vmem:[#allocation8_spill] sm:$0xff]  ;;  %v21652_v31 = vsub.s32 %v16334_v9, %v20204_v10  ;;  %v21655_v33 = vsub.s32 %v16390_v45, %v20204_v10 }
 0x6ae   : > { %25110 = vst [vmem:[#allocation11_spill] sm:$0xff] %v21584_v3  ;;  %25111 = vst [vmem:[#allocation53_spill] sm:$0xff] %v21586_v15  ;;  %v6808_v53 = vrot.slane %v21365_v63, %v25116_v36  ;;  %v6812_v3 = vrot.slane %v21365_v63, %v25117_v38  ;;  %v6816_v15 = vrot.slane %v21365_v63, %v25118_v47  ;;  %v5151_v27 = vpop.xlane.xlu0 %5150 }
 0x6af   : > { %v7032_v43 = vrot.slane %v21396_v42, %v25116_v36  ;;  %v7040_v63 = vrot.slane %v21396_v42, %v25118_v47  ;;  %25119 = vst [vmem:[#allocation3_spill] sm:$0xff] %v21622_v58  ;;  %25120 = vst [vmem:[#allocation5_spill] sm:$0xff] %v21626_v59  ;;  %v4885_v42 = vadd.f32 %v21421_v30, %v4623_v20 }
 0x6b0   : > { %25121 = vst [vmem:[#allocation54_spill] sm:$0xff] %v21632_v5  ;;  %v21637_v58 = vpop.permute.xlu1 %15916  ;;  %v11548_v49 = vcombine.low %v6792_v56, %v6796_v28  ;;  %v11549_v44 = vcombine.low %v6800_v50, %v6804_v37  ;;  %v11550_v59 = vcombine.low %v6808_v53, %v6812_v3  ;;  %v11551_v2 = vcombine.low %v6816_v15, %v6820_v1 }
 0x6b1   : > { %25122 = vst [vmem:[#allocation55_spill] sm:$0xff] %v21637_v58  ;;  %v11892_v8 = vcombine.low %v7024_v41, %v7028_v19  ;;  %v11893_v52 = vcombine.low %v7032_v43, %v7036_v24  ;;  %v11894_v25 = vcombine.low %v7040_v63, %v7044_v35  ;;  %25123 = vst [vmem:[#allocation56_spill] sm:$0xff] %v21641_v0  ;;  %v16355_v24 = vadd.s32 4294967224, %v21357_v13 }
 0x6b2   : > { %v21644_v5 = vadd.f32 %v20232_v12, %v5145_v11  ;;  %v21646_v30 = vpop.permute.xlu0 %15940  ;;  %v21649_v22 = vsub.s32 %v16341_v32, %v20204_v10  ;;  %25127 = vst [vmem:[#allocation60_spill] sm:$0xff] %v21652_v31  ;;  %25128 = vst [vmem:[#allocation61_spill] sm:$0xff] %v21655_v33  ;;  %v5257_v35 = vsel %vm695_vm0, %v4885_v42, 0.0  ;;  %v5236_v43 = vsel %vm695_vm0, %v4878_v14, 0.0 }
 0x6b3   : > { %25125 = vst [vmem:[#allocation58_spill] sm:$0xff] %v21646_v30  ;;  %v11558_v19 = vrot.slane %v11548_v49, %v20302_v57  ;;  %v11565_v23 = vrot.slane %v11549_v44, %v20302_v57  ;;  %v11572_v1 = vrot.slane %v11550_v59, %v20302_v57  ;;  %v11579_v61 = vrot.slane %v11551_v2, %v20302_v57  ;;  %v4491_v44 = vld [vmem:[%s19652_s14 + $0x3e0] sm:$0xff] }
 0x6b4   : > { %25124 = vst [vmem:[#allocation57_spill] sm:$0xff] %v21644_v5  ;;  %25126 = vst [vmem:[#allocation59_spill] sm:$0xff] %v21649_v22  ;;  %v5136_v41 = vpop.xlane.xlu1 %5135  ;;  %v11901_v15 = vrot.slane %v11891_v55, %v20302_v57  ;;  %v11908_v45 = vrot.slane %v11892_v8, %v20302_v57  ;;  %v11915_v32 = vrot.slane %v11893_v52, %v20302_v57  ;;  %v16369_v53 = vadd.s32 4294967208, %v21357_v13 }
 0x6b5   : > { %v11922_v11 = vrot.slane %v11894_v25, %v20302_v57  ;;  %v6856_v20 = vrot.slane %v21369_v21, %v25112_v17  ;;  %v6860_v49 = vrot.slane %v21369_v21, %v25113_v34  ;;  %v6864_v56 = vrot.slane %v21369_v21, %v25114_v26 }
 0x6b6   : > { %v5157_v9 = vpop.xlane.xlu0 %5156  ;;  %v6868_v2 = vrot.slane %v21369_v21, %v25115_v46  ;;  %v6872_v52 = vrot.slane %v21369_v21, %v25116_v36  ;;  %v6876_v25 = vrot.slane %v21369_v21, %v25117_v38  ;;  %v6880_v8 = vrot.slane %v21369_v21, %v25118_v47 }
 0x6b7   : > { %v6884_v55 = vrot.slane %v21369_v21, %v20282_v16  ;;  %v21686_v28 = vadd.f32 %v20232_v12, %v21510_v48  ;;  %v21689_v59 = vadd.f32 %v20232_v12, %v5151_v27  ;;  %v21692_v3 = vadd.f32 %v20232_v12, %v5136_v41 }
 0x6b8   : > { %v21695_v50 = vsub.s32 %v16355_v24, %v20204_v10  ;;  %v21698_v37 = vadd.f32 %v20232_v12, %v5157_v9  ;;  %v11580_v63 = vcombine.low %v11558_v19, %v11565_v23  ;;  %v11581_v21 = vcombine.low %v11572_v1, %v11579_v61  ;;  %v21701_v42 = vpop.permute.xlu1 %15925 }
 0x6b9   : > { %25129 = vst [vmem:[#allocation62_spill] sm:$0xff] %v21686_v28  ;;  %25130 = vst [vmem:[#allocation63_spill] sm:$0xff] %v21689_v59  ;;  %v11923_v48 = vcombine.low %v11901_v15, %v11908_v45  ;;  %v11924_v14 = vcombine.low %v11915_v32, %v11922_v11  ;;  %v11646_v27 = vcombine.low %v6856_v20, %v6860_v49 }
 0x6ba   : > { %25131 = vst [vmem:[#allocation64_spill] sm:$0xff] %v21692_v3  ;;  %25132 = vst [vmem:[#allocation65_spill] sm:$0xff] %v21695_v50  ;;  %v11648_v41 = vcombine.low %v6872_v52, %v6876_v25  ;;  %v11649_v30 = vcombine.low %v6880_v8, %v6884_v55  ;;  %v7080_v24 = vrot.slane %v21407_v6, %v25112_v17 }
 0x6bb   : > { %25133 = vst [vmem:[#allocation66_spill] sm:$0xff] %v21698_v37  ;;  %25134 = vst [vmem:[#allocation67_spill] sm:$0xff] %v21701_v42  ;;  %v7084_v9 = vrot.slane %v21407_v6, %v25113_v34  ;;  %v7088_v19 = vrot.slane %v21407_v6, %v25114_v26  ;;  %v7092_v23 = vrot.slane %v21407_v6, %v25115_v46 }
 0x6bc   : > { %v7096_v1 = vrot.slane %v21407_v6, %v25116_v36  ;;  %v7100_v61 = vrot.slane %v21407_v6, %v25117_v38  ;;  %v21718_v15 = vsub.s32 %v16369_v53, %v20204_v10  ;;  %v11588_v45 = vrot.slane %v11580_v63, %v20302_v57  ;;  %v21732_v53 = vpop.permute.xlu1 %15922 }
 0x6bd   : > { %v11595_v32 = vrot.slane %v11581_v21, %v20302_v57  ;;  %v4625_v11 = vmul.f32 %v25109_v40, %v4491_v44  ;;  %v11931_v20 = vrot.slane %v11923_v48, %v20302_v57  ;;  %v11938_v49 = vrot.slane %v11924_v14, %v20302_v57  ;;  %25136 = vst [vmem:[#allocation69_spill] sm:$0xff] %v21732_v53  ;;  %v4493_v44 = vld [vmem:[%s19652_s14 + $0x3f0] sm:$0xff]  ;;  %v21756_v53 = vpop.permute.xlu0 %15946 }
 0x6be   : > { %25135 = vst [vmem:[#allocation68_spill] sm:$0xff] %v21718_v15  ;;  %v11670_v25 = vrot.slane %v11648_v41, %v20302_v57  ;;  %v11677_v8 = vrot.slane %v11649_v30, %v20302_v57  ;;  %v7104_v55 = vrot.slane %v21407_v6, %v25118_v47  ;;  %v7108_v63 = vrot.slane %v21407_v6, %v20282_v16 }
 0x6bf   : > { %v11989_v21 = vcombine.low %v7080_v24, %v7084_v9  ;;  %v11990_v48 = vcombine.low %v7088_v19, %v7092_v23  ;;  %v11991_v14 = vcombine.low %v7096_v1, %v7100_v61  ;;  %v6928_v30 = vrot.slane %v21377_v18, %v25114_v26  ;;  %25137 = vst [vmem:[#allocation70_spill] sm:$0xff] %v21756_v53 }
 0x6c0   : > { %v6932_v41 = vrot.slane %v21377_v18, %v25115_v46  ;;  %v6936_v6 = vrot.slane %v21377_v18, %v25116_v36  ;;  %v6940_v24 = vrot.slane %v21377_v18, %v25117_v38  ;;  %v6944_v9 = vrot.slane %v21377_v18, %v25118_v47  ;;  %v5142_v58 = vpop.xlane.xlu1 %5141 }
 0x6c1   : > { %v6948_v19 = vrot.slane %v21377_v18, %v20282_v16  ;;  %v11596_v23 = vcombine.low %v11588_v45, %v11595_v32  ;;  %v11939_v1 = vcombine.low %v11931_v20, %v11938_v49  ;;  %v4887_v61 = vadd.f32 %v21435_v62, %v4625_v11 }
 0x6c2   : > { %v21760_v28 = vcombine.low %v11670_v25, %v11677_v8  ;;  %v4627_v33 = vmul.f32 %v25109_v40, %v4493_v44  ;;  %v11992_v50 = vcombine.low %v7104_v55, %v7108_v63  ;;  %v12006_v45 = vrot.slane %v11990_v48, %v20302_v57 }
 0x6c3   : > { %5258 = vadd.xlane.f32.xlu0 %v5257_v35  ;;  %v11647_v35 = vcombine.low %v6864_v56, %v6868_v2  ;;  %v11656_v2 = vrot.slane %v11646_v27, %v20302_v57  ;;  %v6920_v27 = vrot.slane %v21377_v18, %v25112_v17  ;;  %v12013_v62 = vrot.slane %v11991_v14, %v20302_v57 }
 0x6c4   : > { %v11746_v11 = vcombine.low %v6936_v6, %v6940_v24  ;;  %v11747_v20 = vcombine.low %v6944_v9, %v6948_v19  ;;  %v7144_v49 = vrot.slane %v21428_v7, %v25112_v17  ;;  %v7160_v25 = vrot.slane %v21428_v7, %v25116_v36 }
 0x6c5   : > { %5237 = vadd.xlane.f32.xlu1 %v5236_v43  ;;  %v4484_v43 = vld [vmem:[%s19652_s14 + $0x3a8] sm:$0xff]  ;;  %v11663_v52 = vrot.slane %v11647_v35, %v20302_v57  ;;  %v6924_v35 = vrot.slane %v21377_v18, %v25113_v34  ;;  %v11999_v18 = vrot.slane %v11989_v21, %v20302_v57  ;;  %v7164_v8 = vrot.slane %v21428_v7, %v25117_v38 }
 0x6c6   : > { %v4618_v56 = vmul.f32 %v25109_v40, %v4484_v43  ;;  %v4486_v43 = vld [vmem:[%s19652_s14 + $0x3b8] sm:$0xff]  ;;  %v7168_v55 = vrot.slane %v21428_v7, %v25118_v47  ;;  %v7172_v63 = vrot.slane %v21428_v7, %v20282_v16  ;;  %v12020_v21 = vrot.slane %v11992_v50, %v20302_v57 }
 0x6c7   : > { %v21758_v3 = vcombine.low %v11656_v2, %v11663_v52  ;;  %v4620_v15 = vmul.f32 %v25109_v40, %v4486_v43  ;;  %v11744_v32 = vcombine.low %v6920_v27, %v6924_v35  ;;  %v7152_v40 = vrot.slane %v21428_v7, %v25114_v26  ;;  %v5163_v52 = vpop.xlane.xlu0 %5162  ;;  %v21788_v43 = vpop.permute.xlu1 %15931 }
 0x6c8   : > { %v4880_v42 = vadd.f32 %v21381_v51, %v4618_v56  ;;  %v11745_v51 = vcombine.low %v6928_v30, %v6932_v41  ;;  %v7148_v56 = vrot.slane %v21428_v7, %v25113_v34  ;;  %v7156_v2 = vrot.slane %v21428_v7, %v25115_v46  ;;  %25138 = vst [vmem:[#allocation71_spill] sm:$0xff] %v21788_v43 }
 0x6c9   : > { %v21784_v48 = vcombine.low %v11999_v18, %v12006_v45  ;;  %v4889_v14 = vadd.f32 %v21449_v54, %v4627_v33  ;;  %v4882_v44 = vadd.f32 %v21392_v60, %v4620_v15  ;;  %v11754_v27 = vrot.slane %v11744_v32, %v20302_v57 }
 0x6ca   : > { %v11761_v35 = vrot.slane %v11745_v51, %v20302_v57  ;;  %v11768_v30 = vrot.slane %v11746_v11, %v20302_v57  ;;  %v11775_v41 = vrot.slane %v11747_v20, %v20302_v57  ;;  %v21795_v7 = vadd.f32 %v20232_v12, %v5142_v58 }
 0x6cb   : > { %v21798_v50 = vadd.f32 %v20232_v12, %v5163_v52  ;;  %v21801_v54 = vsel %vm695_vm0, %v4887_v61, 0.0  ;;  %v21804_v60 = vsel %vm695_vm0, %v4880_v42, 0.0  ;;  %v12087_v33 = vcombine.low %v7144_v49, %v7148_v56  ;;  %v21832_v11 = vpop.permute.xlu1 %15928 }
 0x6cc   : > { %25139 = vst [vmem:[#allocation72_spill] sm:$0xff] %v21795_v7  ;;  %v12088_v15 = vcombine.low %v7152_v40, %v7156_v2  ;;  %v12089_v6 = vcombine.low %v7160_v25, %v7164_v8  ;;  %v12090_v24 = vcombine.low %v7168_v55, %v7172_v63  ;;  %v21811_v19 = vsel %vm695_vm0, %v4889_v14, 0.0  ;;  %25142 = vst [vmem:[#allocation75_spill] sm:$0xff] %v21832_v11 }
 0x6cd   : > { %25140 = vst [vmem:[#allocation73_spill] sm:$0xff] %v21798_v50  ;;  %v21820_v61 = vcombine.low %v11754_v27, %v11761_v35  ;;  %v21822_v18 = vcombine.low %v11768_v30, %v11775_v41  ;;  %v7208_v45 = vrot.slane %v21442_v29, %v25112_v17  ;;  %v7212_v32 = vrot.slane %v21442_v29, %v25113_v34 }
 0x6ce   : > { %v7216_v51 = vrot.slane %v21442_v29, %v25114_v26  ;;  %v12097_v20 = vrot.slane %v12087_v33, %v20302_v57  ;;  %v12104_v49 = vrot.slane %v12088_v15, %v20302_v57  ;;  %v12111_v56 = vrot.slane %v12089_v6, %v20302_v57 }
 0x6cf   : > { %v12118_v40 = vrot.slane %v12090_v24, %v20302_v57  ;;  %v7224_v2 = vrot.slane %v21442_v29, %v25116_v36  ;;  %v7228_v52 = vrot.slane %v21442_v29, %v25117_v38  ;;  %v7232_v25 = vrot.slane %v21442_v29, %v25118_v47  ;;  %v21858_v30 = vpop.xlane.xlu1 %5147 }
 0x6d0   : > { %v7236_v8 = vrot.slane %v21442_v29, %v20282_v16  ;;  %v7272_v55 = vrot.slane %v21453_v39, %v25112_v17  ;;  %v7276_v63 = vrot.slane %v21453_v39, %v25113_v34  ;;  %v7284_v14 = vrot.slane %v21453_v39, %v25115_v46 }
 0x6d1   : > { %v7288_v35 = vrot.slane %v21453_v39, %v25116_v36  ;;  %v16383_v41 = vadd.s32 4294967192, %v21357_v13  ;;  %v7296_v15 = vrot.slane %v21453_v39, %v25118_v47  ;;  %v7300_v6 = vrot.slane %v21453_v39, %v20282_v16 }
 0x6d2   : > { %v11784_v24 = vrot.slane %v21820_v61, %v20302_v57  ;;  %v12188_v42 = vcombine.low %v7232_v25, %v7236_v8  ;;  %v12283_v9 = vcombine.low %v7272_v55, %v7276_v63  ;;  %v7340_v61 = vrot.slane %v21475_v4, %v25113_v34 }
 0x6d3   : > { %v12286_v11 = vcombine.low %v7296_v15, %v7300_v6 }
 0x6d4   : > { %v12216_v8 = vrot.slane %v12188_v42, %v20302_v57  ;;  %v12293_v55 = vrot.slane %v12283_v9, %v20302_v57 }
 0x6d5   : > { %v12314_v42 = vrot.slane %v12286_v11, %v20302_v57 }
 0x6d6   : > { %16027 = vperm.xlu1 %18483, %v11596_v23   ;;  %v21814_v23 = vsel %vm695_vm0, %v4882_v44, 0.0  ;;  %v12185_v44 = vcombine.low %v7208_v45, %v7212_v32  ;;  %v11791_v45 = vrot.slane %v21822_v18, %v20302_v57  ;;  %v12119_v32 = vcombine.low %v12097_v20, %v12104_v49 }
 0x6d7   : > { %25141 = vst [vmem:[#allocation74_spill] sm:$0xff] %v21814_v23  ;;  %v7344_v18 = vrot.slane %v21475_v4, %v25114_v26  ;;  %v7348_v20 = vrot.slane %v21475_v4, %v25115_v46  ;;  %v7352_v49 = vrot.slane %v21475_v4, %v25116_v36  ;;  %v22027_v23 = vpop.permute.xlu0 %15952 }
 0x6d9   : > { %16048 = vperm.xlu0 %18482, %v11939_v1   ;;  %v21816_v1 = vcombine.low %v12013_v62, %v12020_v21  ;;  %v7220_v62 = vrot.slane %v21442_v29, %v25115_v46  ;;  %v7280_v21 = vrot.slane %v21453_v39, %v25114_v26  ;;  %v7292_v29 = vrot.slane %v21453_v39, %v25117_v38 }
 0x6da   : > { %v7336_v39 = vrot.slane %v21475_v4, %v25112_v17  ;;  %v12382_v9 = vcombine.low %v7344_v18, %v7348_v20 }
 0x6db   : > { %v12186_v27 = vcombine.low %v7216_v51, %v7220_v62  ;;  %v12036_v33 = vrot.slane %v21816_v1, %v20302_v57  ;;  %v12120_v51 = vcombine.low %v12111_v56, %v12118_v40  ;;  %v12187_v62 = vcombine.low %v7224_v2, %v7228_v52  ;;  %v21889_v52 = vpop.permute.xlu1 %15937 }
 0x6dc   : > { %v12284_v58 = vcombine.low %v7280_v21, %v7284_v14  ;;  %v12195_v1 = vrot.slane %v12185_v44, %v20302_v57  ;;  %v12285_v43 = vcombine.low %v7288_v35, %v7292_v29  ;;  %v7356_v56 = vrot.slane %v21475_v4, %v25117_v38  ;;  %25143 = vst [vmem:[#allocation76_spill] sm:$0xff] %v21889_v52  ;;  %v25144_v21 = vld [vmem:[#allocation34_spill] sm:$0xff] }
 0x6dd   : > { %v12202_v53 = vrot.slane %v12186_v27, %v20302_v57  ;;  %v7360_v40 = vrot.slane %v21475_v4, %v25118_v47  ;;  %v7364_v2 = vrot.slane %v21475_v4, %v20282_v16  ;;  %v12209_v25 = vrot.slane %v12187_v62, %v20302_v57 }
 0x6de   : > { %v12300_v63 = vrot.slane %v12284_v58, %v20302_v57  ;;  %v7400_v14 = vrot.slane %v25144_v21, %v25112_v17  ;;  %v7404_v44 = vrot.slane %v25144_v21, %v25113_v34  ;;  %v7408_v27 = vrot.slane %v25144_v21, %v25114_v26 }
 0x6df   : > { %v7412_v4 = vrot.slane %v25144_v21, %v25115_v46  ;;  %v12307_v35 = vrot.slane %v12285_v43, %v20302_v57  ;;  %v12381_v29 = vcombine.low %v7336_v39, %v7340_v61  ;;  %v12127_v58 = vrot.slane %v12119_v32, %v20302_v57  ;;  %v21907_v52 = vpop.xlane.xlu1 %5153 }
 0x6e0   : > { %v12134_v15 = vrot.slane %v12120_v51, %v20302_v57  ;;  %v12383_v6 = vcombine.low %v7352_v49, %v7356_v56  ;;  %v12384_v62 = vcombine.low %v7360_v40, %v7364_v2  ;;  %25145 = vst [vmem:[#allocation34_spill] sm:$0xff] %v21907_v52  ;;  %v7416_v7 = vrot.slane %v25144_v21, %v25116_v36 }
 0x6e1   : > { %v7420_v31 = vrot.slane %v25144_v21, %v25117_v38  ;;  %v7424_v43 = vrot.slane %v25144_v21, %v25118_v47  ;;  %v7428_v11 = vrot.slane %v25144_v21, %v20282_v16  ;;  %v21917_v39 = vcombine.low %v12195_v1, %v12202_v53 }
 0x6e2   : > { %v21919_v32 = vcombine.low %v12209_v25, %v12216_v8  ;;  %v12479_v51 = vcombine.low %v7400_v14, %v7404_v44  ;;  %v12480_v61 = vcombine.low %v7408_v27, %v7412_v4  ;;  %v21921_v18 = vcombine.low %v12293_v55, %v12300_v63 }
 0x6e3   : > { %v21923_v20 = vcombine.low %v12307_v35, %v12314_v42  ;;  %v12391_v49 = vrot.slane %v12381_v29, %v20302_v57  ;;  %v12398_v56 = vrot.slane %v12382_v9, %v20302_v57  ;;  %v25146_v40 = vrot.slane %v21760_v28, %v20302_v57  ;;  %v21953_v27 = vpop.permute.xlu1 %15943 }
 0x6e4   : > { %v25147_v2 = vrot.slane %v21758_v3, %v20302_v57  ;;  %v25148_v1 = vrot.slane %v21784_v48, %v20302_v57  ;;  %v12405_v8 = vrot.slane %v12383_v6, %v20302_v57  ;;  %v12412_v55 = vrot.slane %v12384_v62, %v20302_v57  ;;  %25152 = vst [vmem:[#allocation80_spill] sm:$0xff] %v21953_v27 }
 0x6e5   : > { %v21943_v63 = vsub.s32 %v16383_v41, %v20204_v10  ;;  %v21945_v21 = vcombine.low %v11784_v24, %v11791_v45  ;;  %v12481_v28 = vcombine.low %v7416_v7, %v7420_v31  ;;  %v12482_v14 = vcombine.low %v7424_v43, %v7428_v11  ;;  %v25153_v45 = vld [vmem:[#allocation36_spill] sm:$0xff] }
 0x6e6   : > { %v21933_v53 = vcombine.low %v25147_v2, %v25146_v40  ;;  %v21938_v25 = vcombine.low %v25148_v1, %v12036_v33  ;;  %v21947_v44 = vcombine.low %v12127_v58, %v12134_v15  ;;  %v12489_v48 = vrot.slane %v12479_v51, %v20302_v57 }
 0x6e7   : > { %25149 = vst [vmem:[#allocation77_spill] sm:$0xff] %v21943_v63  ;;  %25150 = vst [vmem:[#allocation78_spill] sm:$0xff] %v21945_v21  ;;  %v12496_v33 = vrot.slane %v12480_v61, %v20302_v57  ;;  %v21961_v7 = vcombine.low %v12391_v49, %v12398_v56  ;;  %v21963_v24 = vcombine.low %v12405_v8, %v12412_v55  ;;  %v21985_v61 = vpop.xlane.xlu1 %5159  ;;  %v25155_v49 = vld [vmem:[#allocation38_spill] sm:$0xff] }
 0x6e8   : > { %25151 = vst [vmem:[#allocation79_spill] sm:$0xff] %v21947_v44  ;;  %v7464_v35 = vrot.slane %v25153_v45, %v25112_v17  ;;  %v7468_v42 = vrot.slane %v25153_v45, %v25113_v34  ;;  %v7472_v29 = vrot.slane %v25153_v45, %v25114_v26  ;;  %v12503_v9 = vrot.slane %v12481_v28, %v20302_v57 }
 0x6e9   : > { %v12510_v58 = vrot.slane %v12482_v14, %v20302_v57  ;;  %v7476_v15 = vrot.slane %v25153_v45, %v25115_v46  ;;  %v7480_v6 = vrot.slane %v25153_v45, %v25116_v36  ;;  %v21977_v62 = vcombine.low %v12489_v48, %v12496_v33  ;;  %25154 = vst [vmem:[#allocation36_spill] sm:$0xff] %v21985_v61  ;;  %v25156_v48 = vld [vmem:[#allocation40_spill] sm:$0xff] }
 0x6ea   : > { %v7484_v43 = vrot.slane %v25153_v45, %v25117_v38  ;;  %v7488_v11 = vrot.slane %v25153_v45, %v25118_v47  ;;  %v7492_v51 = vrot.slane %v25153_v45, %v20282_v16  ;;  %v7528_v56 = vrot.slane %v25155_v49, %v25112_v17  ;;  %25158 = vst [vmem:[#allocation40_spill] sm:$0xff] %v22027_v23 }
 0x6eb   : > { %v7532_v40 = vrot.slane %v25155_v49, %v25113_v34  ;;  %v7536_v2 = vrot.slane %v25155_v49, %v25114_v26  ;;  %v7540_v1 = vrot.slane %v25155_v49, %v25115_v46  ;;  %v7544_v8 = vrot.slane %v25155_v49, %v25116_v36  ;;  %v22021_v21 = vpop.permute.xlu1 %15949 }
 0x6ec   : > { %v7548_v55 = vrot.slane %v25155_v49, %v25117_v38  ;;  %v7552_v28 = vrot.slane %v25155_v49, %v25118_v47  ;;  %v7556_v14 = vrot.slane %v25155_v49, %v20282_v16  ;;  %v7592_v33 = vrot.slane %v25156_v48, %v25112_v17  ;;  %25157 = vst [vmem:[#allocation38_spill] sm:$0xff] %v22021_v21 }
 0x6ed   : > { %v7596_v45 = vrot.slane %v25156_v48, %v25113_v34  ;;  %v7604_v41 = vrot.slane %v25156_v48, %v25115_v46  ;;  %v7608_v31 = vrot.slane %v25156_v48, %v25116_v36  ;;  %v7612_v49 = vrot.slane %v25156_v48, %v25117_v38 }
 0x6ee   : > { %v7616_v3 = vrot.slane %v25156_v48, %v25118_v47  ;;  %v7620_v4 = vrot.slane %v25156_v48, %v20282_v16  ;;  %v12577_v27 = vcombine.low %v7464_v35, %v7468_v42  ;;  %v12578_v63 = vcombine.low %v7472_v29, %v7476_v15 }
 0x6ef   : > { %v12579_v61 = vcombine.low %v7480_v6, %v7484_v43  ;;  %v12580_v22 = vcombine.low %v7488_v11, %v7492_v51  ;;  %v12675_v50 = vcombine.low %v7528_v56, %v7532_v40  ;;  %v12676_v37 = vcombine.low %v7536_v2, %v7540_v1 }
 0x6f0   : > { %v12677_v44 = vcombine.low %v7544_v8, %v7548_v55  ;;  %v12421_v59 = vrot.slane %v21961_v7, %v20302_v57  ;;  %v12428_v5 = vrot.slane %v21963_v24, %v20302_v57  ;;  %v12773_v52 = vcombine.low %v7592_v33, %v7596_v45 }
 0x6f1   : > { %v12512_v35 = vcombine.low %v12503_v9, %v12510_v58  ;;  %v12519_v42 = vrot.slane %v21977_v62, %v20302_v57  ;;  %v12775_v29 = vcombine.low %v7608_v31, %v7612_v49  ;;  %v12776_v15 = vcombine.low %v7616_v3, %v7620_v4  ;;  %v22039_v58 = vpop.xlane.xlu1 %5165  ;;  %v5169_v31 = vpop.xlane.xlu0 %5168 }
 0x6f2   : > { %v12587_v6 = vrot.slane %v12577_v27, %v20302_v57  ;;  %v12594_v43 = vrot.slane %v12578_v63, %v20302_v57  ;;  %v12601_v11 = vrot.slane %v12579_v61, %v20302_v57  ;;  %v12608_v7 = vrot.slane %v12580_v22, %v20302_v57  ;;  %25159 = vst [vmem:[#allocation81_spill] sm:$0xff] %v22039_v58  ;;  %v25160_v63 = vld [vmem:[#allocation45_spill] sm:$0xff] }
 0x6f3   : > { %v12685_v24 = vrot.slane %v12675_v50, %v20302_v57  ;;  %v12699_v51 = vrot.slane %v12677_v44, %v20302_v57  ;;  %v12783_v3 = vrot.slane %v12773_v52, %v20302_v57  ;;  %v7656_v4 = vrot.slane %v25160_v63, %v25112_v17 }
 0x6f4   : > { %v7660_v22 = vrot.slane %v25160_v63, %v25113_v34  ;;  %v12797_v50 = vrot.slane %v12775_v29, %v20302_v57  ;;  %v7664_v44 = vrot.slane %v25160_v63, %v25114_v26  ;;  %v7668_v62 = vrot.slane %v25160_v63, %v25115_v46 }
 0x6f5   : > { %v7676_v52 = vrot.slane %v25160_v63, %v25117_v38  ;;  %v7680_v61 = vrot.slane %v25160_v63, %v25118_v47  ;;  %v7684_v56 = vrot.slane %v25160_v63, %v20282_v16  ;;  %v12526_v40 = vrot.slane %v12512_v35, %v20302_v57 }
 0x6f6   : > { %v12609_v2 = vcombine.low %v12587_v6, %v12594_v43  ;;  %v12610_v1 = vcombine.low %v12601_v11, %v12608_v7  ;;  %v22063_v55 = vadd.f32 %v20232_v12, %v5169_v31  ;;  %v25165_v45 = vrot.slane %v21923_v20, %v20302_v57  ;;  %v4488_v11 = vld [vmem:[%s19652_s14 + $0x3c8] sm:$0xff] }
 0x6f7   : > { %v12872_v6 = vcombine.low %v7664_v44, %v7668_v62  ;;  %v12874_v43 = vcombine.low %v7680_v61, %v7684_v56  ;;  %v22090_v7 = vcombine.low %v12519_v42, %v12526_v40  ;;  %v25171_v40 = vld [vmem:[#allocation49_spill] sm:$0xff] }
 0x6f8   : > { %5264 = vadd.xlane.f32.xlu0 %v21801_v54  ;;  %v7600_v54 = vrot.slane %v25156_v48, %v25114_v26  ;;  %25161 = vst [vmem:[#allocation45_spill] sm:$0xff] %v22063_v55  ;;  %v25164_v48 = vrot.slane %v21917_v39, %v20302_v57  ;;  %v12617_v20 = vrot.slane %v12609_v2, %v20302_v57 }
 0x6f9   : > { %25168 = vst [vmem:[#allocation84_spill] sm:$0xff] %v22090_v7  ;;  %v12902_v44 = vrot.slane %v12874_v43, %v20302_v57  ;;  %v7784_v2 = vrot.slane %v25171_v40, %v25112_v17 }
 0x6fa   : > { %5243 = vadd.xlane.f32.xlu1 %v21804_v60  ;;  %v12678_v60 = vcombine.low %v7552_v28, %v7556_v14  ;;  %v12774_v0 = vcombine.low %v7600_v54, %v7604_v41  ;;  %v12692_v41 = vrot.slane %v12676_v37, %v20302_v57  ;;  %v12804_v37 = vrot.slane %v12776_v15, %v20302_v57  ;;  %v22087_v15 = vpop.permute.xlu1 %15955 }
 0x6fb   : > { %v22067_v28 = vadd.f32 %v20232_v12, %v21858_v30  ;;  %v25163_v14 = vrot.slane %v21919_v32, %v20302_v57  ;;  %v25166_v54 = vrot.slane %v21921_v18, %v20302_v57  ;;  %25167 = vst [vmem:[#allocation83_spill] sm:$0xff] %v22087_v15  ;;  %v12871_v32 = vcombine.low %v7656_v4, %v7660_v22 }
 0x6fc   : > { %v12706_v9 = vrot.slane %v12678_v60, %v20302_v57  ;;  %v12790_v27 = vrot.slane %v12774_v0, %v20302_v57  ;;  %v7672_v0 = vrot.slane %v25160_v63, %v25116_v36  ;;  %v12707_v8 = vcombine.low %v12685_v24, %v12692_v41  ;;  %v22109_v63 = vld [vmem:[%s24850_s8] ss:$0 sm:$0xff] }
 0x6fd   : > { %25162 = vst [vmem:[#allocation82_spill] sm:$0xff] %v22067_v28  ;;  %v22075_v33 = vcombine.low %v25164_v48, %v25163_v14  ;;  %v22083_v49 = vcombine.low %v25166_v54, %v25165_v45  ;;  %v22085_v60 = vcombine.low %v12421_v59, %v12428_v5  ;;  %v12806_v29 = vcombine.low %v12797_v50, %v12804_v37  ;;  %v25169_v5 = vld [vmem:[#allocation47_spill] sm:$0xff] }
 0x6fe   : > { %v12708_v30 = vcombine.low %v12699_v51, %v12706_v9  ;;  %v12805_v35 = vcombine.low %v12783_v3, %v12790_v27  ;;  %v12873_v39 = vcombine.low %v7672_v0, %v7676_v52  ;;  %v12624_v18 = vrot.slane %v12610_v1, %v20302_v57  ;;  %v22112_v22 = vpop.xlane.xlu1 %5171 }
 0x6ff   : > { %v12715_v24 = vrot.slane %v12707_v8, %v20302_v57  ;;  %v7720_v59 = vrot.slane %v25169_v5, %v25112_v17  ;;  %v7724_v41 = vrot.slane %v25169_v5, %v25113_v34  ;;  %v7728_v51 = vrot.slane %v25169_v5, %v25114_v26  ;;  %25170 = vst [vmem:[#allocation47_spill] sm:$0xff] %v22112_v22 }
 0x700   : > { %v7732_v9 = vrot.slane %v25169_v5, %v25115_v46  ;;  %v12722_v42 = vrot.slane %v12708_v30, %v20302_v57  ;;  %v12813_v3 = vrot.slane %v12805_v35, %v20302_v57  ;;  %v12820_v27 = vrot.slane %v12806_v29, %v20302_v57 }
 0x701   : > { %v4622_v4 = vmul.f32 %v22109_v63, %v4488_v11  ;;  %v12881_v31 = vrot.slane %v12871_v32, %v20302_v57  ;;  %v12888_v50 = vrot.slane %v12872_v6, %v20302_v57  ;;  %v12895_v37 = vrot.slane %v12873_v39, %v20302_v57  ;;  %v25175_v39 = vld [vmem:[#allocation20_spill] sm:$0xff] }
 0x702   : > { %v7736_v62 = vrot.slane %v25169_v5, %v25116_v36  ;;  %v7740_v0 = vrot.slane %v25169_v5, %v25117_v38  ;;  %v7744_v52 = vrot.slane %v25169_v5, %v25118_v47  ;;  %v22127_v61 = vcombine.low %v7720_v59, %v7724_v41  ;;  %v22157_v11 = vpop.permute.xlu1 %15961 }
 0x703   : > { %v12970_v56 = vcombine.low %v7728_v51, %v7732_v9  ;;  %v7788_v1 = vrot.slane %v25171_v40, %v25113_v34  ;;  %v7792_v8 = vrot.slane %v25171_v40, %v25114_v26  ;;  %v7796_v14 = vrot.slane %v25171_v40, %v25115_v46  ;;  %25176 = vst [vmem:[#allocation20_spill] sm:$0xff] %v22157_v11  ;;  %v25177_v9 = vld [vmem:[#allocation13_spill] sm:$0xff] }
 0x704   : > { %v7800_v48 = vrot.slane %v25171_v40, %v25116_v36  ;;  %v7804_v45 = vrot.slane %v25171_v40, %v25117_v38  ;;  %v22142_v54 = vcombine.low %v12617_v20, %v12624_v18  ;;  %v22144_v30 = vcombine.low %v12715_v24, %v12722_v42 }
 0x705   : > { %v7808_v35 = vrot.slane %v25171_v40, %v25118_v47  ;;  %v22150_v29 = vcombine.low %v12813_v3, %v12820_v27  ;;  %v22152_v32 = vcombine.low %v12881_v31, %v12888_v50  ;;  %v22154_v6 = vcombine.low %v12895_v37, %v12902_v44 }
 0x706   : > { %25172 = vst [vmem:[#allocation49_spill] sm:$0xff] %v22142_v54  ;;  %25173 = vst [vmem:[#allocation85_spill] sm:$0xff] %v22144_v30  ;;  %v4884_v43 = vadd.f32 %v25175_v39, %v4622_v4  ;;  %v12971_v20 = vcombine.low %v7736_v62, %v7740_v0  ;;  %v12979_v24 = vrot.slane %v22127_v61, %v20302_v57  ;;  %v22178_v0 = vpop.xlane.xlu1 %5177 }
 0x707   : > { %25174 = vst [vmem:[#allocation86_spill] sm:$0xff] %v22150_v29  ;;  %v13067_v59 = vcombine.low %v7784_v2, %v7788_v1  ;;  %v13068_v41 = vcombine.low %v7792_v8, %v7796_v14  ;;  %v13069_v51 = vcombine.low %v7800_v48, %v7804_v45  ;;  %v7848_v42 = vrot.slane %v25177_v9, %v25112_v17 }
 0x708   : > { %v7852_v27 = vrot.slane %v25177_v9, %v25113_v34  ;;  %v7856_v4 = vrot.slane %v25177_v9, %v25114_v26  ;;  %v7860_v31 = vrot.slane %v25177_v9, %v25115_v46  ;;  %v7864_v50 = vrot.slane %v25177_v9, %v25116_v36  ;;  %25178 = vst [vmem:[#allocation13_spill] sm:$0xff] %v22178_v0 }
 0x709   : > { %v7868_v37 = vrot.slane %v25177_v9, %v25117_v38  ;;  %v7872_v44 = vrot.slane %v25177_v9, %v25118_v47  ;;  %v7876_v62 = vrot.slane %v25177_v9, %v20282_v16  ;;  %v12993_v48 = vrot.slane %v12971_v20, %v20302_v57 }
 0x70a   : > { %v13091_v39 = vrot.slane %v13069_v51, %v20302_v57  ;;  %v13165_v23 = vcombine.low %v7848_v42, %v7852_v27  ;;  %v13166_v15 = vcombine.low %v7856_v4, %v7860_v31  ;;  %v12911_v21 = vrot.slane %v22152_v32, %v20302_v57  ;;  %v22208_v28 = vpop.permute.xlu1 %15967 }
 0x70b   : > { %16033 = vperm.xlu1 %18483, %v21933_v53   ;;  %v7748_v53 = vrot.slane %v25169_v5, %v20282_v16  ;;  %v12986_v5 = vrot.slane %v12970_v56, %v20302_v57  ;;  %v22205_v11 = vsel %vm695_vm0, %v4884_v43, 0.0  ;;  %v13168_v20 = vcombine.low %v7872_v44, %v7876_v62  ;;  %25181 = vst [vmem:[#allocation87_spill] sm:$0xff] %v22208_v28 }
 0x70c   : > { %v12918_v51 = vrot.slane %v22154_v6, %v20302_v57  ;;  %v13175_v27 = vrot.slane %v13165_v23, %v20302_v57  ;;  %v13182_v4 = vrot.slane %v13166_v15, %v20302_v57 }
 0x70d   : > { %v12972_v18 = vcombine.low %v7744_v52, %v7748_v53  ;;  %v25179_v52 = vld [vmem:[#allocation16_spill] sm:$0xff]  ;;  %v22212_v42 = vcombine.low %v12979_v24, %v12986_v5  ;;  %v22228_v24 = vpop.permute.xlu0 %15958 }
 0x70e   : > { %16054 = vperm.xlu0 %18482, %v21938_v25   ;;  %v7812_v25 = vrot.slane %v25171_v40, %v20282_v16  ;;  %v7912_v53 = vrot.slane %v25179_v52, %v25112_v17  ;;  %v7916_v61 = vrot.slane %v25179_v52, %v25113_v34  ;;  %v7920_v56 = vrot.slane %v25179_v52, %v25114_v26  ;;  %v22234_v62 = vpop.xlane.xlu1 %5183 }
 0x70f   : > { %v7924_v40 = vrot.slane %v25179_v52, %v25115_v46  ;;  %v7928_v2 = vrot.slane %v25179_v52, %v25116_v36  ;;  %v7932_v1 = vrot.slane %v25179_v52, %v25117_v38  ;;  %v7936_v8 = vrot.slane %v25179_v52, %v25118_v47  ;;  %25180 = vst [vmem:[#allocation16_spill] sm:$0xff] %v22205_v11 }
 0x710   : > { %v13070_v3 = vcombine.low %v7808_v35, %v7812_v25  ;;  %v7940_v14 = vrot.slane %v25179_v52, %v20282_v16  ;;  %v13000_v45 = vrot.slane %v12972_v18, %v20302_v57  ;;  %v13077_v35 = vrot.slane %v13067_v59, %v20302_v57  ;;  %25184 = vst [vmem:[#allocation88_spill] sm:$0xff] %v22234_v62 }
 0x711   : > { %v13084_v25 = vrot.slane %v13068_v41, %v20302_v57  ;;  %v13167_v52 = vcombine.low %v7864_v50, %v7868_v37  ;;  %v13263_v0 = vcombine.low %v7912_v53, %v7916_v61  ;;  %v13264_v18 = vcombine.low %v7920_v56, %v7924_v40  ;;  %v25182_v50 = vld [vmem:[#allocation18_spill] sm:$0xff] }
 0x712   : > { %v13098_v9 = vrot.slane %v13070_v3, %v20302_v57  ;;  %v13265_v22 = vcombine.low %v7928_v2, %v7932_v1  ;;  %v13266_v59 = vcombine.low %v7936_v8, %v7940_v14  ;;  %v16397_v41 = vadd.s32 4294967176, %v21357_v13  ;;  %25183 = vst [vmem:[#allocation18_spill] sm:$0xff] %v22228_v24 }
 0x713   : > { %v22214_v3 = vcombine.low %v12993_v48, %v13000_v45  ;;  %v22216_v32 = vcombine.low %v13077_v35, %v13084_v25  ;;  %v13189_v31 = vrot.slane %v13167_v52, %v20302_v57  ;;  %v13196_v13 = vrot.slane %v13168_v20, %v20302_v57 }
 0x714   : > { %v22218_v43 = vcombine.low %v13091_v39, %v13098_v9  ;;  %v6984_v37 = vrot.slane %v25182_v50, %v25112_v17  ;;  %v6988_v6 = vrot.slane %v25182_v50, %v25113_v34  ;;  %v13273_v5 = vrot.slane %v13263_v0, %v20302_v57 }
 0x715   : > { %v13280_v44 = vrot.slane %v13264_v18, %v20302_v57  ;;  %v13287_v23 = vrot.slane %v13265_v22, %v20302_v57  ;;  %v13294_v15 = vrot.slane %v13266_v59, %v20302_v57  ;;  %v6992_v53 = vrot.slane %v25182_v50, %v25114_v26  ;;  %v25187_v18 = vld [vmem:[#allocation51_spill] sm:$0xff] }
 0x716   : > { %v6996_v61 = vrot.slane %v25182_v50, %v25115_v46  ;;  %v7000_v56 = vrot.slane %v25182_v50, %v25116_v36  ;;  %v7004_v0 = vrot.slane %v25182_v50, %v25117_v38  ;;  %v22245_v40 = vsub.s32 %v16397_v41, %v20204_v10 }
 0x717   : > { %v22247_v22 = vcombine.low %v12911_v21, %v12918_v51  ;;  %v7008_v2 = vrot.slane %v25182_v50, %v25118_v47  ;;  %v7012_v1 = vrot.slane %v25182_v50, %v20282_v16  ;;  %v22261_v21 = vpop.xlane.xlu0 %5174  ;;  %v22263_v45 = vcombine.low %v13175_v27, %v13182_v4 }
 0x718   : > { %25185 = vst [vmem:[#allocation89_spill] sm:$0xff] %v22245_v40  ;;  %v22265_v35 = vcombine.low %v13189_v31, %v13196_v13  ;;  %v22267_v25 = vcombine.low %v13273_v5, %v13280_v44  ;;  %v22269_v39 = vcombine.low %v13287_v23, %v13294_v15  ;;  %v11842_v9 = vcombine.low %v6984_v37, %v6988_v6  ;;  %v22279_v31 = vpop.permute.xlu1 %15973  ;;  %v25190_v44 = vld [vmem:[#allocation5_spill] sm:$0xff] }
 0x719   : > { %25186 = vst [vmem:[#allocation90_spill] sm:$0xff] %v22247_v22  ;;  %v11843_v52 = vcombine.low %v6992_v53, %v6996_v61  ;;  %v11844_v20 = vcombine.low %v7000_v56, %v7004_v0  ;;  %v7976_v59 = vrot.slane %v25187_v18, %v25112_v17  ;;  %v11845_v41 = vcombine.low %v7008_v2, %v7012_v1 }
 0x71a   : > { %v7980_v51 = vrot.slane %v25187_v18, %v25113_v34  ;;  %v7984_v27 = vrot.slane %v25187_v18, %v25114_v26  ;;  %v7988_v4 = vrot.slane %v25187_v18, %v25115_v46  ;;  %25188 = vst [vmem:[#allocation51_spill] sm:$0xff] %v22279_v31  ;;  %v7992_v13 = vrot.slane %v25187_v18, %v25116_v36  ;;  %v25192_v31 = vld [vmem:[#allocation54_spill] sm:$0xff] }
 0x71b   : > { %v7996_v50 = vrot.slane %v25187_v18, %v25117_v38  ;;  %v8000_v37 = vrot.slane %v25187_v18, %v25118_v47  ;;  %v8004_v6 = vrot.slane %v25187_v18, %v20282_v16  ;;  %v22289_v5 = vpop.permute.xlu0 %15964  ;;  %v8040_v23 = vrot.slane %v25190_v44, %v25112_v17 }
 0x71c   : > { %25189 = vst [vmem:[#allocation91_spill] sm:$0xff] %v22289_v5  ;;  %v8044_v15 = vrot.slane %v25190_v44, %v25113_v34  ;;  %v8048_v53 = vrot.slane %v25190_v44, %v25114_v26  ;;  %v8052_v61 = vrot.slane %v25190_v44, %v25115_v46  ;;  %v8056_v56 = vrot.slane %v25190_v44, %v25116_v36  ;;  %v22311_v14 = vpop.xlane.xlu1 %5189 }
 0x71d   : > { %v8060_v0 = vrot.slane %v25190_v44, %v25117_v38  ;;  %v8064_v2 = vrot.slane %v25190_v44, %v25118_v47  ;;  %v8068_v1 = vrot.slane %v25190_v44, %v20282_v16  ;;  %v11852_v18 = vrot.slane %v11842_v9, %v20302_v57  ;;  %25191 = vst [vmem:[#allocation5_spill] sm:$0xff] %v22311_v14 }
 0x71e   : > { %v11859_v48 = vrot.slane %v11843_v52, %v20302_v57  ;;  %v11866_v10 = vrot.slane %v11844_v20, %v20302_v57  ;;  %v11873_v8 = vrot.slane %v11845_v41, %v20302_v57  ;;  %v8104_v5 = vrot.slane %v25192_v31, %v25112_v17 }
 0x71f   : > { %v8108_v28 = vrot.slane %v25192_v31, %v25113_v34  ;;  %v8112_v24 = vrot.slane %v25192_v31, %v25114_v26  ;;  %v8116_v9 = vrot.slane %v25192_v31, %v25115_v46  ;;  %v22321_v44 = vpop.xlane.xlu0 %5180  ;;  %v13361_v52 = vcombine.low %v7976_v59, %v7980_v51 }
 0x720   : > { %25193 = vst [vmem:[#allocation54_spill] sm:$0xff] %v22321_v44  ;;  %v13362_v20 = vcombine.low %v7984_v27, %v7988_v4  ;;  %v13363_v62 = vcombine.low %v7992_v13, %v7996_v50  ;;  %v13364_v41 = vcombine.low %v8000_v37, %v8004_v6  ;;  %v13459_v40 = vcombine.low %v8040_v23, %v8044_v15  ;;  %v22338_v37 = vpop.permute.xlu1 %15979 }
 0x721   : > { %v13460_v14 = vcombine.low %v8048_v53, %v8052_v61  ;;  %v13461_v58 = vcombine.low %v8056_v56, %v8060_v0  ;;  %v13462_v11 = vcombine.low %v8064_v2, %v8068_v1  ;;  %v11874_v22 = vcombine.low %v11852_v18, %v11859_v48  ;;  %25195 = vst [vmem:[#allocation93_spill] sm:$0xff] %v22338_v37 }
 0x722   : > { %v11875_v29 = vcombine.low %v11866_v10, %v11873_v8  ;;  %v8120_v55 = vrot.slane %v25192_v31, %v25116_v36  ;;  %v8124_v30 = vrot.slane %v25192_v31, %v25117_v38  ;;  %v8128_v59 = vrot.slane %v25192_v31, %v25118_v47 }
 0x723   : > { %v8132_v51 = vrot.slane %v25192_v31, %v20282_v16  ;;  %v13557_v27 = vcombine.low %v8104_v5, %v8108_v28  ;;  %v13558_v4 = vcombine.low %v8112_v24, %v8116_v9  ;;  %v22332_v13 = vpop.permute.xlu0 %15970  ;;  %v13371_v8 = vrot.slane %v13361_v52, %v20302_v57 }
 0x724   : > { %25194 = vst [vmem:[#allocation92_spill] sm:$0xff] %v22332_v13  ;;  %v13378_v48 = vrot.slane %v13362_v20, %v20302_v57  ;;  %v13385_v10 = vrot.slane %v13363_v62, %v20302_v57  ;;  %v13392_v50 = vrot.slane %v13364_v41, %v20302_v57  ;;  %v13469_v6 = vrot.slane %v13459_v40, %v20302_v57 }
 0x725   : > { %v13476_v31 = vrot.slane %v13460_v14, %v20302_v57  ;;  %v13483_v28 = vrot.slane %v13461_v58, %v20302_v57  ;;  %v13490_v24 = vrot.slane %v13462_v11, %v20302_v57  ;;  %v25197_v5 = vrot.slane %v22214_v3, %v20302_v57 }
 0x726   : > { %v25198_v62 = vrot.slane %v22212_v42, %v20302_v57  ;;  %v13205_v15 = vrot.slane %v22263_v45, %v20302_v57  ;;  %v13212_v40 = vrot.slane %v22265_v35, %v20302_v57  ;;  %v13559_v53 = vcombine.low %v8120_v55, %v8124_v30 }
 0x727   : > { %v25200_v58 = vrot.slane %v22218_v43, %v20302_v57  ;;  %v25201_v11 = vrot.slane %v22216_v32, %v20302_v57  ;;  %v13560_v3 = vcombine.low %v8128_v59, %v8132_v51  ;;  %v13567_v42 = vrot.slane %v13557_v27, %v20302_v57  ;;  %v22367_v56 = vpop.xlane.xlu0 %5186  ;;  %v22375_v32 = vpop.xlane.xlu1 %5195  ;;  %v25209_v51 = vld [vmem:[#allocation34_spill] sm:$0xff] }
 0x728   : > { %v22351_v23 = vcombine.low %v25198_v62, %v25197_v5  ;;  %v13574_v61 = vrot.slane %v13558_v4, %v20302_v57  ;;  %25203 = vst [vmem:[#allocation95_spill] sm:$0xff] %v22367_v56  ;;  %v13303_v45 = vrot.slane %v22267_v25, %v20302_v57  ;;  %v13310_v55 = vrot.slane %v22269_v39, %v20302_v57  ;;  %v25206_v39 = vld [vmem:[#allocation56_spill] sm:$0xff] }
 0x729   : > { %v22363_v14 = vcombine.low %v25201_v11, %v25200_v58  ;;  %v11882_v30 = vrot.slane %v11874_v22, %v20302_v57  ;;  %v11889_v43 = vrot.slane %v11875_v29, %v20302_v57  ;;  %25204 = vst [vmem:[#allocation96_spill] sm:$0xff] %v22375_v32  ;;  %v22377_v35 = vcombine.low %v13371_v8, %v13378_v48  ;;  %v25216_v11 = vld [vmem:[#allocation57_spill] sm:$0xff]  ;;  %v25221_v32 = vld [vmem:[#allocation78_spill] sm:$0xff] }
 0x72a   : > { %v22379_v0 = vcombine.low %v13385_v10, %v13392_v50  ;;  %v22381_v2 = vcombine.low %v13469_v6, %v13476_v31  ;;  %v22383_v1 = vcombine.low %v13483_v28, %v13490_v24  ;;  %v22385_v18 = vcombine.low %v13205_v15, %v13212_v40  ;;  %v25220_v10 = vld [vmem:[#allocation21_spill] sm:$0xff] }
 0x72b   : > { %25202 = vst [vmem:[#allocation94_spill] sm:$0xff] %v22363_v14  ;;  %v13581_v25 = vrot.slane %v13559_v53, %v20302_v57  ;;  %v8168_v9 = vrot.slane %v25206_v39, %v25112_v17  ;;  %v8172_v29 = vrot.slane %v25206_v39, %v25113_v34  ;;  %v13588_v22 = vrot.slane %v13560_v3, %v20302_v57  ;;  %v22407_v4 = vpop.permute.xlu0 %15976  ;;  %v22429_v5 = vpop.permute.xlu1 %15985 }
 0x72c   : > { %25205 = vst [vmem:[#allocation97_spill] sm:$0xff] %v22385_v18  ;;  %v22393_v52 = vcombine.low %v13567_v42, %v13574_v61  ;;  %v8176_v20 = vrot.slane %v25206_v39, %v25114_v26  ;;  %v8180_v41 = vrot.slane %v25206_v39, %v25115_v46  ;;  %v22401_v59 = vadd.f32 %v20232_v12, %v22261_v21 }
 0x72d   : > { %5270 = vadd.xlane.f32.xlu0 %v21811_v19  ;;  %v25196_v19 = vld [vmem:[#allocation74_spill] sm:$0xff]  ;;  %v22405_v27 = vadd.f32 %v20232_v12, %v25209_v51  ;;  %25211 = vst [vmem:[#allocation99_spill] sm:$0xff] %v22407_v4  ;;  %v22409_v8 = vcombine.low %v13303_v45, %v13310_v55  ;;  %v22411_v48 = vcombine.low %v11882_v30, %v11889_v43  ;;  %25214 = vst [vmem:[#allocation102_spill] sm:$0xff] %v22429_v5 }
 0x72e   : > { %25199 = vst [vmem:[#allocation74_spill] sm:$0xff] %v22351_v23  ;;  %25207 = vst [vmem:[#allocation56_spill] sm:$0xff] %v22393_v52  ;;  %v8184_v6 = vrot.slane %v25206_v39, %v25116_v36  ;;  %v8188_v31 = vrot.slane %v25206_v39, %v25117_v38  ;;  %v8192_v28 = vrot.slane %v25206_v39, %v25118_v47 }
 0x72f   : > { %5249 = vadd.xlane.f32.xlu1 %v25196_v19  ;;  %25208 = vst [vmem:[#allocation98_spill] sm:$0xff] %v22401_v59  ;;  %25210 = vst [vmem:[#allocation34_spill] sm:$0xff] %v22405_v27  ;;  %v8196_v24 = vrot.slane %v25206_v39, %v20282_v16  ;;  %v22431_v62 = vcombine.low %v13581_v25, %v13588_v22  ;;  %v13655_v40 = vcombine.low %v8168_v9, %v8172_v29  ;;  %v22435_v58 = vpop.xlane.xlu0 %5192  ;;  %v25217_v39 = vld [vmem:[#allocation63_spill] sm:$0xff] }
 0x730   : > { %25212 = vst [vmem:[#allocation100_spill] sm:$0xff] %v22409_v8  ;;  %25213 = vst [vmem:[#allocation101_spill] sm:$0xff] %v22411_v48  ;;  %v13656_v53 = vcombine.low %v8176_v20, %v8180_v41  ;;  %v8232_v3 = vrot.slane %v25216_v11, %v25112_v17  ;;  %v8236_v42 = vrot.slane %v25216_v11, %v25113_v34  ;;  %v22461_v41 = vpop.xlane.xlu1 %5201 }
 0x731   : > { %25215 = vst [vmem:[#allocation103_spill] sm:$0xff] %v22435_v58  ;;  %v8240_v61 = vrot.slane %v25216_v11, %v25114_v26  ;;  %v8244_v45 = vrot.slane %v25216_v11, %v25115_v46  ;;  %v8248_v55 = vrot.slane %v25216_v11, %v25116_v36  ;;  %v8252_v30 = vrot.slane %v25216_v11, %v25117_v38 }
 0x732   : > { %v8256_v43 = vrot.slane %v25216_v11, %v25118_v47  ;;  %v8260_v25 = vrot.slane %v25216_v11, %v20282_v16  ;;  %v8296_v9 = vrot.slane %v25217_v39, %v25112_v17  ;;  %v8300_v29 = vrot.slane %v25217_v39, %v25113_v34  ;;  %25218 = vst [vmem:[#allocation57_spill] sm:$0xff] %v22461_v41 }
 0x733   : > { %v8304_v22 = vrot.slane %v25217_v39, %v25114_v26  ;;  %v8308_v20 = vrot.slane %v25217_v39, %v25115_v46  ;;  %v8312_v51 = vrot.slane %v25217_v39, %v25116_v36  ;;  %v8316_v11 = vrot.slane %v25217_v39, %v25117_v38  ;;  %v22471_v19 = vpop.permute.xlu0 %15982 }
 0x734   : > { %v8320_v15 = vrot.slane %v25217_v39, %v25118_v47  ;;  %v8324_v21 = vrot.slane %v25217_v39, %v20282_v16  ;;  %25219 = vst [vmem:[#allocation63_spill] sm:$0xff] %v22471_v19  ;;  %v7048_v50 = vrot.slane %v25220_v10, %v25112_v17  ;;  %v7052_v5 = vrot.slane %v25220_v10, %v25113_v34  ;;  %v22494_v52 = vpop.permute.xlu1 %15991 }
 0x735   : > { %v7056_v37 = vrot.slane %v25220_v10, %v25114_v26  ;;  %v7060_v4 = vrot.slane %v25220_v10, %v25115_v46  ;;  %v7064_v13 = vrot.slane %v25220_v10, %v25116_v36  ;;  %v7068_v39 = vrot.slane %v25220_v10, %v25117_v38  ;;  %25222 = vst [vmem:[#allocation21_spill] sm:$0xff] %v22494_v52 }
 0x736   : > { %v7072_v19 = vrot.slane %v25220_v10, %v25118_v47  ;;  %v7076_v41 = vrot.slane %v25220_v10, %v20282_v16  ;;  %v13657_v27 = vcombine.low %v8184_v6, %v8188_v31  ;;  %v13658_v48 = vcombine.low %v8192_v28, %v8196_v24  ;;  %v25223_v10 = vld [vmem:[#allocation79_spill] sm:$0xff] }
 0x737   : > { %v13665_v8 = vrot.slane %v13655_v40, %v20302_v57  ;;  %v13672_v18 = vrot.slane %v13656_v53, %v20302_v57  ;;  %v13753_v58 = vcombine.low %v8232_v3, %v8236_v42  ;;  %v13754_v56 = vcombine.low %v8240_v61, %v8244_v45  ;;  %v22492_v59 = vpop.xlane.xlu0 %5198 }
 0x738   : > { %v13755_v14 = vcombine.low %v8248_v55, %v8252_v30  ;;  %v13756_v23 = vcombine.low %v8256_v43, %v8260_v25  ;;  %v13851_v12 = vcombine.low %v8296_v9, %v8300_v29  ;;  %v13852_v44 = vcombine.low %v8304_v22, %v8308_v20  ;;  %v4494_v30 = vld [vmem:[%s19652_s14 + $0x3f8] sm:$0xff] }
 0x739   : > { %v13853_v54 = vcombine.low %v8312_v51, %v8316_v11  ;;  %v13854_v7 = vcombine.low %v8320_v15, %v8324_v21  ;;  %v11941_v6 = vcombine.low %v7056_v37, %v7060_v4  ;;  %v11942_v31 = vcombine.low %v7064_v13, %v7068_v39 }
 0x73a   : > { %v11943_v28 = vcombine.low %v7072_v19, %v7076_v41  ;;  %v13604_v24 = vrot.slane %v22431_v62, %v20302_v57  ;;  %v13679_v40 = vrot.slane %v13657_v27, %v20302_v57  ;;  %v13686_v53 = vrot.slane %v13658_v48, %v20302_v57  ;;  %v22514_v48 = vpop.xlane.xlu1 %5207  ;;  %v25243_v62 = vld [vmem:[#allocation26_spill] sm:$0xff] }
 0x73b   : > { %v22501_v3 = vcombine.low %v13665_v8, %v13672_v18  ;;  %v13763_v21 = vrot.slane %v13753_v58, %v20302_v57  ;;  %v13770_v15 = vrot.slane %v13754_v56, %v20302_v57  ;;  %v13784_v37 = vrot.slane %v13756_v23, %v20302_v57  ;;  %v22507_v13 = vpop.permute.xlu0 %15988  ;;  %v4490_v8 = vld [vmem:[%s19652_s14 + $0x3d8] sm:$0xff]  ;;  %25225 = vst [vmem:[#allocation79_spill] sm:$0xff] %v22514_v48 }
 0x73c   : > { %25224 = vst [vmem:[#allocation78_spill] sm:$0xff] %v22507_v13  ;;  %v13861_v4 = vrot.slane %v13851_v12, %v20302_v57  ;;  %v13868_v19 = vrot.slane %v13852_v44, %v20302_v57  ;;  %v13875_v27 = vrot.slane %v13853_v54, %v20302_v57  ;;  %v13882_v18 = vrot.slane %v13854_v7, %v20302_v57  ;;  %v25226_v44 = vld [vmem:[#allocation23_spill] sm:$0xff] }
 0x73d   : > { %v11957_v23 = vrot.slane %v11941_v6, %v20302_v57  ;;  %v11964_v56 = vrot.slane %v11942_v31, %v20302_v57  ;;  %v11971_v12 = vrot.slane %v11943_v28, %v20302_v57  ;;  %v7112_v54 = vrot.slane %v25226_v44, %v25112_v17 }
 0x73e   : > { %v7116_v7 = vrot.slane %v25226_v44, %v25113_v34  ;;  %v7120_v58 = vrot.slane %v25226_v44, %v25114_v26  ;;  %v13688_v42 = vcombine.low %v13679_v40, %v13686_v53  ;;  %v13785_v61 = vcombine.low %v13763_v21, %v13770_v15  ;;  %v22545_v31 = vpop.permute.xlu1 %15997 }
 0x73f   : > { %v4624_v55 = vmul.f32 %v22109_v63, %v4490_v8  ;;  %v22532_v43 = vpop.xlane.xlu0 %5204  ;;  %v13883_v25 = vcombine.low %v13861_v4, %v13868_v19  ;;  %v13884_v9 = vcombine.low %v13875_v27, %v13882_v18  ;;  %v7128_v22 = vrot.slane %v25226_v44, %v25116_v36  ;;  %25227 = vst [vmem:[#allocation23_spill] sm:$0xff] %v22545_v31 }
 0x740   : > { %16039 = vperm.xlu1 %18483, %v25221_v32   ;;  %v11940_v32 = vcombine.low %v7048_v50, %v7052_v5  ;;  %v13777_v50 = vrot.slane %v13755_v14, %v20302_v57  ;;  %v4492_v5 = vld [vmem:[%s19652_s14 + $0x3e8] sm:$0xff]  ;;  %v11973_v41 = vcombine.low %v11964_v56, %v11971_v12  ;;  %v7132_v51 = vrot.slane %v25226_v44, %v25117_v38  ;;  %s17093_s14 = sshll.u32 %s17082_s20, 3 }
 0x741   : > { %v4626_v29 = vmul.f32 %v22109_v63, %v4492_v5  ;;  %v7136_v11 = vrot.slane %v25226_v44, %v25118_v47  ;;  %v7140_v39 = vrot.slane %v25226_v44, %v20282_v16  ;;  %v4628_v6 = vmul.f32 %v22109_v63, %v4494_v30  ;;  %v25230_v63 = vld [vmem:[#allocation25_spill] sm:$0xff]  ;;  %p430_p4 = scmp.lt.s32.totalorder %s17093_s14, 15 }
 0x742   : > { %v11950_v14 = vrot.slane %v11940_v32, %v20302_v57  ;;  %v13786_v45 = vcombine.low %v13777_v50, %v13784_v37  ;;  %v13702_v28 = vrot.slane %v13688_v42, %v20302_v57  ;;  %v13793_v40 = vrot.slane %v13785_v61, %v20302_v57  ;;  %v25229_v37 = vld [vmem:[#allocation22_spill] sm:$0xff] }
 0x743   : > { %16060 = vperm.xlu0 %18482, %v25223_v10   ;;  %v12038_v10 = vcombine.low %v7112_v54, %v7116_v7  ;;  %v22552_v21 = vpop.permute.xlu0 %15994  ;;  %v13891_v15 = vrot.slane %v13883_v25, %v20302_v57  ;;  %v13898_v50 = vrot.slane %v13884_v9, %v20302_v57  ;;  %v4886_v4 = vadd.f32 %v25229_v37, %v4624_v55  ;;  %v22572_v54 = vpop.xlane.xlu1 %5213  ;;  %v25244_v9 = vld [vmem:[#allocation84_spill] sm:$0xff]  ;;  %s25511_s14 = smov (!%p430_p4, %s17093_s14), 15 }
 0x744   : > { %v11972_v20 = vcombine.low %v11950_v14, %v11957_v23  ;;  %v13800_v53 = vrot.slane %v13786_v45, %v20302_v57  ;;  %25228 = vst [vmem:[#allocation104_spill] sm:$0xff] %v22552_v21  ;;  %v4888_v19 = vadd.f32 %v25230_v63, %v4626_v29  ;;  %v25232_v27 = vrot.slane %v22377_v35, %v20302_v57  ;;  %v25251_v63 = vld [vmem:[#allocation49_spill] sm:$0xff]  ;;  %s432_s13 = scalar_lea.vmem %s24853_s11, %s25511_s14 }
 0x745   : > { %v11987_v14 = vrot.slane %v11973_v41, %v20302_v57  ;;  %v12040_v23 = vcombine.low %v7128_v22, %v7132_v51  ;;  %v12041_v56 = vcombine.low %v7136_v11, %v7140_v39  ;;  %v12048_v12 = vrot.slane %v12038_v10, %v20302_v57  ;;  %25234 = vst [vmem:[#allocation22_spill] sm:$0xff] %v22572_v54  ;;  %v25248_v10 = vld [vmem:[#allocation66_spill] sm:$0xff] }
 0x746   : > { %v11980_v8 = vrot.slane %v11972_v20, %v20302_v57  ;;  %v25236_v35 = vrot.slane %v22381_v2, %v20302_v57  ;;  %v22592_v45 = vcombine.low %v13793_v40, %v13800_v53  ;;  %v22599_v2 = vsel %vm695_vm0, %v4886_v4, 0.0 }
 0x747   : > { %16066 = vperm.xlu0 %18482, %v22075_v33   ;;  %v7124_v33 = vrot.slane %v25226_v44, %v25115_v46  ;;  %v25233_v44 = vld [vmem:[#allocation27_spill] sm:$0xff]  ;;  %v22594_v55 = vpop.xlane.xlu0 %5210  ;;  %v22602_v30 = vsel %vm695_vm0, %v4888_v19, 0.0  ;;  %v7176_v25 = vrot.slane %v25243_v62, %v25112_v17  ;;  %v12062_v29 = vrot.slane %v12040_v23, %v20302_v57  ;;  %v22640_v4 = vpop.permute.xlu1 %16003  ;;  %v25252_v19 = vld [vmem:[#allocation73_spill] sm:$0xff] }
 0x748   : > { %25239 = vst [vmem:[#allocation25_spill] sm:$0xff] %v22592_v45  ;;  %25242 = vst [vmem:[#allocation105_spill] sm:$0xff] %v22602_v30  ;;  %v7180_v22 = vrot.slane %v25243_v62, %v25113_v34  ;;  %v7184_v20 = vrot.slane %v25243_v62, %v25114_v26  ;;  %v12069_v41 = vrot.slane %v12041_v56, %v20302_v57 }
 0x749   : > { %v12039_v32 = vcombine.low %v7120_v58, %v7124_v33  ;;  %v25237_v58 = vld [vmem:[#allocation56_spill] sm:$0xff]  ;;  %v7188_v39 = vrot.slane %v25243_v62, %v25115_v46  ;;  %v8376_v53 = vrot.slane %v25248_v10, %v25116_v36  ;;  %v8388_v37 = vrot.slane %v25248_v10, %v20282_v16  ;;  %25250 = vst [vmem:[#allocation107_spill] sm:$0xff] %v22640_v4 }
 0x74a   : > { %v25238_v33 = vrot.slane %v25237_v58, %v20302_v57  ;;  %25241 = vst [vmem:[#allocation56_spill] sm:$0xff] %v22599_v2  ;;  %v8440_v23 = vrot.slane %v25252_v19, %v25116_v36  ;;  %v8444_v56 = vrot.slane %v25252_v19, %v25117_v38  ;;  %v22676_v52 = vcombine.low %v7176_v25, %v7180_v22 }
 0x74b   : > { %16072 = vperm.xlu0 %18482, %v22083_v49   ;;  %v13695_v49 = vrot.slane %v22501_v3, %v20302_v57  ;;  %v25231_v3 = vrot.slane %v22379_v0, %v20302_v57  ;;  %v12055_v5 = vrot.slane %v12039_v32, %v20302_v57  ;;  %v25235_v0 = vrot.slane %v22383_v1, %v20302_v57  ;;  %v22630_v40 = vpop.permute.xlu0 %16000 }
 0x74c   : > { %v22588_v42 = vcombine.low %v25238_v33, %v13604_v24  ;;  %v22596_v1 = vcombine.low %v13891_v15, %v13898_v50  ;;  %v22607_v24 = vcombine.low %v11980_v8, %v11987_v14  ;;  %v8360_v32 = vrot.slane %v25248_v10, %v25112_v17  ;;  %25249 = vst [vmem:[#allocation66_spill] sm:$0xff] %v22630_v40 }
 0x74d   : > { %v22565_v18 = vcombine.low %v25232_v27, %v25231_v3  ;;  %v22580_v7 = vcombine.low %v25236_v35, %v25235_v0  ;;  %v22590_v61 = vcombine.low %v13695_v49, %v13702_v28  ;;  %v22615_v51 = vcombine.low %v12048_v12, %v12055_v5 }
 0x74e   : > { %25240 = vst [vmem:[#allocation27_spill] sm:$0xff] %v22596_v1  ;;  %25245 = vst [vmem:[#allocation26_spill] sm:$0xff] %v22607_v24  ;;  %v8368_v49 = vrot.slane %v25248_v10, %v25114_v26  ;;  %v8372_v28 = vrot.slane %v25248_v10, %v25115_v46  ;;  %v8380_v15 = vrot.slane %v25248_v10, %v25117_v38 }
 0x74f   : > { %16078 = vperm.xlu0 %18482, %v22085_v60   ;;  %v4890_v60 = vadd.f32 %v25233_v44, %v4628_v6  ;;  %25246 = vst [vmem:[#allocation84_spill] sm:$0xff] %v22615_v51  ;;  %v8364_v6 = vrot.slane %v25248_v10, %v25113_v34  ;;  %v8384_v50 = vrot.slane %v25248_v10, %v25118_v47  ;;  %v22667_v58 = vpop.xlane.xlu0 %5216 }
 0x750   : > { %v8424_v3 = vrot.slane %v25252_v19, %v25112_v17  ;;  %v8428_v27 = vrot.slane %v25252_v19, %v25113_v34  ;;  %v8432_v8 = vrot.slane %v25252_v19, %v25114_v26  ;;  %v8436_v14 = vrot.slane %v25252_v19, %v25115_v46 }
 0x751   : > { %v22618_v11 = vsel %vm695_vm0, %v4890_v60, 0.0  ;;  %v8448_v12 = vrot.slane %v25252_v19, %v25118_v47  ;;  %v8452_v5 = vrot.slane %v25252_v19, %v20282_v16  ;;  %v22659_v44 = vcombine.low %v12062_v29, %v12069_v41  ;;  %v22673_v41 = vpop.xlane.xlu1 %5219 }
 0x752   : > { %25247 = vst [vmem:[#allocation106_spill] sm:$0xff] %v22618_v11  ;;  %v7192_v60 = vrot.slane %v25243_v62, %v25116_v36  ;;  %v7196_v0 = vrot.slane %v25243_v62, %v25117_v38  ;;  %v7200_v35 = vrot.slane %v25243_v62, %v25118_v47  ;;  %v13949_v33 = vcombine.low %v8360_v32, %v8364_v6  ;;  %v25258_v6 = vld [vmem:[#allocation45_spill] sm:$0xff] }
 0x753   : > { %16084 = vperm.xlu0 %18482, %v25244_v9   ;;  %25253 = vst [vmem:[#allocation49_spill] sm:$0xff] %v22659_v44  ;;  %v13950_v9 = vcombine.low %v8368_v49, %v8372_v28  ;;  %v7204_v29 = vrot.slane %v25243_v62, %v20282_v16  ;;  %25254 = vst [vmem:[#allocation73_spill] sm:$0xff] %v22673_v41  ;;  %v13951_v19 = vcombine.low %v8376_v53, %v8380_v15  ;;  %v22688_v15 = vpop.permute.xlu0 %16006  ;;  %vm16402_vm0 = vcmask 1048512  }
 0x754   : > { %v13952_v40 = vcombine.low %v8384_v50, %v8388_v37  ;;  %v14047_v4 = vcombine.low %v8424_v3, %v8428_v27  ;;  %v14048_v21 = vcombine.low %v8432_v8, %v8436_v14  ;;  %v14049_v31 = vcombine.low %v8440_v23, %v8444_v56  ;;  %v25261_v37 = vld [vmem:[#allocation86_spill] sm:$0xff] }
 0x755   : > { %v14050_v13 = vcombine.low %v8448_v12, %v8452_v5  ;;  %v22678_v32 = vcombine.low %v7184_v20, %v7188_v39  ;;  %v8488_v49 = vrot.slane %v25258_v6, %v25112_v17  ;;  %v8492_v62 = vrot.slane %v25258_v6, %v25113_v34  ;;  %v25260_v20 = vld [vmem:[#allocation28_spill] sm:$0xff] }
 0x756   : > { %v8496_v28 = vrot.slane %v25258_v6, %v25114_v26  ;;  %v8500_v53 = vrot.slane %v25258_v6, %v25115_v46  ;;  %v13959_v50 = vrot.slane %v13949_v33, %v20302_v57  ;;  %v13966_v25 = vrot.slane %v13950_v9, %v20302_v57 }
 0x757   : > { %16090 = vperm.xlu0 %18482, %v25251_v63   ;;  %v25255_v63 = vld [vmem:[#allocation85_spill] sm:$0xff]  ;;  %25257 = vst [vmem:[#allocation108_spill] sm:$0xff] %v22678_v32  ;;  %v22692_v22 = vcombine.low %v7192_v60, %v7196_v0  ;;  %v13973_v3 = vrot.slane %v13951_v19, %v20302_v57  ;;  %v13980_v27 = vrot.slane %v13952_v40, %v20302_v57  ;;  %v22707_v60 = vpop.permute.xlu1 %16009  ;;  %v22713_v33 = vpop.xlane.xlu0 %5222  ;;  %v25264_v19 = vld [vmem:[#allocation54_spill] sm:$0xff]  ;;  %v25278_v32 = vld [vmem:[#allocation103_spill] sm:$0xff] }
 0x758   : > { %25256 = vst [vmem:[#allocation85_spill] sm:$0xff] %v22676_v52  ;;  %v14057_v8 = vrot.slane %v14047_v4, %v20302_v57  ;;  %v14064_v14 = vrot.slane %v14048_v21, %v20302_v57  ;;  %v14071_v23 = vrot.slane %v14049_v31, %v20302_v57  ;;  %v14078_v56 = vrot.slane %v14050_v13, %v20302_v57 }
 0x759   : > { %25259 = vst [vmem:[#allocation45_spill] sm:$0xff] %v22692_v22  ;;  %v8504_v12 = vrot.slane %v25258_v6, %v25116_v36  ;;  %v8508_v5 = vrot.slane %v25258_v6, %v25117_v38  ;;  %v8512_v0 = vrot.slane %v25258_v6, %v25118_v47  ;;  %v8516_v40 = vrot.slane %v25258_v6, %v20282_v16  ;;  %v25266_v6 = vld [vmem:[#allocation90_spill] sm:$0xff] }
 0x75a   : > { %v14145_v4 = vcombine.low %v8488_v49, %v8492_v62  ;;  %v14146_v21 = vcombine.low %v8496_v28, %v8500_v53  ;;  %25262 = vst [vmem:[#allocation86_spill] sm:$0xff] %v22713_v33  ;;  %v22717_v31 = vcombine.low %v7200_v35, %v7204_v29  ;;  %v13981_v49 = vcombine.low %v13959_v50, %v13966_v25  ;;  %v25267_v29 = vld [vmem:[#allocation16_spill] sm:$0xff]  ;;  %v25269_v62 = vld [vmem:[#allocation98_spill] sm:$0xff] }
 0x75b   : > { %16096 = vperm.xlu0 %18482, %v25255_v63   ;;  %v7244_v63 = vrot.slane %v25260_v20, %v25113_v34  ;;  %v13982_v28 = vcombine.low %v13973_v3, %v13980_v27  ;;  %v14079_v53 = vcombine.low %v14057_v8, %v14064_v14  ;;  %v14080_v13 = vcombine.low %v14071_v23, %v14078_v56  ;;  %v22733_v39 = vpop.xlane.xlu1 %5225  ;;  %v22739_v25 = vpop.permute.xlu0 %16012  ;;  %v25270_v14 = vld [vmem:[#allocation74_spill] sm:$0xff]  ;;  %v25285_v33 = vld [vmem:[#allocation24_spill] sm:$0xff] }
 0x75c   : > { %25263 = vst [vmem:[#allocation109_spill] sm:$0xff] %v22717_v31  ;;  %v14147_v9 = vcombine.low %v8504_v12, %v8508_v5  ;;  %25268 = vst [vmem:[#allocation54_spill] sm:$0xff] %v22733_v39  ;;  %v14148_v48 = vcombine.low %v8512_v0, %v8516_v40  ;;  %v8552_v35 = vrot.slane %v25269_v62, %v25112_v17 }
 0x75d   : > { %v8556_v3 = vrot.slane %v25269_v62, %v25113_v34  ;;  %v8560_v27 = vrot.slane %v25269_v62, %v25114_v26  ;;  %v8564_v8 = vrot.slane %v25269_v62, %v25115_v46  ;;  %v13989_v23 = vrot.slane %v13981_v49, %v20302_v57 }
 0x75e   : > { %v13996_v0 = vrot.slane %v13982_v28, %v20302_v57  ;;  %v14087_v40 = vrot.slane %v14079_v53, %v20302_v57  ;;  %v8572_v56 = vrot.slane %v25269_v62, %v25117_v38  ;;  %v8576_v28 = vrot.slane %v25269_v62, %v25118_v47 }
 0x75f   : > { %16102 = vperm.xlu0 %18482, %v25261_v37   ;;  %v25265_v37 = vld [vmem:[#allocation4_spill] sm:$0xff]  ;;  %v22768_v12 = vpop.xlane.xlu0 %5228  ;;  %v22774_v53 = vcombine.low %v8552_v35, %v8556_v3  ;;  %v25276_v30 = vrot.slane %v25260_v20, %v25112_v17  ;;  %v16490_v2 = vrot.slane %v22707_v60, %v25285_v33 }
 0x760   : > { %v22725_v10 = vadd.f32 %v25265_v37, %v25264_v19  ;;  %v14155_v19 = vrot.slane %v14145_v4, %v20302_v57  ;;  %v14094_v4 = vrot.slane %v14080_v13, %v20302_v57  ;;  %25272 = vst [vmem:[#allocation90_spill] sm:$0xff] %v22768_v12  ;;  %v8580_v13 = vrot.slane %v25269_v62, %v20282_v16 }
 0x761   : > { %v22799_v51 = vcombine.low %v13989_v23, %v13996_v0  ;;  %v22806_v52 = vcombine.low %v25276_v30, %v7244_v63  ;;  %v5385_v31 = vadd.f32 %v25265_v37, %v25278_v32  ;;  %v14253_v30 = vrot.slane %v22774_v53, %v20302_v57  ;;  %v25283_v53 = vld [vmem:[#allocation100_spill] sm:$0xff] }
 0x762   : > { %v8620_v5 = vrot.slane %v22725_v10, %v25113_v34  ;;  %v8624_v50 = vrot.slane %v22725_v10, %v25114_v26  ;;  %v8632_v35 = vrot.slane %v22725_v10, %v25116_v36  ;;  %v8636_v3 = vrot.slane %v22725_v10, %v25117_v38 }
 0x763   : > { %16108 = vperm.xlu0 %18482, %v25266_v6   ;;  %v14162_v6 = vrot.slane %v14146_v21, %v20302_v57  ;;  %v14169_v21 = vrot.slane %v14147_v9, %v20302_v57  ;;  %v22776_v9 = vcombine.low %v8560_v27, %v8564_v8  ;;  %v8640_v27 = vrot.slane %v22725_v10, %v25118_v47  ;;  %v22810_v22 = vpop.permute.xlu0 %16018 }
 0x764   : > { %5255 = vadd.xlane.f32.xlu1 %v25267_v29  ;;  %v14176_v29 = vrot.slane %v14148_v48, %v20302_v57  ;;  %v22778_v48 = vpop.permute.xlu1 %16015  ;;  %v8644_v8 = vrot.slane %v22725_v10, %v20282_v16  ;;  %25275 = vst [vmem:[#allocation16_spill] sm:$0xff] %v22799_v51  ;;  %25277 = vst [vmem:[#allocation98_spill] sm:$0xff] %v22806_v52  ;;  %v22812_v39 = vcombine.low %v14087_v40, %v14094_v4 }
 0x765   : > { %v22762_v49 = vcombine.low %v14155_v19, %v14162_v6  ;;  %v25273_v19 = vld [vmem:[#allocation94_spill] sm:$0xff]  ;;  %v8616_v6 = vrot.slane %v22725_v10, %v25112_v17  ;;  %v14246_v20 = vcombine.low %v8576_v28, %v8580_v13  ;;  %v14260_v32 = vrot.slane %v22776_v9, %v20302_v57 }
 0x766   : > { %25279 = vst [vmem:[#allocation74_spill] sm:$0xff] %v22812_v39  ;;  %v14343_v4 = vcombine.low %v8632_v35, %v8636_v3  ;;  %v8744_v9 = vrot.slane %v5385_v31, %v25112_v17  ;;  %v8756_v35 = vrot.slane %v5385_v31, %v25115_v46  ;;  %v8760_v3 = vrot.slane %v5385_v31, %v25116_v36  ;;  %v25286_v39 = vld [vmem:[#allocation29_spill] sm:$0xff] }
 0x767   : > { %16114 = vperm.xlu0 %18482, %v25270_v14   ;;  %25271 = vst [vmem:[#allocation4_spill] sm:$0xff] %v22762_v49  ;;  %v8568_v14 = vrot.slane %v25269_v62, %v25116_v36  ;;  %v8628_v62 = vrot.slane %v22725_v10, %v25115_v46  ;;  %v22814_v10 = vcombine.low %v14169_v21, %v14176_v29 }
 0x768   : > { %v22818_v0 = vpop.xlane.xlu1 %5231  ;;  %v14341_v63 = vcombine.low %v8616_v6, %v8620_v5  ;;  %v14344_v21 = vcombine.low %v8640_v27, %v8644_v8  ;;  %v8748_v6 = vrot.slane %v5385_v31, %v25113_v34  ;;  %v8764_v27 = vrot.slane %v5385_v31, %v25117_v38 }
 0x769   : > { %25280 = vst [vmem:[#allocation94_spill] sm:$0xff] %v22818_v0  ;;  %v14245_v44 = vcombine.low %v8568_v14, %v8572_v56  ;;  %v14342_v40 = vcombine.low %v8624_v50, %v8628_v62  ;;  %v22829_v14 = vpop.xlane.xlu0 %5234  ;;  %v8752_v62 = vrot.slane %v5385_v31, %v25114_v26  ;;  %v8768_v8 = vrot.slane %v5385_v31, %v25118_v47 }
 0x76a   : > { %v14274_v24 = vrot.slane %v14246_v20, %v20302_v57  ;;  %v14372_v49 = vrot.slane %v14344_v21, %v20302_v57  ;;  %v14539_v1 = vcombine.low %v8760_v3, %v8764_v27 }
 0x76b   : > { %16120 = vperm.xlu0 %18482, %v25273_v19   ;;  %v25274_v19 = vld [vmem:[#allocation95_spill] sm:$0xff]  ;;  %v14267_v52 = vrot.slane %v14245_v44, %v20302_v57  ;;  %v14358_v12 = vrot.slane %v14342_v40, %v20302_v57  ;;  %v14537_v40 = vcombine.low %v8744_v9, %v8748_v6  ;;  %v14538_v51 = vcombine.low %v8752_v62, %v8756_v35  ;;  %v25292_v62 = vld [vmem:[#allocation50_spill] sm:$0xff] }
 0x76c   : > { %v5383_v11 = vadd.f32 %v25265_v37, %v25274_v19  ;;  %v25281_v19 = vld [vmem:[#allocation97_spill] sm:$0xff]  ;;  %25282 = vst [vmem:[#allocation95_spill] sm:$0xff] %v22829_v14  ;;  %v14351_v14 = vrot.slane %v14341_v63, %v20302_v57  ;;  %v22908_v6 = vadd.f32 %v25265_v37, %v22594_v55  ;;  %v16505_v35 = vrot.slane %v22810_v22, %v25292_v62 }
 0x76d   : > { %v22851_v41 = vpop.permute.xlu0 %16024  ;;  %v22866_v21 = vcombine.low %v14267_v52, %v14274_v24 }
 0x76e   : > { %v8680_v29 = vrot.slane %v5383_v11, %v25112_v17  ;;  %v8684_v23 = vrot.slane %v5383_v11, %v25113_v34  ;;  %v8688_v0 = vrot.slane %v5383_v11, %v25114_v26  ;;  %v8692_v56 = vrot.slane %v5383_v11, %v25115_v46 }
 0x76f   : > { %16126 = vperm.xlu0 %18482, %v25281_v19   ;;  %v8696_v28 = vrot.slane %v5383_v11, %v25116_v36  ;;  %v8700_v13 = vrot.slane %v5383_v11, %v25117_v38  ;;  %v8704_v5 = vrot.slane %v5383_v11, %v25118_v47  ;;  %v8708_v50 = vrot.slane %v5383_v11, %v20282_v16  ;;  %v22844_v11 = vpop.permute.xlu1 %16021 }
 0x770   : > { %v8772_v19 = vrot.slane %v5385_v31, %v20282_v16  ;;  %v14365_v31 = vrot.slane %v14343_v4, %v20302_v57  ;;  %v14439_v54 = vcombine.low %v8680_v29, %v8684_v23  ;;  %v14440_v44 = vcombine.low %v8688_v0, %v8692_v56  ;;  %v25289_v29 = vld [vmem:[#allocation41_spill] sm:$0xff] }
 0x771   : > { %v14441_v20 = vcombine.low %v8696_v28, %v8700_v13  ;;  %v14442_v63 = vcombine.low %v8704_v5, %v8708_v50  ;;  %v22864_v23 = vcombine.low %v14253_v30, %v14260_v32  ;;  %v16500_v56 = vrot.slane %v22778_v48, %v25289_v29  ;;  %v25290_v5 = vld [vmem:[#allocation43_spill] sm:$0xff] }
 0x772   : > { %v14540_v45 = vcombine.low %v8768_v8, %v8772_v19  ;;  %v22875_v28 = vcombine.low %v14365_v31, %v14372_v49  ;;  %v14449_v13 = vrot.slane %v14439_v54, %v20302_v57  ;;  %v16495_v50 = vrot.slane %v22739_v25, %v25290_v5 }
 0x773   : > { %16132 = vperm.xlu0 %18482, %v25283_v53   ;;  %v25284_v53 = vld [vmem:[#allocation101_spill] sm:$0xff]  ;;  %v22860_v60 = vpop.xlane.xlu1 %5237  ;;  %v14456_v52 = vrot.slane %v14440_v44, %v20302_v57  ;;  %v14463_v24 = vrot.slane %v14441_v20, %v20302_v57  ;;  %v14554_v48 = vrot.slane %v14538_v51, %v20302_v57  ;;  %v14561_v49 = vrot.slane %v14539_v1, %v20302_v57  ;;  %v25294_v20 = vld [vmem:[#allocation59_spill] sm:$0xff] }
 0x774   : > { %25287 = vst [vmem:[#allocation103_spill] sm:$0xff] %v22860_v60  ;;  %v14568_v54 = vrot.slane %v14540_v45, %v20302_v57  ;;  %v22890_v25 = vadd.f32 %v25265_v37, %v22492_v59  ;;  %v22899_v51 = vadd.f32 %v25265_v37, %v22532_v43  ;;  %v22919_v8 = vadd.f32 %v25265_v37, %v22667_v58  ;;  %v25298_v43 = vld [vmem:[#allocation25_spill] sm:$0xff] }
 0x775   : > { %16045 = vperm.xlu1 %18483, %v25284_v53   ;;  %v16486_v53 = vrot.slane %v22688_v15, %v25286_v39  ;;  %v22868_v15 = vcombine.low %v14351_v14, %v14358_v12  ;;  %v14470_v12 = vrot.slane %v14442_v63, %v20302_v57  ;;  %v25291_v14 = vld [vmem:[#allocation14_spill] sm:$0xff]  ;;  %v22915_v27 = vcombine.low %v14449_v13, %v14456_v52 }
 0x776   : > { %v16510_v9 = vrot.slane %v22844_v11, %v25291_v14  ;;  %v22925_v11 = vcombine.low %v14561_v49, %v14568_v54  ;;  %v8812_v31 = vrot.slane %v22890_v25, %v25113_v34  ;;  %v8828_v52 = vrot.slane %v22890_v25, %v25117_v38 }
 0x777   : > { %16138 = vperm.xlu0 %18482, %v22565_v18   ;;  %v22870_v18 = vpop.xlane.xlu0 %5240  ;;  %v16491_v0 = vsel %vm16304_vm2, %v16490_v2, %v16486_v53  ;;  %v14547_v2 = vrot.slane %v14537_v40, %v20302_v57  ;;  %v16028_v3 = vpop.permute.xlu1 %16027  ;;  %v22921_v19 = vcombine.low %v14463_v24, %v14470_v12  ;;  %v8816_v53 = vrot.slane %v22890_v25, %v25114_v26 }
 0x778   : > { %25288 = vst [vmem:[#allocation97_spill] sm:$0xff] %v22870_v18  ;;  %v16520_v63 = vrot.slane %v16028_v3, %v25294_v20  ;;  %v8820_v40 = vrot.slane %v22890_v25, %v25115_v46  ;;  %v8832_v24 = vrot.slane %v22890_v25, %v25118_v47  ;;  %v8836_v12 = vrot.slane %v22890_v25, %v20282_v16  ;;  %v25300_v20 = vld [vmem:[#allocation44_spill] sm:$0xff] }
 0x779   : > { %v22923_v55 = vcombine.low %v14547_v2, %v14554_v48  ;;  %v8872_v2 = vrot.slane %v22899_v51, %v25112_v17  ;;  %v8876_v48 = vrot.slane %v22899_v51, %v25113_v34  ;;  %v8888_v54 = vrot.slane %v22899_v51, %v25116_v36 }
 0x77a   : > { %v8936_v3 = vrot.slane %v22908_v6, %v25112_v17  ;;  %v8944_v30 = vrot.slane %v22908_v6, %v25114_v26  ;;  %v8956_v4 = vrot.slane %v22908_v6, %v25117_v38  ;;  %v9012_v62 = vrot.slane %v22919_v8, %v25115_v46 }
 0x77b   : > { %16144 = vperm.xlu0 %18482, %v22580_v7   ;;  %v16496_v7 = vsel %vm16311_vm3, %v16495_v50, %v16491_v0  ;;  %v16031_v1 = vpop.permute.xlu0 %16030  ;;  %v8824_v0 = vrot.slane %v22890_v25, %v25116_v36  ;;  %v14638_v5 = vcombine.low %v8832_v24, %v8836_v12  ;;  %v14733_v33 = vcombine.low %v8872_v2, %v8876_v48  ;;  %v25307_v24 = vld [vmem:[#allocation4_spill] sm:$0xff] }
 0x77c   : > { %v16501_v45 = vsel %vm16318_vm4, %v16500_v56, %v16496_v7  ;;  %v25295_v56 = vld [vmem:[#allocation60_spill] sm:$0xff]  ;;  %v8896_v7 = vrot.slane %v22899_v51, %v25118_v47  ;;  %v25308_v12 = vrot.slane %v25307_v24, %v20302_v57  ;;  %v25309_v48 = vrot.slane %v22866_v21, %v20302_v57 }
 0x77d   : > { %v16506_v22 = vsel %vm16325_vm5, %v16505_v35, %v16501_v45  ;;  %v16515_v13 = vrot.slane %v22851_v41, %v25295_v56  ;;  %v8880_v41 = vrot.slane %v22899_v51, %v25114_v26  ;;  %v8900_v35 = vrot.slane %v22899_v51, %v20282_v16 }
 0x77e   : > { %v16511_v44 = vsel %vm16332_vm6, %v16510_v9, %v16506_v22  ;;  %v8940_v22 = vrot.slane %v22908_v6, %v25113_v34  ;;  %v9004_v56 = vrot.slane %v22919_v8, %v25113_v34  ;;  %v14637_v60 = vcombine.low %v8824_v0, %v8828_v52 }
 0x77f   : > { %16150 = vperm.xlu0 %18482, %v22588_v42   ;;  %v8808_v42 = vrot.slane %v22890_v25, %v25112_v17  ;;  %v22934_v58 = vpop.xlane.xlu0 %5246  ;;  %v16516_v49 = vsel %vm16339_vm7, %v16515_v13, %v16511_v44  ;;  %v8892_v25 = vrot.slane %v22899_v51, %v25117_v38  ;;  %v25297_v44 = vld [vmem:[#allocation32_spill] sm:$0xff]  ;;  %v14577_v21 = vrot.slane %v22923_v55, %v20302_v57 }
 0x780   : > { %25293 = vst [vmem:[#allocation100_spill] sm:$0xff] %v22934_v58  ;;  %v16521_v9 = vsel %vm16346_vm8, %v16520_v63, %v16516_v49  ;;  %v16525_v13 = vrot.slane %v16031_v1, %v25297_v44  ;;  %v8948_v63 = vrot.slane %v22908_v6, %v25115_v46  ;;  %v25299_v49 = vld [vmem:[#allocation65_spill] sm:$0xff]  ;;  %v8960_v1 = vrot.slane %v22908_v6, %v25118_v47 }
 0x781   : > { %v9000_v44 = vrot.slane %v22919_v8, %v25112_v17  ;;  %v14735_v58 = vcombine.low %v8888_v54, %v8892_v25  ;;  %v14831_v18 = vcombine.low %v8936_v3, %v8940_v22 }
 0x782   : > { %v16526_v29 = vsel %vm16353_vm9, %v16525_v13, %v16521_v9  ;;  %v9020_v13 = vrot.slane %v22919_v8, %v25117_v38 }
 0x783   : > { %v22944_v50 = vpop.xlane.xlu1 %5243  ;;  %16156 = vperm.xlu0 %18482, %v22590_v61   ;;  %v8884_v61 = vrot.slane %v22899_v51, %v25115_v46  ;;  %v16037_v45 = vpop.permute.xlu0 %16036  ;;  %v8952_v51 = vrot.slane %v22908_v6, %v25116_v36  ;;  %v14929_v38 = vcombine.low %v9000_v44, %v9004_v56 }
 0x784   : > { %25296 = vst [vmem:[#allocation101_spill] sm:$0xff] %v22944_v50  ;;  %v16535_v14 = vrot.slane %v16037_v45, %v25300_v20  ;;  %v25301_v45 = vld [vmem:[#allocation27_spill] sm:$0xff]  ;;  %v14635_v20 = vcombine.low %v8808_v42, %v8812_v31  ;;  %v14636_v50 = vcombine.low %v8816_v53, %v8820_v40  ;;  %v14659_v31 = vrot.slane %v14637_v60, %v20302_v57 }
 0x785   : > { %v14734_v39 = vcombine.low %v8880_v41, %v8884_v61  ;;  %v14666_v53 = vrot.slane %v14638_v5, %v20302_v57  ;;  %v14743_v40 = vrot.slane %v14733_v33, %v20302_v57  ;;  %v14939_v60 = vrot.slane %v14929_v38, %v20302_v57 }
 0x786   : > { %v14652_v42 = vrot.slane %v14636_v50, %v20302_v57  ;;  %v25304_v50 = vld [vmem:[#allocation74_spill] sm:$0xff]  ;;  %v14486_v61 = vrot.slane %v22921_v19, %v20302_v57 }
 0x787   : > { %v16034_v59 = vpop.permute.xlu1 %16033  ;;  %16162 = vperm.xlu0 %18482, %v25298_v43   ;;  %v8964_v43 = vrot.slane %v22908_v6, %v20282_v16  ;;  %v9016_v6 = vrot.slane %v22919_v8, %v25116_v36  ;;  %v25303_v36 = vld [vmem:[#allocation16_spill] sm:$0xff]  ;;  %v14668_v25 = vcombine.low %v14659_v31, %v14666_v53  ;;  %v25313_v19 = vld [vmem:[#allocation6_spill] sm:$0xff] }
 0x788   : > { %v16530_v32 = vrot.slane %v16034_v59, %v25299_v49  ;;  %v9008_v49 = vrot.slane %v22919_v8, %v25114_v26 }
 0x789   : > { %v14682_v53 = vrot.slane %v14668_v25, %v20302_v57 }
 0x78a   : > { %v16531_v59 = vsel %vm16360_vm10, %v16530_v32, %v16526_v29  ;;  %v9024_v29 = vrot.slane %v22919_v8, %v25118_v47  ;;  %v9028_v32 = vrot.slane %v22919_v8, %v20282_v16  ;;  %v14930_v46 = vcombine.low %v9008_v49, %v9012_v62  ;;  %v25315_v49 = vld [vmem:[#allocation56_spill] sm:$0xff] }
 0x78b   : > { %16168 = vperm.xlu0 %18482, %v25301_v45   ;;  %v23005_v9 = vsel %vm16367_vm11, %v16535_v14, %v16531_v59  ;;  %v14736_v45 = vcombine.low %v8896_v7, %v8900_v35  ;;  %v14832_v14 = vcombine.low %v8944_v30, %v8948_v63  ;;  %v14833_v59 = vcombine.low %v8952_v51, %v8956_v4  ;;  %v25314_v51 = vld [vmem:[#allocation7_spill] sm:$0xff] }
 0x78c   : > { %25302 = vst [vmem:[#allocation25_spill] sm:$0xff] %v23005_v9  ;;  %v14834_v9 = vcombine.low %v8960_v1, %v8964_v43  ;;  %v14931_v47 = vcombine.low %v9016_v6, %v9020_v13  ;;  %v14932_v26 = vcombine.low %v9024_v29, %v9028_v32  ;;  %v14645_v8 = vrot.slane %v14635_v20, %v20302_v57  ;;  %v25317_v43 = vld [vmem:[#allocation9_spill] sm:$0xff]  ;;  %v25319_v32 = vld [vmem:[#allocation86_spill] sm:$0xff] }
 0x78d   : > { %v14750_v30 = vrot.slane %v14734_v39, %v20302_v57  ;;  %v14757_v4 = vrot.slane %v14735_v58, %v20302_v57  ;;  %v14841_v62 = vrot.slane %v14831_v18, %v20302_v57  ;;  %v14848_v0 = vrot.slane %v14832_v14, %v20302_v57  ;;  %v25305_v58 = vld [vmem:[#allocation22_spill] sm:$0xff]  ;;  %v25320_v14 = vld [vmem:[#allocation73_spill] sm:$0xff] }
 0x78e   : > { %v14855_v20 = vrot.slane %v14833_v59, %v20302_v57  ;;  %v14862_v56 = vrot.slane %v14834_v9, %v20302_v57  ;;  %v14946_v33 = vrot.slane %v14930_v46, %v20302_v57  ;;  %v14953_v39 = vrot.slane %v14931_v47, %v20302_v57  ;;  %v25318_v9 = vld [vmem:[#allocation10_spill] sm:$0xff] }
 0x78f   : > { %16174 = vperm.xlu0 %18482, %v25303_v36   ;;  %v14764_v36 = vrot.slane %v14736_v45, %v20302_v57  ;;  %v14960_v5 = vrot.slane %v14932_v26, %v20302_v57  ;;  %v5392_v52 = vadd.f32 %v25265_v37, %v25305_v58  ;;  %v25306_v18 = vrot.slane %v22814_v10, %v20302_v57 }
 0x790   : > { %v25310_v46 = vrot.slane %v22864_v23, %v20302_v57  ;;  %v25311_v47 = vrot.slane %v22875_v28, %v20302_v57  ;;  %v25312_v26 = vrot.slane %v22868_v15, %v20302_v57  ;;  %v14479_v10 = vrot.slane %v22915_v27, %v20302_v57 }
 0x791   : > { %v14193_v2 = vcombine.low %v25308_v12, %v25306_v18  ;;  %v14584_v23 = vrot.slane %v22925_v11, %v20302_v57  ;;  %v14667_v54 = vcombine.low %v14645_v8, %v14652_v42  ;;  %v14765_v7 = vcombine.low %v14743_v40, %v14750_v30  ;;  %v25316_v11 = vld [vmem:[#allocation8_spill] sm:$0xff] }
 0x792   : > { %v14291_v38 = vcombine.low %v25310_v46, %v25309_v48  ;;  %v14389_v41 = vcombine.low %v25312_v26, %v25311_v47  ;;  %v14766_v28 = vcombine.low %v14757_v4, %v14764_v36  ;;  %v14863_v35 = vcombine.low %v14841_v62, %v14848_v0  ;;  %v25322_v46 = vld [vmem:[#allocation95_spill] sm:$0xff] }
 0x793   : > { %16180 = vperm.xlu0 %18482, %v25304_v50   ;;  %v14864_v15 = vcombine.low %v14855_v20, %v14862_v56  ;;  %v14961_v3 = vcombine.low %v14939_v60, %v14946_v33  ;;  %v14962_v22 = vcombine.low %v14953_v39, %v14960_v5  ;;  %v8968_v27 = vrot.slane %v5392_v52, %v25112_v17 }
 0x794   : > { %v8972_v44 = vrot.slane %v5392_v52, %v25113_v34  ;;  %v8976_v63 = vrot.slane %v5392_v52, %v25313_v19  ;;  %v8980_v55 = vrot.slane %v5392_v52, %v25314_v51  ;;  %v8984_v1 = vrot.slane %v5392_v52, %v25316_v11 }
 0x795   : > { %v8988_v6 = vrot.slane %v5392_v52, %v25317_v43  ;;  %v8992_v13 = vrot.slane %v5392_v52, %v25318_v9  ;;  %v8996_v29 = vrot.slane %v5392_v52, %v20282_v16  ;;  %v23070_v45 = vadd.f32 %v25265_v37, %v25319_v32 }
 0x796   : > { %v5394_v59 = vadd.f32 %v25265_v37, %v25320_v14  ;;  %v14487_v8 = vcombine.low %v14479_v10, %v14486_v61  ;;  %v14585_v42 = vcombine.low %v14577_v21, %v14584_v23  ;;  %v14675_v31 = vrot.slane %v14667_v54, %v20302_v57  ;;  %v25323_v10 = vld [vmem:[#allocation97_spill] sm:$0xff] }
 0x797   : > { %16186 = vperm.xlu0 %18482, %v14193_v2   ;;  %v14773_v40 = vrot.slane %v14765_v7, %v20302_v57  ;;  %v14780_v30 = vrot.slane %v14766_v28, %v20302_v57  ;;  %v14871_v4 = vrot.slane %v14863_v35, %v20302_v57  ;;  %v14878_v36 = vrot.slane %v14864_v15, %v20302_v57  ;;  %v25321_v2 = vld [vmem:[#allocation90_spill] sm:$0xff] }
 0x798   : > { %v14969_v62 = vrot.slane %v14961_v3, %v20302_v57  ;;  %v14976_v0 = vrot.slane %v14962_v22, %v20302_v57  ;;  %v14880_v20 = vcombine.low %v8968_v27, %v8972_v44  ;;  %v14881_v56 = vcombine.low %v8976_v63, %v8980_v55 }
 0x799   : > { %5261 = vadd.xlane.f32.xlu1 %v25315_v49  ;;  %v14882_v50 = vcombine.low %v8984_v1, %v8988_v6  ;;  %v14883_v60 = vcombine.low %v8992_v13, %v8996_v29  ;;  %v9032_v33 = vrot.slane %v5394_v59, %v25112_v17  ;;  %v9036_v39 = vrot.slane %v5394_v59, %v25113_v34 }
 0x79a   : > { %v9040_v5 = vrot.slane %v5394_v59, %v25313_v19  ;;  %v9044_v58 = vrot.slane %v5394_v59, %v25314_v51  ;;  %v9048_v52 = vrot.slane %v5394_v59, %v25316_v11  ;;  %v9052_v18 = vrot.slane %v5394_v59, %v25317_v43 }
 0x79b   : > { %16192 = vperm.xlu0 %18482, %v14291_v38   ;;  %v9056_v24 = vrot.slane %v5394_v59, %v25318_v9  ;;  %v9060_v12 = vrot.slane %v5394_v59, %v20282_v16  ;;  %v5397_v48 = vadd.f32 %v25265_v37, %v25321_v2  ;;  %v5399_v38 = vadd.f32 %v25265_v37, %v25322_v46 }
 0x79c   : > { %v14683_v47 = vcombine.low %v14675_v31, %v14682_v53  ;;  %v14781_v26 = vcombine.low %v14773_v40, %v14780_v30  ;;  %v23096_v61 = vadd.f32 %v25265_v37, %v25323_v10  ;;  %v23102_v23 = vcombine.low %v14871_v4, %v14878_v36 }
 0x79d   : > { %v23104_v54 = vcombine.low %v14969_v62, %v14976_v0  ;;  %v14890_v25 = vrot.slane %v14880_v20, %v20302_v57  ;;  %v14897_v7 = vrot.slane %v14881_v56, %v20302_v57  ;;  %v14904_v28 = vrot.slane %v14882_v50, %v20302_v57 }
 0x79e   : > { %v14911_v35 = vrot.slane %v14883_v60, %v20302_v57  ;;  %v14978_v15 = vcombine.low %v9032_v33, %v9036_v39  ;;  %v14979_v3 = vcombine.low %v9040_v5, %v9044_v58  ;;  %v14980_v22 = vcombine.low %v9048_v52, %v9052_v18  ;;  %v25325_v33 = vld [vmem:[#allocation26_spill] sm:$0xff] }
 0x79f   : > { %16198 = vperm.xlu0 %18482, %v14389_v41   ;;  %v25324_v41 = vld [vmem:[#allocation100_spill] sm:$0xff]  ;;  %v14981_v27 = vcombine.low %v9056_v24, %v9060_v12  ;;  %v9128_v44 = vrot.slane %v5397_v48, %v25112_v17  ;;  %v9132_v63 = vrot.slane %v5397_v48, %v25113_v34  ;;  %v9136_v55 = vrot.slane %v5397_v48, %v25313_v19  ;;  %v25326_v52 = vld [vmem:[#allocation54_spill] sm:$0xff] }
 0x7a0   : > { %v23100_v21 = vadd.f32 %v25265_v37, %v25324_v41  ;;  %v9140_v49 = vrot.slane %v5397_v48, %v25314_v51  ;;  %v9144_v1 = vrot.slane %v5397_v48, %v25316_v11  ;;  %v9148_v6 = vrot.slane %v5397_v48, %v25317_v43 }
 0x7a1   : > { %v9152_v13 = vrot.slane %v5397_v48, %v25318_v9  ;;  %v9156_v29 = vrot.slane %v5397_v48, %v20282_v16  ;;  %v9192_v32 = vrot.slane %v5399_v38, %v25112_v17  ;;  %v9196_v14 = vrot.slane %v5399_v38, %v25113_v34 }
 0x7a2   : > { %v9200_v59 = vrot.slane %v5399_v38, %v25313_v19  ;;  %v14912_v31 = vcombine.low %v14890_v25, %v14897_v7  ;;  %v14913_v53 = vcombine.low %v14904_v28, %v14911_v35  ;;  %v14988_v40 = vrot.slane %v14978_v15, %v20302_v57 }
 0x7a3   : > { %16204 = vperm.xlu0 %18482, %v14487_v8   ;;  %v9204_v8 = vrot.slane %v5399_v38, %v25314_v51  ;;  %v14995_v30 = vrot.slane %v14979_v3, %v20302_v57  ;;  %v15002_v4 = vrot.slane %v14980_v22, %v20302_v57  ;;  %v15009_v36 = vrot.slane %v14981_v27, %v20302_v57 }
 0x7a4   : > { %v15125_v62 = vcombine.low %v9128_v44, %v9132_v63  ;;  %v15126_v0 = vcombine.low %v9136_v55, %v9140_v49  ;;  %v15127_v20 = vcombine.low %v9144_v1, %v9148_v6  ;;  %v15128_v56 = vcombine.low %v9152_v13, %v9156_v29  ;;  %v5253_v55 = vpop.xlane.xlu0 %5252 }
 0x7a5   : > { %v9208_v50 = vrot.slane %v5399_v38, %v25316_v11  ;;  %v9212_v60 = vrot.slane %v5399_v38, %v25317_v43  ;;  %v9220_v39 = vrot.slane %v5399_v38, %v20282_v16  ;;  %v15223_v5 = vcombine.low %v9192_v32, %v9196_v14 }
 0x7a6   : > { %v15224_v58 = vcombine.low %v9200_v59, %v9204_v8  ;;  %v23133_v18 = vadd.f32 %v25265_v37, %v25326_v52  ;;  %v9064_v24 = vrot.slane %v23070_v45, %v25112_v17  ;;  %v9068_v12 = vrot.slane %v23070_v45, %v25113_v34 }
 0x7a7   : > { %16210 = vperm.xlu0 %18482, %v14585_v42   ;;  %v9216_v42 = vrot.slane %v5399_v38, %v25318_v9  ;;  %v9072_v2 = vrot.slane %v23070_v45, %v25313_v19  ;;  %v14920_v48 = vrot.slane %v14912_v31, %v20302_v57  ;;  %v14927_v46 = vrot.slane %v14913_v53, %v20302_v57 }
 0x7a8   : > { %v15010_v38 = vcombine.low %v14988_v40, %v14995_v30  ;;  %v15011_v10 = vcombine.low %v15002_v4, %v15009_v36  ;;  %v15135_v41 = vrot.slane %v15125_v62, %v20302_v57  ;;  %v15142_v25 = vrot.slane %v15126_v0, %v20302_v57  ;;  %v16043_v36 = vpop.permute.xlu0 %16042 }
 0x7a9   : > { %v15156_v7 = vrot.slane %v15128_v56, %v20302_v57  ;;  %v15225_v28 = vcombine.low %v9208_v50, %v9212_v60  ;;  %v15226_v35 = vcombine.low %v9216_v42, %v9220_v39  ;;  %v15233_v15 = vrot.slane %v15223_v5, %v20302_v57 }
 0x7aa   : > { %16051 = vperm.xlu1 %18483, %v25325_v33   ;;  %v15240_v3 = vrot.slane %v15224_v58, %v20302_v57  ;;  %v9256_v22 = vrot.slane %v23096_v61, %v25112_v17  ;;  %v9260_v27 = vrot.slane %v23096_v61, %v25113_v34  ;;  %v9264_v44 = vrot.slane %v23096_v61, %v25313_v19 }
 0x7ab   : > { %16216 = vperm.xlu0 %18482, %v14683_v47   ;;  %v15149_v47 = vrot.slane %v15127_v20, %v20302_v57  ;;  %v9268_v63 = vrot.slane %v23096_v61, %v25314_v51  ;;  %v9272_v49 = vrot.slane %v23096_v61, %v25316_v11  ;;  %v9276_v1 = vrot.slane %v23096_v61, %v25317_v43 }
 0x7ac   : > { %v9284_v6 = vrot.slane %v23096_v61, %v20282_v16  ;;  %v14928_v13 = vcombine.low %v14920_v48, %v14927_v46  ;;  %v9076_v29 = vrot.slane %v23070_v45, %v25314_v51  ;;  %v9080_v32 = vrot.slane %v23070_v45, %v25316_v11  ;;  %v25327_v46 = vld [vmem:[#allocation52_spill] sm:$0xff] }
 0x7ad   : > { %v9084_v14 = vrot.slane %v23070_v45, %v25317_v43  ;;  %v15018_v59 = vrot.slane %v15010_v38, %v20302_v57  ;;  %v15025_v8 = vrot.slane %v15011_v10, %v20302_v57  ;;  %v23173_v31 = vcombine.low %v15135_v41, %v15142_v25 }
 0x7ae   : > { %v9088_v53 = vrot.slane %v23070_v45, %v25318_v9  ;;  %v15247_v40 = vrot.slane %v15225_v28, %v20302_v57  ;;  %v15254_v30 = vrot.slane %v15226_v35, %v20302_v57  ;;  %v23181_v4 = vcombine.low %v15233_v15, %v15240_v3 }
 0x7af   : > { %16222 = vperm.xlu0 %18482, %v14781_v26   ;;  %v9280_v26 = vrot.slane %v23096_v61, %v25318_v9  ;;  %v23177_v61 = vcombine.low %v15149_v47, %v15156_v7  ;;  %v15321_v62 = vcombine.low %v9256_v22, %v9260_v27  ;;  %v15322_v0 = vcombine.low %v9264_v44, %v9268_v63 }
 0x7b0   : > { %v15323_v20 = vcombine.low %v9272_v49, %v9276_v1  ;;  %v9320_v50 = vrot.slane %v23100_v21, %v25112_v17  ;;  %v9324_v60 = vrot.slane %v23100_v21, %v25113_v34  ;;  %v9328_v33 = vrot.slane %v23100_v21, %v25313_v19 }
 0x7b1   : > { %v15324_v56 = vcombine.low %v9280_v26, %v9284_v6  ;;  %v9332_v42 = vrot.slane %v23100_v21, %v25314_v51  ;;  %v9336_v39 = vrot.slane %v23100_v21, %v25316_v11  ;;  %v9340_v5 = vrot.slane %v23100_v21, %v25317_v43 }
 0x7b2   : > { %v9344_v58 = vrot.slane %v23100_v21, %v25318_v9  ;;  %v9348_v52 = vrot.slane %v23100_v21, %v20282_v16  ;;  %v5405_v48 = vadd.f32 %v25265_v37, %v5253_v55  ;;  %v16545_v38 = vrot.slane %v16043_v36, %v25327_v46 }
 0x7b3   : > { %16231 = vperm.xlu0 %18482, %v14928_v13   ;;  %v15026_v10 = vcombine.low %v15018_v59, %v15025_v8  ;;  %v9092_v41 = vrot.slane %v23070_v45, %v20282_v16  ;;  %v15165_v47 = vrot.slane %v23173_v31, %v20302_v57  ;;  %v15172_v7 = vrot.slane %v23177_v61, %v20302_v57  ;;  %v25329_v61 = vld [vmem:[#allocation68_spill] sm:$0xff] }
 0x7b4   : > { %v15256_v21 = vcombine.low %v15247_v40, %v15254_v30  ;;  %v15263_v28 = vrot.slane %v23181_v4, %v20302_v57  ;;  %v15331_v35 = vrot.slane %v15321_v62, %v20302_v57  ;;  %v15345_v15 = vrot.slane %v15323_v20, %v20302_v57 }
 0x7b5   : > { %v15352_v3 = vrot.slane %v15324_v56, %v20302_v57  ;;  %v15419_v22 = vcombine.low %v9320_v50, %v9324_v60  ;;  %v15420_v27 = vcombine.low %v9328_v33, %v9332_v42  ;;  %v15421_v44 = vcombine.low %v9336_v39, %v9340_v5  ;;  %v25330_v50 = vld [vmem:[#allocation25_spill] sm:$0xff] }
 0x7b6   : > { %v15422_v63 = vcombine.low %v9344_v58, %v9348_v52  ;;  %v9384_v55 = vrot.slane %v5405_v48, %v25112_v17  ;;  %v9388_v49 = vrot.slane %v5405_v48, %v25113_v34  ;;  %v9392_v1 = vrot.slane %v5405_v48, %v25313_v19 }
 0x7b7   : > { %16228 = vperm.xlu0 %18482, %v23102_v23   ;;  %v15338_v23 = vrot.slane %v15322_v0, %v20302_v57  ;;  %v9396_v26 = vrot.slane %v5405_v48, %v25314_v51  ;;  %v9400_v13 = vrot.slane %v5405_v48, %v25316_v11  ;;  %v9404_v59 = vrot.slane %v5405_v48, %v25317_v43 }
 0x7b8   : > { %v23204_v25 = vpop.xlane.xlu1 %5249  ;;  %v9408_v8 = vrot.slane %v5405_v48, %v25318_v9  ;;  %v9412_v31 = vrot.slane %v5405_v48, %v20282_v16  ;;  %v15270_v30 = vrot.slane %v15256_v21, %v20302_v57  ;;  %v15354_v36 = vcombine.low %v15345_v15, %v15352_v3 }
 0x7b9   : > { %25328 = vst [vmem:[#allocation27_spill] sm:$0xff] %v23204_v25  ;;  %v15353_v4 = vcombine.low %v15331_v35, %v15338_v23  ;;  %v15429_v62 = vrot.slane %v15419_v22, %v20302_v57  ;;  %v15436_v0 = vrot.slane %v15420_v27, %v20302_v57  ;;  %v15443_v20 = vrot.slane %v15421_v44, %v20302_v57  ;;  %v25331_v27 = vld [vmem:[#allocation28_spill] sm:$0xff] }
 0x7ba   : > { %v15450_v56 = vrot.slane %v15422_v63, %v20302_v57  ;;  %v15517_v33 = vcombine.low %v9384_v55, %v9388_v49  ;;  %v15518_v42 = vcombine.low %v9392_v1, %v9396_v26  ;;  %v15027_v39 = vcombine.low %v9064_v24, %v9068_v12 }
 0x7bb   : > { %16237 = vperm.xlu0 %18482, %v15026_v10   ;;  %v15519_v5 = vcombine.low %v9400_v13, %v9404_v59  ;;  %v15520_v58 = vcombine.low %v9408_v8, %v9412_v31  ;;  %v15028_v52 = vcombine.low %v9072_v2, %v9076_v29  ;;  %v15173_v48 = vcombine.low %v15165_v47, %v15172_v7 }
 0x7bc   : > { %v16040_v6 = vpop.permute.xlu1 %16039  ;;  %v15271_v10 = vcombine.low %v15263_v28, %v15270_v30  ;;  %v15029_v24 = vcombine.low %v9080_v32, %v9084_v14  ;;  %v15030_v12 = vcombine.low %v9088_v53, %v9092_v41  ;;  %v15361_v21 = vrot.slane %v15353_v4, %v20302_v57 }
 0x7bd   : > { %v16540_v40 = vrot.slane %v16040_v6, %v25329_v61  ;;  %v15368_v2 = vrot.slane %v15354_v36, %v20302_v57  ;;  %v15451_v29 = vcombine.low %v15429_v62, %v15436_v0  ;;  %v15527_v47 = vrot.slane %v15517_v33, %v20302_v57 }
 0x7be   : > { %v15534_v7 = vrot.slane %v15518_v42, %v20302_v57  ;;  %v9096_v28 = vrot.slane %v23133_v18, %v25112_v17  ;;  %v9100_v32 = vrot.slane %v23133_v18, %v25113_v34  ;;  %v15541_v45 = vrot.slane %v15519_v5, %v20302_v57  ;;  %v25339_v42 = vld [vmem:[#allocation109_spill] sm:$0xff]  ;;  %v25340_v5 = vld [vmem:[#allocation98_spill] sm:$0xff] }
 0x7bf   : > { %v16541_v60 = vsel %vm16374_vm12, %v16540_v40, %v25330_v50  ;;  %16234 = vperm.xlu0 %18482, %v23104_v54   ;;  %v15548_v14 = vrot.slane %v15520_v58, %v20302_v57  ;;  %v9104_v53 = vrot.slane %v23133_v18, %v25313_v19  ;;  %v9108_v41 = vrot.slane %v23133_v18, %v25314_v51 }
 0x7c0   : > { %v23246_v54 = vsel %vm16381_vm13, %v16545_v38, %v16541_v60  ;;  %v15452_v38 = vcombine.low %v15443_v20, %v15450_v56  ;;  %v9112_v35 = vrot.slane %v23133_v18, %v25316_v11  ;;  %v9116_v23 = vrot.slane %v23133_v18, %v25317_v43  ;;  %v25338_v60 = vld [vmem:[#allocation45_spill] sm:$0xff] }
 0x7c1   : > { %v9120_v15 = vrot.slane %v23133_v18, %v25318_v9  ;;  %v9124_v3 = vrot.slane %v23133_v18, %v20282_v16  ;;  %v15037_v22 = vrot.slane %v15027_v39, %v20302_v57  ;;  %v25332_v44 = vrot.slane %v25331_v27, %v25314_v51 }
 0x7c2   : > { %v25333_v63 = vrot.slane %v25331_v27, %v25313_v19  ;;  %v25334_v49 = vrot.slane %v25331_v27, %v25317_v43  ;;  %v25335_v1 = vrot.slane %v25331_v27, %v25316_v11  ;;  %v25336_v6 = vrot.slane %v25331_v27, %v20282_v16 }
 0x7c3   : > { %16246 = vperm.xlu0 %18482, %v15173_v48   ;;  %v25337_v18 = vrot.slane %v25331_v27, %v25318_v9  ;;  %v15369_v59 = vcombine.low %v15361_v21, %v15368_v2  ;;  %v15044_v8 = vrot.slane %v15028_v52, %v20302_v57  ;;  %v15051_v31 = vrot.slane %v15029_v24, %v20302_v57 }
 0x7c4   : > { %v12235_v55 = vcombine.low %v25333_v63, %v25332_v44  ;;  %v12236_v26 = vcombine.low %v25335_v1, %v25334_v49  ;;  %v15058_v40 = vrot.slane %v15030_v12, %v20302_v57  ;;  %v15459_v30 = vrot.slane %v15451_v29, %v20302_v57  ;;  %v25343_v12 = vld [vmem:[#allocation85_spill] sm:$0xff] }
 0x7c5   : > { %v12237_v13 = vcombine.low %v25337_v18, %v25336_v6  ;;  %v15466_v4 = vrot.slane %v15452_v38, %v20302_v57  ;;  %v15549_v36 = vcombine.low %v15527_v47, %v15534_v7  ;;  %v15076_v62 = vcombine.low %v9096_v28, %v9100_v32  ;;  %v25349_v18 = vld [vmem:[#allocation84_spill] sm:$0xff] }
 0x7c6   : > { %v15550_v0 = vcombine.low %v15541_v45, %v15548_v14  ;;  %v15077_v20 = vcombine.low %v9104_v53, %v9108_v41  ;;  %v15078_v56 = vcombine.low %v9112_v35, %v9116_v23  ;;  %v15079_v50 = vcombine.low %v9120_v15, %v9124_v3  ;;  %v25345_v35 = vld [vmem:[#allocation105_spill] sm:$0xff]  ;;  %v25346_v3 = vld [vmem:[#allocation31_spill] sm:$0xff] }
 0x7c7   : > { %16252 = vperm.xlu0 %18482, %v15271_v10   ;;  %v12160_v33 = vrot.slane %v25338_v60, %v20302_v57  ;;  %v12167_v39 = vrot.slane %v25339_v42, %v20302_v57  ;;  %v12244_v58 = vrot.slane %v25340_v5, %v20302_v57  ;;  %v12251_v52 = vrot.slane %v12235_v55, %v20302_v57  ;;  %v25341_v10 = vld [vmem:[#allocation108_spill] sm:$0xff]  ;;  %v25351_v42 = vld [vmem:[#allocation33_spill] sm:$0xff] }
 0x7c8   : > { %v15059_v48 = vcombine.low %v15037_v22, %v15044_v8  ;;  %v25342_v24 = vrot.slane %v25341_v10, %v20302_v57  ;;  %v25344_v21 = vrot.slane %v25343_v12, %v20302_v57  ;;  %v12258_v29 = vrot.slane %v12236_v26, %v20302_v57  ;;  %v25347_v26 = vld [vmem:[#allocation49_spill] sm:$0xff] }
 0x7c9   : > { %v12265_v38 = vrot.slane %v12237_v13, %v20302_v57  ;;  %v15467_v47 = vcombine.low %v15459_v30, %v15466_v4  ;;  %v15557_v7 = vrot.slane %v15549_v36, %v20302_v57  ;;  %v15060_v28 = vcombine.low %v15051_v31, %v15058_v40 }
 0x7ca   : > { %v23316_v2 = vcombine.low %v25344_v21, %v25342_v24  ;;  %v15086_v32 = vrot.slane %v15076_v62, %v20302_v57  ;;  %v15564_v45 = vrot.slane %v15550_v0, %v20302_v57  ;;  %v15093_v14 = vrot.slane %v15077_v20, %v20302_v57 }
 0x7cb   : > { %16258 = vperm.xlu0 %18482, %v15369_v59   ;;  %v15100_v53 = vrot.slane %v15078_v56, %v20302_v57  ;;  %v15107_v41 = vrot.slane %v15079_v50, %v20302_v57  ;;  %v23327_v23 = vcombine.low %v12160_v33, %v12167_v39  ;;  %v23329_v15 = vcombine.low %v12244_v58, %v12251_v52 }
 0x7cc   : > { %v7304_v22 = vrot.slane %v25346_v3, %v25112_v17  ;;  %v7308_v27 = vrot.slane %v25346_v3, %v25113_v34  ;;  %v7312_v44 = vrot.slane %v25346_v3, %v25313_v19  ;;  %v7316_v63 = vrot.slane %v25346_v3, %v25314_v51 }
 0x7cd   : > { %v7320_v55 = vrot.slane %v25346_v3, %v25316_v11  ;;  %v7324_v49 = vrot.slane %v25346_v3, %v25317_v43  ;;  %v15067_v1 = vrot.slane %v15059_v48, %v20302_v57  ;;  %v25348_v6 = vrot.slane %v25347_v26, %v20302_v57 }
 0x7ce   : > { %5267 = vadd.xlane.f32.xlu1 %v25345_v35  ;;  %v25350_v13 = vrot.slane %v25349_v18, %v20302_v57  ;;  %v12176_v8 = vrot.slane %v23316_v2, %v20302_v57  ;;  %v23352_v31 = vcombine.low %v12258_v29, %v12265_v38  ;;  %v15565_v40 = vcombine.low %v15557_v7, %v15564_v45  ;;  %v25352_v7 = vld [vmem:[#allocation35_spill] sm:$0xff] }
 0x7cf   : > { %16264 = vperm.xlu0 %18482, %v15467_v47   ;;  %v15074_v30 = vrot.slane %v15060_v28, %v20302_v57  ;;  %v15108_v4 = vcombine.low %v15086_v32, %v15093_v14  ;;  %v15109_v36 = vcombine.low %v15100_v53, %v15107_v41  ;;  %v12183_v62 = vrot.slane %v23327_v23, %v20302_v57 }
 0x7d0   : > { %v12086_v59 = vcombine.low %v25350_v13, %v25348_v6  ;;  %v12274_v0 = vrot.slane %v23329_v15, %v20302_v57  ;;  %v7328_v20 = vrot.slane %v25346_v3, %v25318_v9  ;;  %v7332_v56 = vrot.slane %v25346_v3, %v20282_v16 }
 0x7d1   : > { %v23363_v50 = vcombine.low %v7304_v22, %v7308_v27  ;;  %v23365_v60 = vcombine.low %v7312_v44, %v7316_v63  ;;  %v23367_v33 = vcombine.low %v7320_v55, %v7324_v49  ;;  %v7368_v39 = vrot.slane %v25351_v42, %v25112_v17  ;;  %v25353_v22 = vld [vmem:[#allocation37_spill] sm:$0xff] }
 0x7d2   : > { %v12281_v5 = vrot.slane %v23352_v31, %v20302_v57  ;;  %v7372_v58 = vrot.slane %v25351_v42, %v25113_v34  ;;  %v7376_v52 = vrot.slane %v25351_v42, %v25313_v19  ;;  %v7380_v48 = vrot.slane %v25351_v42, %v25314_v51 }
 0x7d3   : > { %16270 = vperm.xlu0 %18482, %v15565_v40   ;;  %v15075_v10 = vcombine.low %v15067_v1, %v15074_v30  ;;  %v15116_v24 = vrot.slane %v15108_v4, %v20302_v57  ;;  %v15123_v12 = vrot.slane %v15109_v36, %v20302_v57  ;;  %v7384_v21 = vrot.slane %v25351_v42, %v25316_v11 }
 0x7d4   : > { %v7388_v29 = vrot.slane %v25351_v42, %v25317_v43  ;;  %v7392_v38 = vrot.slane %v25351_v42, %v25318_v9  ;;  %v7396_v47 = vrot.slane %v25351_v42, %v20282_v16  ;;  %v7432_v28 = vrot.slane %v25352_v7, %v25112_v17 }
 0x7d5   : > { %v7436_v32 = vrot.slane %v25352_v7, %v25113_v34  ;;  %v7440_v45 = vrot.slane %v25352_v7, %v25313_v19  ;;  %v7444_v14 = vrot.slane %v25352_v7, %v25314_v51  ;;  %v7448_v53 = vrot.slane %v25352_v7, %v25316_v11 }
 0x7d6   : > { %v7452_v41 = vrot.slane %v25352_v7, %v25317_v43  ;;  %v7456_v35 = vrot.slane %v25352_v7, %v25318_v9  ;;  %v7460_v3 = vrot.slane %v25352_v7, %v20282_v16  ;;  %v7496_v27 = vrot.slane %v25353_v22, %v25112_v17 }
 0x7d7   : > { %16240 = vperm.xlu0 %18482, %v15075_v10   ;;  %v15124_v44 = vcombine.low %v15116_v24, %v15123_v12  ;;  %v7500_v63 = vrot.slane %v25353_v22, %v25113_v34  ;;  %v7504_v55 = vrot.slane %v25353_v22, %v25313_v19  ;;  %v7508_v49 = vrot.slane %v25353_v22, %v25314_v51 }
 0x7d8   : > { %v12335_v1 = vcombine.low %v7328_v20, %v7332_v56  ;;  %v12342_v26 = vrot.slane %v23363_v50, %v20302_v57  ;;  %v12430_v6 = vcombine.low %v7368_v39, %v7372_v58  ;;  %v12431_v18 = vcombine.low %v7376_v52, %v7380_v48 }
 0x7d9   : > { %v12432_v13 = vcombine.low %v7384_v21, %v7388_v29  ;;  %v12433_v31 = vcombine.low %v7392_v38, %v7396_v47  ;;  %v12528_v40 = vcombine.low %v7432_v28, %v7436_v32  ;;  %v12529_v30 = vcombine.low %v7440_v45, %v7444_v14  ;;  %v25354_v28 = vld [vmem:[#allocation36_spill] sm:$0xff] }
 0x7da   : > { %v12530_v4 = vcombine.low %v7448_v53, %v7452_v41  ;;  %v12531_v36 = vcombine.low %v7456_v35, %v7460_v3  ;;  %v7512_v42 = vrot.slane %v25353_v22, %v25316_v11  ;;  %v7516_v10 = vrot.slane %v25353_v22, %v25317_v43  ;;  %v25356_v35 = vld [vmem:[#allocation39_spill] sm:$0xff] }
 0x7db   : > { %16243 = vperm.xlu0 %18482, %v15124_v44   ;;  %v7520_v20 = vrot.slane %v25353_v22, %v25318_v9  ;;  %v7524_v56 = vrot.slane %v25353_v22, %v20282_v16  ;;  %v12626_v50 = vcombine.low %v7496_v27, %v7500_v63  ;;  %v12627_v39 = vcombine.low %v7504_v55, %v7508_v49 }
 0x7dc   : > { %v12349_v58 = vrot.slane %v23365_v60, %v20302_v57  ;;  %v12356_v52 = vrot.slane %v23367_v33, %v20302_v57  ;;  %v12363_v48 = vrot.slane %v12335_v1, %v20302_v57  ;;  %v12440_v24 = vrot.slane %v12430_v6, %v20302_v57 }
 0x7dd   : > { %v12447_v12 = vrot.slane %v12431_v18, %v20302_v57  ;;  %v12454_v21 = vrot.slane %v12432_v13, %v20302_v57  ;;  %v12461_v29 = vrot.slane %v12433_v31, %v20302_v57  ;;  %v12538_v38 = vrot.slane %v12528_v40, %v20302_v57  ;;  %v25357_v13 = vld [vmem:[#allocation42_spill] sm:$0xff] }
 0x7de   : > { %v12545_v47 = vrot.slane %v12529_v30, %v20302_v57  ;;  %v12552_v60 = vrot.slane %v12530_v4, %v20302_v57  ;;  %v12559_v7 = vrot.slane %v12531_v36, %v20302_v57  ;;  %v12628_v33 = vcombine.low %v7512_v42, %v7516_v10 }
 0x7df   : > { %16057 = vperm.xlu1 %18483, %v12086_v59   ;;  %v23438_v32 = vadd.f32 %v25265_v37, %v25354_v28  ;;  %v12629_v59 = vcombine.low %v7520_v20, %v7524_v56  ;;  %v12636_v45 = vrot.slane %v12626_v50, %v20302_v57  ;;  %v12643_v14 = vrot.slane %v12627_v39, %v20302_v57 }
 0x7e0   : > { %v23448_v53 = vcombine.low %v12176_v8, %v12183_v62  ;;  %v23453_v41 = vcombine.low %v12274_v0, %v12281_v5  ;;  %v7560_v3 = vrot.slane %v25356_v35, %v25112_v17  ;;  %v7564_v22 = vrot.slane %v25356_v35, %v25113_v34 }
 0x7e1   : > { %25355 = vst [vmem:[#allocation16_spill] sm:$0xff] %v23438_v32  ;;  %v23459_v27 = vcombine.low %v12342_v26, %v12349_v58  ;;  %v12365_v44 = vcombine.low %v12356_v52, %v12363_v48  ;;  %v12462_v23 = vcombine.low %v12440_v24, %v12447_v12  ;;  %v12463_v63 = vcombine.low %v12454_v21, %v12461_v29 }
 0x7e2   : > { %v23461_v55 = vcombine.low %v12538_v38, %v12545_v47  ;;  %v23463_v2 = vcombine.low %v12552_v60, %v12559_v7  ;;  %v12650_v8 = vrot.slane %v12628_v33, %v20302_v57  ;;  %v7568_v15 = vrot.slane %v25356_v35, %v25313_v19  ;;  %v23509_v60 = vpop.xlane.xlu0 %5258 }
 0x7e3   : > { %v12657_v62 = vrot.slane %v12629_v59, %v20302_v57  ;;  %v23469_v0 = vcombine.low %v12636_v45, %v12643_v14  ;;  %v7572_v5 = vrot.slane %v25356_v35, %v25314_v51  ;;  %v7576_v49 = vrot.slane %v25356_v35, %v25316_v11  ;;  %25358 = vst [vmem:[#allocation74_spill] sm:$0xff] %v23509_v60  ;;  %v25360_v14 = vld [vmem:[#allocation46_spill] sm:$0xff] }
 0x7e4   : > { %v7580_v1 = vrot.slane %v25356_v35, %v25317_v43  ;;  %v7584_v26 = vrot.slane %v25356_v35, %v25318_v9  ;;  %v7588_v6 = vrot.slane %v25356_v35, %v20282_v16  ;;  %v12724_v18 = vcombine.low %v7560_v3, %v7564_v22 }
 0x7e5   : > { %v7624_v31 = vrot.slane %v25357_v13, %v25112_v17  ;;  %v7628_v40 = vrot.slane %v25357_v13, %v25113_v34  ;;  %v7632_v30 = vrot.slane %v25357_v13, %v25313_v19  ;;  %v7636_v4 = vrot.slane %v25357_v13, %v25314_v51 }
 0x7e6   : > { %v7640_v36 = vrot.slane %v25357_v13, %v25316_v11  ;;  %v7644_v42 = vrot.slane %v25357_v13, %v25317_v43  ;;  %v7648_v10 = vrot.slane %v25357_v13, %v25318_v9  ;;  %v7652_v20 = vrot.slane %v25357_v13, %v20282_v16 }
 0x7e7   : > { %v12372_v56 = vrot.slane %v23459_v27, %v20302_v57  ;;  %v12379_v50 = vrot.slane %v12365_v44, %v20302_v57  ;;  %v12470_v39 = vrot.slane %v12462_v23, %v20302_v57  ;;  %v12477_v58 = vrot.slane %v12463_v63, %v20302_v57 }
 0x7e8   : > { %v12568_v52 = vrot.slane %v23461_v55, %v20302_v57  ;;  %v12575_v48 = vrot.slane %v23463_v2, %v20302_v57  ;;  %v12659_v24 = vcombine.low %v12650_v8, %v12657_v62  ;;  %v12725_v12 = vcombine.low %v7568_v15, %v7572_v5 }
 0x7e9   : > { %v12666_v21 = vrot.slane %v23469_v0, %v20302_v57  ;;  %v12726_v29 = vcombine.low %v7576_v49, %v7580_v1  ;;  %v12727_v38 = vcombine.low %v7584_v26, %v7588_v6  ;;  %v12734_v47 = vrot.slane %v12724_v18, %v20302_v57  ;;  %v16049_v0 = vpop.permute.xlu0 %16048 }
 0x7ea   : > { %v12822_v7 = vcombine.low %v7624_v31, %v7628_v40  ;;  %v12823_v33 = vcombine.low %v7632_v30, %v7636_v4  ;;  %v12824_v28 = vcombine.low %v7640_v36, %v7644_v42  ;;  %v12825_v59 = vcombine.low %v7648_v10, %v7652_v20  ;;  %v25362_v30 = vld [vmem:[#allocation77_spill] sm:$0xff] }
 0x7eb   : > { %v7688_v35 = vrot.slane %v25360_v14, %v25112_v17  ;;  %v7692_v3 = vrot.slane %v25360_v14, %v25113_v34  ;;  %v7696_v22 = vrot.slane %v25360_v14, %v25313_v19  ;;  %v7700_v27 = vrot.slane %v25360_v14, %v25314_v51  ;;  %v25364_v20 = vld [vmem:[#allocation61_spill] sm:$0xff] }
 0x7ec   : > { %v7704_v44 = vrot.slane %v25360_v14, %v25316_v11  ;;  %v7708_v23 = vrot.slane %v25360_v14, %v25317_v43  ;;  %v7712_v63 = vrot.slane %v25360_v14, %v25318_v9  ;;  %v7716_v55 = vrot.slane %v25360_v14, %v20282_v16 }
 0x7ed   : > { %v23511_v45 = vpop.xlane.xlu1 %5255  ;;  %v12673_v2 = vrot.slane %v12659_v24, %v20302_v57  ;;  %v12741_v8 = vrot.slane %v12725_v12, %v20302_v57  ;;  %v12748_v15 = vrot.slane %v12726_v29, %v20302_v57  ;;  %v12755_v62 = vrot.slane %v12727_v38, %v20302_v57 }
 0x7ee   : > { %25359 = vst [vmem:[#allocation22_spill] sm:$0xff] %v23511_v45  ;;  %v12832_v5 = vrot.slane %v12822_v7, %v20302_v57  ;;  %v12839_v49 = vrot.slane %v12823_v33, %v20302_v57  ;;  %v12846_v1 = vrot.slane %v12824_v28, %v20302_v57  ;;  %v12853_v26 = vrot.slane %v12825_v59, %v20302_v57 }
 0x7ef   : > { %v23537_v18 = vcombine.low %v12372_v56, %v12379_v50  ;;  %v23539_v13 = vcombine.low %v12470_v39, %v12477_v58  ;;  %v12920_v31 = vcombine.low %v7688_v35, %v7692_v3  ;;  %v12921_v40 = vcombine.low %v7696_v22, %v7700_v27  ;;  %v25369_v58 = vld [vmem:[#allocation48_spill] sm:$0xff] }
 0x7f0   : > { %v23542_v36 = vcombine.low %v12568_v52, %v12575_v48  ;;  %v12922_v42 = vcombine.low %v7704_v44, %v7708_v23  ;;  %v12923_v10 = vcombine.low %v7712_v63, %v7716_v55  ;;  %v16555_v24 = vrot.slane %v16049_v0, %v25364_v20  ;;  %v25371_v27 = vld [vmem:[#allocation12_spill] sm:$0xff] }
 0x7f1   : > { %v16046_v6 = vpop.permute.xlu1 %16045  ;;  %25361 = vst [vmem:[#allocation4_spill] sm:$0xff] %v23539_v13  ;;  %v23545_v12 = vcombine.low %v12666_v21, %v12673_v2  ;;  %v23547_v29 = vcombine.low %v12734_v47, %v12741_v8  ;;  %v23549_v38 = vcombine.low %v12748_v15, %v12755_v62  ;;  %v23553_v50 = vcombine.low %v12832_v5, %v12839_v49  ;;  %v25376_v49 = vld [vmem:[#allocation106_spill] sm:$0xff] }
 0x7f2   : > { %v16550_v4 = vrot.slane %v16046_v6, %v25362_v30  ;;  %25363 = vst [vmem:[#allocation6_spill] sm:$0xff] %v23542_v36  ;;  %v23555_v39 = vcombine.low %v12846_v1, %v12853_v26  ;;  %v7752_v52 = vrot.slane %v25369_v58, %v25112_v17  ;;  %v12930_v21 = vrot.slane %v12920_v31, %v20302_v57 }
 0x7f3   : > { %25365 = vst [vmem:[#allocation7_spill] sm:$0xff] %v23545_v12  ;;  %25366 = vst [vmem:[#allocation56_spill] sm:$0xff] %v23547_v29  ;;  %v12937_v47 = vrot.slane %v12921_v40, %v20302_v57  ;;  %v7756_v7 = vrot.slane %v25369_v58, %v25113_v34  ;;  %v12944_v33 = vrot.slane %v12922_v42, %v20302_v57 }
 0x7f4   : > { %v16551_v56 = vsel %vm16388_vm14, %v16550_v4, %v23246_v54  ;;  %25367 = vst [vmem:[#allocation8_spill] sm:$0xff] %v23553_v50  ;;  %25368 = vst [vmem:[#allocation9_spill] sm:$0xff] %v23555_v39  ;;  %v12951_v54 = vrot.slane %v12923_v10, %v20302_v57  ;;  %v7760_v28 = vrot.slane %v25369_v58, %v25313_v19 }
 0x7f5   : > { %v23560_v48 = vsel %vm16395_vm15, %v16555_v24, %v16551_v56  ;;  %v7764_v59 = vrot.slane %v25369_v58, %v25314_v51  ;;  %v7768_v14 = vrot.slane %v25369_v58, %v25316_v11  ;;  %v7772_v35 = vrot.slane %v25369_v58, %v25317_v43 }
 0x7f6   : > { %25370 = vst [vmem:[#allocation10_spill] sm:$0xff] %v23560_v48  ;;  %v7776_v3 = vrot.slane %v25369_v58, %v25318_v9  ;;  %v7780_v22 = vrot.slane %v25369_v58, %v20282_v16  ;;  %v7816_v44 = vrot.slane %v25371_v27, %v25112_v17  ;;  %v7820_v23 = vrot.slane %v25371_v27, %v25113_v34 }
 0x7f7   : > { %v7824_v63 = vrot.slane %v25371_v27, %v25313_v19  ;;  %v7828_v55 = vrot.slane %v25371_v27, %v25314_v51  ;;  %v7832_v2 = vrot.slane %v25371_v27, %v25316_v11  ;;  %v7836_v8 = vrot.slane %v25371_v27, %v25317_v43 }
 0x7f8   : > { %v7840_v15 = vrot.slane %v25371_v27, %v25318_v9  ;;  %v7844_v62 = vrot.slane %v25371_v27, %v20282_v16  ;;  %v23604_v26 = vcombine.low %v12930_v21, %v12937_v47  ;;  %v23606_v6 = vcombine.low %v12944_v33, %v12951_v54  ;;  %v25374_v21 = vld [vmem:[#allocation15_spill] sm:$0xff] }
 0x7f9   : > { %v23608_v31 = vcombine.low %v7752_v52, %v7756_v7  ;;  %v23610_v40 = vcombine.low %v7760_v28, %v7764_v59  ;;  %v23612_v4 = vcombine.low %v7768_v14, %v7772_v35  ;;  %v23614_v42 = vcombine.low %v7776_v3, %v7780_v22  ;;  %v25375_v59 = vld [vmem:[#allocation17_spill] sm:$0xff] }
 0x7fa   : > { %25372 = vst [vmem:[#allocation86_spill] sm:$0xff] %v23604_v26  ;;  %25373 = vst [vmem:[#allocation73_spill] sm:$0xff] %v23606_v6  ;;  %v23616_v10 = vcombine.low %v7816_v44, %v7820_v23  ;;  %v23618_v24 = vcombine.low %v7824_v63, %v7828_v55  ;;  %v23620_v56 = vcombine.low %v7832_v2, %v7836_v8  ;;  %v25378_v44 = vld [vmem:[#allocation62_spill] sm:$0xff] }
 0x7fb   : > { %v23622_v58 = vcombine.low %v7840_v15, %v7844_v62  ;;  %v7880_v47 = vrot.slane %v25374_v21, %v25112_v17  ;;  %v7884_v52 = vrot.slane %v25374_v21, %v25113_v34  ;;  %v7888_v7 = vrot.slane %v25374_v21, %v25313_v19 }
 0x7fc   : > { %v7892_v33 = vrot.slane %v25374_v21, %v25314_v51  ;;  %v7896_v54 = vrot.slane %v25374_v21, %v25316_v11  ;;  %v7900_v28 = vrot.slane %v25374_v21, %v25317_v43  ;;  %v7904_v35 = vrot.slane %v25374_v21, %v25318_v9 }
 0x7fd   : > { %v7908_v3 = vrot.slane %v25374_v21, %v20282_v16  ;;  %v23660_v15 = vcombine.low %v7880_v47, %v7884_v52  ;;  %v7944_v14 = vrot.slane %v25375_v59, %v25112_v17  ;;  %v7948_v0 = vrot.slane %v25375_v59, %v25113_v34 }
 0x7fe   : > { %v23662_v62 = vcombine.low %v7888_v7, %v7892_v33  ;;  %v23664_v21 = vcombine.low %v7896_v54, %v7900_v28  ;;  %v7952_v5 = vrot.slane %v25375_v59, %v25313_v19  ;;  %v7956_v47 = vrot.slane %v25375_v59, %v25314_v51  ;;  %v25377_v54 = vld [vmem:[#allocation3_spill] sm:$0xff] }
 0x7ff   : > { %v23669_v1 = vcombine.low %v7904_v35, %v7908_v3  ;;  %v7960_v52 = vrot.slane %v25375_v59, %v25316_v11  ;;  %v7964_v7 = vrot.slane %v25375_v59, %v25317_v43  ;;  %v7972_v33 = vrot.slane %v25375_v59, %v20282_v16 }
 0x800   : > { %v8008_v28 = vrot.slane %v25377_v54, %v25112_v17  ;;  %v8012_v35 = vrot.slane %v25377_v54, %v25113_v34  ;;  %v8016_v3 = vrot.slane %v25377_v54, %v25313_v19  ;;  %v8020_v2 = vrot.slane %v25377_v54, %v25314_v51 }
 0x801   : > { %v8024_v8 = vrot.slane %v25377_v54, %v25316_v11  ;;  %v8028_v63 = vrot.slane %v25377_v54, %v25317_v43  ;;  %v8036_v55 = vrot.slane %v25377_v54, %v20282_v16  ;;  %v8072_v23 = vrot.slane %v25378_v44, %v25112_v17 }
 0x802   : > { %v8076_v22 = vrot.slane %v25378_v44, %v25113_v34  ;;  %v8080_v27 = vrot.slane %v25378_v44, %v25313_v19  ;;  %v8084_v20 = vrot.slane %v25378_v44, %v25314_v51  ;;  %v8088_v30 = vrot.slane %v25378_v44, %v25316_v11 }
 0x803   : > { %5273 = vadd.xlane.f32.xlu1 %v25376_v49  ;;  %v7968_v49 = vrot.slane %v25375_v59, %v25318_v9  ;;  %v8032_v59 = vrot.slane %v25377_v54, %v25318_v9  ;;  %v8092_v61 = vrot.slane %v25378_v44, %v25317_v43  ;;  %v8096_v54 = vrot.slane %v25378_v44, %v25318_v9 }
 0x804   : > { %v8100_v46 = vrot.slane %v25378_v44, %v20282_v16  ;;  %v13312_v45 = vcombine.low %v7944_v14, %v7948_v0  ;;  %v13313_v25 = vcombine.low %v7952_v5, %v7956_v47  ;;  %v13314_v60 = vcombine.low %v7960_v52, %v7964_v7 }
 0x805   : > { %v13315_v48 = vcombine.low %v7968_v49, %v7972_v33  ;;  %v13410_v12 = vcombine.low %v8008_v28, %v8012_v35  ;;  %v13411_v32 = vcombine.low %v8016_v3, %v8020_v2  ;;  %v13412_v36 = vcombine.low %v8024_v8, %v8028_v63 }
 0x806   : > { %v13413_v13 = vcombine.low %v8032_v59, %v8036_v55  ;;  %v13224_v26 = vrot.slane %v23660_v15, %v20302_v57  ;;  %v13231_v6 = vrot.slane %v23662_v62, %v20302_v57  ;;  %v13508_v50 = vcombine.low %v8072_v23, %v8076_v22 }
 0x807   : > { %v13509_v39 = vcombine.low %v8080_v27, %v8084_v20  ;;  %v13238_v29 = vrot.slane %v23664_v21, %v20302_v57  ;;  %v13245_v0 = vrot.slane %v23669_v1, %v20302_v57  ;;  %v13510_v5 = vcombine.low %v8088_v30, %v8092_v61  ;;  %v25379_v61 = vld [vmem:[#allocation64_spill] sm:$0xff] }
 0x808   : > { %v13511_v14 = vcombine.low %v8096_v54, %v8100_v46  ;;  %v13322_v44 = vrot.slane %v13312_v45, %v20302_v57  ;;  %v13329_v63 = vrot.slane %v13313_v25, %v20302_v57  ;;  %v13336_v55 = vrot.slane %v13314_v60, %v20302_v57 }
 0x809   : > { %v13343_v2 = vrot.slane %v13315_v48, %v20302_v57  ;;  %v13420_v8 = vrot.slane %v13410_v12, %v20302_v57  ;;  %v13427_v20 = vrot.slane %v13411_v32, %v20302_v57  ;;  %v13434_v22 = vrot.slane %v13412_v36, %v20302_v57 }
 0x80a   : > { %v13441_v27 = vrot.slane %v13413_v13, %v20302_v57  ;;  %v13518_v1 = vrot.slane %v13508_v50, %v20302_v57  ;;  %v13525_v46 = vrot.slane %v13509_v39, %v20302_v57  ;;  %v8136_v45 = vrot.slane %v25379_v61, %v25112_v17 }
 0x80b   : > { %v8140_v25 = vrot.slane %v25379_v61, %v25113_v34  ;;  %v13532_v60 = vrot.slane %v13510_v5, %v20302_v57  ;;  %v13539_v30 = vrot.slane %v13511_v14, %v20302_v57  ;;  %v8144_v32 = vrot.slane %v25379_v61, %v25313_v19 }
 0x80c   : > { %v8148_v13 = vrot.slane %v25379_v61, %v25314_v51  ;;  %v8152_v36 = vrot.slane %v25379_v61, %v25316_v11  ;;  %v8156_v12 = vrot.slane %v25379_v61, %v25317_v43  ;;  %v8160_v50 = vrot.slane %v25379_v61, %v25318_v9 }
 0x80d   : > { %v8164_v39 = vrot.slane %v25379_v61, %v20282_v16  ;;  %v25380_v48 = vrot.slane %v23610_v40, %v20302_v57  ;;  %v25381_v23 = vrot.slane %v23608_v31, %v20302_v57  ;;  %v25382_v62 = vrot.slane %v23614_v42, %v20302_v57 }
 0x80e   : > { %v25383_v21 = vrot.slane %v23612_v4, %v20302_v57  ;;  %v25384_v52 = vrot.slane %v23618_v24, %v20302_v57  ;;  %v25385_v7 = vrot.slane %v23616_v10, %v20302_v57  ;;  %v25386_v40 = vrot.slane %v23622_v58, %v20302_v57 }
 0x80f   : > { %v13050_v15 = vcombine.low %v25381_v23, %v25380_v48  ;;  %v25387_v31 = vrot.slane %v23620_v56, %v20302_v57  ;;  %v13246_v28 = vcombine.low %v13224_v26, %v13231_v6  ;;  %v13247_v42 = vcombine.low %v13238_v29, %v13245_v0 }
 0x810   : > { %v13051_v47 = vcombine.low %v25383_v21, %v25382_v62  ;;  %v13148_v49 = vcombine.low %v25385_v7, %v25384_v52  ;;  %v13344_v35 = vcombine.low %v13322_v44, %v13329_v63  ;;  %v13345_v3 = vcombine.low %v13336_v55, %v13343_v2  ;;  %v25393_v62 = vld [vmem:[#allocation9_spill] sm:$0xff] }
 0x811   : > { %v13149_v33 = vcombine.low %v25387_v31, %v25386_v40  ;;  %v13442_v4 = vcombine.low %v13420_v8, %v13427_v20  ;;  %v13443_v59 = vcombine.low %v13434_v22, %v13441_v27  ;;  %v13540_v24 = vcombine.low %v13518_v1, %v13525_v46  ;;  %v25388_v1 = vld [vmem:[#allocation72_spill] sm:$0xff] }
 0x812   : > { %v13541_v54 = vcombine.low %v13532_v60, %v13539_v30  ;;  %v13606_v5 = vcombine.low %v8136_v45, %v8140_v25  ;;  %v13607_v10 = vcombine.low %v8144_v32, %v8148_v13  ;;  %v13608_v14 = vcombine.low %v8152_v36, %v8156_v12  ;;  %v25389_v36 = vld [vmem:[#allocation81_spill] sm:$0xff] }
 0x813   : > { %v13609_v61 = vcombine.low %v8160_v50, %v8164_v39  ;;  %v13058_v58 = vrot.slane %v13050_v15, %v20302_v57  ;;  %v13065_v48 = vrot.slane %v13051_v47, %v20302_v57  ;;  %v13156_v56 = vrot.slane %v13148_v49, %v20302_v57  ;;  %v25391_v39 = vld [vmem:[#allocation56_spill] sm:$0xff]  ;;  %v25397_v49 = vld [vmem:[#allocation73_spill] sm:$0xff] }
 0x814   : > { %16063 = vperm.xlu1 %18483, %v23448_v53   ;;  %v13163_v29 = vrot.slane %v13149_v33, %v20302_v57  ;;  %v13254_v26 = vrot.slane %v13246_v28, %v20302_v57  ;;  %v13261_v53 = vrot.slane %v13247_v42, %v20302_v57  ;;  %v13352_v6 = vrot.slane %v13344_v35, %v20302_v57  ;;  %v25395_v47 = vld [vmem:[#allocation8_spill] sm:$0xff] }
 0x815   : > { %v13359_v0 = vrot.slane %v13345_v3, %v20302_v57  ;;  %v13450_v44 = vrot.slane %v13442_v4, %v20302_v57  ;;  %v13457_v63 = vrot.slane %v13443_v59, %v20302_v57  ;;  %v13548_v55 = vrot.slane %v13540_v24, %v20302_v57 }
 0x816   : > { %v13555_v2 = vrot.slane %v13541_v54, %v20302_v57  ;;  %v13616_v8 = vrot.slane %v13606_v5, %v20302_v57  ;;  %v13623_v20 = vrot.slane %v13607_v10, %v20302_v57  ;;  %v13630_v22 = vrot.slane %v13608_v14, %v20302_v57 }
 0x817   : > { %v13637_v27 = vrot.slane %v13609_v61, %v20302_v57  ;;  %v8200_v46 = vrot.slane %v25388_v1, %v25112_v17  ;;  %v8208_v45 = vrot.slane %v25388_v1, %v25313_v19  ;;  %v8212_v25 = vrot.slane %v25388_v1, %v25314_v51  ;;  %v25401_v61 = vld [vmem:[#allocation4_spill] sm:$0xff] }
 0x818   : > { %16069 = vperm.xlu1 %18483, %v23453_v41   ;;  %v8204_v41 = vrot.slane %v25388_v1, %v25113_v34  ;;  %v8216_v60 = vrot.slane %v25388_v1, %v25316_v11  ;;  %v8220_v30 = vrot.slane %v25388_v1, %v25317_v43  ;;  %v8224_v32 = vrot.slane %v25388_v1, %v25318_v9 }
 0x819   : > { %v8228_v13 = vrot.slane %v25388_v1, %v20282_v16  ;;  %v23813_v12 = vadd.f32 %v25265_v37, %v25389_v36  ;;  %v25390_v50 = vrot.slane %v23549_v38, %v20302_v57  ;;  %v25392_v23 = vrot.slane %v25391_v39, %v20302_v57 }
 0x81a   : > { %v25394_v21 = vrot.slane %v25393_v62, %v20302_v57  ;;  %v25396_v52 = vrot.slane %v25395_v47, %v20302_v57  ;;  %v25398_v40 = vrot.slane %v25397_v49, %v20302_v57  ;;  %v23840_v33 = vcombine.low %v13058_v58, %v13065_v48  ;;  %v25402_v58 = vld [vmem:[#allocation82_spill] sm:$0xff]  ;;  %v25406_v49 = vld [vmem:[#allocation89_spill] sm:$0xff] }
 0x81b   : > { %v23822_v15 = vcombine.low %v25392_v23, %v25390_v50  ;;  %v23842_v28 = vcombine.low %v13156_v56, %v13163_v29  ;;  %v23844_v42 = vcombine.low %v13254_v26, %v13261_v53  ;;  %v23846_v35 = vcombine.low %v13352_v6, %v13359_v0 }
 0x81c   : > { %16075 = vperm.xlu1 %18483, %v23537_v18   ;;  %v23830_v7 = vcombine.low %v25396_v52, %v25394_v21  ;;  %v25399_v18 = vld [vmem:[#allocation86_spill] sm:$0xff]  ;;  %v23848_v3 = vcombine.low %v13450_v44, %v13457_v63  ;;  %v23850_v4 = vcombine.low %v13548_v55, %v13555_v2  ;;  %v23852_v59 = vcombine.low %v13616_v8, %v13623_v20 }
 0x81d   : > { %v25400_v31 = vrot.slane %v25399_v18, %v20302_v57  ;;  %v23854_v24 = vcombine.low %v13630_v22, %v13637_v27  ;;  %v13704_v54 = vcombine.low %v8200_v46, %v8204_v41  ;;  %v13705_v5 = vcombine.low %v8208_v45, %v8212_v25  ;;  %v25404_v55 = vld [vmem:[#allocation34_spill] sm:$0xff] }
 0x81e   : > { %v13706_v10 = vcombine.low %v8216_v60, %v8220_v30  ;;  %v13707_v14 = vcombine.low %v8224_v32, %v8228_v13  ;;  %v8264_v48 = vrot.slane %v25402_v58, %v25112_v17  ;;  %v8268_v56 = vrot.slane %v25402_v58, %v25113_v34  ;;  %v25405_v45 = vld [vmem:[#allocation6_spill] sm:$0xff] }
 0x81f   : > { %v23838_v38 = vcombine.low %v25400_v31, %v25398_v40  ;;  %v8272_v29 = vrot.slane %v25402_v58, %v25313_v19  ;;  %v8276_v26 = vrot.slane %v25402_v58, %v25314_v51  ;;  %v8280_v53 = vrot.slane %v25402_v58, %v25316_v11 }
 0x820   : > { %16081 = vperm.xlu1 %18483, %v25401_v61   ;;  %v8284_v6 = vrot.slane %v25402_v58, %v25317_v43  ;;  %v8288_v0 = vrot.slane %v25402_v58, %v25318_v9  ;;  %v8292_v44 = vrot.slane %v25402_v58, %v20282_v16  ;;  %v8328_v2 = vrot.slane %v25404_v55, %v25112_v17  ;;  %v25409_v58 = vld [vmem:[#allocation10_spill] sm:$0xff] }
 0x821   : > { %v8332_v8 = vrot.slane %v25404_v55, %v25113_v34  ;;  %v8336_v20 = vrot.slane %v25404_v55, %v25313_v19  ;;  %v8340_v22 = vrot.slane %v25404_v55, %v25314_v51  ;;  %v8344_v27 = vrot.slane %v25404_v55, %v25316_v11 }
 0x822   : > { %v23873_v63 = vpop.xlane.xlu1 %5261  ;;  %v8348_v1 = vrot.slane %v25404_v55, %v25317_v43  ;;  %v8352_v46 = vrot.slane %v25404_v55, %v25318_v9  ;;  %v8356_v41 = vrot.slane %v25404_v55, %v20282_v16  ;;  %v13646_v25 = vrot.slane %v23852_v59, %v20302_v57  ;;  %v25407_v59 = vld [vmem:[#allocation16_spill] sm:$0xff] }
 0x823   : > { %25403 = vst [vmem:[#allocation90_spill] sm:$0xff] %v23873_v63  ;;  %v13653_v60 = vrot.slane %v23854_v24, %v20302_v57  ;;  %v13714_v30 = vrot.slane %v13704_v54, %v20302_v57  ;;  %v13721_v32 = vrot.slane %v13705_v5, %v20302_v57  ;;  %v13728_v13 = vrot.slane %v13706_v10, %v20302_v57  ;;  %v25408_v54 = vld [vmem:[#allocation7_spill] sm:$0xff] }
 0x824   : > { %16087 = vperm.xlu1 %18483, %v25405_v45   ;;  %v13735_v36 = vrot.slane %v13707_v14, %v20302_v57  ;;  %v13802_v50 = vcombine.low %v8264_v48, %v8268_v56  ;;  %v13803_v39 = vcombine.low %v8272_v29, %v8276_v26  ;;  %v13804_v62 = vcombine.low %v8280_v53, %v8284_v6 }
 0x825   : > { %v13805_v21 = vcombine.low %v8288_v0, %v8292_v44  ;;  %v13900_v47 = vcombine.low %v8328_v2, %v8332_v8  ;;  %v13901_v52 = vcombine.low %v8336_v20, %v8340_v22  ;;  %v13902_v18 = vcombine.low %v8344_v27, %v8348_v1 }
 0x826   : > { %v16052_v23 = vpop.permute.xlu1 %16051  ;;  %v13903_v31 = vcombine.low %v8352_v46, %v8356_v41  ;;  %v8392_v24 = vrot.slane %v25407_v59, %v25112_v17  ;;  %v8396_v5 = vrot.slane %v25407_v59, %v25113_v34  ;;  %v8400_v10 = vrot.slane %v25407_v59, %v25313_v19  ;;  %v25411_v41 = vld [vmem:[#allocation47_spill] sm:$0xff] }
 0x827   : > { %v16560_v40 = vrot.slane %v16052_v23, %v25406_v49  ;;  %v8404_v14 = vrot.slane %v25407_v59, %v25314_v51  ;;  %v8408_v61 = vrot.slane %v25407_v59, %v25316_v11  ;;  %v8412_v56 = vrot.slane %v25407_v59, %v25317_v43 }
 0x828   : > { %16093 = vperm.xlu1 %18483, %v25408_v54   ;;  %v8416_v29 = vrot.slane %v25407_v59, %v25318_v9  ;;  %v8420_v26 = vrot.slane %v25407_v59, %v20282_v16  ;;  %v13736_v53 = vcombine.low %v13714_v30, %v13721_v32  ;;  %v13737_v6 = vcombine.low %v13728_v13, %v13735_v36 }
 0x829   : > { %v23914_v48 = vsel %vm16402_vm0, %v16560_v40, %v25409_v58  ;;  %v13812_v0 = vrot.slane %v13802_v50, %v20302_v57  ;;  %v13819_v44 = vrot.slane %v13803_v39, %v20302_v57  ;;  %v13826_v55 = vrot.slane %v13804_v62, %v20302_v57 }
 0x82a   : > { %25410 = vst [vmem:[#allocation95_spill] sm:$0xff] %v23914_v48  ;;  %v13833_v2 = vrot.slane %v13805_v21, %v20302_v57  ;;  %v13910_v8 = vrot.slane %v13900_v47, %v20302_v57  ;;  %v13917_v20 = vrot.slane %v13901_v52, %v20302_v57  ;;  %v13924_v22 = vrot.slane %v13902_v18, %v20302_v57 }
 0x82b   : > { %v13931_v27 = vrot.slane %v13903_v31, %v20302_v57  ;;  %v13998_v1 = vcombine.low %v8392_v24, %v8396_v5  ;;  %v13999_v46 = vcombine.low %v8400_v10, %v8404_v14  ;;  %v23933_v45 = vadd.f32 %v25265_v37, %v25411_v41  ;;  %v25412_v14 = vld [vmem:[#allocation13_spill] sm:$0xff] }
 0x82c   : > { %16099 = vperm.xlu1 %18483, %v23822_v15   ;;  %v23935_v30 = vcombine.low %v13646_v25, %v13653_v60  ;;  %v14000_v32 = vcombine.low %v8408_v61, %v8412_v56  ;;  %v14001_v13 = vcombine.low %v8416_v29, %v8420_v26  ;;  %v8456_v36 = vrot.slane %v23813_v12, %v25112_v17 }
 0x82d   : > { %v8460_v15 = vrot.slane %v23813_v12, %v25113_v34  ;;  %v8464_v50 = vrot.slane %v23813_v12, %v25313_v19  ;;  %v8468_v39 = vrot.slane %v23813_v12, %v25314_v51  ;;  %v13744_v23 = vrot.slane %v13736_v53, %v20302_v57 }
 0x82e   : > { %v13751_v62 = vrot.slane %v13737_v6, %v20302_v57  ;;  %v13834_v25 = vcombine.low %v13812_v0, %v13819_v44  ;;  %v13835_v60 = vcombine.low %v13826_v55, %v13833_v2  ;;  %v13932_v21 = vcombine.low %v13910_v8, %v13917_v20  ;;  %v23979_v8 = vpop.xlane.xlu0 %5264 }
 0x82f   : > { %v13933_v47 = vcombine.low %v13924_v22, %v13931_v27  ;;  %v14008_v52 = vrot.slane %v13998_v1, %v20302_v57  ;;  %v14015_v40 = vrot.slane %v13999_v46, %v20302_v57  ;;  %v14022_v18 = vrot.slane %v14000_v32, %v20302_v57  ;;  %25413 = vst [vmem:[#allocation97_spill] sm:$0xff] %v23979_v8 }
 0x830   : > { %16105 = vperm.xlu1 %18483, %v23830_v7   ;;  %v14029_v31 = vrot.slane %v14001_v13, %v20302_v57  ;;  %v8472_v59 = vrot.slane %v23813_v12, %v25316_v11  ;;  %v8476_v24 = vrot.slane %v23813_v12, %v25317_v43  ;;  %v8480_v54 = vrot.slane %v23813_v12, %v25318_v9  ;;  %v25414_v13 = vld [vmem:[#allocation88_spill] sm:$0xff] }
 0x831   : > { %v8484_v7 = vrot.slane %v23813_v12, %v20282_v16  ;;  %v14096_v5 = vcombine.low %v8456_v36, %v8460_v15  ;;  %v14097_v10 = vcombine.low %v8464_v50, %v8468_v39  ;;  %v23962_v61 = vadd.f32 %v25265_v37, %v25412_v14 }
 0x832   : > { %v23964_v58 = vcombine.low %v13744_v23, %v13751_v62  ;;  %v13842_v56 = vrot.slane %v13834_v25, %v20302_v57  ;;  %v13849_v29 = vrot.slane %v13835_v60, %v20302_v57  ;;  %v8520_v26 = vrot.slane %v23933_v45, %v25112_v17  ;;  %v24006_v60 = vpop.permute.xlu0 %16054 }
 0x833   : > { %v8524_v12 = vrot.slane %v23933_v45, %v25113_v34  ;;  %v8528_v53 = vrot.slane %v23933_v45, %v25313_v19  ;;  %v8532_v6 = vrot.slane %v23933_v45, %v25314_v51  ;;  %v13940_v0 = vrot.slane %v13932_v21, %v20302_v57 }
 0x834   : > { %16111 = vperm.xlu1 %18483, %v23838_v38   ;;  %v13947_v44 = vrot.slane %v13933_v47, %v20302_v57  ;;  %v14030_v55 = vcombine.low %v14008_v52, %v14015_v40  ;;  %v14031_v2 = vcombine.low %v14022_v18, %v14029_v31  ;;  %v14098_v38 = vcombine.low %v8472_v59, %v8476_v24 }
 0x835   : > { %v14099_v20 = vcombine.low %v8480_v54, %v8484_v7  ;;  %v14106_v22 = vrot.slane %v14096_v5, %v20302_v57  ;;  %v14113_v27 = vrot.slane %v14097_v10, %v20302_v57  ;;  %v8536_v1 = vrot.slane %v23933_v45, %v25316_v11 }
 0x836   : > { %v8540_v46 = vrot.slane %v23933_v45, %v25317_v43  ;;  %v8544_v41 = vrot.slane %v23933_v45, %v25318_v9  ;;  %v8548_v32 = vrot.slane %v23933_v45, %v20282_v16  ;;  %v23993_v36 = vadd.f32 %v25265_v37, %v25414_v13 }
 0x837   : > { %v23996_v15 = vcombine.low %v13842_v56, %v13849_v29  ;;  %v14194_v50 = vcombine.low %v8520_v26, %v8524_v12  ;;  %v14195_v39 = vcombine.low %v8528_v53, %v8532_v6  ;;  %v8584_v23 = vrot.slane %v23962_v61, %v25112_v17  ;;  %v25415_v26 = vld [vmem:[#allocation5_spill] sm:$0xff]  ;;  %v25416_v12 = vld [vmem:[#allocation96_spill] sm:$0xff]  ;;  %v24035_v6 = vpop.xlane.xlu0 %5270 }
 0x838   : > { %16117 = vperm.xlu1 %18483, %v23840_v33   ;;  %v8588_v62 = vrot.slane %v23962_v61, %v25113_v34  ;;  %v8592_v25 = vrot.slane %v23962_v61, %v25313_v19  ;;  %v8596_v45 = vrot.slane %v23962_v61, %v25314_v51  ;;  %v14038_v33 = vrot.slane %v14030_v55, %v20302_v57 }
 0x839   : > { %v14045_v21 = vrot.slane %v14031_v2, %v20302_v57  ;;  %v14120_v47 = vrot.slane %v14098_v38, %v20302_v57  ;;  %v14127_v52 = vrot.slane %v14099_v20, %v20302_v57  ;;  %v24012_v40 = vcombine.low %v13940_v0, %v13947_v44  ;;  %25417 = vst [vmem:[#allocation100_spill] sm:$0xff] %v24035_v6 }
 0x83a   : > { %v24014_v18 = vcombine.low %v14106_v22, %v14113_v27  ;;  %v14196_v31 = vcombine.low %v8536_v1, %v8540_v46  ;;  %v14197_v59 = vcombine.low %v8544_v41, %v8548_v32  ;;  %v14204_v24 = vrot.slane %v14194_v50, %v20302_v57 }
 0x83b   : > { %v14211_v54 = vrot.slane %v14195_v39, %v20302_v57  ;;  %v8600_v7 = vrot.slane %v23962_v61, %v25316_v11  ;;  %v8604_v5 = vrot.slane %v23962_v61, %v25317_v43  ;;  %v8608_v10 = vrot.slane %v23962_v61, %v25318_v9  ;;  %v24058_v50 = vpop.permute.xlu0 %16060 }
 0x83c   : > { %16123 = vperm.xlu1 %18483, %v23842_v28   ;;  %v8612_v14 = vrot.slane %v23962_v61, %v20282_v16  ;;  %v14292_v56 = vcombine.low %v8584_v23, %v8588_v62  ;;  %v14293_v29 = vcombine.low %v8592_v25, %v8596_v45  ;;  %v24029_v28 = vadd.f32 %v25265_v37, %v25415_v26  ;;  %v25418_v25 = vld [vmem:[#allocation57_spill] sm:$0xff] }
 0x83d   : > { %v24033_v53 = vadd.f32 %v25265_v37, %v25416_v12  ;;  %v24037_v0 = vcombine.low %v14038_v33, %v14045_v21  ;;  %v24039_v44 = vcombine.low %v14120_v47, %v14127_v52  ;;  %v8648_v55 = vrot.slane %v23993_v36, %v25112_v17 }
 0x83e   : > { %v8652_v61 = vrot.slane %v23993_v36, %v25113_v34  ;;  %v8656_v2 = vrot.slane %v23993_v36, %v25313_v19  ;;  %v8660_v38 = vrot.slane %v23993_v36, %v25314_v51  ;;  %v14218_v22 = vrot.slane %v14196_v31, %v20302_v57 }
 0x83f   : > { %v14225_v27 = vrot.slane %v14197_v59, %v20302_v57  ;;  %v24054_v1 = vcombine.low %v14204_v24, %v14211_v54  ;;  %v14294_v46 = vcombine.low %v8600_v7, %v8604_v5  ;;  %v14295_v41 = vcombine.low %v8608_v10, %v8612_v14  ;;  %v25419_v24 = vld [vmem:[#allocation79_spill] sm:$0xff] }
 0x840   : > { %16129 = vperm.xlu1 %18483, %v23844_v42   ;;  %v14302_v32 = vrot.slane %v14292_v56, %v20302_v57  ;;  %v14309_v13 = vrot.slane %v14293_v29, %v20302_v57  ;;  %v8664_v42 = vrot.slane %v23993_v36, %v25316_v11  ;;  %v8668_v39 = vrot.slane %v23993_v36, %v25317_v43 }
 0x841   : > { %v8672_v23 = vrot.slane %v23993_v36, %v25318_v9  ;;  %v8676_v62 = vrot.slane %v23993_v36, %v20282_v16  ;;  %v5388_v45 = vadd.f32 %v25265_v37, %v25418_v25  ;;  %v14390_v21 = vcombine.low %v8648_v55, %v8652_v61 }
 0x842   : > { %v14391_v47 = vcombine.low %v8656_v2, %v8660_v38  ;;  %v8712_v52 = vrot.slane %v24029_v28, %v25112_v17  ;;  %v8716_v31 = vrot.slane %v24029_v28, %v25113_v34  ;;  %v8720_v59 = vrot.slane %v24029_v28, %v25313_v19  ;;  %v24099_v2 = vpop.permute.xlu0 %16066 }
 0x843   : > { %v8724_v36 = vrot.slane %v24029_v28, %v25314_v51  ;;  %v24083_v54 = vadd.f32 %v25265_v37, %v25419_v24  ;;  %v24085_v7 = vcombine.low %v14218_v22, %v14225_v27  ;;  %v14316_v5 = vrot.slane %v14294_v46, %v20302_v57  ;;  %25420 = vst [vmem:[#allocation26_spill] sm:$0xff] %v24099_v2 }
 0x844   : > { %16135 = vperm.xlu1 %18483, %v23846_v35   ;;  %v14323_v10 = vrot.slane %v14295_v41, %v20302_v57  ;;  %v24091_v14 = vcombine.low %v14302_v32, %v14309_v13  ;;  %v14392_v56 = vcombine.low %v8664_v42, %v8668_v39  ;;  %v14393_v29 = vcombine.low %v8672_v23, %v8676_v62 }
 0x845   : > { %v14400_v26 = vrot.slane %v14390_v21, %v20302_v57  ;;  %v14407_v12 = vrot.slane %v14391_v47, %v20302_v57  ;;  %v8728_v55 = vrot.slane %v24029_v28, %v25316_v11  ;;  %v8732_v61 = vrot.slane %v24029_v28, %v25317_v43 }
 0x846   : > { %v8736_v38 = vrot.slane %v24029_v28, %v25318_v9  ;;  %v8740_v22 = vrot.slane %v24029_v28, %v20282_v16  ;;  %v14488_v27 = vcombine.low %v8712_v52, %v8716_v31  ;;  %v14489_v46 = vcombine.low %v8720_v59, %v8724_v36  ;;  %v24137_v33 = vpop.permute.xlu0 %16072 }
 0x847   : > { %v8776_v41 = vrot.slane %v24033_v53, %v25112_v17  ;;  %v8780_v32 = vrot.slane %v24033_v53, %v25113_v34  ;;  %v8784_v13 = vrot.slane %v24033_v53, %v25313_v19  ;;  %v8792_v42 = vrot.slane %v24033_v53, %v25316_v11  ;;  %25421 = vst [vmem:[#allocation54_spill] sm:$0xff] %v24137_v33 }
 0x848   : > { %16141 = vperm.xlu1 %18483, %v23848_v3   ;;  %v8788_v3 = vrot.slane %v24033_v53, %v25314_v51  ;;  %v8796_v28 = vrot.slane %v24033_v53, %v25317_v43  ;;  %v8800_v39 = vrot.slane %v24033_v53, %v25318_v9  ;;  %v8804_v23 = vrot.slane %v24033_v53, %v20282_v16 }
 0x849   : > { %v8840_v62 = vrot.slane %v5388_v45, %v25112_v17  ;;  %v8844_v25 = vrot.slane %v5388_v45, %v25113_v34  ;;  %v8848_v21 = vrot.slane %v5388_v45, %v25313_v19  ;;  %v8852_v47 = vrot.slane %v5388_v45, %v25314_v51 }
 0x84a   : > { %v8856_v52 = vrot.slane %v5388_v45, %v25316_v11  ;;  %v8860_v31 = vrot.slane %v5388_v45, %v25317_v43  ;;  %v8864_v59 = vrot.slane %v5388_v45, %v25318_v9  ;;  %v8868_v36 = vrot.slane %v5388_v45, %v20282_v16 }
 0x84b   : > { %v24131_v24 = vcombine.low %v14316_v5, %v14323_v10  ;;  %v14414_v53 = vrot.slane %v14392_v56, %v20302_v57  ;;  %v14421_v35 = vrot.slane %v14393_v29, %v20302_v57  ;;  %v24135_v20 = vcombine.low %v14400_v26, %v14407_v12 }
 0x84c   : > { %16147 = vperm.xlu1 %18483, %v23850_v4   ;;  %v14490_v48 = vcombine.low %v8728_v55, %v8732_v61  ;;  %v14491_v4 = vcombine.low %v8736_v38, %v8740_v22  ;;  %v14498_v49 = vrot.slane %v14488_v27, %v20302_v57  ;;  %v14505_v63 = vrot.slane %v14489_v46, %v20302_v57 }
 0x84d   : > { %v14586_v2 = vcombine.low %v8776_v41, %v8780_v32  ;;  %v14587_v6 = vcombine.low %v8784_v13, %v8788_v3  ;;  %v14588_v8 = vcombine.low %v8792_v42, %v8796_v28  ;;  %v14589_v45 = vcombine.low %v8800_v39, %v8804_v23  ;;  %v24162_v3 = vpop.permute.xlu0 %16078 }
 0x84e   : > { %v14684_v5 = vcombine.low %v8840_v62, %v8844_v25  ;;  %v14685_v10 = vcombine.low %v8848_v21, %v8852_v47  ;;  %v14686_v56 = vcombine.low %v8856_v52, %v8860_v31  ;;  %v14687_v29 = vcombine.low %v8864_v59, %v8868_v36  ;;  %25422 = vst [vmem:[#allocation25_spill] sm:$0xff] %v24162_v3  ;;  %v25423_v52 = vld [vmem:[#allocation94_spill] sm:$0xff] }
 0x84f   : > { %v8904_v26 = vrot.slane %v24083_v54, %v25112_v17  ;;  %v8908_v12 = vrot.slane %v24083_v54, %v25113_v34  ;;  %v8912_v55 = vrot.slane %v24083_v54, %v25313_v19  ;;  %v8916_v61 = vrot.slane %v24083_v54, %v25314_v51 }
 0x850   : > { %16153 = vperm.xlu1 %18483, %v23935_v30   ;;  %v8920_v38 = vrot.slane %v24083_v54, %v25316_v11  ;;  %v8924_v30 = vrot.slane %v24083_v54, %v25317_v43  ;;  %v8928_v22 = vrot.slane %v24083_v54, %v25318_v9  ;;  %v8932_v27 = vrot.slane %v24083_v54, %v20282_v16 }
 0x851   : > { %v14512_v46 = vrot.slane %v14490_v48, %v20302_v57  ;;  %v14519_v41 = vrot.slane %v14491_v4, %v20302_v57  ;;  %v14596_v32 = vrot.slane %v14586_v2, %v20302_v57  ;;  %v14603_v13 = vrot.slane %v14587_v6, %v20302_v57 }
 0x852   : > { %v14423_v42 = vcombine.low %v14414_v53, %v14421_v35  ;;  %v14520_v28 = vcombine.low %v14498_v49, %v14505_v63  ;;  %v14610_v39 = vrot.slane %v14588_v8, %v20302_v57  ;;  %v14617_v23 = vrot.slane %v14589_v45, %v20302_v57 }
 0x853   : > { %v14694_v54 = vrot.slane %v14684_v5, %v20302_v57  ;;  %v14701_v48 = vrot.slane %v14685_v10, %v20302_v57  ;;  %v14708_v62 = vrot.slane %v14686_v56, %v20302_v57  ;;  %v14715_v2 = vrot.slane %v14687_v29, %v20302_v57  ;;  %v24186_v10 = vpop.permute.xlu0 %16084  ;;  %v25425_v29 = vld [vmem:[#allocation29_spill] sm:$0xff] }
 0x854   : > { %16159 = vperm.xlu1 %18483, %v23964_v58   ;;  %v14782_v25 = vcombine.low %v8904_v26, %v8908_v12  ;;  %v14783_v6 = vcombine.low %v8912_v55, %v8916_v61  ;;  %v14784_v21 = vcombine.low %v8920_v38, %v8924_v30  ;;  %v14785_v47 = vcombine.low %v8928_v22, %v8932_v27  ;;  %v25426_v38 = vld [vmem:[#allocation24_spill] sm:$0xff] }
 0x855   : > { %v5398_v58 = vadd.f32 %v25265_v37, %v25423_v52  ;;  %v14241_v49 = vrot.slane %v24085_v7, %v20302_v57  ;;  %v14521_v8 = vcombine.low %v14512_v46, %v14519_v41  ;;  %v14618_v35 = vcombine.low %v14596_v32, %v14603_v13  ;;  %25424 = vst [vmem:[#allocation28_spill] sm:$0xff] %v24186_v10  ;;  %v25427_v41 = vld [vmem:[#allocation43_spill] sm:$0xff] }
 0x856   : > { %v14332_v31 = vrot.slane %v24091_v14, %v20302_v57  ;;  %v14339_v59 = vrot.slane %v24131_v24, %v20302_v57  ;;  %v14430_v36 = vrot.slane %v24135_v20, %v20302_v57  ;;  %v14437_v53 = vrot.slane %v14423_v42, %v20302_v57 }
 0x857   : > { %v24173_v63 = vpop.xlane.xlu1 %5267  ;;  %v14528_v4 = vrot.slane %v14520_v28, %v20302_v57  ;;  %v14619_v45 = vcombine.low %v14610_v39, %v14617_v23  ;;  %v14716_v5 = vcombine.low %v14694_v54, %v14701_v48  ;;  %v14717_v7 = vcombine.low %v14708_v62, %v14715_v2  ;;  %v25428_v2 = vld [vmem:[#allocation103_spill] sm:$0xff] }
 0x858   : > { %16165 = vperm.xlu1 %18483, %v23996_v15   ;;  %v14792_v15 = vrot.slane %v14782_v25, %v20302_v57  ;;  %v14799_v56 = vrot.slane %v14783_v6, %v20302_v57  ;;  %v14806_v14 = vrot.slane %v14784_v21, %v20302_v57  ;;  %v14813_v24 = vrot.slane %v14785_v47, %v20302_v57  ;;  %v24217_v6 = vpop.permute.xlu0 %16090 }
 0x859   : > { %v16565_v20 = vrot.slane %v24006_v60, %v25425_v29  ;;  %v14535_v12 = vrot.slane %v14521_v8, %v20302_v57  ;;  %v14626_v55 = vrot.slane %v14618_v35, %v20302_v57  ;;  %v9160_v61 = vrot.slane %v5398_v58, %v25112_v17  ;;  %25429 = vst [vmem:[#allocation45_spill] sm:$0xff] %v24217_v6 }
 0x85a   : > { %v9164_v22 = vrot.slane %v5398_v58, %v25113_v34  ;;  %v9168_v27 = vrot.slane %v5398_v58, %v25313_v19  ;;  %v9172_v46 = vrot.slane %v5398_v58, %v25314_v51  ;;  %v16574_v60 = vrot.slane %v24058_v50, %v25427_v41 }
 0x85b   : > { %v16058_v26 = vpop.permute.xlu1 %16057  ;;  %v14633_v32 = vrot.slane %v14619_v45, %v20302_v57  ;;  %v14724_v13 = vrot.slane %v14716_v5, %v20302_v57  ;;  %v14731_v42 = vrot.slane %v14717_v7, %v20302_v57  ;;  %v14814_v39 = vcombine.low %v14792_v15, %v14799_v56 }
 0x85c   : > { %v16569_v30 = vrot.slane %v16058_v26, %v25426_v38  ;;  %16171 = vperm.xlu1 %18483, %v24012_v40   ;;  %v14815_v23 = vcombine.low %v14806_v14, %v14813_v24  ;;  %v9176_v40 = vrot.slane %v5398_v58, %v25316_v11  ;;  %v9180_v54 = vrot.slane %v5398_v58, %v25317_v43  ;;  %v25433_v24 = vld [vmem:[#allocation101_spill] sm:$0xff] }
 0x85d   : > { %v9184_v48 = vrot.slane %v5398_v58, %v25318_v9  ;;  %v9188_v62 = vrot.slane %v5398_v58, %v20282_v16  ;;  %v5400_v25 = vadd.f32 %v25265_v37, %v25428_v2  ;;  %v15174_v21 = vcombine.low %v9160_v61, %v9164_v22 }
 0x85e   : > { %v16570_v28 = vsel %vm16304_vm2, %v16569_v30, %v16565_v20  ;;  %v15175_v47 = vcombine.low %v9168_v27, %v9172_v46  ;;  %v25430_v52 = vrot.slane %v24039_v44, %v20302_v57  ;;  %v25431_v8 = vrot.slane %v24014_v18, %v20302_v57  ;;  %v24251_v30 = vpop.permute.xlu0 %16096 }
 0x85f   : > { %v24213_v50 = vsel %vm16311_vm3, %v16574_v60, %v16570_v28  ;;  %v25432_v58 = vrot.slane %v24054_v1, %v20302_v57  ;;  %v14340_v5 = vcombine.low %v14332_v31, %v14339_v59  ;;  %v14438_v7 = vcombine.low %v14430_v36, %v14437_v53  ;;  %25435 = vst [vmem:[#allocation109_spill] sm:$0xff] %v24251_v30  ;;  %v25436_v60 = vld [vmem:[#allocation97_spill] sm:$0xff]  ;;  %v25438_v28 = vld [vmem:[#allocation27_spill] sm:$0xff] }
 0x860   : > { %16177 = vperm.xlu1 %18483, %v24037_v0   ;;  %v14144_v35 = vcombine.low %v25431_v8, %v25430_v52  ;;  %v24229_v15 = vcombine.low %v14528_v4, %v14535_v12  ;;  %v24231_v56 = vcombine.low %v14626_v55, %v14633_v32  ;;  %v14822_v0 = vrot.slane %v14814_v39, %v20302_v57  ;;  %v25434_v55 = vld [vmem:[#allocation74_spill] sm:$0xff] }
 0x861   : > { %v14242_v45 = vcombine.low %v25432_v58, %v14241_v49  ;;  %v14829_v14 = vrot.slane %v14815_v23, %v20302_v57  ;;  %v5402_v44 = vadd.f32 %v25265_v37, %v25433_v24  ;;  %v24237_v20 = vcombine.low %v14724_v13, %v14731_v42  ;;  %v25437_v13 = vld [vmem:[#allocation100_spill] sm:$0xff]  ;;  %v25439_v23 = vld [vmem:[#allocation50_spill] sm:$0xff] }
 0x862   : > { %v15176_v18 = vcombine.low %v9176_v40, %v9180_v54  ;;  %v15177_v26 = vcombine.low %v9184_v48, %v9188_v62  ;;  %v15184_v1 = vrot.slane %v15174_v21, %v20302_v57  ;;  %v15191_v49 = vrot.slane %v15175_v47, %v20302_v57  ;;  %v25440_v40 = vld [vmem:[#allocation26_spill] sm:$0xff] }
 0x863   : > { %v9224_v31 = vrot.slane %v5400_v25, %v25112_v17  ;;  %v9228_v59 = vrot.slane %v5400_v25, %v25113_v34  ;;  %v9232_v36 = vrot.slane %v5400_v25, %v25313_v19  ;;  %v9236_v53 = vrot.slane %v5400_v25, %v25314_v51 }
 0x864   : > { %16183 = vperm.xlu1 %18483, %v14144_v35   ;;  %v9240_v4 = vrot.slane %v5400_v25, %v25316_v11  ;;  %v9244_v12 = vrot.slane %v5400_v25, %v25317_v43  ;;  %v24249_v61 = vadd.f32 %v25265_v37, %v25434_v55  ;;  %v24253_v22 = vcombine.low %v14822_v0, %v14829_v14 }
 0x865   : > { %v9248_v27 = vrot.slane %v5400_v25, %v25318_v9  ;;  %v9252_v46 = vrot.slane %v5400_v25, %v20282_v16  ;;  %v24259_v32 = vadd.f32 %v25265_v37, %v25436_v60  ;;  %v24263_v42 = vadd.f32 %v25265_v37, %v25437_v13 }
 0x866   : > { %v5404_v39 = vadd.f32 %v25265_v37, %v25438_v28  ;;  %v15198_v2 = vrot.slane %v15176_v18, %v20302_v57  ;;  %v15205_v25 = vrot.slane %v15177_v26, %v20302_v57  ;;  %v24273_v21 = vcombine.low %v15184_v1, %v15191_v49  ;;  %v24283_v49 = vpop.permute.xlu0 %16102 }
 0x867   : > { %v15272_v47 = vcombine.low %v9224_v31, %v9228_v59  ;;  %v15273_v52 = vcombine.low %v9232_v36, %v9236_v53  ;;  %v15274_v8 = vcombine.low %v9240_v4, %v9244_v12  ;;  %v9288_v35 = vrot.slane %v5402_v44, %v25112_v17  ;;  %25442 = vst [vmem:[#allocation98_spill] sm:$0xff] %v24283_v49 }
 0x868   : > { %16189 = vperm.xlu1 %18483, %v14242_v45   ;;  %v15275_v58 = vcombine.low %v9248_v27, %v9252_v46  ;;  %v9292_v0 = vrot.slane %v5402_v44, %v25113_v34  ;;  %v9296_v14 = vrot.slane %v5402_v44, %v25313_v19  ;;  %v9300_v24 = vrot.slane %v5402_v44, %v25314_v51 }
 0x869   : > { %v9304_v45 = vrot.slane %v5402_v44, %v25316_v11  ;;  %v9308_v18 = vrot.slane %v5402_v44, %v25317_v43  ;;  %v9312_v26 = vrot.slane %v5402_v44, %v25318_v9  ;;  %v9316_v1 = vrot.slane %v5402_v44, %v20282_v16 }
 0x86a   : > { %v9352_v31 = vrot.slane %v5404_v39, %v25112_v17  ;;  %v9356_v59 = vrot.slane %v5404_v39, %v25113_v34  ;;  %v9360_v36 = vrot.slane %v5404_v39, %v25313_v19  ;;  %v9364_v53 = vrot.slane %v5404_v39, %v25314_v51 }
 0x86b   : > { %v9368_v4 = vrot.slane %v5404_v39, %v25316_v11  ;;  %v9372_v12 = vrot.slane %v5404_v39, %v25317_v43  ;;  %v9376_v55 = vrot.slane %v5404_v39, %v25318_v9  ;;  %v9380_v27 = vrot.slane %v5404_v39, %v20282_v16 }
 0x86c   : > { %16195 = vperm.xlu1 %18483, %v14340_v5   ;;  %v25444_v5 = vld [vmem:[#allocation22_spill] sm:$0xff]  ;;  %v24297_v13 = vcombine.low %v15198_v2, %v15205_v25  ;;  %v15282_v62 = vrot.slane %v15272_v47, %v20302_v57  ;;  %v15289_v54 = vrot.slane %v15273_v52, %v20302_v57  ;;  %v15296_v41 = vrot.slane %v15274_v8, %v20302_v57  ;;  %v24321_v8 = vpop.permute.xlu0 %16108 }
 0x86d   : > { %v5406_v60 = vadd.f32 %v25265_v37, %v25444_v5  ;;  %v15303_v38 = vrot.slane %v15275_v58, %v20302_v57  ;;  %v24305_v39 = vcombine.low %v9288_v35, %v9292_v0  ;;  %v24307_v46 = vcombine.low %v9296_v14, %v9300_v24  ;;  %25445 = vst [vmem:[#allocation108_spill] sm:$0xff] %v24321_v8 }
 0x86e   : > { %v24309_v49 = vcombine.low %v9304_v45, %v9308_v18  ;;  %v24311_v2 = vcombine.low %v9312_v26, %v9316_v1  ;;  %v24313_v25 = vcombine.low %v9352_v31, %v9356_v59  ;;  %v24315_v5 = vcombine.low %v9360_v36, %v9364_v53  ;;  %v25446_v36 = vld [vmem:[#allocation90_spill] sm:$0xff] }
 0x86f   : > { %v24317_v47 = vcombine.low %v9368_v4, %v9372_v12  ;;  %v24319_v52 = vcombine.low %v9376_v55, %v9380_v27  ;;  %v9420_v35 = vrot.slane %v5406_v60, %v25113_v34  ;;  %v9424_v58 = vrot.slane %v5406_v60, %v25313_v19 }
 0x870   : > { %16201 = vperm.xlu1 %18483, %v14438_v7   ;;  %v9416_v7 = vrot.slane %v5406_v60, %v25112_v17  ;;  %v9428_v0 = vrot.slane %v5406_v60, %v25314_v51  ;;  %v9432_v14 = vrot.slane %v5406_v60, %v25316_v11  ;;  %v9436_v24 = vrot.slane %v5406_v60, %v25317_v43 }
 0x871   : > { %v9440_v45 = vrot.slane %v5406_v60, %v25318_v9  ;;  %v9444_v18 = vrot.slane %v5406_v60, %v20282_v16  ;;  %v15221_v26 = vrot.slane %v24297_v13, %v20302_v57  ;;  %v15304_v1 = vcombine.low %v15282_v62, %v15289_v54 }
 0x872   : > { %v15305_v31 = vcombine.low %v15296_v41, %v15303_v38  ;;  %v15380_v59 = vrot.slane %v24305_v39, %v20302_v57  ;;  %v5408_v53 = vadd.f32 %v25265_v37, %v25446_v36  ;;  %v15387_v4 = vrot.slane %v24307_v46, %v20302_v57 }
 0x873   : > { %v15394_v12 = vrot.slane %v24309_v49, %v20302_v57  ;;  %v15478_v55 = vrot.slane %v24313_v25, %v20302_v57  ;;  %v15485_v38 = vrot.slane %v24315_v5, %v20302_v57  ;;  %v15492_v41 = vrot.slane %v24317_v47, %v20302_v57  ;;  %v24352_v49 = vpop.permute.xlu0 %16114 }
 0x874   : > { %16207 = vperm.xlu1 %18483, %v24229_v15   ;;  %v15401_v15 = vrot.slane %v24311_v2, %v20302_v57  ;;  %v15499_v54 = vrot.slane %v24319_v52, %v20302_v57  ;;  %v15566_v62 = vcombine.low %v9416_v7, %v9420_v35  ;;  %v15567_v27 = vcombine.low %v9424_v58, %v9428_v0 }
 0x875   : > { %v15568_v46 = vcombine.low %v9432_v14, %v9436_v24  ;;  %v15569_v60 = vcombine.low %v9440_v45, %v9444_v18  ;;  %25447 = vst [vmem:[#allocation85_spill] sm:$0xff] %v24352_v49  ;;  %v9448_v13 = vrot.slane %v24249_v61, %v25112_v17  ;;  %v9452_v39 = vrot.slane %v24249_v61, %v25113_v34 }
 0x876   : > { %v9456_v2 = vrot.slane %v24249_v61, %v25313_v19  ;;  %v9460_v25 = vrot.slane %v24249_v61, %v25314_v51  ;;  %v9480_v5 = vrot.slane %v5408_v53, %v25112_v17  ;;  %v9484_v47 = vrot.slane %v5408_v53, %v25113_v34 }
 0x877   : > { %v9488_v52 = vrot.slane %v5408_v53, %v25313_v19  ;;  %v9496_v7 = vrot.slane %v5408_v53, %v25316_v11  ;;  %v9500_v35 = vrot.slane %v5408_v53, %v25317_v43  ;;  %v9504_v58 = vrot.slane %v5408_v53, %v25318_v9  ;;  %v24384_v29 = vpop.permute.xlu0 %16120 }
 0x878   : > { %16213 = vperm.xlu1 %18483, %v24231_v56   ;;  %v9492_v56 = vrot.slane %v5408_v53, %v25314_v51  ;;  %v9508_v0 = vrot.slane %v5408_v53, %v20282_v16  ;;  %v15576_v14 = vrot.slane %v15566_v62, %v20302_v57  ;;  %v15583_v24 = vrot.slane %v15567_v27, %v20302_v57 }
 0x879   : > { %v15590_v45 = vrot.slane %v15568_v46, %v20302_v57  ;;  %v15597_v18 = vrot.slane %v15569_v60, %v20302_v57  ;;  %v9464_v36 = vrot.slane %v24249_v61, %v25316_v11  ;;  %v9468_v28 = vrot.slane %v24249_v61, %v25317_v43 }
 0x87a   : > { %v9472_v49 = vrot.slane %v24249_v61, %v25318_v9  ;;  %v9476_v53 = vrot.slane %v24249_v61, %v20282_v16  ;;  %v15664_v62 = vcombine.low %v9480_v5, %v9484_v47  ;;  %v15665_v27 = vcombine.low %v9488_v52, %v9492_v56 }
 0x87b   : > { %v15615_v8 = vcombine.low %v9448_v13, %v9452_v39  ;;  %v15616_v46 = vcombine.low %v9456_v2, %v9460_v25  ;;  %v15319_v60 = vrot.slane %v15305_v31, %v20302_v57  ;;  %v15666_v30 = vcombine.low %v9496_v7, %v9500_v35 }
 0x87c   : > { %16219 = vperm.xlu1 %18483, %v24237_v20   ;;  %v15312_v20 = vrot.slane %v15304_v1, %v20302_v57  ;;  %v15667_v6 = vcombine.low %v9504_v58, %v9508_v0  ;;  %v15402_v44 = vcombine.low %v15380_v59, %v15387_v4  ;;  %v15403_v3 = vcombine.low %v15394_v12, %v15401_v15 }
 0x87d   : > { %v15500_v10 = vcombine.low %v15478_v55, %v15485_v38  ;;  %v15501_v48 = vcombine.low %v15492_v41, %v15499_v54  ;;  %v15598_v33 = vcombine.low %v15576_v14, %v15583_v24  ;;  %v15599_v61 = vcombine.low %v15590_v45, %v15597_v18  ;;  %v24403_v41 = vpop.permute.xlu0 %16126 }
 0x87e   : > { %v15617_v5 = vcombine.low %v9464_v36, %v9468_v28  ;;  %v15618_v47 = vcombine.low %v9472_v49, %v9476_v53  ;;  %v15674_v13 = vrot.slane %v15664_v62, %v20302_v57  ;;  %v15681_v39 = vrot.slane %v15665_v27, %v20302_v57 }
 0x87f   : > { %v15625_v1 = vrot.slane %v15615_v8, %v20302_v57  ;;  %v15632_v31 = vrot.slane %v15616_v46, %v20302_v57  ;;  %v25448_v59 = vrot.slane %v24273_v21, %v20302_v57  ;;  %v15320_v12 = vcombine.low %v15312_v20, %v15319_v60 }
 0x880   : > { %16225 = vperm.xlu1 %18483, %v24253_v22   ;;  %v15688_v15 = vrot.slane %v15666_v30, %v20302_v57  ;;  %v15695_v22 = vrot.slane %v15667_v6, %v20302_v57  ;;  %v5410_v28 = vadd.f32 %v25265_v37, %v24173_v63  ;;  %v15410_v55 = vrot.slane %v15402_v44, %v20302_v57 }
 0x881   : > { %v15222_v4 = vcombine.low %v25448_v59, %v15221_v26  ;;  %v15417_v38 = vrot.slane %v15403_v3, %v20302_v57  ;;  %v15508_v8 = vrot.slane %v15500_v10, %v20302_v57  ;;  %v15515_v21 = vrot.slane %v15501_v48, %v20302_v57  ;;  %v24436_v36 = vpop.permute.xlu0 %16132 }
 0x882   : > { %v15606_v26 = vrot.slane %v15598_v33, %v20302_v57  ;;  %v15613_v30 = vrot.slane %v15599_v61, %v20302_v57  ;;  %v15639_v6 = vrot.slane %v15617_v5, %v20302_v57  ;;  %v15696_v54 = vcombine.low %v15674_v13, %v15681_v39 }
 0x883   : > { %v15646_v63 = vrot.slane %v15618_v47, %v20302_v57  ;;  %v24410_v49 = vcombine.low %v15625_v1, %v15632_v31  ;;  %v9512_v3 = vrot.slane %v24259_v32, %v25112_v17  ;;  %v15697_v10 = vcombine.low %v15688_v15, %v15695_v22 }
 0x884   : > { %16249 = vperm.xlu1 %18483, %v15222_v4   ;;  %v9516_v44 = vrot.slane %v24259_v32, %v25113_v34  ;;  %v9520_v48 = vrot.slane %v24259_v32, %v25313_v19  ;;  %v9524_v33 = vrot.slane %v24259_v32, %v25314_v51  ;;  %v9544_v2 = vrot.slane %v5410_v28, %v25112_v17 }
 0x885   : > { %v9548_v25 = vrot.slane %v5410_v28, %v25113_v34  ;;  %v9552_v52 = vrot.slane %v5410_v28, %v25313_v19  ;;  %v9556_v56 = vrot.slane %v5410_v28, %v25314_v51  ;;  %v9560_v7 = vrot.slane %v5410_v28, %v25316_v11 }
 0x886   : > { %v9564_v35 = vrot.slane %v5410_v28, %v25317_v43  ;;  %v9568_v58 = vrot.slane %v5410_v28, %v25318_v9  ;;  %v9572_v0 = vrot.slane %v5410_v28, %v20282_v16  ;;  %v9528_v14 = vrot.slane %v24259_v32, %v25316_v11 }
 0x887   : > { %v9532_v24 = vrot.slane %v24259_v32, %v25317_v43  ;;  %v9536_v45 = vrot.slane %v24259_v32, %v25318_v9  ;;  %v9540_v18 = vrot.slane %v24259_v32, %v20282_v16  ;;  %v15418_v53 = vcombine.low %v15410_v55, %v15417_v38 }
 0x888   : > { %16255 = vperm.xlu1 %18483, %v15320_v12   ;;  %v15516_v62 = vcombine.low %v15508_v8, %v15515_v21  ;;  %v15614_v27 = vcombine.low %v15606_v26, %v15613_v30  ;;  %v15648_v46 = vcombine.low %v15639_v6, %v15646_v63  ;;  %v15704_v20 = vrot.slane %v15696_v54, %v20302_v57  ;;  %v24459_v30 = vpop.permute.xlu0 %16138 }
 0x889   : > { %v15711_v60 = vrot.slane %v15697_v10, %v20302_v57  ;;  %v15655_v61 = vrot.slane %v24410_v49, %v20302_v57  ;;  %v15762_v5 = vcombine.low %v9544_v2, %v9548_v25  ;;  %v15763_v13 = vcombine.low %v9552_v52, %v9556_v56  ;;  %v25449_v10 = vld [vmem:[#allocation41_spill] sm:$0xff] }
 0x88a   : > { %v15764_v39 = vcombine.low %v9560_v7, %v9564_v35  ;;  %v15765_v1 = vcombine.low %v9568_v58, %v9572_v0  ;;  %v15713_v32 = vcombine.low %v9512_v3, %v9516_v44  ;;  %v15714_v31 = vcombine.low %v9520_v48, %v9524_v33 }
 0x88b   : > { %v15715_v59 = vcombine.low %v9528_v14, %v9532_v24  ;;  %v15716_v4 = vcombine.low %v9536_v45, %v9540_v18  ;;  %v9576_v12 = vrot.slane %v24263_v42, %v25112_v17  ;;  %v9580_v15 = vrot.slane %v24263_v42, %v25113_v34 }
 0x88c   : > { %16261 = vperm.xlu1 %18483, %v15418_v53   ;;  %v5274_v47 = vpop.xlane.xlu1 %5273  ;;  %v9584_v22 = vrot.slane %v24263_v42, %v25313_v19  ;;  %v9588_v28 = vrot.slane %v24263_v42, %v25314_v51  ;;  %v9592_v55 = vrot.slane %v24263_v42, %v25316_v11  ;;  %v15772_v38 = vrot.slane %v15762_v5, %v20302_v57  ;;  %v24482_v5 = vpop.permute.xlu0 %16144 }
 0x88d   : > { %v9596_v8 = vrot.slane %v24263_v42, %v25317_v43  ;;  %v9600_v21 = vrot.slane %v24263_v42, %v25318_v9  ;;  %v9604_v26 = vrot.slane %v24263_v42, %v20282_v16  ;;  %v5412_v6 = vadd.f32 %v25265_v37, %v5274_v47 }
 0x88e   : > { %v15779_v63 = vrot.slane %v15763_v13, %v20302_v57  ;;  %v15786_v49 = vrot.slane %v15764_v39, %v20302_v57  ;;  %v15793_v3 = vrot.slane %v15765_v1, %v20302_v57  ;;  %v15712_v48 = vcombine.low %v15704_v20, %v15711_v60 }
 0x88f   : > { %v15662_v33 = vrot.slane %v15648_v46, %v20302_v57  ;;  %v15723_v2 = vrot.slane %v15713_v32, %v20302_v57  ;;  %v15730_v42 = vrot.slane %v15714_v31, %v20302_v57  ;;  %v15737_v25 = vrot.slane %v15715_v59, %v20302_v57  ;;  %v25453_v31 = vld [vmem:[#allocation60_spill] sm:$0xff] }
 0x890   : > { %16267 = vperm.xlu1 %18483, %v15516_v62   ;;  %v16064_v54 = vpop.permute.xlu1 %16063  ;;  %v15744_v37 = vrot.slane %v15716_v4, %v20302_v57  ;;  %v15811_v52 = vcombine.low %v9576_v12, %v9580_v15  ;;  %v15812_v7 = vcombine.low %v9584_v22, %v9588_v28  ;;  %v15813_v35 = vcombine.low %v9592_v55, %v9596_v8  ;;  %v25451_v62 = vld [vmem:[#allocation14_spill] sm:$0xff]  ;;  %v25455_v4 = vld [vmem:[#allocation59_spill] sm:$0xff] }
 0x891   : > { %v16579_v44 = vrot.slane %v16064_v54, %v25449_v10  ;;  %v15814_v58 = vcombine.low %v9600_v21, %v9604_v26  ;;  %v25450_v14 = vrot.slane %v25440_v40, %v25439_v23  ;;  %v15794_v45 = vcombine.low %v15772_v38, %v15779_v63  ;;  %v25456_v21 = vld [vmem:[#allocation44_spill] sm:$0xff]  ;;  %v24503_v54 = vpop.permute.xlu0 %16150 }
 0x892   : > { %v15795_v18 = vcombine.low %v15786_v49, %v15793_v3  ;;  %v9608_v53 = vrot.slane %v5412_v6, %v25112_v17  ;;  %v9612_v20 = vrot.slane %v5412_v6, %v25113_v34  ;;  %v9620_v60 = vrot.slane %v5412_v6, %v25314_v51  ;;  %v25457_v26 = vld [vmem:[#allocation28_spill] sm:$0xff]  ;;  %v25458_v49 = vld [vmem:[#allocation25_spill] sm:$0xff] }
 0x893   : > { %v16580_v56 = vsel %vm16318_vm4, %v16579_v44, %v24213_v50  ;;  %v9616_v50 = vrot.slane %v5412_v6, %v25313_v19  ;;  %v9628_v40 = vrot.slane %v5412_v6, %v25317_v43  ;;  %v9632_v47 = vrot.slane %v5412_v6, %v25318_v9  ;;  %v25452_v19 = vld [vmem:[#allocation54_spill] sm:$0xff]  ;;  %v25459_v3 = vld [vmem:[#allocation32_spill] sm:$0xff] }
 0x894   : > { %16273 = vperm.xlu1 %18483, %v15614_v27   ;;  %v16070_v0 = vpop.permute.xlu1 %16069  ;;  %v16585_v24 = vsel %vm16325_vm5, %v25450_v14, %v16580_v56  ;;  %v9624_v27 = vrot.slane %v5412_v6, %v25316_v11  ;;  %v9636_v13 = vrot.slane %v5412_v6, %v20282_v16  ;;  %v15663_v39 = vcombine.low %v15655_v61, %v15662_v33 }
 0x895   : > { %v16589_v46 = vrot.slane %v16070_v0, %v25451_v62  ;;  %v15745_v1 = vcombine.low %v15723_v2, %v15730_v42  ;;  %v15746_v32 = vcombine.low %v15737_v25, %v15744_v37  ;;  %v25454_v51 = vrot.slane %v25452_v19, %v25453_v31  ;;  %v25461_v42 = vld [vmem:[#allocation65_spill] sm:$0xff] }
 0x896   : > { %v15821_v11 = vrot.slane %v15811_v52, %v20302_v57  ;;  %v15828_v43 = vrot.slane %v15812_v7, %v20302_v57  ;;  %v15835_v9 = vrot.slane %v15813_v35, %v20302_v57  ;;  %v15802_v12 = vrot.slane %v15794_v45, %v20302_v57 }
 0x897   : > { %v16590_v17 = vsel %vm16332_vm6, %v16589_v46, %v16585_v24  ;;  %v15809_v61 = vrot.slane %v15795_v18, %v20302_v57  ;;  %v15842_v15 = vrot.slane %v15814_v58, %v20302_v57  ;;  %v15860_v22 = vcombine.low %v9608_v53, %v9612_v20  ;;  %v25462_v18 = vld [vmem:[#allocation52_spill] sm:$0xff]  ;;  %v25463_v53 = vld [vmem:[#allocation45_spill] sm:$0xff] }
 0x898   : > { %16279 = vperm.xlu1 %18483, %v15712_v48   ;;  %v16076_v34 = vpop.permute.xlu1 %16075  ;;  %v16595_v59 = vsel %vm16339_vm7, %v25454_v51, %v16590_v17  ;;  %v15861_v28 = vcombine.low %v9616_v50, %v9620_v60  ;;  %v15862_v55 = vcombine.low %v9624_v27, %v9628_v40  ;;  %v15863_v38 = vcombine.low %v9632_v47, %v9636_v13  ;;  %v25464_v20 = vld [vmem:[#allocation68_spill] sm:$0xff]  ;;  %v24521_v27 = vpop.permute.xlu0 %16156  ;;  %v25466_v51 = vld [vmem:[#allocation61_spill] sm:$0xff] }
 0x899   : > { %v16599_v16 = vrot.slane %v16076_v34, %v25455_v4  ;;  %v16614_v6 = vrot.slane %v25457_v26, %v25456_v21  ;;  %v25460_v44 = vrot.slane %v25458_v49, %v25459_v3  ;;  %v15753_v33 = vrot.slane %v15745_v1, %v20302_v57  ;;  %v25465_v34 = vld [vmem:[#allocation77_spill] sm:$0xff]  ;;  %v25469_v26 = vld [vmem:[#allocation95_spill] sm:$0xff] }
 0x89a   : > { %v15760_v2 = vrot.slane %v15746_v32, %v20302_v57  ;;  %v15810_v37 = vcombine.low %v15802_v12, %v15809_v61  ;;  %v15843_v52 = vcombine.low %v15821_v11, %v15828_v43  ;;  %v15844_v56 = vcombine.low %v15835_v9, %v15842_v15  ;;  %v25470_v49 = vld [vmem:[#allocation29_spill] sm:$0xff] }
 0x89b   : > { %v16600_v8 = vsel %vm16346_vm8, %v16599_v16, %v16595_v59  ;;  %v15870_v7 = vrot.slane %v15860_v22, %v20302_v57  ;;  %v15877_v35 = vrot.slane %v15861_v28, %v20302_v57  ;;  %v15884_v58 = vrot.slane %v15862_v55, %v20302_v57  ;;  %v25467_v59 = vld [vmem:[#allocation109_spill] sm:$0xff] }
 0x89c   : > { %v16082_v63 = vpop.permute.xlu1 %16081  ;;  %v16605_v48 = vsel %vm16353_vm9, %v25460_v44, %v16600_v8  ;;  %16276 = vperm.xlu1 %18483, %v15663_v39   ;;  %v15891_v0 = vrot.slane %v15863_v38, %v20302_v57  ;;  %v16624_v46 = vrot.slane %v25463_v53, %v25462_v18  ;;  %v15761_v60 = vcombine.low %v15753_v33, %v15760_v2  ;;  %v24533_v61 = vpop.permute.xlu0 %16162  ;;  %v25468_v28 = vld [vmem:[#allocation89_spill] sm:$0xff]  ;;  %v25471_v44 = vld [vmem:[#allocation98_spill] sm:$0xff]  ;;  %v25472_v33 = vld [vmem:[#allocation24_spill] sm:$0xff] }
 0x89d   : > { %v16609_v25 = vrot.slane %v16082_v63, %v25461_v42  ;;  %v15851_v40 = vrot.slane %v15843_v52, %v20302_v57  ;;  %v15858_v47 = vrot.slane %v15844_v56, %v20302_v57  ;;  %v15892_v13 = vcombine.low %v15870_v7, %v15877_v35 }
 0x89e   : > { %v15893_v17 = vcombine.low %v15884_v58, %v15891_v0  ;;  %v16634_v11 = vrot.slane %v25467_v59, %v25466_v51 }
 0x89f   : > { %v16610_v14 = vsel %vm16360_vm10, %v16609_v25, %v16605_v48  ;;  %v15859_v43 = vcombine.low %v15851_v40, %v15858_v47  ;;  %v15900_v9 = vrot.slane %v15892_v13, %v20302_v57  ;;  %v16644_v48 = vrot.slane %v25471_v44, %v25470_v49  ;;  %v25473_v25 = vld [vmem:[#allocation43_spill] sm:$0xff] }
 0x8a0   : > { %v16088_v24 = vpop.permute.xlu1 %16087  ;;  %v16615_v45 = vsel %vm16367_vm11, %v16614_v6, %v16610_v14  ;;  %16285 = vperm.xlu1 %18483, %v15810_v37   ;;  %v15907_v16 = vrot.slane %v15893_v17, %v20302_v57  ;;  %v25474_v37 = vld [vmem:[#allocation108_spill] sm:$0xff]  ;;  %v16169_v56 = vpop.permute.xlu0 %16168  ;;  %v25475_v14 = vld [vmem:[#allocation85_spill] sm:$0xff]  ;;  %v16673_v40 = vrot.slane %v24384_v29, %v25453_v31  ;;  %v16693_v29 = vrot.slane %v24436_v36, %v25456_v21 }
 0x8a1   : > { %v16619_v50 = vrot.slane %v16088_v24, %v25464_v20  ;;  %v16653_v52 = vrot.slane %v25474_v37, %v25473_v25  ;;  %v16663_v24 = vrot.slane %v25475_v14, %v25439_v23  ;;  %v16713_v36 = vrot.slane %v24482_v5, %v25466_v51 }
 0x8a2   : > { %v15908_v38 = vcombine.low %v15900_v9, %v15907_v16  ;;  %v16732_v5 = vrot.slane %v24521_v27, %v25473_v25  ;;  %v16752_v27 = vrot.slane %v16169_v56, %v25453_v31 }
 0x8a3   : > { %v16620_v39 = vsel %vm16374_vm12, %v16619_v50, %v16615_v45 }
 0x8a4   : > { %v16094_v1 = vpop.permute.xlu1 %16093  ;;  %v16625_v32 = vsel %vm16381_vm13, %v16624_v46, %v16620_v39  ;;  %16282 = vperm.xlu1 %18483, %v15761_v60   ;;  %v16175_v53 = vpop.permute.xlu0 %16174 }
 0x8a5   : > { %v16629_v19 = vrot.slane %v16094_v1, %v25465_v34  ;;  %v16683_v1 = vrot.slane %v24403_v41, %v25459_v3  ;;  %v16703_v41 = vrot.slane %v24459_v30, %v25462_v18 }
 0x8a7   : > { %v16630_v12 = vsel %vm16388_vm14, %v16629_v19, %v16625_v32 }
 0x8a8   : > { %v16100_v15 = vpop.permute.xlu1 %16099  ;;  %v16635_v22 = vsel %vm16395_vm15, %v16634_v11, %v16630_v12  ;;  %16288 = vperm.xlu1 %18483, %v15859_v43   ;;  %v16181_v32 = vpop.permute.xlu0 %16180 }
 0x8a9   : > { %v16639_v55 = vrot.slane %v16100_v15, %v25468_v28  ;;  %v16772_v56 = vrot.slane %v16181_v32, %v25456_v21 }
 0x8ab   : > { %v24538_v8 = vsel %vm16402_vm0, %v16639_v55, %v16635_v22 }
 0x8ac   : > { %v16958_v6 = vcombine.low %v25469_v26, %v24538_v8  ;;  %v16106_v63 = vpop.permute.xlu1 %16105  ;;  %16291 = vperm.xlu1 %18483, %v15908_v38   ;;  %v16187_v16 = vpop.permute.xlu0 %16186 }
 0x8ad   : > { %v16648_v2 = vrot.slane %v16106_v63, %v25472_v33 }
 0x8af   : > { %v16649_v7 = vsel %vm16304_vm2, %v16648_v2, %v16644_v48 }
 0x8b0   : > { %v16112_v35 = vpop.permute.xlu1 %16111  ;;  %v16654_v58 = vsel %vm16311_vm3, %v16653_v52, %v16649_v7  ;;  %v16193_v48 = vpop.permute.xlu0 %16192 }
 0x8b1   : > { %v16658_v0 = vrot.slane %v16112_v35, %v25449_v10 }
 0x8b3   : > { %v16659_v45 = vsel %vm16318_vm4, %v16658_v0, %v16654_v58  ;;  %v16723_v0 = vrot.slane %v24503_v54, %v25470_v49 }
 0x8b4   : > { %v16118_v46 = vpop.permute.xlu1 %16117  ;;  %v16664_v50 = vsel %vm16325_vm5, %v16663_v24, %v16659_v45  ;;  %v24583_v35 = vpop.permute.xlu0 %16198 }
 0x8b5   : > { %v16668_v60 = vrot.slane %v16118_v46, %v25451_v62 }
 0x8b7   : > { %v16669_v47 = vsel %vm16332_vm6, %v16668_v60, %v16664_v50  ;;  %v16742_v60 = vrot.slane %v24533_v61, %v25439_v23 }
 0x8b8   : > { %v16124_v13 = vpop.permute.xlu1 %16123  ;;  %v16674_v17 = vsel %vm16339_vm7, %v16673_v40, %v16669_v47  ;;  %v24595_v40 = vpop.permute.xlu0 %16204 }
 0x8b9   : > { %v16678_v39 = vrot.slane %v16124_v13, %v25455_v4 }
 0x8bb   : > { %v16679_v19 = vsel %vm16346_vm8, %v16678_v39, %v16674_v17 }
 0x8bc   : > { %v16130_v59 = vpop.permute.xlu1 %16129  ;;  %v16684_v11 = vsel %vm16353_vm9, %v16683_v1, %v16679_v19  ;;  %v24602_v1 = vpop.permute.xlu0 %16210 }
 0x8bd   : > { %v16688_v43 = vrot.slane %v16130_v59, %v25461_v42 }
 0x8bf   : > { %v16689_v9 = vsel %vm16360_vm10, %v16688_v43, %v16684_v11  ;;  %v16762_v11 = vrot.slane %v16175_v53, %v25459_v3  ;;  %v16782_v53 = vrot.slane %v16187_v16, %v25462_v18 }
 0x8c0   : > { %v16136_v12 = vpop.permute.xlu1 %16135  ;;  %v16694_v15 = vsel %vm16367_vm11, %v16693_v29, %v16689_v9 }
 0x8c1   : > { %v16698_v22 = vrot.slane %v16136_v12, %v25464_v20 }
 0x8c3   : > { %v16699_v55 = vsel %vm16374_vm12, %v16698_v22, %v16694_v15  ;;  %v24611_v15 = vpop.permute.xlu0 %16216 }
 0x8c4   : > { %v16142_v38 = vpop.permute.xlu1 %16141  ;;  %v16704_v63 = vsel %vm16381_vm13, %v16703_v41, %v16699_v55 }
 0x8c5   : > { %v16708_v44 = vrot.slane %v16142_v38, %v25465_v34 }
 0x8c7   : > { %v16709_v2 = vsel %vm16388_vm14, %v16708_v44, %v16704_v63  ;;  %v24618_v44 = vpop.permute.xlu0 %16222 }
 0x8c8   : > { %v16148_v37 = vpop.permute.xlu1 %16147  ;;  %v16714_v52 = vsel %vm16395_vm15, %v16713_v36, %v16709_v2 }
 0x8c9   : > { %v16718_v7 = vrot.slane %v16148_v37, %v25468_v28 }
 0x8cb   : > { %v24581_v30 = vsel %vm16402_vm0, %v16718_v7, %v16714_v52  ;;  %v16792_v52 = vrot.slane %v16193_v48, %v25466_v51 }
 0x8cc   : > { %v16154_v58 = vpop.permute.xlu1 %16153 }
 0x8cd   : > { %v16727_v14 = vrot.slane %v16154_v58, %v25472_v33 }
 0x8cf   : > { %v16728_v24 = vsel %vm16304_vm2, %v16727_v14, %v16723_v0  ;;  %v24625_v0 = vpop.permute.xlu0 %16231 }
 0x8d0   : > { %v16160_v45 = vpop.permute.xlu1 %16159  ;;  %v16733_v46 = vsel %vm16311_vm3, %v16732_v5, %v16728_v24 }
 0x8d1   : > { %v16737_v50 = vrot.slane %v16160_v45, %v25449_v10 }
 0x8d3   : > { %v16738_v47 = vsel %vm16318_vm4, %v16737_v50, %v16733_v46  ;;  %v24633_v45 = vpop.permute.xlu0 %16228 }
 0x8d4   : > { %v16166_v54 = vpop.permute.xlu1 %16165  ;;  %v16743_v13 = vsel %vm16325_vm5, %v16742_v60, %v16738_v47 }
 0x8d5   : > { %v16747_v17 = vrot.slane %v16166_v54, %v25451_v62 }
 0x8d7   : > { %v16748_v39 = vsel %vm16332_vm6, %v16747_v17, %v16743_v13  ;;  %v24635_v60 = vpop.permute.xlu0 %16237  ;;  %v25476_v17 = vld [vmem:[#allocation30_spill] sm:$0xff] }
 0x8d8   : > { %v16172_v19 = vpop.permute.xlu1 %16171  ;;  %v16753_v59 = vsel %vm16339_vm7, %v16752_v27, %v16748_v39  ;;  %v16298_v27 = vrot.slane %v25476_v17, %v25470_v49 }
 0x8d9   : > { %v16757_v61 = vrot.slane %v16172_v19, %v25455_v4  ;;  %v25477_v19 = vld [vmem:[#allocation55_spill] sm:$0xff] }
 0x8db   : > { %v16758_v43 = vsel %vm16346_vm8, %v16757_v61, %v16753_v59  ;;  %v24639_v47 = vpop.permute.xlu0 %16234  ;;  %v16310_v59 = vrot.slane %v25477_v19, %v25473_v25  ;;  %v25478_v61 = vld [vmem:[#allocation19_spill] sm:$0xff]  ;;  %v16811_v19 = vrot.slane %v24595_v40, %v25473_v25  ;;  %v25488_v40 = vld [vmem:[#allocation92_spill] sm:$0xff] }
 0x8dc   : > { %v16178_v29 = vpop.permute.xlu1 %16177  ;;  %v16763_v9 = vsel %vm16353_vm9, %v16762_v11, %v16758_v43  ;;  %v16303_v11 = vrot.slane %v25478_v61, %v25472_v33  ;;  %v25479_v43 = vld [vmem:[#allocation20_spill] sm:$0xff]  ;;  %v25485_v61 = vld [vmem:[#allocation75_spill] sm:$0xff] }
 0x8dd   : > { %v16767_v12 = vrot.slane %v16178_v29, %v25461_v42  ;;  %v16411_v29 = vrot.slane %v25479_v43, %v25472_v33 }
 0x8df   : > { %v16768_v22 = vsel %vm16360_vm10, %v16767_v12, %v16763_v9  ;;  %v16247_v39 = vpop.permute.xlu0 %16246 }
 0x8e0   : > { %v16184_v41 = vpop.permute.xlu1 %16183  ;;  %v16773_v55 = vsel %vm16367_vm11, %v16772_v56, %v16768_v22  ;;  %v16305_v56 = vsel %vm16304_vm2, %v16303_v11, %v16298_v27  ;;  %v25480_v22 = vld [vmem:[#allocation18_spill] sm:$0xff]  ;;  %v16338_v11 = vrot.slane %v25485_v61, %v25453_v31 }
 0x8e1   : > { %v16777_v38 = vrot.slane %v16184_v41, %v25464_v20  ;;  %v16407_v41 = vrot.slane %v25480_v22, %v25470_v49 }
 0x8e3   : > { %v16778_v63 = vsel %vm16374_vm12, %v16777_v38, %v16773_v55  ;;  %v16312_v55 = vsel %vm16311_vm3, %v16310_v59, %v16305_v56  ;;  %v25481_v38 = vld [vmem:[#allocation69_spill] sm:$0xff] }
 0x8e4   : > { %v16190_v36 = vpop.permute.xlu1 %16189  ;;  %v16783_v2 = vsel %vm16381_vm13, %v16782_v53, %v16778_v63  ;;  %v16324_v53 = vrot.slane %v25481_v38, %v25439_v23  ;;  %v16802_v63 = vrot.slane %v24583_v35, %v25470_v49  ;;  %v16426_v38 = vrot.slane %v25488_v40, %v25439_v23  ;;  %v25494_v40 = vld [vmem:[#allocation63_spill] sm:$0xff] }
 0x8e5   : > { %v16787_v32 = vrot.slane %v16190_v36, %v25465_v34  ;;  %v25482_v36 = vld [vmem:[#allocation53_spill] sm:$0xff] }
 0x8e7   : > { %v16788_v37 = vsel %vm16388_vm14, %v16787_v32, %v16783_v2  ;;  %v16317_v2 = vrot.slane %v25482_v36, %v25449_v10  ;;  %v16412_v32 = vsel %vm16304_vm2, %v16411_v29, %v16407_v41  ;;  %v25486_v29 = vld [vmem:[#allocation67_spill] sm:$0xff] }
 0x8e8   : > { %v16196_v7 = vpop.permute.xlu1 %16195  ;;  %v16793_v16 = vsel %vm16395_vm15, %v16792_v52, %v16788_v37  ;;  %v25483_v37 = vld [vmem:[#allocation87_spill] sm:$0xff]  ;;  %v16331_v56 = vrot.slane %v25486_v29, %v25451_v62 }
 0x8e9   : > { %v16797_v58 = vrot.slane %v16196_v7, %v25468_v28  ;;  %v16421_v52 = vrot.slane %v25483_v37, %v25449_v10  ;;  %v16253_v7 = vpop.permute.xlu0 %16252  ;;  %v16319_v35 = vsel %vm16318_vm4, %v16317_v2, %v16312_v55 }
 0x8ea   : > { %v16326_v59 = vsel %vm16325_vm5, %v16324_v53, %v16319_v35  ;;  %v16881_v35 = vrot.slane %v16247_v39, %v25470_v49  ;;  %v25492_v39 = vld [vmem:[#allocation11_spill] sm:$0xff] }
 0x8eb   : > { %v24629_v14 = vsel %vm16402_vm0, %v16797_v58, %v16793_v16  ;;  %v25484_v16 = vld [vmem:[#allocation91_spill] sm:$0xff]  ;;  %v16333_v2 = vsel %vm16332_vm6, %v16331_v56, %v16326_v59  ;;  %v16352_v29 = vrot.slane %v25492_v39, %v25459_v3  ;;  %v16831_v56 = vrot.slane %v24611_v15, %v25453_v31 }
 0x8ec   : > { %v16959_v5 = vcombine.low %v24581_v30, %v24629_v14  ;;  %v16202_v24 = vpop.permute.xlu1 %16201  ;;  %v16851_v39 = vrot.slane %v24633_v45, %v25456_v21  ;;  %v16856_v45 = vrot.slane %v24625_v0, %v25464_v20 }
 0x8ed   : > { %v16806_v12 = vrot.slane %v16202_v24, %v25472_v33  ;;  %v16416_v24 = vrot.slane %v25484_v16, %v25473_v25  ;;  %v16259_v37 = vpop.permute.xlu0 %16258 }
 0x8ef   : > { %v16807_v17 = vsel %vm16304_vm2, %v16806_v12, %v16802_v63  ;;  %v16417_v43 = vsel %vm16311_vm3, %v16416_v24, %v16412_v32  ;;  %v25487_v12 = vld [vmem:[#allocation51_spill] sm:$0xff]  ;;  %v16821_v32 = vrot.slane %v24602_v1, %v25439_v23  ;;  %v16340_v24 = vsel %vm16339_vm7, %v16338_v11, %v16333_v2 }
 0x8f0   : > { %v16208_v46 = vpop.permute.xlu1 %16207  ;;  %v16422_v22 = vsel %vm16318_vm4, %v16421_v52, %v16417_v43  ;;  %v16812_v41 = vsel %vm16311_vm3, %v16811_v19, %v16807_v17  ;;  %v25489_v52 = vld [vmem:[#allocation71_spill] sm:$0xff] }
 0x8f1   : > { %v16816_v27 = vrot.slane %v16208_v46, %v25449_v10  ;;  %v16431_v46 = vrot.slane %v25487_v12, %v25451_v62  ;;  %v16345_v16 = vrot.slane %v25489_v52, %v25455_v4  ;;  %v16427_v17 = vsel %vm16325_vm5, %v16426_v38, %v16422_v22 }
 0x8f2   : > { %v16890_v22 = vrot.slane %v16253_v7, %v25473_v25 }
 0x8f3   : > { %v16817_v53 = vsel %vm16318_vm4, %v16816_v27, %v16812_v41  ;;  %v25490_v27 = vld [vmem:[#allocation99_spill] sm:$0xff]  ;;  %v16347_v12 = vsel %vm16346_vm8, %v16345_v16, %v16340_v24  ;;  %v16841_v24 = vrot.slane %v24618_v44, %v25459_v3 }
 0x8f4   : > { %v16214_v50 = vpop.permute.xlu1 %16213  ;;  %v16822_v1 = vsel %vm16325_vm5, %v16821_v32, %v16817_v53  ;;  %v16354_v16 = vsel %vm16353_vm9, %v16352_v29, %v16347_v12 }
 0x8f5   : > { %v16826_v63 = vrot.slane %v16214_v50, %v25451_v62  ;;  %v16436_v50 = vrot.slane %v25490_v27, %v25453_v31 }
 0x8f7   : > { %v16827_v61 = vsel %vm16332_vm6, %v16826_v63, %v16822_v1  ;;  %v16265_v63 = vpop.permute.xlu0 %16264 }
 0x8f8   : > { %v24637_v48 = vpop.permute.xlu1 %16219  ;;  %v16832_v15 = vsel %vm16339_vm7, %v16831_v56, %v16827_v61  ;;  %v25498_v61 = vld [vmem:[#allocation58_spill] sm:$0xff]  ;;  %v16910_v29 = vrot.slane %v16265_v63, %v25453_v31 }
 0x8f9   : > { %v16836_v11 = vrot.slane %v24637_v48, %v25455_v4  ;;  %v16446_v48 = vrot.slane %v25494_v40, %v25459_v3  ;;  %v25500_v40 = vld [vmem:[#allocation23_spill] sm:$0xff] }
 0x8fb   : > { %v16271_v56 = vpop.permute.xlu0 %16270 }
 0x8fc   : > { %v24641_v54 = vpop.permute.xlu1 %16225  ;;  %v16920_v63 = vrot.slane %v16271_v56, %v25459_v3 }
 0x8fd   : > { %v16846_v2 = vrot.slane %v24641_v54, %v25461_v42  ;;  %v25496_v54 = vld [vmem:[#allocation21_spill] sm:$0xff] }
 0x900   : > { %v16250_v13 = vpop.permute.xlu1 %16249 }
 0x901   : > { %v16885_v36 = vrot.slane %v16250_v13, %v25472_v33  ;;  %v16432_v33 = vsel %vm16332_vm6, %v16431_v46, %v16427_v17  ;;  %v25491_v13 = vld [vmem:[#allocation93_spill] sm:$0xff]  ;;  %v25493_v46 = vld [vmem:[#allocation76_spill] sm:$0xff]  ;;  %v16900_v17 = vrot.slane %v16259_v37, %v25439_v23 }
 0x902   : > { %v16441_v19 = vrot.slane %v25491_v13, %v25455_v4  ;;  %v16359_v41 = vrot.slane %v25493_v46, %v25461_v42  ;;  %v16437_v38 = vsel %vm16339_vm7, %v16436_v50, %v16432_v33  ;;  %v16461_v33 = vrot.slane %v25496_v54, %v25464_v20 }
 0x903   : > { %v16886_v43 = vsel %vm16304_vm2, %v16885_v36, %v16881_v35  ;;  %v16837_v36 = vsel %vm16346_vm8, %v16836_v11, %v16832_v15  ;;  %v16366_v11 = vrot.slane %v25498_v61, %v25456_v21 }
 0x904   : > { %v16256_v9 = vpop.permute.xlu1 %16255  ;;  %v16891_v25 = vsel %vm16311_vm3, %v16890_v22, %v16886_v43  ;;  %v16361_v35 = vsel %vm16360_vm10, %v16359_v41, %v16354_v16  ;;  %v16842_v13 = vsel %vm16353_vm9, %v16841_v24, %v16837_v36  ;;  %v25499_v43 = vld [vmem:[#allocation80_spill] sm:$0xff] }
 0x905   : > { %v16895_v49 = vrot.slane %v16256_v9, %v25449_v10  ;;  %v16442_v10 = vsel %vm16346_vm8, %v16441_v19, %v16437_v38  ;;  %v25495_v9 = vld [vmem:[#allocation102_spill] sm:$0xff]  ;;  %v16847_v44 = vsel %vm16360_vm10, %v16846_v2, %v16842_v13  ;;  %v16368_v12 = vsel %vm16367_vm11, %v16366_v11, %v16361_v35 }
 0x906   : > { %v16451_v53 = vrot.slane %v25495_v9, %v25461_v42  ;;  %v16447_v27 = vsel %vm16353_vm9, %v16446_v48, %v16442_v10  ;;  %v25497_v19 = vld [vmem:[#allocation78_spill] sm:$0xff]  ;;  %v16471_v48 = vrot.slane %v25500_v40, %v25465_v34  ;;  %v25501_v9 = vld [vmem:[#allocation104_spill] sm:$0xff] }
 0x907   : > { %v16896_v32 = vsel %vm16318_vm4, %v16895_v49, %v16891_v25  ;;  %v16456_v1 = vrot.slane %v25497_v19, %v25456_v21  ;;  %v16373_v49 = vrot.slane %v25499_v43, %v25464_v20  ;;  %v25502_v25 = vld [vmem:[#allocation70_spill] sm:$0xff] }
 0x908   : > { %v24665_v58 = vpop.permute.xlu1 %16261  ;;  %v16452_v50 = vsel %vm16360_vm10, %v16451_v53, %v16447_v27  ;;  %v16466_v53 = vrot.slane %v25501_v9, %v25462_v18  ;;  %v16380_v36 = vrot.slane %v25502_v25, %v25462_v18  ;;  %v25503_v2 = vld [vmem:[#allocation38_spill] sm:$0xff] }
 0x909   : > { %v16905_v52 = vrot.slane %v24665_v58, %v25451_v62  ;;  %v16901_v62 = vsel %vm16325_vm5, %v16900_v17, %v16896_v32  ;;  %v16457_v22 = vsel %vm16367_vm11, %v16456_v1, %v16452_v50  ;;  %v16375_v10 = vsel %vm16374_vm12, %v16373_v49, %v16368_v12  ;;  %v25504_v17 = vld [vmem:[#allocation107_spill] sm:$0xff]  ;;  %v25505_v50 = vld [vmem:[#allocation66_spill] sm:$0xff] }
 0x90a   : > { %v16462_v46 = vsel %vm16374_vm12, %v16461_v33, %v16457_v22  ;;  %v16387_v0 = vrot.slane %v25503_v2, %v25465_v34  ;;  %v16382_v3 = vsel %vm16381_vm13, %v16380_v36, %v16375_v10  ;;  %v16481_v35 = vrot.slane %v25504_v17, %v25468_v28 }
 0x90b   : > { %v16906_v23 = vsel %vm16332_vm6, %v16905_v52, %v16901_v62  ;;  %v16467_v52 = vsel %vm16381_vm13, %v16466_v53, %v16462_v46  ;;  %v16476_v54 = vrot.slane %v25505_v50, %v25466_v51  ;;  %v16866_v1 = vrot.slane %v24635_v60, %v25465_v34 }
 0x90c   : > { %v24684_v55 = vpop.permute.xlu1 %16267  ;;  %v16389_v62 = vsel %vm16388_vm14, %v16387_v0, %v16382_v3 }
 0x90d   : > { %v16915_v37 = vrot.slane %v24684_v55, %v25455_v4  ;;  %v16852_v4 = vsel %vm16367_vm11, %v16851_v39, %v16847_v44  ;;  %v16911_v55 = vsel %vm16339_vm7, %v16910_v29, %v16906_v23  ;;  %v25507_v23 = vld [vmem:[#allocation40_spill] sm:$0xff] }
 0x90e   : > { %v16857_v32 = vsel %vm16374_vm12, %v16856_v45, %v16852_v4 }
 0x90f   : > { %v16916_v31 = vsel %vm16346_vm8, %v16915_v37, %v16911_v55  ;;  %v16394_v37 = vrot.slane %v25507_v23, %v25466_v51 }
 0x910   : > { %v24705_v59 = vpop.permute.xlu1 %16273  ;;  %v16921_v16 = vsel %vm16353_vm9, %v16920_v63, %v16916_v31 }
 0x911   : > { %v16925_v38 = vrot.slane %v24705_v59, %v25461_v42  ;;  %v16861_v42 = vrot.slane %v24639_v47, %v25462_v18  ;;  %v16241_v59 = vpop.permute.xlu0 %16240  ;;  %v16396_v39 = vsel %vm16395_vm15, %v16394_v37, %v16389_v62 }
 0x912   : > { %v16871_v60 = vrot.slane %v16241_v59, %v25466_v51 }
 0x913   : > { %v16926_v27 = vsel %vm16360_vm10, %v16925_v38, %v16921_v16  ;;  %v16862_v33 = vsel %vm16381_vm13, %v16861_v42, %v16857_v32 }
 0x914   : > { %v24728_v7 = vpop.permute.xlu1 %16279  ;;  %v16867_v49 = vsel %vm16388_vm14, %v16866_v1, %v16862_v33 }
 0x915   : > { %v16935_v44 = vrot.slane %v24728_v7, %v25464_v20  ;;  %v16244_v29 = vpop.permute.xlu0 %16243  ;;  %v16872_v4 = vsel %vm16395_vm15, %v16871_v60, %v16867_v49 }
 0x916   : > { %v16876_v55 = vrot.slane %v16244_v29, %v25468_v28 }
 0x918   : > { %v16277_v58 = vpop.permute.xlu1 %16276 }
 0x919   : > { %v16930_v15 = vrot.slane %v16277_v58, %v25456_v21  ;;  %v16472_v21 = vsel %vm16388_vm14, %v16471_v48, %v16467_v52  ;;  %v25506_v58 = vld [vmem:[#allocation83_spill] sm:$0xff] }
 0x91a   : > { %v16401_v19 = vrot.slane %v25506_v58, %v25468_v28  ;;  %v16477_v61 = vsel %vm16395_vm15, %v16476_v54, %v16472_v21 }
 0x91b   : > { %v16931_v47 = vsel %vm16367_vm11, %v16930_v15, %v16926_v27 }
 0x91c   : > { %v16286_v41 = vpop.permute.xlu1 %16285  ;;  %v16936_v43 = vsel %vm16374_vm12, %v16935_v44, %v16931_v47  ;;  %v16403_v7 = vsel %vm16402_vm0, %v16401_v19, %v16396_v39 }
 0x91d   : > { %v16945_v22 = vrot.slane %v16286_v41, %v25465_v34  ;;  %v16877_v34 = vsel %vm16402_vm0, %v16876_v55, %v16872_v4 }
 0x920   : > { %v16283_v24 = vpop.permute.xlu1 %16282 }
 0x921   : > { %v16940_v13 = vrot.slane %v16283_v24, %v25462_v18  ;;  %v16482_v18 = vsel %vm16402_vm0, %v16481_v35, %v16477_v61 }
 0x922   : > { %v16957_v12 = vcombine.low %v16403_v7, %v16482_v18 }
 0x923   : > { %v16941_v56 = vsel %vm16381_vm13, %v16940_v13, %v16936_v43 }
 0x924   : > { %v16289_v11 = vpop.permute.xlu1 %16288  ;;  %v16946_v40 = vsel %vm16388_vm14, %v16945_v22, %v16941_v56  ;;  %v16967_v31 = vrot.slane %v16957_v12, %v20302_v57 }
 0x925   : > { %v16950_v20 = vrot.slane %v16289_v11, %v25466_v51  ;;  %v16974_v51 = vrot.slane %v16958_v6, %v20302_v57 }
 0x927   : > { %v16951_v45 = vsel %vm16395_vm15, %v16950_v20, %v16946_v40  ;;  %v16989_v10 = vcombine.low %v16967_v31, %v16974_v51 }
 0x928   : > { %v16292_v46 = vpop.permute.xlu1 %16291 }
 0x929   : > { %v16955_v48 = vrot.slane %v16292_v46, %v25468_v28  ;;  %v16981_v28 = vrot.slane %v16959_v5, %v20302_v57  ;;  %v16997_v26 = vrot.slane %v16989_v10, %v20302_v57 }
 0x92b   : > { %v16956_v41 = vsel %vm16402_vm0, %v16955_v48, %v16951_v45 }
 0x92c   : > { %v16960_v38 = vcombine.low %v16877_v34, %v16956_v41 }
 0x92e   : > { %v16988_v9 = vrot.slane %v16960_v38, %v20302_v57 }
 0x930   : > { %v16990_v8 = vcombine.low %v16981_v28, %v16988_v9 }
 0x932   : > { %v17004_v6 = vrot.slane %v16990_v8, %v20302_v57 }
 0x934   : > { %v17005_v53 = vcombine.low %v16997_v26, %v17004_v6 }
 0x936   : > { %17007 = vst [vmem:[%s432_s13] sm:$0xff] %v17005_v53 }
 0x937 PF: > { %s23_s19 = sadd.s32 1, %s18504_s19  }
 0x938   : > { %p20_p5 = scmp.ge.s32.totalorder %s23_s19, 4  }
 0x93a   :  { %22 = sbr.rel (!%p20_p5) target bundleno = 3 (0x3), region = 100 }

</bundles_post_ra>
